<compile_context>
chip_gen: v7x
topology: tpu7x:2x2x1
jax: 0.10.0
libtpu: 0.0.40
codegen_flags: <defaults>
</compile_context>

<pallas_src>
import numpy as np
import jax
import jax.numpy as jnp
from jax.experimental import pallas as pl
from jax.experimental.pallas import tpu as pltpu

BN_EPS = 1e-5
PAD = 16  # scratch halo: >= max |dy*W + dx| over all 3x3 layers (15 for W=14)


def _vmem():
    return pl.BlockSpec(memory_space=pltpu.MemorySpace.VMEM)


# ----------------------------- in-kernel helpers ----------------------------

def _bn_relu(y, g_ref, b_ref):
    """Training-mode BatchNorm (batch stats over N*H*W) + ReLU. y: (C, M) f32."""
    mean = jnp.mean(y, axis=1, keepdims=True)
    var = jnp.mean(jnp.square(y - mean), axis=1, keepdims=True)
    yn = (y - mean) * jax.lax.rsqrt(var + BN_EPS)
    return jnp.maximum(yn * g_ref[...] + b_ref[...], 0.0)


def _conv3x3(xpad_ref, x, w_ref, valid_ref, width, m):
    """3x3 'same' conv in flat transposed layout (in-kernel im2col).

    x:         (Cin, M) activation, M = N*H*W in flat (n, y, x) order.
    w_ref:     (9, Cout, Cin) ref, taps in (dy, dx) row-major order.
    valid_ref: (9, M) f32 ref, 1 where the tap stays inside its image.
    xpad_ref:  (32, >= M + 2*PAD) bf16 VMEM scratch (reused by every layer).

    Each tap is a shifted static slice of the scratch slab, one small MXU
    matmul per tap, masked post-matmul in f32 (implements zero padding).
    """
    cin = x.shape[0]
    cout = w_ref.shape[1]
    span = m + 2 * PAD
    xpad_ref[0:cin, 0:span] = jnp.zeros((cin, span), jnp.bfloat16)
    xpad_ref[0:cin, PAD:PAD + m] = x.astype(jnp.bfloat16)
    acc = jnp.zeros((cout, m), jnp.float32)
    tap = 0
    for dy in (-1, 0, 1):
        for dx in (-1, 0, 1):
            start = PAD + dy * width + dx
            xs = xpad_ref[0:cin, start:start + m]               # (Cin, M) bf16
            part = jnp.dot(w_ref[tap], xs,
                           preferred_element_type=jnp.float32)  # (Cout, M) f32
            acc = acc + part * valid_ref[tap:tap + 1, :]
            tap += 1
    return acc


def _maxpool_sel(y, pool_ref):
    """2x2 / stride-2 maxpool via four 0/1 selection matmuls.

    y: (C, Min) f32, pool_ref: (4, Min, Mout) bf16 constant selectors."""
    yb = y.astype(jnp.bfloat16)
    c0 = jnp.dot(yb, pool_ref[0], preferred_element_type=jnp.float32)
    c1 = jnp.dot(yb, pool_ref[1], preferred_element_type=jnp.float32)
    c2 = jnp.dot(yb, pool_ref[2], preferred_element_type=jnp.float32)
    c3 = jnp.dot(yb, pool_ref[3], preferred_element_type=jnp.float32)
    return jnp.maximum(jnp.maximum(c0, c1), jnp.maximum(c2, c3))


# ------------------------------ Pallas kernels ------------------------------

def conv1_bn_relu_kernel(pT_ref, w_ref, g_ref, b_ref, o_ref):
    # pT: (49, N*784) bf16 im2col patches (transposed, lane-dense),
    # w:  (32, 49) bf16.  conv1 has bias=False in the reference module.
    y = jnp.dot(w_ref[...], pT_ref[...], preferred_element_type=jnp.float32)
    o_ref[...] = _bn_relu(y, g_ref, b_ref).astype(o_ref.dtype)


def tail_kernel(xp_ref,
                w_a_ref, g_a_ref, b_a_ref,      # conv1x1   32 -> 28 (+BN+ReLU)
                w_b_ref, g_b_ref, b_b_ref,      # conv2     28 -> 16 (+BN+ReLU)
                w_c_ref, g_c_ref, b_c_ref,      # conv3     16 ->  8 (+BN+ReLU)
                w_d_ref, g_d_ref, b_d_ref,      # conv1x1_2  8 ->  4 (+BN+ReLU)
                w_e_ref, bias_e_ref,            # conv4      4 ->  8 (+bias+ReLU)
                w_f_ref, bias_f_ref,            # conv5 1x1  8 -> 10 (+bias)
                v14_ref, v7_ref, v3_ref,        # conv tap validity masks
                p14_ref, p7_ref,                # maxpool selection matrices
                avg_ref,                        # (N*9, N) adaptive-avg matrix
                o_ref,                          # (10, N) f32 log-probs (transposed)
                xpad_ref):                      # VMEM scratch (32, N*196 + 2*PAD)
    n14 = v14_ref.shape[1]      # N*14*14
    n7 = v7_ref.shape[1]        # N*7*7
    n3 = v3_ref.shape[1]        # N*3*3

    x = xp_ref[...]                                                   # (32, N*196) bf16
    y = _bn_relu(_conv3x3(xpad_ref, x, w_a_ref, v14_ref, 14, n14), g_a_ref, b_a_ref)
    y = _bn_relu(_conv3x3(xpad_ref, y, w_b_ref, v14_ref, 14, n14), g_b_ref, b_b_ref)
    y = _maxpool_sel(y, p14_ref)                                      # (16, N*49)
    y = _bn_relu(_conv3x3(xpad_ref, y, w_c_ref, v7_ref, 7, n7), g_c_ref, b_c_ref)
    y = _maxpool_sel(y, p7_ref)                                       # (8, N*9)
    y = _bn_relu(_conv3x3(xpad_ref, y, w_d_ref, v3_ref, 3, n3), g_d_ref, b_d_ref)
    y = _conv3x3(xpad_ref, y, w_e_ref, v3_ref, 3, n3) + bias_e_ref[...]
    y = jnp.maximum(y, 0.0)                                           # (8, N*9)

    # conv5 (1x1) and AdaptiveAvgPool2d(1) commute: average spatially first.
    xa = jnp.dot(y, avg_ref[...], preferred_element_type=jnp.float32)  # (8, N)
    logits = jnp.dot(w_f_ref[...], xa,
                     preferred_element_type=jnp.float32) + bias_f_ref[...]  # (10, N)
    m = jnp.max(logits, axis=0, keepdims=True)
    lse = m + jnp.log(jnp.sum(jnp.exp(logits - m), axis=0, keepdims=True))
    o_ref[...] = logits - lse


# ------------------------- trace-time constant builders ---------------------

def _conv_tap_valid(n, h, w):
    """(9, n*h*w) f32: 1 where tap (dy, dx) stays inside the h x w image."""
    ys = np.tile(np.repeat(np.arange(h), w), n)
    xs = np.tile(np.tile(np.arange(w), h), n)
    rows = []
    for dy in (-1, 0, 1):
        for dx in (-1, 0, 1):
            ok = (ys + dy >= 0) & (ys + dy < h) & (xs + dx >= 0) & (xs + dx < w)
            rows.append(ok)
    return jnp.asarray(np.stack(rows).astype(np.float32))


def _pool_select(n, h, w):
    """(4, n*h*w, n*(h//2)*(w//2)) bf16 0/1 corner-selection matrices."""
    ho, wo = h // 2, w // 2
    sel = np.zeros((4, n * h * w, n * ho * wo), np.float32)
    tap = 0
    for dy in (0, 1):
        for dx in (0, 1):
            for b in range(n):
                for yo in range(ho):
                    for xo in range(wo):
                        i = (b * ho + yo) * wo + xo
                        j = (b * h + 2 * yo + dy) * w + (2 * xo + dx)
                        sel[tap, j, i] = 1.0
            tap += 1
    return jnp.asarray(sel, dtype=jnp.bfloat16)


def _avg_select(n, hw):
    """(n*hw, n) f32 spatial-average matrix (AdaptiveAvgPool2d(1))."""
    a = np.zeros((n * hw, n), np.float32)
    for b in range(n):
        a[b * hw:(b + 1) * hw, b] = 1.0 / hw
    return jnp.asarray(a)


# ------------------------------- parameters ---------------------------------

def init_params(key):
    ks = jax.random.split(key, 10)

    def conv_taps(k_, cout, cin, ksz, dtype=jnp.bfloat16):
        fan_in = cin * ksz * ksz
        lim = 1.0 / np.sqrt(fan_in)
        w = jax.random.uniform(k_, (ksz * ksz, cout, cin), jnp.float32, -lim, lim)
        return w.astype(dtype)

    def bn(cout):
        return jnp.ones((cout, 1), jnp.float32), jnp.zeros((cout, 1), jnp.float32)

    p = {}
    # conv1: 7x7, 1 -> 32, bias=False (per the PyTorch module).
    w1 = conv_taps(ks[0], 32, 1, 7, dtype=jnp.float32)                 # (49, 32, 1)
    p["w1T"] = jnp.transpose(w1[:, :, 0]).astype(jnp.bfloat16)         # (32, 49)
    p["g1"], p["be1"] = bn(32)

    # 3x3 convs feeding training-mode BatchNorm: conv bias omitted on purpose,
    # the batch-mean subtraction cancels it exactly (zero numerical change).
    p["w_a"] = conv_taps(ks[1], 28, 32, 3); p["g_a"], p["b_a"] = bn(28)  # conv1x1
    p["w_b"] = conv_taps(ks[2], 16, 28, 3); p["g_b"], p["b_b"] = bn(16)  # conv2
    p["w_c"] = conv_taps(ks[3], 8, 16, 3);  p["g_c"], p["b_c"] = bn(8)   # conv3
    p["w_d"] = conv_taps(ks[4], 4, 8, 3);   p["g_d"], p["b_d"] = bn(4)   # conv1x1_2

    # conv4: 3x3, 4 -> 8, bias + ReLU (no BN).
    p["w_e"] = conv_taps(ks[5], 8, 4, 3)
    p["bias_e"] = jax.random.uniform(ks[6], (8, 1), jnp.float32, -1.0 / 6.0, 1.0 / 6.0)

    # conv5: 1x1, 8 -> 10 (+ bias); kept f32, it is tiny.
    lim = 1.0 / np.sqrt(8.0)
    p["w_f"] = jax.random.uniform(ks[7], (10, 8), jnp.float32, -lim, lim)
    p["bias_f"] = jax.random.uniform(ks[8], (10, 1), jnp.float32, -lim, lim)
    return p


# --------------------------------- forward ----------------------------------

def s6_model_forward(x_nchw, params):
    n = x_nchw.shape[0]
    h = w = 28
    m1 = n * h * w

    # conv1 im2col, transposed / lane-dense: (49, N*784).  1 input channel ->
    # this is ~150 KB of cheap XLA glue; in-kernel gather would cost more here.
    img = x_nchw[:, 0, :, :].astype(jnp.float32)            # (N, 28, 28)
    xp = jnp.pad(img, ((0, 0), (3, 3), (3, 3)))
    taps = [xp[:, dy:dy + h, dx:dx + w].reshape(m1)
            for dy in range(7) for dx in range(7)]
    patches_t = jnp.stack(taps, axis=0).astype(jnp.bfloat16)  # (49, N*784)

    # ---- kernel A: conv1 + BN + ReLU --------------------------------------
    y1 = pl.pallas_call(
        conv1_bn_relu_kernel,
        out_shape=jax.ShapeDtypeStruct((32, m1), jnp.bfloat16),
        in_specs=[_vmem()] * 4,
        out_specs=_vmem(),
    )(patches_t, params["w1T"], params["g1"], params["be1"])

    # ---- 2x2 maxpool 28 -> 14 (tiny XLA glue, fused by XLA) ----------------
    y1 = y1.reshape(32, n, h, w)
    pooled = jnp.maximum(
        jnp.maximum(y1[:, :, 0::2, 0::2], y1[:, :, 0::2, 1::2]),
        jnp.maximum(y1[:, :, 1::2, 0::2], y1[:, :, 1::2, 1::2]))
    pooled = pooled.reshape(32, n * 14 * 14)                 # (32, N*196) bf16

    # ---- kernel B: everything else, fully fused ----------------------------
    v14 = _conv_tap_valid(n, 14, 14)
    v7 = _conv_tap_valid(n, 7, 7)
    v3 = _conv_tap_valid(n, 3, 3)
    sel14 = _pool_select(n, 14, 14)
    sel7 = _pool_select(n, 7, 7)
    avg9 = _avg_select(n, 9)

    out_t = pl.pallas_call(
        tail_kernel,
        out_shape=jax.ShapeDtypeStruct((10, n), jnp.float32),
        in_specs=[_vmem()] * 23,
        out_specs=_vmem(),
        scratch_shapes=[pltpu.VMEM((32, n * 14 * 14 + 2 * PAD), jnp.bfloat16)],
    )(pooled,
      params["w_a"], params["g_a"], params["b_a"],
      params["w_b"], params["g_b"], params["b_b"],
      params["w_c"], params["g_c"], params["b_c"],
      params["w_d"], params["g_d"], params["b_d"],
      params["w_e"], params["bias_e"],
      params["w_f"], params["bias_f"],
      v14, v7, v3, sel14, sel7, avg9)

    return jnp.transpose(out_t)                              # (N, 10)


# ----------------------------------- main ------------------------------------

if __name__ == "__main__":
    key = jax.random.PRNGKey(0)
    k_x, k_p = jax.random.split(key)
    x = jax.random.normal(k_x, (2, 1, 28, 28), jnp.float32)   # MNIST-shaped input
    params = init_params(k_p)

    fwd = jax.jit(s6_model_forward)
    out = jax.block_until_ready(fwd(x, params))

    assert out.shape == (2, 10), out.shape
    assert bool(jnp.all(jnp.isfinite(out)))
    # log_softmax rows must exp-sum to ~1
    assert bool(jnp.all(jnp.abs(jnp.sum(jnp.exp(out), axis=1) - 1.0) < 1e-4))
    print("KERNEL_OK")
</pallas_src>

<mosaic_0001>
module attributes {stable_mosaic.version = 11 : i64} {
  func.func @conv1_bn_relu_kernel(%arg0: memref<49x1568xbf16, #tpu.memory_space<vmem>>, %arg1: memref<32x49xbf16, #tpu.memory_space<vmem>>, %arg2: memref<32x1xf32, #tpu.memory_space<vmem>>, %arg3: memref<32x1xf32, #tpu.memory_space<vmem>>, %arg4: memref<32x1568xbf16, #tpu.memory_space<vmem>>) attributes {dimension_semantics = [], scalar_prefetch = 0 : i64, scratch_operands = 0 : i64, tpu.core_type = #tpu.core_type<tc>} {
    %c0 = arith.constant 0 : index
    %c0_0 = arith.constant 0 : index
    %0 = vector.load %arg1[%c0, %c0_0] : memref<32x49xbf16, #tpu.memory_space<vmem>>, vector<32x49xbf16>
    %c0_1 = arith.constant 0 : index
    %c0_2 = arith.constant 0 : index
    %1 = vector.load %arg0[%c0_1, %c0_2] : memref<49x1568xbf16, #tpu.memory_space<vmem>>, vector<49x1568xbf16>
    %cst = arith.constant dense<0.000000e+00> : vector<32x1568xf32>
    %2 = tpu.matmul %0, %1, %cst {dimension_numbers = #tpu.dot_dimension_numbers<[1], [0], [0], [1], [0, 0, 1, 1], [], []>} : vector<32x49xbf16>, vector<49x1568xbf16>, vector<32x1568xf32> -> vector<32x1568xf32>
    %cst_3 = arith.constant dense<0.000000e+00> : vector<32xf32>
    %3 = vector.multi_reduction <add>, %2, %cst_3 [1] : vector<32x1568xf32> to vector<32xf32>
    %4 = vector.shape_cast %3 : vector<32xf32> to vector<32x1xf32>
    %cst_4 = arith.constant 1.568000e+03 : f32
    %5 = vector.broadcast %cst_4 : f32 to vector<32x1xf32>
    %6 = arith.divf %4, %5 : vector<32x1xf32>
    %7 = vector.broadcast %6 : vector<32x1xf32> to vector<32x1568xf32>
    %8 = arith.subf %2, %7 : vector<32x1568xf32>
    %9 = arith.mulf %8, %8 : vector<32x1568xf32>
    %cst_5 = arith.constant dense<0.000000e+00> : vector<32xf32>
    %10 = vector.multi_reduction <add>, %9, %cst_5 [1] : vector<32x1568xf32> to vector<32xf32>
    %11 = vector.shape_cast %10 : vector<32xf32> to vector<32x1xf32>
    %cst_6 = arith.constant 1.568000e+03 : f32
    %12 = vector.broadcast %cst_6 : f32 to vector<32x1xf32>
    %13 = arith.divf %11, %12 : vector<32x1xf32>
    %14 = vector.broadcast %6 : vector<32x1xf32> to vector<32x1568xf32>
    %15 = arith.subf %2, %14 : vector<32x1568xf32>
    %cst_7 = arith.constant 9.99999974E-6 : f32
    %16 = vector.broadcast %cst_7 : f32 to vector<32x1xf32>
    %17 = arith.addf %13, %16 : vector<32x1xf32>
    %18 = math.rsqrt %17 : vector<32x1xf32>
    %19 = vector.broadcast %18 : vector<32x1xf32> to vector<32x1568xf32>
    %20 = arith.mulf %15, %19 : vector<32x1568xf32>
    %c0_8 = arith.constant 0 : index
    %c0_9 = arith.constant 0 : index
    %21 = vector.load %arg2[%c0_8, %c0_9] : memref<32x1xf32, #tpu.memory_space<vmem>>, vector<32x1xf32>
    %22 = vector.broadcast %21 : vector<32x1xf32> to vector<32x1568xf32>
    %23 = arith.mulf %20, %22 : vector<32x1568xf32>
    %c0_10 = arith.constant 0 : index
    %c0_11 = arith.constant 0 : index
    %24 = vector.load %arg3[%c0_10, %c0_11] : memref<32x1xf32, #tpu.memory_space<vmem>>, vector<32x1xf32>
    %25 = vector.broadcast %24 : vector<32x1xf32> to vector<32x1568xf32>
    %26 = arith.addf %23, %25 : vector<32x1568xf32>
    %cst_12 = arith.constant 0.000000e+00 : f32
    %27 = vector.broadcast %cst_12 : f32 to vector<32x1568xf32>
    %28 = arith.maximumf %26, %27 : vector<32x1568xf32>
    %29 = arith.truncf %28 : vector<32x1568xf32> to vector<32x1568xbf16>
    %c0_13 = arith.constant 0 : index
    %c0_14 = arith.constant 0 : index
    %30 = vector.load %arg4[%c0_13, %c0_14] : memref<32x1568xbf16, #tpu.memory_space<vmem>>, vector<32x1568xbf16>
    tpu.vector_store %arg4[%c0_13, %c0_14], %29 {strides = array<i32>} : memref<32x1568xbf16, #tpu.memory_space<vmem>>, vector<32x1568xbf16>,
    return
  }
}

module attributes {stable_mosaic.version = 11 : i64} {
  func.func @tail_kernel(%arg0: memref<32x392xbf16, #tpu.memory_space<vmem>>, %arg1: memref<9x28x32xbf16, #tpu.memory_space<vmem>>, %arg2: memref<28x1xf32, #tpu.memory_space<vmem>>, %arg3: memref<28x1xf32, #tpu.memory_space<vmem>>, %arg4: memref<9x16x28xbf16, #tpu.memory_space<vmem>>, %arg5: memref<16x1xf32, #tpu.memory_space<vmem>>, %arg6: memref<16x1xf32, #tpu.memory_space<vmem>>, %arg7: memref<9x8x16xbf16, #tpu.memory_space<vmem>>, %arg8: memref<8x1xf32, #tpu.memory_space<vmem>>, %arg9: memref<8x1xf32, #tpu.memory_space<vmem>>, %arg10: memref<9x4x8xbf16, #tpu.memory_space<vmem>>, %arg11: memref<4x1xf32, #tpu.memory_space<vmem>>, %arg12: memref<4x1xf32, #tpu.memory_space<vmem>>, %arg13: memref<9x8x4xbf16, #tpu.memory_space<vmem>>, %arg14: memref<8x1xf32, #tpu.memory_space<vmem>>, %arg15: memref<10x8xf32, #tpu.memory_space<vmem>>, %arg16: memref<10x1xf32, #tpu.memory_space<vmem>>, %arg17: memref<9x392xf32, #tpu.memory_space<vmem>>, %arg18: memref<9x98xf32, #tpu.memory_space<vmem>>, %arg19: memref<9x18xf32, #tpu.memory_space<vmem>>, %arg20: memref<4x392x98xbf16, #tpu.memory_space<vmem>>, %arg21: memref<4x98x18xbf16, #tpu.memory_space<vmem>>, %arg22: memref<18x2xf32, #tpu.memory_space<vmem>>, %arg23: memref<10x2xf32, #tpu.memory_space<vmem>>, %arg24: memref<32x424xbf16, #tpu.memory_space<vmem>>) attributes {dimension_semantics = [], scalar_prefetch = 0 : i64, scratch_operands = 1 : i64, tpu.core_type = #tpu.core_type<tc>} {
    %c0 = arith.constant 0 : index
    %c0_0 = arith.constant 0 : index
    %0 = vector.load %arg0[%c0, %c0_0] : memref<32x392xbf16, #tpu.memory_space<vmem>>, vector<32x392xbf16>
    %cst = arith.constant 0.000000e+00 : bf16
    %1 = vector.broadcast %cst : bf16 to vector<32x424xbf16>
    %c0_1 = arith.constant 0 : index
    %c0_2 = arith.constant 0 : index
    %2 = vector.load %arg24[%c0_1, %c0_2] : memref<32x424xbf16, #tpu.memory_space<vmem>>, vector<32x424xbf16>
    tpu.vector_store %arg24[%c0_1, %c0_2], %1 {strides = array<i32>} : memref<32x424xbf16, #tpu.memory_space<vmem>>, vector<32x424xbf16>,
    %c0_3 = arith.constant 0 : index
    %c16 = arith.constant 16 : index
    %3 = vector.load %arg24[%c0_3, %c16] : memref<32x424xbf16, #tpu.memory_space<vmem>>, vector<32x392xbf16>
    tpu.vector_store %arg24[%c0_3, %c16], %0 {strides = array<i32>} : memref<32x424xbf16, #tpu.memory_space<vmem>>, vector<32x392xbf16>,
    %cst_4 = arith.constant 0.000000e+00 : f32
    %4 = vector.broadcast %cst_4 : f32 to vector<28x392xf32>
    %c0_5 = arith.constant 0 : index
    %c1 = arith.constant 1 : index
    %5 = vector.load %arg24[%c0_5, %c1] : memref<32x424xbf16, #tpu.memory_space<vmem>>, vector<32x392xbf16>
    %c0_6 = arith.constant 0 : index
    %c0_7 = arith.constant 0 : index
    %c0_8 = arith.constant 0 : index
    %6 = vector.load %arg1[%c0_6, %c0_7, %c0_8] : memref<9x28x32xbf16, #tpu.memory_space<vmem>>, vector<1x28x32xbf16>
    %7 = vector.shape_cast %6 : vector<1x28x32xbf16> to vector<28x32xbf16>
    %cst_9 = arith.constant dense<0.000000e+00> : vector<28x392xf32>
    %8 = tpu.matmul %7, %5, %cst_9 {dimension_numbers = #tpu.dot_dimension_numbers<[1], [0], [0], [1], [0, 0, 1, 1], [], []>} : vector<28x32xbf16>, vector<32x392xbf16>, vector<28x392xf32> -> vector<28x392xf32>
    %c0_10 = arith.constant 0 : index
    %c0_11 = arith.constant 0 : index
    %9 = vector.load %arg17[%c0_10, %c0_11] : memref<9x392xf32, #tpu.memory_space<vmem>>, vector<1x392xf32>
    %10 = vector.broadcast %9 : vector<1x392xf32> to vector<28x392xf32>
    %11 = arith.mulf %8, %10 : vector<28x392xf32>
    %12 = arith.addf %4, %11 : vector<28x392xf32>
    %c0_12 = arith.constant 0 : index
    %c2 = arith.constant 2 : index
    %13 = vector.load %arg24[%c0_12, %c2] : memref<32x424xbf16, #tpu.memory_space<vmem>>, vector<32x392xbf16>
    %c1_13 = arith.constant 1 : index
    %c0_14 = arith.constant 0 : index
    %c0_15 = arith.constant 0 : index
    %14 = vector.load %arg1[%c1_13, %c0_14, %c0_15] : memref<9x28x32xbf16, #tpu.memory_space<vmem>>, vector<1x28x32xbf16>
    %15 = vector.shape_cast %14 : vector<1x28x32xbf16> to vector<28x32xbf16>
    %cst_16 = arith.constant dense<0.000000e+00> : vector<28x392xf32>
    %16 = tpu.matmul %15, %13, %cst_16 {dimension_numbers = #tpu.dot_dimension_numbers<[1], [0], [0], [1], [0, 0, 1, 1], [], []>} : vector<28x32xbf16>, vector<32x392xbf16>, vector<28x392xf32> -> vector<28x392xf32>
    %c1_17 = arith.constant 1 : index
    %c0_18 = arith.constant 0 : index
    %17 = vector.load %arg17[%c1_17, %c0_18] : memref<9x392xf32, #tpu.memory_space<vmem>>, vector<1x392xf32>
    %18 = vector.broadcast %17 : vector<1x392xf32> to vector<28x392xf32>
    %19 = arith.mulf %16, %18 : vector<28x392xf32>
    %20 = arith.addf %12, %19 : vector<28x392xf32>
    %c0_19 = arith.constant 0 : index
    %c3 = arith.constant 3 : index
    %21 = vector.load %arg24[%c0_19, %c3] : memref<32x424xbf16, #tpu.memory_space<vmem>>, vector<32x392xbf16>
    %c2_20 = arith.constant 2 : index
    %c0_21 = arith.constant 0 : index
    %c0_22 = arith.constant 0 : index
    %22 = vector.load %arg1[%c2_20, %c0_21, %c0_22] : memref<9x28x32xbf16, #tpu.memory_space<vmem>>, vector<1x28x32xbf16>
    %23 = vector.shape_cast %22 : vector<1x28x32xbf16> to vector<28x32xbf16>
    %cst_23 = arith.constant dense<0.000000e+00> : vector<28x392xf32>
    %24 = tpu.matmul %23, %21, %cst_23 {dimension_numbers = #tpu.dot_dimension_numbers<[1], [0], [0], [1], [0, 0, 1, 1], [], []>} : vector<28x32xbf16>, vector<32x392xbf16>, vector<28x392xf32> -> vector<28x392xf32>
    %c2_24 = arith.constant 2 : index
    %c0_25 = arith.constant 0 : index
    %25 = vector.load %arg17[%c2_24, %c0_25] : memref<9x392xf32, #tpu.memory_space<vmem>>, vector<1x392xf32>
    %26 = vector.broadcast %25 : vector<1x392xf32> to vector<28x392xf32>
    %27 = arith.mulf %24, %26 : vector<28x392xf32>
    %28 = arith.addf %20, %27 : vector<28x392xf32>
    %c0_26 = arith.constant 0 : index
    %c15 = arith.constant 15 : index
    %29 = vector.load %arg24[%c0_26, %c15] : memref<32x424xbf16, #tpu.memory_space<vmem>>, vector<32x392xbf16>
    %c3_27 = arith.constant 3 : index
    %c0_28 = arith.constant 0 : index
    %c0_29 = arith.constant 0 : index
    %30 = vector.load %arg1[%c3_27, %c0_28, %c0_29] : memref<9x28x32xbf16, #tpu.memory_space<vmem>>, vector<1x28x32xbf16>
    %31 = vector.shape_cast %30 : vector<1x28x32xbf16> to vector<28x32xbf16>
    %cst_30 = arith.constant dense<0.000000e+00> : vector<28x392xf32>
    %32 = tpu.matmul %31, %29, %cst_30 {dimension_numbers = #tpu.dot_dimension_numbers<[1], [0], [0], [1], [0, 0, 1, 1], [], []>} : vector<28x32xbf16>, vector<32x392xbf16>, vector<28x392xf32> -> vector<28x392xf32>
    %c3_31 = arith.constant 3 : index
    %c0_32 = arith.constant 0 : index
    %33 = vector.load %arg17[%c3_31, %c0_32] : memref<9x392xf32, #tpu.memory_space<vmem>>, vector<1x392xf32>
    %34 = vector.broadcast %33 : vector<1x392xf32> to vector<28x392xf32>
    %35 = arith.mulf %32, %34 : vector<28x392xf32>
    %36 = arith.addf %28, %35 : vector<28x392xf32>
    %c0_33 = arith.constant 0 : index
    %c16_34 = arith.constant 16 : index
    %37 = vector.load %arg24[%c0_33, %c16_34] : memref<32x424xbf16, #tpu.memory_space<vmem>>, vector<32x392xbf16>
    %c4 = arith.constant 4 : index
    %c0_35 = arith.constant 0 : index
    %c0_36 = arith.constant 0 : index
    %38 = vector.load %arg1[%c4, %c0_35, %c0_36] : memref<9x28x32xbf16, #tpu.memory_space<vmem>>, vector<1x28x32xbf16>
    %39 = vector.shape_cast %38 : vector<1x28x32xbf16> to vector<28x32xbf16>
    %cst_37 = arith.constant dense<0.000000e+00> : vector<28x392xf32>
    %40 = tpu.matmul %39, %37, %cst_37 {dimension_numbers = #tpu.dot_dimension_numbers<[1], [0], [0], [1], [0, 0, 1, 1], [], []>} : vector<28x32xbf16>, vector<32x392xbf16>, vector<28x392xf32> -> vector<28x392xf32>
    %c4_38 = arith.constant 4 : index
    %c0_39 = arith.constant 0 : index
    %41 = vector.load %arg17[%c4_38, %c0_39] : memref<9x392xf32, #tpu.memory_space<vmem>>, vector<1x392xf32>
    %42 = vector.broadcast %41 : vector<1x392xf32> to vector<28x392xf32>
    %43 = arith.mulf %40, %42 : vector<28x392xf32>
    %44 = arith.addf %36, %43 : vector<28x392xf32>
    %c0_40 = arith.constant 0 : index
    %c17 = arith.constant 17 : index
    %45 = vector.load %arg24[%c0_40, %c17] : memref<32x424xbf16, #tpu.memory_space<vmem>>, vector<32x392xbf16>
    %c5 = arith.constant 5 : index
    %c0_41 = arith.constant 0 : index
    %c0_42 = arith.constant 0 : index
    %46 = vector.load %arg1[%c5, %c0_41, %c0_42] : memref<9x28x32xbf16, #tpu.memory_space<vmem>>, vector<1x28x32xbf16>
    %47 = vector.shape_cast %46 : vector<1x28x32xbf16> to vector<28x32xbf16>
    %cst_43 = arith.constant dense<0.000000e+00> : vector<28x392xf32>
    %48 = tpu.matmul %47, %45, %cst_43 {dimension_numbers = #tpu.dot_dimension_numbers<[1], [0], [0], [1], [0, 0, 1, 1], [], []>} : vector<28x32xbf16>, vector<32x392xbf16>, vector<28x392xf32> -> vector<28x392xf32>
    %c5_44 = arith.constant 5 : index
    %c0_45 = arith.constant 0 : index
    %49 = vector.load %arg17[%c5_44, %c0_45] : memref<9x392xf32, #tpu.memory_space<vmem>>, vector<1x392xf32>
    %50 = vector.broadcast %49 : vector<1x392xf32> to vector<28x392xf32>
    %51 = arith.mulf %48, %50 : vector<28x392xf32>
    %52 = arith.addf %44, %51 : vector<28x392xf32>
    %c0_46 = arith.constant 0 : index
    %c29 = arith.constant 29 : index
    %53 = vector.load %arg24[%c0_46, %c29] : memref<32x424xbf16, #tpu.memory_space<vmem>>, vector<32x392xbf16>
    %c6 = arith.constant 6 : index
    %c0_47 = arith.constant 0 : index
    %c0_48 = arith.constant 0 : index
    %54 = vector.load %arg1[%c6, %c0_47, %c0_48] : memref<9x28x32xbf16, #tpu.memory_space<vmem>>, vector<1x28x32xbf16>
    %55 = vector.shape_cast %54 : vector<1x28x32xbf16> to vector<28x32xbf16>
    %cst_49 = arith.constant dense<0.000000e+00> : vector<28x392xf32>
    %56 = tpu.matmul %55, %53, %cst_49 {dimension_numbers = #tpu.dot_dimension_numbers<[1], [0], [0], [1], [0, 0, 1, 1], [], []>} : vector<28x32xbf16>, vector<32x392xbf16>, vector<28x392xf32> -> vector<28x392xf32>
    %c6_50 = arith.constant 6 : index
    %c0_51 = arith.constant 0 : index
    %57 = vector.load %arg17[%c6_50, %c0_51] : memref<9x392xf32, #tpu.memory_space<vmem>>, vector<1x392xf32>
    %58 = vector.broadcast %57 : vector<1x392xf32> to vector<28x392xf32>
    %59 = arith.mulf %56, %58 : vector<28x392xf32>
    %60 = arith.addf %52, %59 : vector<28x392xf32>
    %c0_52 = arith.constant 0 : index
    %c30 = arith.constant 30 : index
    %61 = vector.load %arg24[%c0_52, %c30] : memref<32x424xbf16, #tpu.memory_space<vmem>>, vector<32x392xbf16>
    %c7 = arith.constant 7 : index
    %c0_53 = arith.constant 0 : index
    %c0_54 = arith.constant 0 : index
    %62 = vector.load %arg1[%c7, %c0_53, %c0_54] : memref<9x28x32xbf16, #tpu.memory_space<vmem>>, vector<1x28x32xbf16>
    %63 = vector.shape_cast %62 : vector<1x28x32xbf16> to vector<28x32xbf16>
    %cst_55 = arith.constant dense<0.000000e+00> : vector<28x392xf32>
    %64 = tpu.matmul %63, %61, %cst_55 {dimension_numbers = #tpu.dot_dimension_numbers<[1], [0], [0], [1], [0, 0, 1, 1], [], []>} : vector<28x32xbf16>, vector<32x392xbf16>, vector<28x392xf32> -> vector<28x392xf32>
    %c7_56 = arith.constant 7 : index
    %c0_57 = arith.constant 0 : index
    %65 = vector.load %arg17[%c7_56, %c0_57] : memref<9x392xf32, #tpu.memory_space<vmem>>, vector<1x392xf32>
    %66 = vector.broadcast %65 : vector<1x392xf32> to vector<28x392xf32>
    %67 = arith.mulf %64, %66 : vector<28x392xf32>
    %68 = arith.addf %60, %67 : vector<28x392xf32>
    %c0_58 = arith.constant 0 : index
    %c31 = arith.constant 31 : index
    %69 = vector.load %arg24[%c0_58, %c31] : memref<32x424xbf16, #tpu.memory_space<vmem>>, vector<32x392xbf16>
    %c8 = arith.constant 8 : index
    %c0_59 = arith.constant 0 : index
    %c0_60 = arith.constant 0 : index
    %70 = vector.load %arg1[%c8, %c0_59, %c0_60] : memref<9x28x32xbf16, #tpu.memory_space<vmem>>, vector<1x28x32xbf16>
    %71 = vector.shape_cast %70 : vector<1x28x32xbf16> to vector<28x32xbf16>
    %cst_61 = arith.constant dense<0.000000e+00> : vector<28x392xf32>
    %72 = tpu.matmul %71, %69, %cst_61 {dimension_numbers = #tpu.dot_dimension_numbers<[1], [0], [0], [1], [0, 0, 1, 1], [], []>} : vector<28x32xbf16>, vector<32x392xbf16>, vector<28x392xf32> -> vector<28x392xf32>
    %c8_62 = arith.constant 8 : index
    %c0_63 = arith.constant 0 : index
    %73 = vector.load %arg17[%c8_62, %c0_63] : memref<9x392xf32, #tpu.memory_space<vmem>>, vector<1x392xf32>
    %74 = vector.broadcast %73 : vector<1x392xf32> to vector<28x392xf32>
    %75 = arith.mulf %72, %74 : vector<28x392xf32>
    %76 = arith.addf %68, %75 : vector<28x392xf32>
    %cst_64 = arith.constant dense<0.000000e+00> : vector<28xf32>
    %77 = vector.multi_reduction <add>, %76, %cst_64 [1] : vector<28x392xf32> to vector<28xf32>
    %78 = vector.shape_cast %77 : vector<28xf32> to vector<28x1xf32>
    %cst_65 = arith.constant 3.920000e+02 : f32
    %79 = vector.broadcast %cst_65 : f32 to vector<28x1xf32>
    %80 = arith.divf %78, %79 : vector<28x1xf32>
    %81 = vector.broadcast %80 : vector<28x1xf32> to vector<28x392xf32>
    %82 = arith.subf %76, %81 : vector<28x392xf32>
    %83 = arith.mulf %82, %82 : vector<28x392xf32>
    %cst_66 = arith.constant dense<0.000000e+00> : vector<28xf32>
    %84 = vector.multi_reduction <add>, %83, %cst_66 [1] : vector<28x392xf32> to vector<28xf32>
    %85 = vector.shape_cast %84 : vector<28xf32> to vector<28x1xf32>
    %cst_67 = arith.constant 3.920000e+02 : f32
    %86 = vector.broadcast %cst_67 : f32 to vector<28x1xf32>
    %87 = arith.divf %85, %86 : vector<28x1xf32>
    %88 = vector.broadcast %80 : vector<28x1xf32> to vector<28x392xf32>
    %89 = arith.subf %76, %88 : vector<28x392xf32>
    %cst_68 = arith.constant 9.99999974E-6 : f32
    %90 = vector.broadcast %cst_68 : f32 to vector<28x1xf32>
    %91 = arith.addf %87, %90 : vector<28x1xf32>
    %92 = math.rsqrt %91 : vector<28x1xf32>
    %93 = vector.broadcast %92 : vector<28x1xf32> to vector<28x392xf32>
    %94 = arith.mulf %89, %93 : vector<28x392xf32>
    %c0_69 = arith.constant 0 : index
    %c0_70 = arith.constant 0 : index
    %95 = vector.load %arg2[%c0_69, %c0_70] : memref<28x1xf32, #tpu.memory_space<vmem>>, vector<28x1xf32>
    %96 = vector.broadcast %95 : vector<28x1xf32> to vector<28x392xf32>
    %97 = arith.mulf %94, %96 : vector<28x392xf32>
    %c0_71 = arith.constant 0 : index
    %c0_72 = arith.constant 0 : index
    %98 = vector.load %arg3[%c0_71, %c0_72] : memref<28x1xf32, #tpu.memory_space<vmem>>, vector<28x1xf32>
    %99 = vector.broadcast %98 : vector<28x1xf32> to vector<28x392xf32>
    %100 = arith.addf %97, %99 : vector<28x392xf32>
    %cst_73 = arith.constant 0.000000e+00 : f32
    %101 = vector.broadcast %cst_73 : f32 to vector<28x392xf32>
    %102 = arith.maximumf %100, %101 : vector<28x392xf32>
    %cst_74 = arith.constant 0.000000e+00 : bf16
    %103 = vector.broadcast %cst_74 : bf16 to vector<28x424xbf16>
    %c0_75 = arith.constant 0 : index
    %c0_76 = arith.constant 0 : index
    %104 = vector.load %arg24[%c0_75, %c0_76] : memref<32x424xbf16, #tpu.memory_space<vmem>>, vector<28x424xbf16>
    tpu.vector_store %arg24[%c0_75, %c0_76], %103 {strides = array<i32>} : memref<32x424xbf16, #tpu.memory_space<vmem>>, vector<28x424xbf16>,
    %105 = arith.truncf %102 : vector<28x392xf32> to vector<28x392xbf16>
    %c0_77 = arith.constant 0 : index
    %c16_78 = arith.constant 16 : index
    %106 = vector.load %arg24[%c0_77, %c16_78] : memref<32x424xbf16, #tpu.memory_space<vmem>>, vector<28x392xbf16>
    tpu.vector_store %arg24[%c0_77, %c16_78], %105 {strides = array<i32>} : memref<32x424xbf16, #tpu.memory_space<vmem>>, vector<28x392xbf16>,
    %cst_79 = arith.constant 0.000000e+00 : f32
    %107 = vector.broadcast %cst_79 : f32 to vector<16x392xf32>
    %c0_80 = arith.constant 0 : index
    %c1_81 = arith.constant 1 : index
    %108 = vector.load %arg24[%c0_80, %c1_81] : memref<32x424xbf16, #tpu.memory_space<vmem>>, vector<28x392xbf16>
    %c0_82 = arith.constant 0 : index
    %c0_83 = arith.constant 0 : index
    %c0_84 = arith.constant 0 : index
    %109 = vector.load %arg4[%c0_82, %c0_83, %c0_84] : memref<9x16x28xbf16, #tpu.memory_space<vmem>>, vector<1x16x28xbf16>
    %110 = vector.shape_cast %109 : vector<1x16x28xbf16> to vector<16x28xbf16>
    %cst_85 = arith.constant dense<0.000000e+00> : vector<16x392xf32>
    %111 = tpu.matmul %110, %108, %cst_85 {dimension_numbers = #tpu.dot_dimension_numbers<[1], [0], [0], [1], [0, 0, 1, 1], [], []>} : vector<16x28xbf16>, vector<28x392xbf16>, vector<16x392xf32> -> vector<16x392xf32>
    %c0_86 = arith.constant 0 : index
    %c0_87 = arith.constant 0 : index
    %112 = vector.load %arg17[%c0_86, %c0_87] : memref<9x392xf32, #tpu.memory_space<vmem>>, vector<1x392xf32>
    %113 = vector.broadcast %112 : vector<1x392xf32> to vector<16x392xf32>
    %114 = arith.mulf %111, %113 : vector<16x392xf32>
    %115 = arith.addf %107, %114 : vector<16x392xf32>
    %c0_88 = arith.constant 0 : index
    %c2_89 = arith.constant 2 : index
    %116 = vector.load %arg24[%c0_88, %c2_89] : memref<32x424xbf16, #tpu.memory_space<vmem>>, vector<28x392xbf16>
    %c1_90 = arith.constant 1 : index
    %c0_91 = arith.constant 0 : index
    %c0_92 = arith.constant 0 : index
    %117 = vector.load %arg4[%c1_90, %c0_91, %c0_92] : memref<9x16x28xbf16, #tpu.memory_space<vmem>>, vector<1x16x28xbf16>
    %118 = vector.shape_cast %117 : vector<1x16x28xbf16> to vector<16x28xbf16>
    %cst_93 = arith.constant dense<0.000000e+00> : vector<16x392xf32>
    %119 = tpu.matmul %118, %116, %cst_93 {dimension_numbers = #tpu.dot_dimension_numbers<[1], [0], [0], [1], [0, 0, 1, 1], [], []>} : vector<16x28xbf16>, vector<28x392xbf16>, vector<16x392xf32> -> vector<16x392xf32>
    %c1_94 = arith.constant 1 : index
    %c0_95 = arith.constant 0 : index
    %120 = vector.load %arg17[%c1_94, %c0_95] : memref<9x392xf32, #tpu.memory_space<vmem>>, vector<1x392xf32>
    %121 = vector.broadcast %120 : vector<1x392xf32> to vector<16x392xf32>
    %122 = arith.mulf %119, %121 : vector<16x392xf32>
    %123 = arith.addf %115, %122 : vector<16x392xf32>
    %c0_96 = arith.constant 0 : index
    %c3_97 = arith.constant 3 : index
    %124 = vector.load %arg24[%c0_96, %c3_97] : memref<32x424xbf16, #tpu.memory_space<vmem>>, vector<28x392xbf16>
    %c2_98 = arith.constant 2 : index
    %c0_99 = arith.constant 0 : index
    %c0_100 = arith.constant 0 : index
    %125 = vector.load %arg4[%c2_98, %c0_99, %c0_100] : memref<9x16x28xbf16, #tpu.memory_space<vmem>>, vector<1x16x28xbf16>
    %126 = vector.shape_cast %125 : vector<1x16x28xbf16> to vector<16x28xbf16>
    %cst_101 = arith.constant dense<0.000000e+00> : vector<16x392xf32>
    %127 = tpu.matmul %126, %124, %cst_101 {dimension_numbers = #tpu.dot_dimension_numbers<[1], [0], [0], [1], [0, 0, 1, 1], [], []>} : vector<16x28xbf16>, vector<28x392xbf16>, vector<16x392xf32> -> vector<16x392xf32>
    %c2_102 = arith.constant 2 : index
    %c0_103 = arith.constant 0 : index
    %128 = vector.load %arg17[%c2_102, %c0_103] : memref<9x392xf32, #tpu.memory_space<vmem>>, vector<1x392xf32>
    %129 = vector.broadcast %128 : vector<1x392xf32> to vector<16x392xf32>
    %130 = arith.mulf %127, %129 : vector<16x392xf32>
    %131 = arith.addf %123, %130 : vector<16x392xf32>
    %c0_104 = arith.constant 0 : index
    %c15_105 = arith.constant 15 : index
    %132 = vector.load %arg24[%c0_104, %c15_105] : memref<32x424xbf16, #tpu.memory_space<vmem>>, vector<28x392xbf16>
    %c3_106 = arith.constant 3 : index
    %c0_107 = arith.constant 0 : index
    %c0_108 = arith.constant 0 : index
    %133 = vector.load %arg4[%c3_106, %c0_107, %c0_108] : memref<9x16x28xbf16, #tpu.memory_space<vmem>>, vector<1x16x28xbf16>
    %134 = vector.shape_cast %133 : vector<1x16x28xbf16> to vector<16x28xbf16>
    %cst_109 = arith.constant dense<0.000000e+00> : vector<16x392xf32>
    %135 = tpu.matmul %134, %132, %cst_109 {dimension_numbers = #tpu.dot_dimension_numbers<[1], [0], [0], [1], [0, 0, 1, 1], [], []>} : vector<16x28xbf16>, vector<28x392xbf16>, vector<16x392xf32> -> vector<16x392xf32>
    %c3_110 = arith.constant 3 : index
    %c0_111 = arith.constant 0 : index
    %136 = vector.load %arg17[%c3_110, %c0_111] : memref<9x392xf32, #tpu.memory_space<vmem>>, vector<1x392xf32>
    %137 = vector.broadcast %136 : vector<1x392xf32> to vector<16x392xf32>
    %138 = arith.mulf %135, %137 : vector<16x392xf32>
    %139 = arith.addf %131, %138 : vector<16x392xf32>
    %c0_112 = arith.constant 0 : index
    %c16_113 = arith.constant 16 : index
    %140 = vector.load %arg24[%c0_112, %c16_113] : memref<32x424xbf16, #tpu.memory_space<vmem>>, vector<28x392xbf16>
    %c4_114 = arith.constant 4 : index
    %c0_115 = arith.constant 0 : index
    %c0_116 = arith.constant 0 : index
    %141 = vector.load %arg4[%c4_114, %c0_115, %c0_116] : memref<9x16x28xbf16, #tpu.memory_space<vmem>>, vector<1x16x28xbf16>
    %142 = vector.shape_cast %141 : vector<1x16x28xbf16> to vector<16x28xbf16>
    %cst_117 = arith.constant dense<0.000000e+00> : vector<16x392xf32>
    %143 = tpu.matmul %142, %140, %cst_117 {dimension_numbers = #tpu.dot_dimension_numbers<[1], [0], [0], [1], [0, 0, 1, 1], [], []>} : vector<16x28xbf16>, vector<28x392xbf16>, vector<16x392xf32> -> vector<16x392xf32>
    %c4_118 = arith.constant 4 : index
    %c0_119 = arith.constant 0 : index
    %144 = vector.load %arg17[%c4_118, %c0_119] : memref<9x392xf32, #tpu.memory_space<vmem>>, vector<1x392xf32>
    %145 = vector.broadcast %144 : vector<1x392xf32> to vector<16x392xf32>
    %146 = arith.mulf %143, %145 : vector<16x392xf32>
    %147 = arith.addf %139, %146 : vector<16x392xf32>
    %c0_120 = arith.constant 0 : index
    %c17_121 = arith.constant 17 : index
    %148 = vector.load %arg24[%c0_120, %c17_121] : memref<32x424xbf16, #tpu.memory_space<vmem>>, vector<28x392xbf16>
    %c5_122 = arith.constant 5 : index
    %c0_123 = arith.constant 0 : index
    %c0_124 = arith.constant 0 : index
    %149 = vector.load %arg4[%c5_122, %c0_123, %c0_124] : memref<9x16x28xbf16, #tpu.memory_space<vmem>>, vector<1x16x28xbf16>
    %150 = vector.shape_cast %149 : vector<1x16x28xbf16> to vector<16x28xbf16>
    %cst_125 = arith.constant dense<0.000000e+00> : vector<16x392xf32>
    %151 = tpu.matmul %150, %148, %cst_125 {dimension_numbers = #tpu.dot_dimension_numbers<[1], [0], [0], [1], [0, 0, 1, 1], [], []>} : vector<16x28xbf16>, vector<28x392xbf16>, vector<16x392xf32> -> vector<16x392xf32>
    %c5_126 = arith.constant 5 : index
    %c0_127 = arith.constant 0 : index
    %152 = vector.load %arg17[%c5_126, %c0_127] : memref<9x392xf32, #tpu.memory_space<vmem>>, vector<1x392xf32>
    %153 = vector.broadcast %152 : vector<1x392xf32> to vector<16x392xf32>
    %154 = arith.mulf %151, %153 : vector<16x392xf32>
    %155 = arith.addf %147, %154 : vector<16x392xf32>
    %c0_128 = arith.constant 0 : index
    %c29_129 = arith.constant 29 : index
    %156 = vector.load %arg24[%c0_128, %c29_129] : memref<32x424xbf16, #tpu.memory_space<vmem>>, vector<28x392xbf16>
    %c6_130 = arith.constant 6 : index
    %c0_131 = arith.constant 0 : index
    %c0_132 = arith.constant 0 : index
    %157 = vector.load %arg4[%c6_130, %c0_131, %c0_132] : memref<9x16x28xbf16, #tpu.memory_space<vmem>>, vector<1x16x28xbf16>
    %158 = vector.shape_cast %157 : vector<1x16x28xbf16> to vector<16x28xbf16>
    %cst_133 = arith.constant dense<0.000000e+00> : vector<16x392xf32>
    %159 = tpu.matmul %158, %156, %cst_133 {dimension_numbers = #tpu.dot_dimension_numbers<[1], [0], [0], [1], [0, 0, 1, 1], [], []>} : vector<16x28xbf16>, vector<28x392xbf16>, vector<16x392xf32> -> vector<16x392xf32>
    %c6_134 = arith.constant 6 : index
    %c0_135 = arith.constant 0 : index
    %160 = vector.load %arg17[%c6_134, %c0_135] : memref<9x392xf32, #tpu.memory_space<vmem>>, vector<1x392xf32>
    %161 = vector.broadcast %160 : vector<1x392xf32> to vector<16x392xf32>
    %162 = arith.mulf %159, %161 : vector<16x392xf32>
    %163 = arith.addf %155, %162 : vector<16x392xf32>
    %c0_136 = arith.constant 0 : index
    %c30_137 = arith.constant 30 : index
    %164 = vector.load %arg24[%c0_136, %c30_137] : memref<32x424xbf16, #tpu.memory_space<vmem>>, vector<28x392xbf16>
    %c7_138 = arith.constant 7 : index
    %c0_139 = arith.constant 0 : index
    %c0_140 = arith.constant 0 : index
    %165 = vector.load %arg4[%c7_138, %c0_139, %c0_140] : memref<9x16x28xbf16, #tpu.memory_space<vmem>>, vector<1x16x28xbf16>
    %166 = vector.shape_cast %165 : vector<1x16x28xbf16> to vector<16x28xbf16>
    %cst_141 = arith.constant dense<0.000000e+00> : vector<16x392xf32>
    %167 = tpu.matmul %166, %164, %cst_141 {dimension_numbers = #tpu.dot_dimension_numbers<[1], [0], [0], [1], [0, 0, 1, 1], [], []>} : vector<16x28xbf16>, vector<28x392xbf16>, vector<16x392xf32> -> vector<16x392xf32>
    %c7_142 = arith.constant 7 : index
    %c0_143 = arith.constant 0 : index
    %168 = vector.load %arg17[%c7_142, %c0_143] : memref<9x392xf32, #tpu.memory_space<vmem>>, vector<1x392xf32>
    %169 = vector.broadcast %168 : vector<1x392xf32> to vector<16x392xf32>
    %170 = arith.mulf %167, %169 : vector<16x392xf32>
    %171 = arith.addf %163, %170 : vector<16x392xf32>
    %c0_144 = arith.constant 0 : index
    %c31_145 = arith.constant 31 : index
    %172 = vector.load %arg24[%c0_144, %c31_145] : memref<32x424xbf16, #tpu.memory_space<vmem>>, vector<28x392xbf16>
    %c8_146 = arith.constant 8 : index
    %c0_147 = arith.constant 0 : index
    %c0_148 = arith.constant 0 : index
    %173 = vector.load %arg4[%c8_146, %c0_147, %c0_148] : memref<9x16x28xbf16, #tpu.memory_space<vmem>>, vector<1x16x28xbf16>
    %174 = vector.shape_cast %173 : vector<1x16x28xbf16> to vector<16x28xbf16>
    %cst_149 = arith.constant dense<0.000000e+00> : vector<16x392xf32>
    %175 = tpu.matmul %174, %172, %cst_149 {dimension_numbers = #tpu.dot_dimension_numbers<[1], [0], [0], [1], [0, 0, 1, 1], [], []>} : vector<16x28xbf16>, vector<28x392xbf16>, vector<16x392xf32> -> vector<16x392xf32>
    %c8_150 = arith.constant 8 : index
    %c0_151 = arith.constant 0 : index
    %176 = vector.load %arg17[%c8_150, %c0_151] : memref<9x392xf32, #tpu.memory_space<vmem>>, vector<1x392xf32>
    %177 = vector.broadcast %176 : vector<1x392xf32> to vector<16x392xf32>
    %178 = arith.mulf %175, %177 : vector<16x392xf32>
    %179 = arith.addf %171, %178 : vector<16x392xf32>
    %cst_152 = arith.constant dense<0.000000e+00> : vector<16xf32>
    %180 = vector.multi_reduction <add>, %179, %cst_152 [1] : vector<16x392xf32> to vector<16xf32>
    %181 = vector.shape_cast %180 : vector<16xf32> to vector<16x1xf32>
    %cst_153 = arith.constant 3.920000e+02 : f32
    %182 = vector.broadcast %cst_153 : f32 to vector<16x1xf32>
    %183 = arith.divf %181, %182 : vector<16x1xf32>
    %184 = vector.broadcast %183 : vector<16x1xf32> to vector<16x392xf32>
    %185 = arith.subf %179, %184 : vector<16x392xf32>
    %186 = arith.mulf %185, %185 : vector<16x392xf32>
    %cst_154 = arith.constant dense<0.000000e+00> : vector<16xf32>
    %187 = vector.multi_reduction <add>, %186, %cst_154 [1] : vector<16x392xf32> to vector<16xf32>
    %188 = vector.shape_cast %187 : vector<16xf32> to vector<16x1xf32>
    %cst_155 = arith.constant 3.920000e+02 : f32
    %189 = vector.broadcast %cst_155 : f32 to vector<16x1xf32>
    %190 = arith.divf %188, %189 : vector<16x1xf32>
    %191 = vector.broadcast %183 : vector<16x1xf32> to vector<16x392xf32>
    %192 = arith.subf %179, %191 : vector<16x392xf32>
    %cst_156 = arith.constant 9.99999974E-6 : f32
    %193 = vector.broadcast %cst_156 : f32 to vector<16x1xf32>
    %194 = arith.addf %190, %193 : vector<16x1xf32>
    %195 = math.rsqrt %194 : vector<16x1xf32>
    %196 = vector.broadcast %195 : vector<16x1xf32> to vector<16x392xf32>
    %197 = arith.mulf %192, %196 : vector<16x392xf32>
    %c0_157 = arith.constant 0 : index
    %c0_158 = arith.constant 0 : index
    %198 = vector.load %arg5[%c0_157, %c0_158] : memref<16x1xf32, #tpu.memory_space<vmem>>, vector<16x1xf32>
    %199 = vector.broadcast %198 : vector<16x1xf32> to vector<16x392xf32>
    %200 = arith.mulf %197, %199 : vector<16x392xf32>
    %c0_159 = arith.constant 0 : index
    %c0_160 = arith.constant 0 : index
    %201 = vector.load %arg6[%c0_159, %c0_160] : memref<16x1xf32, #tpu.memory_space<vmem>>, vector<16x1xf32>
    %202 = vector.broadcast %201 : vector<16x1xf32> to vector<16x392xf32>
    %203 = arith.addf %200, %202 : vector<16x392xf32>
    %cst_161 = arith.constant 0.000000e+00 : f32
    %204 = vector.broadcast %cst_161 : f32 to vector<16x392xf32>
    %205 = arith.maximumf %203, %204 : vector<16x392xf32>
    %206 = arith.truncf %205 : vector<16x392xf32> to vector<16x392xbf16>
    %c0_162 = arith.constant 0 : index
    %c0_163 = arith.constant 0 : index
    %c0_164 = arith.constant 0 : index
    %207 = vector.load %arg20[%c0_162, %c0_163, %c0_164] : memref<4x392x98xbf16, #tpu.memory_space<vmem>>, vector<1x392x98xbf16>
    %208 = vector.shape_cast %207 : vector<1x392x98xbf16> to vector<392x98xbf16>
    %cst_165 = arith.constant dense<0.000000e+00> : vector<16x98xf32>
    %209 = tpu.matmul %206, %208, %cst_165 {dimension_numbers = #tpu.dot_dimension_numbers<[1], [0], [0], [1], [0, 0, 1, 1], [], []>} : vector<16x392xbf16>, vector<392x98xbf16>, vector<16x98xf32> -> vector<16x98xf32>
    %c1_166 = arith.constant 1 : index
    %c0_167 = arith.constant 0 : index
    %c0_168 = arith.constant 0 : index
    %210 = vector.load %arg20[%c1_166, %c0_167, %c0_168] : memref<4x392x98xbf16, #tpu.memory_space<vmem>>, vector<1x392x98xbf16>
    %211 = vector.shape_cast %210 : vector<1x392x98xbf16> to vector<392x98xbf16>
    %cst_169 = arith.constant dense<0.000000e+00> : vector<16x98xf32>
    %212 = tpu.matmul %206, %211, %cst_169 {dimension_numbers = #tpu.dot_dimension_numbers<[1], [0], [0], [1], [0, 0, 1, 1], [], []>} : vector<16x392xbf16>, vector<392x98xbf16>, vector<16x98xf32> -> vector<16x98xf32>
    %c2_170 = arith.constant 2 : index
    %c0_171 = arith.constant 0 : index
    %c0_172 = arith.constant 0 : index
    %213 = vector.load %arg20[%c2_170, %c0_171, %c0_172] : memref<4x392x98xbf16, #tpu.memory_space<vmem>>, vector<1x392x98xbf16>
    %214 = vector.shape_cast %213 : vector<1x392x98xbf16> to vector<392x98xbf16>
    %cst_173 = arith.constant dense<0.000000e+00> : vector<16x98xf32>
    %215 = tpu.matmul %206, %214, %cst_173 {dimension_numbers = #tpu.dot_dimension_numbers<[1], [0], [0], [1], [0, 0, 1, 1], [], []>} : vector<16x392xbf16>, vector<392x98xbf16>, vector<16x98xf32> -> vector<16x98xf32>
    %c3_174 = arith.constant 3 : index
    %c0_175 = arith.constant 0 : index
    %c0_176 = arith.constant 0 : index
    %216 = vector.load %arg20[%c3_174, %c0_175, %c0_176] : memref<4x392x98xbf16, #tpu.memory_space<vmem>>, vector<1x392x98xbf16>
    %217 = vector.shape_cast %216 : vector<1x392x98xbf16> to vector<392x98xbf16>
    %cst_177 = arith.constant dense<0.000000e+00> : vector<16x98xf32>
    %218 = tpu.matmul %206, %217, %cst_177 {dimension_numbers = #tpu.dot_dimension_numbers<[1], [0], [0], [1], [0, 0, 1, 1], [], []>} : vector<16x392xbf16>, vector<392x98xbf16>, vector<16x98xf32> -> vector<16x98xf32>
    %219 = arith.maximumf %209, %212 : vector<16x98xf32>
    %220 = arith.maximumf %215, %218 : vector<16x98xf32>
    %221 = arith.maximumf %219, %220 : vector<16x98xf32>
    %cst_178 = arith.constant 0.000000e+00 : bf16
    %222 = vector.broadcast %cst_178 : bf16 to vector<16x130xbf16>
    %c0_179 = arith.constant 0 : index
    %c0_180 = arith.constant 0 : index
    %223 = vector.load %arg24[%c0_179, %c0_180] : memref<32x424xbf16, #tpu.memory_space<vmem>>, vector<16x130xbf16>
    tpu.vector_store %arg24[%c0_179, %c0_180], %222 {strides = array<i32>} : memref<32x424xbf16, #tpu.memory_space<vmem>>, vector<16x130xbf16>,
    %224 = arith.truncf %221 : vector<16x98xf32> to vector<16x98xbf16>
    %c0_181 = arith.constant 0 : index
    %c16_182 = arith.constant 16 : index
    %225 = vector.load %arg24[%c0_181, %c16_182] : memref<32x424xbf16, #tpu.memory_space<vmem>>, vector<16x98xbf16>
    tpu.vector_store %arg24[%c0_181, %c16_182], %224 {strides = array<i32>} : memref<32x424xbf16, #tpu.memory_space<vmem>>, vector<16x98xbf16>,
    %cst_183 = arith.constant 0.000000e+00 : f32
    %226 = vector.broadcast %cst_183 : f32 to vector<8x98xf32>
    %c0_184 = arith.constant 0 : index
    %c8_185 = arith.constant 8 : index
    %227 = vector.load %arg24[%c0_184, %c8_185] : memref<32x424xbf16, #tpu.memory_space<vmem>>, vector<16x98xbf16>
    %c0_186 = arith.constant 0 : index
    %c0_187 = arith.constant 0 : index
    %c0_188 = arith.constant 0 : index
    %228 = vector.load %arg7[%c0_186, %c0_187, %c0_188] : memref<9x8x16xbf16, #tpu.memory_space<vmem>>, vector<1x8x16xbf16>
    %229 = vector.shape_cast %228 : vector<1x8x16xbf16> to vector<8x16xbf16>
    %cst_189 = arith.constant dense<0.000000e+00> : vector<8x98xf32>
    %230 = tpu.matmul %229, %227, %cst_189 {dimension_numbers = #tpu.dot_dimension_numbers<[1], [0], [0], [1], [0, 0, 1, 1], [], []>} : vector<8x16xbf16>, vector<16x98xbf16>, vector<8x98xf32> -> vector<8x98xf32>
    %c0_190 = arith.constant 0 : index
    %c0_191 = arith.constant 0 : index
    %231 = vector.load %arg18[%c0_190, %c0_191] : memref<9x98xf32, #tpu.memory_space<vmem>>, vector<1x98xf32>
    %232 = vector.broadcast %231 : vector<1x98xf32> to vector<8x98xf32>
    %233 = arith.mulf %230, %232 : vector<8x98xf32>
    %234 = arith.addf %226, %233 : vector<8x98xf32>
    %c0_192 = arith.constant 0 : index
    %c9 = arith.constant 9 : index
    %235 = vector.load %arg24[%c0_192, %c9] : memref<32x424xbf16, #tpu.memory_space<vmem>>, vector<16x98xbf16>
    %c1_193 = arith.constant 1 : index
    %c0_194 = arith.constant 0 : index
    %c0_195 = arith.constant 0 : index
    %236 = vector.load %arg7[%c1_193, %c0_194, %c0_195] : memref<9x8x16xbf16, #tpu.memory_space<vmem>>, vector<1x8x16xbf16>
    %237 = vector.shape_cast %236 : vector<1x8x16xbf16> to vector<8x16xbf16>
    %cst_196 = arith.constant dense<0.000000e+00> : vector<8x98xf32>
    %238 = tpu.matmul %237, %235, %cst_196 {dimension_numbers = #tpu.dot_dimension_numbers<[1], [0], [0], [1], [0, 0, 1, 1], [], []>} : vector<8x16xbf16>, vector<16x98xbf16>, vector<8x98xf32> -> vector<8x98xf32>
    %c1_197 = arith.constant 1 : index
    %c0_198 = arith.constant 0 : index
    %239 = vector.load %arg18[%c1_197, %c0_198] : memref<9x98xf32, #tpu.memory_space<vmem>>, vector<1x98xf32>
    %240 = vector.broadcast %239 : vector<1x98xf32> to vector<8x98xf32>
    %241 = arith.mulf %238, %240 : vector<8x98xf32>
    %242 = arith.addf %234, %241 : vector<8x98xf32>
    %c0_199 = arith.constant 0 : index
    %c10 = arith.constant 10 : index
    %243 = vector.load %arg24[%c0_199, %c10] : memref<32x424xbf16, #tpu.memory_space<vmem>>, vector<16x98xbf16>
    %c2_200 = arith.constant 2 : index
    %c0_201 = arith.constant 0 : index
    %c0_202 = arith.constant 0 : index
    %244 = vector.load %arg7[%c2_200, %c0_201, %c0_202] : memref<9x8x16xbf16, #tpu.memory_space<vmem>>, vector<1x8x16xbf16>
    %245 = vector.shape_cast %244 : vector<1x8x16xbf16> to vector<8x16xbf16>
    %cst_203 = arith.constant dense<0.000000e+00> : vector<8x98xf32>
    %246 = tpu.matmul %245, %243, %cst_203 {dimension_numbers = #tpu.dot_dimension_numbers<[1], [0], [0], [1], [0, 0, 1, 1], [], []>} : vector<8x16xbf16>, vector<16x98xbf16>, vector<8x98xf32> -> vector<8x98xf32>
    %c2_204 = arith.constant 2 : index
    %c0_205 = arith.constant 0 : index
    %247 = vector.load %arg18[%c2_204, %c0_205] : memref<9x98xf32, #tpu.memory_space<vmem>>, vector<1x98xf32>
    %248 = vector.broadcast %247 : vector<1x98xf32> to vector<8x98xf32>
    %249 = arith.mulf %246, %248 : vector<8x98xf32>
    %250 = arith.addf %242, %249 : vector<8x98xf32>
    %c0_206 = arith.constant 0 : index
    %c15_207 = arith.constant 15 : index
    %251 = vector.load %arg24[%c0_206, %c15_207] : memref<32x424xbf16, #tpu.memory_space<vmem>>, vector<16x98xbf16>
    %c3_208 = arith.constant 3 : index
    %c0_209 = arith.constant 0 : index
    %c0_210 = arith.constant 0 : index
    %252 = vector.load %arg7[%c3_208, %c0_209, %c0_210] : memref<9x8x16xbf16, #tpu.memory_space<vmem>>, vector<1x8x16xbf16>
    %253 = vector.shape_cast %252 : vector<1x8x16xbf16> to vector<8x16xbf16>
    %cst_211 = arith.constant dense<0.000000e+00> : vector<8x98xf32>
    %254 = tpu.matmul %253, %251, %cst_211 {dimension_numbers = #tpu.dot_dimension_numbers<[1], [0], [0], [1], [0, 0, 1, 1], [], []>} : vector<8x16xbf16>, vector<16x98xbf16>, vector<8x98xf32> -> vector<8x98xf32>
    %c3_212 = arith.constant 3 : index
    %c0_213 = arith.constant 0 : index
    %255 = vector.load %arg18[%c3_212, %c0_213] : memref<9x98xf32, #tpu.memory_space<vmem>>, vector<1x98xf32>
    %256 = vector.broadcast %255 : vector<1x98xf32> to vector<8x98xf32>
    %257 = arith.mulf %254, %256 : vector<8x98xf32>
    %258 = arith.addf %250, %257 : vector<8x98xf32>
    %c0_214 = arith.constant 0 : index
    %c16_215 = arith.constant 16 : index
    %259 = vector.load %arg24[%c0_214, %c16_215] : memref<32x424xbf16, #tpu.memory_space<vmem>>, vector<16x98xbf16>
    %c4_216 = arith.constant 4 : index
    %c0_217 = arith.constant 0 : index
    %c0_218 = arith.constant 0 : index
    %260 = vector.load %arg7[%c4_216, %c0_217, %c0_218] : memref<9x8x16xbf16, #tpu.memory_space<vmem>>, vector<1x8x16xbf16>
    %261 = vector.shape_cast %260 : vector<1x8x16xbf16> to vector<8x16xbf16>
    %cst_219 = arith.constant dense<0.000000e+00> : vector<8x98xf32>
    %262 = tpu.matmul %261, %259, %cst_219 {dimension_numbers = #tpu.dot_dimension_numbers<[1], [0], [0], [1], [0, 0, 1, 1], [], []>} : vector<8x16xbf16>, vector<16x98xbf16>, vector<8x98xf32> -> vector<8x98xf32>
    %c4_220 = arith.constant 4 : index
    %c0_221 = arith.constant 0 : index
    %263 = vector.load %arg18[%c4_220, %c0_221] : memref<9x98xf32, #tpu.memory_space<vmem>>, vector<1x98xf32>
    %264 = vector.broadcast %263 : vector<1x98xf32> to vector<8x98xf32>
    %265 = arith.mulf %262, %264 : vector<8x98xf32>
    %266 = arith.addf %258, %265 : vector<8x98xf32>
    %c0_222 = arith.constant 0 : index
    %c17_223 = arith.constant 17 : index
    %267 = vector.load %arg24[%c0_222, %c17_223] : memref<32x424xbf16, #tpu.memory_space<vmem>>, vector<16x98xbf16>
    %c5_224 = arith.constant 5 : index
    %c0_225 = arith.constant 0 : index
    %c0_226 = arith.constant 0 : index
    %268 = vector.load %arg7[%c5_224, %c0_225, %c0_226] : memref<9x8x16xbf16, #tpu.memory_space<vmem>>, vector<1x8x16xbf16>
    %269 = vector.shape_cast %268 : vector<1x8x16xbf16> to vector<8x16xbf16>
    %cst_227 = arith.constant dense<0.000000e+00> : vector<8x98xf32>
    %270 = tpu.matmul %269, %267, %cst_227 {dimension_numbers = #tpu.dot_dimension_numbers<[1], [0], [0], [1], [0, 0, 1, 1], [], []>} : vector<8x16xbf16>, vector<16x98xbf16>, vector<8x98xf32> -> vector<8x98xf32>
    %c5_228 = arith.constant 5 : index
    %c0_229 = arith.constant 0 : index
    %271 = vector.load %arg18[%c5_228, %c0_229] : memref<9x98xf32, #tpu.memory_space<vmem>>, vector<1x98xf32>
    %272 = vector.broadcast %271 : vector<1x98xf32> to vector<8x98xf32>
    %273 = arith.mulf %270, %272 : vector<8x98xf32>
    %274 = arith.addf %266, %273 : vector<8x98xf32>
    %c0_230 = arith.constant 0 : index
    %c22 = arith.constant 22 : index
    %275 = vector.load %arg24[%c0_230, %c22] : memref<32x424xbf16, #tpu.memory_space<vmem>>, vector<16x98xbf16>
    %c6_231 = arith.constant 6 : index
    %c0_232 = arith.constant 0 : index
    %c0_233 = arith.constant 0 : index
    %276 = vector.load %arg7[%c6_231, %c0_232, %c0_233] : memref<9x8x16xbf16, #tpu.memory_space<vmem>>, vector<1x8x16xbf16>
    %277 = vector.shape_cast %276 : vector<1x8x16xbf16> to vector<8x16xbf16>
    %cst_234 = arith.constant dense<0.000000e+00> : vector<8x98xf32>
    %278 = tpu.matmul %277, %275, %cst_234 {dimension_numbers = #tpu.dot_dimension_numbers<[1], [0], [0], [1], [0, 0, 1, 1], [], []>} : vector<8x16xbf16>, vector<16x98xbf16>, vector<8x98xf32> -> vector<8x98xf32>
    %c6_235 = arith.constant 6 : index
    %c0_236 = arith.constant 0 : index
    %279 = vector.load %arg18[%c6_235, %c0_236] : memref<9x98xf32, #tpu.memory_space<vmem>>, vector<1x98xf32>
    %280 = vector.broadcast %279 : vector<1x98xf32> to vector<8x98xf32>
    %281 = arith.mulf %278, %280 : vector<8x98xf32>
    %282 = arith.addf %274, %281 : vector<8x98xf32>
    %c0_237 = arith.constant 0 : index
    %c23 = arith.constant 23 : index
    %283 = vector.load %arg24[%c0_237, %c23] : memref<32x424xbf16, #tpu.memory_space<vmem>>, vector<16x98xbf16>
    %c7_238 = arith.constant 7 : index
    %c0_239 = arith.constant 0 : index
    %c0_240 = arith.constant 0 : index
    %284 = vector.load %arg7[%c7_238, %c0_239, %c0_240] : memref<9x8x16xbf16, #tpu.memory_space<vmem>>, vector<1x8x16xbf16>
    %285 = vector.shape_cast %284 : vector<1x8x16xbf16> to vector<8x16xbf16>
    %cst_241 = arith.constant dense<0.000000e+00> : vector<8x98xf32>
    %286 = tpu.matmul %285, %283, %cst_241 {dimension_numbers = #tpu.dot_dimension_numbers<[1], [0], [0], [1], [0, 0, 1, 1], [], []>} : vector<8x16xbf16>, vector<16x98xbf16>, vector<8x98xf32> -> vector<8x98xf32>
    %c7_242 = arith.constant 7 : index
    %c0_243 = arith.constant 0 : index
    %287 = vector.load %arg18[%c7_242, %c0_243] : memref<9x98xf32, #tpu.memory_space<vmem>>, vector<1x98xf32>
    %288 = vector.broadcast %287 : vector<1x98xf32> to vector<8x98xf32>
    %289 = arith.mulf %286, %288 : vector<8x98xf32>
    %290 = arith.addf %282, %289 : vector<8x98xf32>
    %c0_244 = arith.constant 0 : index
    %c24 = arith.constant 24 : index
    %291 = vector.load %arg24[%c0_244, %c24] : memref<32x424xbf16, #tpu.memory_space<vmem>>, vector<16x98xbf16>
    %c8_245 = arith.constant 8 : index
    %c0_246 = arith.constant 0 : index
    %c0_247 = arith.constant 0 : index
    %292 = vector.load %arg7[%c8_245, %c0_246, %c0_247] : memref<9x8x16xbf16, #tpu.memory_space<vmem>>, vector<1x8x16xbf16>
    %293 = vector.shape_cast %292 : vector<1x8x16xbf16> to vector<8x16xbf16>
    %cst_248 = arith.constant dense<0.000000e+00> : vector<8x98xf32>
    %294 = tpu.matmul %293, %291, %cst_248 {dimension_numbers = #tpu.dot_dimension_numbers<[1], [0], [0], [1], [0, 0, 1, 1], [], []>} : vector<8x16xbf16>, vector<16x98xbf16>, vector<8x98xf32> -> vector<8x98xf32>
    %c8_249 = arith.constant 8 : index
    %c0_250 = arith.constant 0 : index
    %295 = vector.load %arg18[%c8_249, %c0_250] : memref<9x98xf32, #tpu.memory_space<vmem>>, vector<1x98xf32>
    %296 = vector.broadcast %295 : vector<1x98xf32> to vector<8x98xf32>
    %297 = arith.mulf %294, %296 : vector<8x98xf32>
    %298 = arith.addf %290, %297 : vector<8x98xf32>
    %cst_251 = arith.constant dense<0.000000e+00> : vector<8xf32>
    %299 = vector.multi_reduction <add>, %298, %cst_251 [1] : vector<8x98xf32> to vector<8xf32>
    %300 = vector.shape_cast %299 : vector<8xf32> to vector<8x1xf32>
    %cst_252 = arith.constant 9.800000e+01 : f32
    %301 = vector.broadcast %cst_252 : f32 to vector<8x1xf32>
    %302 = arith.divf %300, %301 : vector<8x1xf32>
    %303 = vector.broadcast %302 : vector<8x1xf32> to vector<8x98xf32>
    %304 = arith.subf %298, %303 : vector<8x98xf32>
    %305 = arith.mulf %304, %304 : vector<8x98xf32>
    %cst_253 = arith.constant dense<0.000000e+00> : vector<8xf32>
    %306 = vector.multi_reduction <add>, %305, %cst_253 [1] : vector<8x98xf32> to vector<8xf32>
    %307 = vector.shape_cast %306 : vector<8xf32> to vector<8x1xf32>
    %cst_254 = arith.constant 9.800000e+01 : f32
    %308 = vector.broadcast %cst_254 : f32 to vector<8x1xf32>
    %309 = arith.divf %307, %308 : vector<8x1xf32>
    %310 = vector.broadcast %302 : vector<8x1xf32> to vector<8x98xf32>
    %311 = arith.subf %298, %310 : vector<8x98xf32>
    %cst_255 = arith.constant 9.99999974E-6 : f32
    %312 = vector.broadcast %cst_255 : f32 to vector<8x1xf32>
    %313 = arith.addf %309, %312 : vector<8x1xf32>
    %314 = math.rsqrt %313 : vector<8x1xf32>
    %315 = vector.broadcast %314 : vector<8x1xf32> to vector<8x98xf32>
    %316 = arith.mulf %311, %315 : vector<8x98xf32>
    %c0_256 = arith.constant 0 : index
    %c0_257 = arith.constant 0 : index
    %317 = vector.load %arg8[%c0_256, %c0_257] : memref<8x1xf32, #tpu.memory_space<vmem>>, vector<8x1xf32>
    %318 = vector.broadcast %317 : vector<8x1xf32> to vector<8x98xf32>
    %319 = arith.mulf %316, %318 : vector<8x98xf32>
    %c0_258 = arith.constant 0 : index
    %c0_259 = arith.constant 0 : index
    %320 = vector.load %arg9[%c0_258, %c0_259] : memref<8x1xf32, #tpu.memory_space<vmem>>, vector<8x1xf32>
    %321 = vector.broadcast %320 : vector<8x1xf32> to vector<8x98xf32>
    %322 = arith.addf %319, %321 : vector<8x98xf32>
    %cst_260 = arith.constant 0.000000e+00 : f32
    %323 = vector.broadcast %cst_260 : f32 to vector<8x98xf32>
    %324 = arith.maximumf %322, %323 : vector<8x98xf32>
    %325 = arith.truncf %324 : vector<8x98xf32> to vector<8x98xbf16>
    %c0_261 = arith.constant 0 : index
    %c0_262 = arith.constant 0 : index
    %c0_263 = arith.constant 0 : index
    %326 = vector.load %arg21[%c0_261, %c0_262, %c0_263] : memref<4x98x18xbf16, #tpu.memory_space<vmem>>, vector<1x98x18xbf16>
    %327 = vector.shape_cast %326 : vector<1x98x18xbf16> to vector<98x18xbf16>
    %cst_264 = arith.constant dense<0.000000e+00> : vector<8x18xf32>
    %328 = tpu.matmul %325, %327, %cst_264 {dimension_numbers = #tpu.dot_dimension_numbers<[1], [0], [0], [1], [0, 0, 1, 1], [], []>} : vector<8x98xbf16>, vector<98x18xbf16>, vector<8x18xf32> -> vector<8x18xf32>
    %c1_265 = arith.constant 1 : index
    %c0_266 = arith.constant 0 : index
    %c0_267 = arith.constant 0 : index
    %329 = vector.load %arg21[%c1_265, %c0_266, %c0_267] : memref<4x98x18xbf16, #tpu.memory_space<vmem>>, vector<1x98x18xbf16>
    %330 = vector.shape_cast %329 : vector<1x98x18xbf16> to vector<98x18xbf16>
    %cst_268 = arith.constant dense<0.000000e+00> : vector<8x18xf32>
    %331 = tpu.matmul %325, %330, %cst_268 {dimension_numbers = #tpu.dot_dimension_numbers<[1], [0], [0], [1], [0, 0, 1, 1], [], []>} : vector<8x98xbf16>, vector<98x18xbf16>, vector<8x18xf32> -> vector<8x18xf32>
    %c2_269 = arith.constant 2 : index
    %c0_270 = arith.constant 0 : index
    %c0_271 = arith.constant 0 : index
    %332 = vector.load %arg21[%c2_269, %c0_270, %c0_271] : memref<4x98x18xbf16, #tpu.memory_space<vmem>>, vector<1x98x18xbf16>
    %333 = vector.shape_cast %332 : vector<1x98x18xbf16> to vector<98x18xbf16>
    %cst_272 = arith.constant dense<0.000000e+00> : vector<8x18xf32>
    %334 = tpu.matmul %325, %333, %cst_272 {dimension_numbers = #tpu.dot_dimension_numbers<[1], [0], [0], [1], [0, 0, 1, 1], [], []>} : vector<8x98xbf16>, vector<98x18xbf16>, vector<8x18xf32> -> vector<8x18xf32>
    %c3_273 = arith.constant 3 : index
    %c0_274 = arith.constant 0 : index
    %c0_275 = arith.constant 0 : index
    %335 = vector.load %arg21[%c3_273, %c0_274, %c0_275] : memref<4x98x18xbf16, #tpu.memory_space<vmem>>, vector<1x98x18xbf16>
    %336 = vector.shape_cast %335 : vector<1x98x18xbf16> to vector<98x18xbf16>
    %cst_276 = arith.constant dense<0.000000e+00> : vector<8x18xf32>
    %337 = tpu.matmul %325, %336, %cst_276 {dimension_numbers = #tpu.dot_dimension_numbers<[1], [0], [0], [1], [0, 0, 1, 1], [], []>} : vector<8x98xbf16>, vector<98x18xbf16>, vector<8x18xf32> -> vector<8x18xf32>
    %338 = arith.maximumf %328, %331 : vector<8x18xf32>
    %339 = arith.maximumf %334, %337 : vector<8x18xf32>
    %340 = arith.maximumf %338, %339 : vector<8x18xf32>
    %cst_277 = arith.constant 0.000000e+00 : bf16
    %341 = vector.broadcast %cst_277 : bf16 to vector<8x50xbf16>
    %c0_278 = arith.constant 0 : index
    %c0_279 = arith.constant 0 : index
    %342 = vector.load %arg24[%c0_278, %c0_279] : memref<32x424xbf16, #tpu.memory_space<vmem>>, vector<8x50xbf16>
    tpu.vector_store %arg24[%c0_278, %c0_279], %341 {strides = array<i32>} : memref<32x424xbf16, #tpu.memory_space<vmem>>, vector<8x50xbf16>,
    %343 = arith.truncf %340 : vector<8x18xf32> to vector<8x18xbf16>
    %c0_280 = arith.constant 0 : index
    %c16_281 = arith.constant 16 : index
    %344 = vector.load %arg24[%c0_280, %c16_281] : memref<32x424xbf16, #tpu.memory_space<vmem>>, vector<8x18xbf16>
    tpu.vector_store %arg24[%c0_280, %c16_281], %343 {strides = array<i32>} : memref<32x424xbf16, #tpu.memory_space<vmem>>, vector<8x18xbf16>,
    %cst_282 = arith.constant 0.000000e+00 : f32
    %345 = vector.broadcast %cst_282 : f32 to vector<4x18xf32>
    %c0_283 = arith.constant 0 : index
    %c12 = arith.constant 12 : index
    %346 = vector.load %arg24[%c0_283, %c12] : memref<32x424xbf16, #tpu.memory_space<vmem>>, vector<8x18xbf16>
    %c0_284 = arith.constant 0 : index
    %c0_285 = arith.constant 0 : index
    %c0_286 = arith.constant 0 : index
    %347 = vector.load %arg10[%c0_284, %c0_285, %c0_286] : memref<9x4x8xbf16, #tpu.memory_space<vmem>>, vector<1x4x8xbf16>
    %348 = vector.shape_cast %347 : vector<1x4x8xbf16> to vector<4x8xbf16>
    %cst_287 = arith.constant dense<0.000000e+00> : vector<4x18xf32>
    %349 = tpu.matmul %348, %346, %cst_287 {dimension_numbers = #tpu.dot_dimension_numbers<[1], [0], [0], [1], [0, 0, 1, 1], [], []>} : vector<4x8xbf16>, vector<8x18xbf16>, vector<4x18xf32> -> vector<4x18xf32>
    %c0_288 = arith.constant 0 : index
    %c0_289 = arith.constant 0 : index
    %350 = vector.load %arg19[%c0_288, %c0_289] : memref<9x18xf32, #tpu.memory_space<vmem>>, vector<1x18xf32>
    %351 = vector.broadcast %350 : vector<1x18xf32> to vector<4x18xf32>
    %352 = arith.mulf %349, %351 : vector<4x18xf32>
    %353 = arith.addf %345, %352 : vector<4x18xf32>
    %c0_290 = arith.constant 0 : index
    %c13 = arith.constant 13 : index
    %354 = vector.load %arg24[%c0_290, %c13] : memref<32x424xbf16, #tpu.memory_space<vmem>>, vector<8x18xbf16>
    %c1_291 = arith.constant 1 : index
    %c0_292 = arith.constant 0 : index
    %c0_293 = arith.constant 0 : index
    %355 = vector.load %arg10[%c1_291, %c0_292, %c0_293] : memref<9x4x8xbf16, #tpu.memory_space<vmem>>, vector<1x4x8xbf16>
    %356 = vector.shape_cast %355 : vector<1x4x8xbf16> to vector<4x8xbf16>
    %cst_294 = arith.constant dense<0.000000e+00> : vector<4x18xf32>
    %357 = tpu.matmul %356, %354, %cst_294 {dimension_numbers = #tpu.dot_dimension_numbers<[1], [0], [0], [1], [0, 0, 1, 1], [], []>} : vector<4x8xbf16>, vector<8x18xbf16>, vector<4x18xf32> -> vector<4x18xf32>
    %c1_295 = arith.constant 1 : index
    %c0_296 = arith.constant 0 : index
    %358 = vector.load %arg19[%c1_295, %c0_296] : memref<9x18xf32, #tpu.memory_space<vmem>>, vector<1x18xf32>
    %359 = vector.broadcast %358 : vector<1x18xf32> to vector<4x18xf32>
    %360 = arith.mulf %357, %359 : vector<4x18xf32>
    %361 = arith.addf %353, %360 : vector<4x18xf32>
    %c0_297 = arith.constant 0 : index
    %c14 = arith.constant 14 : index
    %362 = vector.load %arg24[%c0_297, %c14] : memref<32x424xbf16, #tpu.memory_space<vmem>>, vector<8x18xbf16>
    %c2_298 = arith.constant 2 : index
    %c0_299 = arith.constant 0 : index
    %c0_300 = arith.constant 0 : index
    %363 = vector.load %arg10[%c2_298, %c0_299, %c0_300] : memref<9x4x8xbf16, #tpu.memory_space<vmem>>, vector<1x4x8xbf16>
    %364 = vector.shape_cast %363 : vector<1x4x8xbf16> to vector<4x8xbf16>
    %cst_301 = arith.constant dense<0.000000e+00> : vector<4x18xf32>
    %365 = tpu.matmul %364, %362, %cst_301 {dimension_numbers = #tpu.dot_dimension_numbers<[1], [0], [0], [1], [0, 0, 1, 1], [], []>} : vector<4x8xbf16>, vector<8x18xbf16>, vector<4x18xf32> -> vector<4x18xf32>
    %c2_302 = arith.constant 2 : index
    %c0_303 = arith.constant 0 : index
    %366 = vector.load %arg19[%c2_302, %c0_303] : memref<9x18xf32, #tpu.memory_space<vmem>>, vector<1x18xf32>
    %367 = vector.broadcast %366 : vector<1x18xf32> to vector<4x18xf32>
    %368 = arith.mulf %365, %367 : vector<4x18xf32>
    %369 = arith.addf %361, %368 : vector<4x18xf32>
    %c0_304 = arith.constant 0 : index
    %c15_305 = arith.constant 15 : index
    %370 = vector.load %arg24[%c0_304, %c15_305] : memref<32x424xbf16, #tpu.memory_space<vmem>>, vector<8x18xbf16>
    %c3_306 = arith.constant 3 : index
    %c0_307 = arith.constant 0 : index
    %c0_308 = arith.constant 0 : index
    %371 = vector.load %arg10[%c3_306, %c0_307, %c0_308] : memref<9x4x8xbf16, #tpu.memory_space<vmem>>, vector<1x4x8xbf16>
    %372 = vector.shape_cast %371 : vector<1x4x8xbf16> to vector<4x8xbf16>
    %cst_309 = arith.constant dense<0.000000e+00> : vector<4x18xf32>
    %373 = tpu.matmul %372, %370, %cst_309 {dimension_numbers = #tpu.dot_dimension_numbers<[1], [0], [0], [1], [0, 0, 1, 1], [], []>} : vector<4x8xbf16>, vector<8x18xbf16>, vector<4x18xf32> -> vector<4x18xf32>
    %c3_310 = arith.constant 3 : index
    %c0_311 = arith.constant 0 : index
    %374 = vector.load %arg19[%c3_310, %c0_311] : memref<9x18xf32, #tpu.memory_space<vmem>>, vector<1x18xf32>
    %375 = vector.broadcast %374 : vector<1x18xf32> to vector<4x18xf32>
    %376 = arith.mulf %373, %375 : vector<4x18xf32>
    %377 = arith.addf %369, %376 : vector<4x18xf32>
    %c0_312 = arith.constant 0 : index
    %c16_313 = arith.constant 16 : index
    %378 = vector.load %arg24[%c0_312, %c16_313] : memref<32x424xbf16, #tpu.memory_space<vmem>>, vector<8x18xbf16>
    %c4_314 = arith.constant 4 : index
    %c0_315 = arith.constant 0 : index
    %c0_316 = arith.constant 0 : index
    %379 = vector.load %arg10[%c4_314, %c0_315, %c0_316] : memref<9x4x8xbf16, #tpu.memory_space<vmem>>, vector<1x4x8xbf16>
    %380 = vector.shape_cast %379 : vector<1x4x8xbf16> to vector<4x8xbf16>
    %cst_317 = arith.constant dense<0.000000e+00> : vector<4x18xf32>
    %381 = tpu.matmul %380, %378, %cst_317 {dimension_numbers = #tpu.dot_dimension_numbers<[1], [0], [0], [1], [0, 0, 1, 1], [], []>} : vector<4x8xbf16>, vector<8x18xbf16>, vector<4x18xf32> -> vector<4x18xf32>
    %c4_318 = arith.constant 4 : index
    %c0_319 = arith.constant 0 : index
    %382 = vector.load %arg19[%c4_318, %c0_319] : memref<9x18xf32, #tpu.memory_space<vmem>>, vector<1x18xf32>
    %383 = vector.broadcast %382 : vector<1x18xf32> to vector<4x18xf32>
    %384 = arith.mulf %381, %383 : vector<4x18xf32>
    %385 = arith.addf %377, %384 : vector<4x18xf32>
    %c0_320 = arith.constant 0 : index
    %c17_321 = arith.constant 17 : index
    %386 = vector.load %arg24[%c0_320, %c17_321] : memref<32x424xbf16, #tpu.memory_space<vmem>>, vector<8x18xbf16>
    %c5_322 = arith.constant 5 : index
    %c0_323 = arith.constant 0 : index
    %c0_324 = arith.constant 0 : index
    %387 = vector.load %arg10[%c5_322, %c0_323, %c0_324] : memref<9x4x8xbf16, #tpu.memory_space<vmem>>, vector<1x4x8xbf16>
    %388 = vector.shape_cast %387 : vector<1x4x8xbf16> to vector<4x8xbf16>
    %cst_325 = arith.constant dense<0.000000e+00> : vector<4x18xf32>
    %389 = tpu.matmul %388, %386, %cst_325 {dimension_numbers = #tpu.dot_dimension_numbers<[1], [0], [0], [1], [0, 0, 1, 1], [], []>} : vector<4x8xbf16>, vector<8x18xbf16>, vector<4x18xf32> -> vector<4x18xf32>
    %c5_326 = arith.constant 5 : index
    %c0_327 = arith.constant 0 : index
    %390 = vector.load %arg19[%c5_326, %c0_327] : memref<9x18xf32, #tpu.memory_space<vmem>>, vector<1x18xf32>
    %391 = vector.broadcast %390 : vector<1x18xf32> to vector<4x18xf32>
    %392 = arith.mulf %389, %391 : vector<4x18xf32>
    %393 = arith.addf %385, %392 : vector<4x18xf32>
    %c0_328 = arith.constant 0 : index
    %c18 = arith.constant 18 : index
    %394 = vector.load %arg24[%c0_328, %c18] : memref<32x424xbf16, #tpu.memory_space<vmem>>, vector<8x18xbf16>
    %c6_329 = arith.constant 6 : index
    %c0_330 = arith.constant 0 : index
    %c0_331 = arith.constant 0 : index
    %395 = vector.load %arg10[%c6_329, %c0_330, %c0_331] : memref<9x4x8xbf16, #tpu.memory_space<vmem>>, vector<1x4x8xbf16>
    %396 = vector.shape_cast %395 : vector<1x4x8xbf16> to vector<4x8xbf16>
    %cst_332 = arith.constant dense<0.000000e+00> : vector<4x18xf32>
    %397 = tpu.matmul %396, %394, %cst_332 {dimension_numbers = #tpu.dot_dimension_numbers<[1], [0], [0], [1], [0, 0, 1, 1], [], []>} : vector<4x8xbf16>, vector<8x18xbf16>, vector<4x18xf32> -> vector<4x18xf32>
    %c6_333 = arith.constant 6 : index
    %c0_334 = arith.constant 0 : index
    %398 = vector.load %arg19[%c6_333, %c0_334] : memref<9x18xf32, #tpu.memory_space<vmem>>, vector<1x18xf32>
    %399 = vector.broadcast %398 : vector<1x18xf32> to vector<4x18xf32>
    %400 = arith.mulf %397, %399 : vector<4x18xf32>
    %401 = arith.addf %393, %400 : vector<4x18xf32>
    %c0_335 = arith.constant 0 : index
    %c19 = arith.constant 19 : index
    %402 = vector.load %arg24[%c0_335, %c19] : memref<32x424xbf16, #tpu.memory_space<vmem>>, vector<8x18xbf16>
    %c7_336 = arith.constant 7 : index
    %c0_337 = arith.constant 0 : index
    %c0_338 = arith.constant 0 : index
    %403 = vector.load %arg10[%c7_336, %c0_337, %c0_338] : memref<9x4x8xbf16, #tpu.memory_space<vmem>>, vector<1x4x8xbf16>
    %404 = vector.shape_cast %403 : vector<1x4x8xbf16> to vector<4x8xbf16>
    %cst_339 = arith.constant dense<0.000000e+00> : vector<4x18xf32>
    %405 = tpu.matmul %404, %402, %cst_339 {dimension_numbers = #tpu.dot_dimension_numbers<[1], [0], [0], [1], [0, 0, 1, 1], [], []>} : vector<4x8xbf16>, vector<8x18xbf16>, vector<4x18xf32> -> vector<4x18xf32>
    %c7_340 = arith.constant 7 : index
    %c0_341 = arith.constant 0 : index
    %406 = vector.load %arg19[%c7_340, %c0_341] : memref<9x18xf32, #tpu.memory_space<vmem>>, vector<1x18xf32>
    %407 = vector.broadcast %406 : vector<1x18xf32> to vector<4x18xf32>
    %408 = arith.mulf %405, %407 : vector<4x18xf32>
    %409 = arith.addf %401, %408 : vector<4x18xf32>
    %c0_342 = arith.constant 0 : index
    %c20 = arith.constant 20 : index
    %410 = vector.load %arg24[%c0_342, %c20] : memref<32x424xbf16, #tpu.memory_space<vmem>>, vector<8x18xbf16>
    %c8_343 = arith.constant 8 : index
    %c0_344 = arith.constant 0 : index
    %c0_345 = arith.constant 0 : index
    %411 = vector.load %arg10[%c8_343, %c0_344, %c0_345] : memref<9x4x8xbf16, #tpu.memory_space<vmem>>, vector<1x4x8xbf16>
    %412 = vector.shape_cast %411 : vector<1x4x8xbf16> to vector<4x8xbf16>
    %cst_346 = arith.constant dense<0.000000e+00> : vector<4x18xf32>
    %413 = tpu.matmul %412, %410, %cst_346 {dimension_numbers = #tpu.dot_dimension_numbers<[1], [0], [0], [1], [0, 0, 1, 1], [], []>} : vector<4x8xbf16>, vector<8x18xbf16>, vector<4x18xf32> -> vector<4x18xf32>
    %c8_347 = arith.constant 8 : index
    %c0_348 = arith.constant 0 : index
    %414 = vector.load %arg19[%c8_347, %c0_348] : memref<9x18xf32, #tpu.memory_space<vmem>>, vector<1x18xf32>
    %415 = vector.broadcast %414 : vector<1x18xf32> to vector<4x18xf32>
    %416 = arith.mulf %413, %415 : vector<4x18xf32>
    %417 = arith.addf %409, %416 : vector<4x18xf32>
    %cst_349 = arith.constant dense<0.000000e+00> : vector<4xf32>
    %418 = vector.multi_reduction <add>, %417, %cst_349 [1] : vector<4x18xf32> to vector<4xf32>
    %419 = vector.shape_cast %418 : vector<4xf32> to vector<4x1xf32>
    %cst_350 = arith.constant 1.800000e+01 : f32
    %420 = vector.broadcast %cst_350 : f32 to vector<4x1xf32>
    %421 = arith.divf %419, %420 : vector<4x1xf32>
    %422 = vector.broadcast %421 : vector<4x1xf32> to vector<4x18xf32>
    %423 = arith.subf %417, %422 : vector<4x18xf32>
    %424 = arith.mulf %423, %423 : vector<4x18xf32>
    %cst_351 = arith.constant dense<0.000000e+00> : vector<4xf32>
    %425 = vector.multi_reduction <add>, %424, %cst_351 [1] : vector<4x18xf32> to vector<4xf32>
    %426 = vector.shape_cast %425 : vector<4xf32> to vector<4x1xf32>
    %cst_352 = arith.constant 1.800000e+01 : f32
    %427 = vector.broadcast %cst_352 : f32 to vector<4x1xf32>
    %428 = arith.divf %426, %427 : vector<4x1xf32>
    %429 = vector.broadcast %421 : vector<4x1xf32> to vector<4x18xf32>
    %430 = arith.subf %417, %429 : vector<4x18xf32>
    %cst_353 = arith.constant 9.99999974E-6 : f32
    %431 = vector.broadcast %cst_353 : f32 to vector<4x1xf32>
    %432 = arith.addf %428, %431 : vector<4x1xf32>
    %433 = math.rsqrt %432 : vector<4x1xf32>
    %434 = vector.broadcast %433 : vector<4x1xf32> to vector<4x18xf32>
    %435 = arith.mulf %430, %434 : vector<4x18xf32>
    %c0_354 = arith.constant 0 : index
    %c0_355 = arith.constant 0 : index
    %436 = vector.load %arg11[%c0_354, %c0_355] : memref<4x1xf32, #tpu.memory_space<vmem>>, vector<4x1xf32>
    %437 = vector.broadcast %436 : vector<4x1xf32> to vector<4x18xf32>
    %438 = arith.mulf %435, %437 : vector<4x18xf32>
    %c0_356 = arith.constant 0 : index
    %c0_357 = arith.constant 0 : index
    %439 = vector.load %arg12[%c0_356, %c0_357] : memref<4x1xf32, #tpu.memory_space<vmem>>, vector<4x1xf32>
    %440 = vector.broadcast %439 : vector<4x1xf32> to vector<4x18xf32>
    %441 = arith.addf %438, %440 : vector<4x18xf32>
    %cst_358 = arith.constant 0.000000e+00 : f32
    %442 = vector.broadcast %cst_358 : f32 to vector<4x18xf32>
    %443 = arith.maximumf %441, %442 : vector<4x18xf32>
    %cst_359 = arith.constant 0.000000e+00 : bf16
    %444 = vector.broadcast %cst_359 : bf16 to vector<4x50xbf16>
    %c0_360 = arith.constant 0 : index
    %c0_361 = arith.constant 0 : index
    %445 = vector.load %arg24[%c0_360, %c0_361] : memref<32x424xbf16, #tpu.memory_space<vmem>>, vector<4x50xbf16>
    tpu.vector_store %arg24[%c0_360, %c0_361], %444 {strides = array<i32>} : memref<32x424xbf16, #tpu.memory_space<vmem>>, vector<4x50xbf16>,
    %446 = arith.truncf %443 : vector<4x18xf32> to vector<4x18xbf16>
    %c0_362 = arith.constant 0 : index
    %c16_363 = arith.constant 16 : index
    %447 = vector.load %arg24[%c0_362, %c16_363] : memref<32x424xbf16, #tpu.memory_space<vmem>>, vector<4x18xbf16>
    tpu.vector_store %arg24[%c0_362, %c16_363], %446 {strides = array<i32>} : memref<32x424xbf16, #tpu.memory_space<vmem>>, vector<4x18xbf16>,
    %cst_364 = arith.constant 0.000000e+00 : f32
    %448 = vector.broadcast %cst_364 : f32 to vector<8x18xf32>
    %c0_365 = arith.constant 0 : index
    %c12_366 = arith.constant 12 : index
    %449 = vector.load %arg24[%c0_365, %c12_366] : memref<32x424xbf16, #tpu.memory_space<vmem>>, vector<4x18xbf16>
    %c0_367 = arith.constant 0 : index
    %c0_368 = arith.constant 0 : index
    %c0_369 = arith.constant 0 : index
    %450 = vector.load %arg13[%c0_367, %c0_368, %c0_369] : memref<9x8x4xbf16, #tpu.memory_space<vmem>>, vector<1x8x4xbf16>
    %451 = vector.shape_cast %450 : vector<1x8x4xbf16> to vector<8x4xbf16>
    %cst_370 = arith.constant dense<0.000000e+00> : vector<8x18xf32>
    %452 = tpu.matmul %451, %449, %cst_370 {dimension_numbers = #tpu.dot_dimension_numbers<[1], [0], [0], [1], [0, 0, 1, 1], [], []>} : vector<8x4xbf16>, vector<4x18xbf16>, vector<8x18xf32> -> vector<8x18xf32>
    %c0_371 = arith.constant 0 : index
    %c0_372 = arith.constant 0 : index
    %453 = vector.load %arg19[%c0_371, %c0_372] : memref<9x18xf32, #tpu.memory_space<vmem>>, vector<1x18xf32>
    %454 = vector.broadcast %453 : vector<1x18xf32> to vector<8x18xf32>
    %455 = arith.mulf %452, %454 : vector<8x18xf32>
    %456 = arith.addf %448, %455 : vector<8x18xf32>
    %c0_373 = arith.constant 0 : index
    %c13_374 = arith.constant 13 : index
    %457 = vector.load %arg24[%c0_373, %c13_374] : memref<32x424xbf16, #tpu.memory_space<vmem>>, vector<4x18xbf16>
    %c1_375 = arith.constant 1 : index
    %c0_376 = arith.constant 0 : index
    %c0_377 = arith.constant 0 : index
    %458 = vector.load %arg13[%c1_375, %c0_376, %c0_377] : memref<9x8x4xbf16, #tpu.memory_space<vmem>>, vector<1x8x4xbf16>
    %459 = vector.shape_cast %458 : vector<1x8x4xbf16> to vector<8x4xbf16>
    %cst_378 = arith.constant dense<0.000000e+00> : vector<8x18xf32>
    %460 = tpu.matmul %459, %457, %cst_378 {dimension_numbers = #tpu.dot_dimension_numbers<[1], [0], [0], [1], [0, 0, 1, 1], [], []>} : vector<8x4xbf16>, vector<4x18xbf16>, vector<8x18xf32> -> vector<8x18xf32>
    %c1_379 = arith.constant 1 : index
    %c0_380 = arith.constant 0 : index
    %461 = vector.load %arg19[%c1_379, %c0_380] : memref<9x18xf32, #tpu.memory_space<vmem>>, vector<1x18xf32>
    %462 = vector.broadcast %461 : vector<1x18xf32> to vector<8x18xf32>
    %463 = arith.mulf %460, %462 : vector<8x18xf32>
    %464 = arith.addf %456, %463 : vector<8x18xf32>
    %c0_381 = arith.constant 0 : index
    %c14_382 = arith.constant 14 : index
    %465 = vector.load %arg24[%c0_381, %c14_382] : memref<32x424xbf16, #tpu.memory_space<vmem>>, vector<4x18xbf16>
    %c2_383 = arith.constant 2 : index
    %c0_384 = arith.constant 0 : index
    %c0_385 = arith.constant 0 : index
    %466 = vector.load %arg13[%c2_383, %c0_384, %c0_385] : memref<9x8x4xbf16, #tpu.memory_space<vmem>>, vector<1x8x4xbf16>
    %467 = vector.shape_cast %466 : vector<1x8x4xbf16> to vector<8x4xbf16>
    %cst_386 = arith.constant dense<0.000000e+00> : vector<8x18xf32>
    %468 = tpu.matmul %467, %465, %cst_386 {dimension_numbers = #tpu.dot_dimension_numbers<[1], [0], [0], [1], [0, 0, 1, 1], [], []>} : vector<8x4xbf16>, vector<4x18xbf16>, vector<8x18xf32> -> vector<8x18xf32>
    %c2_387 = arith.constant 2 : index
    %c0_388 = arith.constant 0 : index
    %469 = vector.load %arg19[%c2_387, %c0_388] : memref<9x18xf32, #tpu.memory_space<vmem>>, vector<1x18xf32>
    %470 = vector.broadcast %469 : vector<1x18xf32> to vector<8x18xf32>
    %471 = arith.mulf %468, %470 : vector<8x18xf32>
    %472 = arith.addf %464, %471 : vector<8x18xf32>
    %c0_389 = arith.constant 0 : index
    %c15_390 = arith.constant 15 : index
    %473 = vector.load %arg24[%c0_389, %c15_390] : memref<32x424xbf16, #tpu.memory_space<vmem>>, vector<4x18xbf16>
    %c3_391 = arith.constant 3 : index
    %c0_392 = arith.constant 0 : index
    %c0_393 = arith.constant 0 : index
    %474 = vector.load %arg13[%c3_391, %c0_392, %c0_393] : memref<9x8x4xbf16, #tpu.memory_space<vmem>>, vector<1x8x4xbf16>
    %475 = vector.shape_cast %474 : vector<1x8x4xbf16> to vector<8x4xbf16>
    %cst_394 = arith.constant dense<0.000000e+00> : vector<8x18xf32>
    %476 = tpu.matmul %475, %473, %cst_394 {dimension_numbers = #tpu.dot_dimension_numbers<[1], [0], [0], [1], [0, 0, 1, 1], [], []>} : vector<8x4xbf16>, vector<4x18xbf16>, vector<8x18xf32> -> vector<8x18xf32>
    %c3_395 = arith.constant 3 : index
    %c0_396 = arith.constant 0 : index
    %477 = vector.load %arg19[%c3_395, %c0_396] : memref<9x18xf32, #tpu.memory_space<vmem>>, vector<1x18xf32>
    %478 = vector.broadcast %477 : vector<1x18xf32> to vector<8x18xf32>
    %479 = arith.mulf %476, %478 : vector<8x18xf32>
    %480 = arith.addf %472, %479 : vector<8x18xf32>
    %c0_397 = arith.constant 0 : index
    %c16_398 = arith.constant 16 : index
    %481 = vector.load %arg24[%c0_397, %c16_398] : memref<32x424xbf16, #tpu.memory_space<vmem>>, vector<4x18xbf16>
    %c4_399 = arith.constant 4 : index
    %c0_400 = arith.constant 0 : index
    %c0_401 = arith.constant 0 : index
    %482 = vector.load %arg13[%c4_399, %c0_400, %c0_401] : memref<9x8x4xbf16, #tpu.memory_space<vmem>>, vector<1x8x4xbf16>
    %483 = vector.shape_cast %482 : vector<1x8x4xbf16> to vector<8x4xbf16>
    %cst_402 = arith.constant dense<0.000000e+00> : vector<8x18xf32>
    %484 = tpu.matmul %483, %481, %cst_402 {dimension_numbers = #tpu.dot_dimension_numbers<[1], [0], [0], [1], [0, 0, 1, 1], [], []>} : vector<8x4xbf16>, vector<4x18xbf16>, vector<8x18xf32> -> vector<8x18xf32>
    %c4_403 = arith.constant 4 : index
    %c0_404 = arith.constant 0 : index
    %485 = vector.load %arg19[%c4_403, %c0_404] : memref<9x18xf32, #tpu.memory_space<vmem>>, vector<1x18xf32>
    %486 = vector.broadcast %485 : vector<1x18xf32> to vector<8x18xf32>
    %487 = arith.mulf %484, %486 : vector<8x18xf32>
    %488 = arith.addf %480, %487 : vector<8x18xf32>
    %c0_405 = arith.constant 0 : index
    %c17_406 = arith.constant 17 : index
    %489 = vector.load %arg24[%c0_405, %c17_406] : memref<32x424xbf16, #tpu.memory_space<vmem>>, vector<4x18xbf16>
    %c5_407 = arith.constant 5 : index
    %c0_408 = arith.constant 0 : index
    %c0_409 = arith.constant 0 : index
    %490 = vector.load %arg13[%c5_407, %c0_408, %c0_409] : memref<9x8x4xbf16, #tpu.memory_space<vmem>>, vector<1x8x4xbf16>
    %491 = vector.shape_cast %490 : vector<1x8x4xbf16> to vector<8x4xbf16>
    %cst_410 = arith.constant dense<0.000000e+00> : vector<8x18xf32>
    %492 = tpu.matmul %491, %489, %cst_410 {dimension_numbers = #tpu.dot_dimension_numbers<[1], [0], [0], [1], [0, 0, 1, 1], [], []>} : vector<8x4xbf16>, vector<4x18xbf16>, vector<8x18xf32> -> vector<8x18xf32>
    %c5_411 = arith.constant 5 : index
    %c0_412 = arith.constant 0 : index
    %493 = vector.load %arg19[%c5_411, %c0_412] : memref<9x18xf32, #tpu.memory_space<vmem>>, vector<1x18xf32>
    %494 = vector.broadcast %493 : vector<1x18xf32> to vector<8x18xf32>
    %495 = arith.mulf %492, %494 : vector<8x18xf32>
    %496 = arith.addf %488, %495 : vector<8x18xf32>
    %c0_413 = arith.constant 0 : index
    %c18_414 = arith.constant 18 : index
    %497 = vector.load %arg24[%c0_413, %c18_414] : memref<32x424xbf16, #tpu.memory_space<vmem>>, vector<4x18xbf16>
    %c6_415 = arith.constant 6 : index
    %c0_416 = arith.constant 0 : index
    %c0_417 = arith.constant 0 : index
    %498 = vector.load %arg13[%c6_415, %c0_416, %c0_417] : memref<9x8x4xbf16, #tpu.memory_space<vmem>>, vector<1x8x4xbf16>
    %499 = vector.shape_cast %498 : vector<1x8x4xbf16> to vector<8x4xbf16>
    %cst_418 = arith.constant dense<0.000000e+00> : vector<8x18xf32>
    %500 = tpu.matmul %499, %497, %cst_418 {dimension_numbers = #tpu.dot_dimension_numbers<[1], [0], [0], [1], [0, 0, 1, 1], [], []>} : vector<8x4xbf16>, vector<4x18xbf16>, vector<8x18xf32> -> vector<8x18xf32>
    %c6_419 = arith.constant 6 : index
    %c0_420 = arith.constant 0 : index
    %501 = vector.load %arg19[%c6_419, %c0_420] : memref<9x18xf32, #tpu.memory_space<vmem>>, vector<1x18xf32>
    %502 = vector.broadcast %501 : vector<1x18xf32> to vector<8x18xf32>
    %503 = arith.mulf %500, %502 : vector<8x18xf32>
    %504 = arith.addf %496, %503 : vector<8x18xf32>
    %c0_421 = arith.constant 0 : index
    %c19_422 = arith.constant 19 : index
    %505 = vector.load %arg24[%c0_421, %c19_422] : memref<32x424xbf16, #tpu.memory_space<vmem>>, vector<4x18xbf16>
    %c7_423 = arith.constant 7 : index
    %c0_424 = arith.constant 0 : index
    %c0_425 = arith.constant 0 : index
    %506 = vector.load %arg13[%c7_423, %c0_424, %c0_425] : memref<9x8x4xbf16, #tpu.memory_space<vmem>>, vector<1x8x4xbf16>
    %507 = vector.shape_cast %506 : vector<1x8x4xbf16> to vector<8x4xbf16>
    %cst_426 = arith.constant dense<0.000000e+00> : vector<8x18xf32>
    %508 = tpu.matmul %507, %505, %cst_426 {dimension_numbers = #tpu.dot_dimension_numbers<[1], [0], [0], [1], [0, 0, 1, 1], [], []>} : vector<8x4xbf16>, vector<4x18xbf16>, vector<8x18xf32> -> vector<8x18xf32>
    %c7_427 = arith.constant 7 : index
    %c0_428 = arith.constant 0 : index
    %509 = vector.load %arg19[%c7_427, %c0_428] : memref<9x18xf32, #tpu.memory_space<vmem>>, vector<1x18xf32>
    %510 = vector.broadcast %509 : vector<1x18xf32> to vector<8x18xf32>
    %511 = arith.mulf %508, %510 : vector<8x18xf32>
    %512 = arith.addf %504, %511 : vector<8x18xf32>
    %c0_429 = arith.constant 0 : index
    %c20_430 = arith.constant 20 : index
    %513 = vector.load %arg24[%c0_429, %c20_430] : memref<32x424xbf16, #tpu.memory_space<vmem>>, vector<4x18xbf16>
    %c8_431 = arith.constant 8 : index
    %c0_432 = arith.constant 0 : index
    %c0_433 = arith.constant 0 : index
    %514 = vector.load %arg13[%c8_431, %c0_432, %c0_433] : memref<9x8x4xbf16, #tpu.memory_space<vmem>>, vector<1x8x4xbf16>
    %515 = vector.shape_cast %514 : vector<1x8x4xbf16> to vector<8x4xbf16>
    %cst_434 = arith.constant dense<0.000000e+00> : vector<8x18xf32>
    %516 = tpu.matmul %515, %513, %cst_434 {dimension_numbers = #tpu.dot_dimension_numbers<[1], [0], [0], [1], [0, 0, 1, 1], [], []>} : vector<8x4xbf16>, vector<4x18xbf16>, vector<8x18xf32> -> vector<8x18xf32>
    %c8_435 = arith.constant 8 : index
    %c0_436 = arith.constant 0 : index
    %517 = vector.load %arg19[%c8_435, %c0_436] : memref<9x18xf32, #tpu.memory_space<vmem>>, vector<1x18xf32>
    %518 = vector.broadcast %517 : vector<1x18xf32> to vector<8x18xf32>
    %519 = arith.mulf %516, %518 : vector<8x18xf32>
    %520 = arith.addf %512, %519 : vector<8x18xf32>
    %c0_437 = arith.constant 0 : index
    %c0_438 = arith.constant 0 : index
    %521 = vector.load %arg14[%c0_437, %c0_438] : memref<8x1xf32, #tpu.memory_space<vmem>>, vector<8x1xf32>
    %522 = vector.broadcast %521 : vector<8x1xf32> to vector<8x18xf32>
    %523 = arith.addf %520, %522 : vector<8x18xf32>
    %cst_439 = arith.constant 0.000000e+00 : f32
    %524 = vector.broadcast %cst_439 : f32 to vector<8x18xf32>
    %525 = arith.maximumf %523, %524 : vector<8x18xf32>
    %c0_440 = arith.constant 0 : index
    %c0_441 = arith.constant 0 : index
    %526 = vector.load %arg22[%c0_440, %c0_441] : memref<18x2xf32, #tpu.memory_space<vmem>>, vector<18x2xf32>
    %cst_442 = arith.constant dense<0.000000e+00> : vector<8x2xf32>
    %527 = tpu.matmul %525, %526, %cst_442 {dimension_numbers = #tpu.dot_dimension_numbers<[1], [0], [0], [1], [0, 0, 1, 1], [], []>} : vector<8x18xf32>, vector<18x2xf32>, vector<8x2xf32> -> vector<8x2xf32>
    %c0_443 = arith.constant 0 : index
    %c0_444 = arith.constant 0 : index
    %528 = vector.load %arg15[%c0_443, %c0_444] : memref<10x8xf32, #tpu.memory_space<vmem>>, vector<10x8xf32>
    %cst_445 = arith.constant dense<0.000000e+00> : vector<10x2xf32>
    %529 = tpu.matmul %528, %527, %cst_445 {dimension_numbers = #tpu.dot_dimension_numbers<[1], [0], [0], [1], [0, 0, 1, 1], [], []>} : vector<10x8xf32>, vector<8x2xf32>, vector<10x2xf32> -> vector<10x2xf32>
    %c0_446 = arith.constant 0 : index
    %c0_447 = arith.constant 0 : index
    %530 = vector.load %arg16[%c0_446, %c0_447] : memref<10x1xf32, #tpu.memory_space<vmem>>, vector<10x1xf32>
    %531 = vector.broadcast %530 : vector<10x1xf32> to vector<10x2xf32>
    %532 = arith.addf %529, %531 : vector<10x2xf32>
    %cst_448 = arith.constant dense<0xFF800000> : vector<2xf32>
    %533 = vector.multi_reduction <maximumf>, %532, %cst_448 [0] : vector<10x2xf32> to vector<2xf32>
    %534 = vector.shape_cast %533 : vector<2xf32> to vector<1x2xf32>
    %535 = vector.broadcast %534 : vector<1x2xf32> to vector<10x2xf32>
    %536 = arith.subf %532, %535 : vector<10x2xf32>
    %537 = math.exp %536 : vector<10x2xf32>
    %cst_449 = arith.constant dense<0.000000e+00> : vector<2xf32>
    %538 = vector.multi_reduction <add>, %537, %cst_449 [0] : vector<10x2xf32> to vector<2xf32>
    %539 = vector.shape_cast %538 : vector<2xf32> to vector<1x2xf32>
    %540 = math.log %539 : vector<1x2xf32>
    %541 = arith.addf %534, %540 : vector<1x2xf32>
    %542 = vector.broadcast %541 : vector<1x2xf32> to vector<10x2xf32>
    %543 = arith.subf %532, %542 : vector<10x2xf32>
    %c0_450 = arith.constant 0 : index
    %c0_451 = arith.constant 0 : index
    %544 = vector.load %arg23[%c0_450, %c0_451] : memref<10x2xf32, #tpu.memory_space<vmem>>, vector<10x2xf32>
    tpu.vector_store %arg23[%c0_450, %c0_451], %543 {strides = array<i32>} : memref<10x2xf32, #tpu.memory_space<vmem>>, vector<10x2xf32>,
    return
  }
}

</mosaic_0001>

<bundles_post_ra>
// kernel: s6_model_forward.2
= control target key start
LH: loop header
LB: loop body
LE: loop exit
PB: predicated region body
PF: predicated region fallthrough
CT: control target
= control target key end

     0   :  { %v1644_v1 = vmov 0   ;;  %vm319_vm0 = vcmask 1040384   ;;  %vm312_vm1 = vcmask 400384   ;;  %vm739_vm2 = vcmask 261120   ;;  %s2741_s0 = inlined_call_operand.vmem [shape: bf16[49,1568], index: 0, kind: input, shape index: {}]   ;;  %s2742_s1 = inlined_call_operand.vmem [shape: bf16[32,49], index: 1, kind: input, shape index: {}]   ;;  %s2743_s2 = inlined_call_operand.vmem [shape: f32[32,1], index: 2, kind: input, shape index: {}]   ;;  %s2744_s3 = inlined_call_operand.vmem [shape: f32[32,1], index: 3, kind: input, shape index: {}]   ;;  %s2745_s4 = inlined_call_operand.vmem [shape: bf16[32,1568], index: 4, kind: output, shape index: {}]  }
   0x1   :  { %v1564_v0 = vld [vmem:[%s2741_s0 + $0x4] ss:$52 sps:$4 sm:$0xff]   ;;  %393 = vmatprep.mubr.bf16.mxu0 %v1644_v1  ;;  %446 = vmatprep.mubr.bf16.mxu1 %v1644_v1  ;;  %v1566_v2 = vld [vmem:[%s2741_s0] ss:$52 sps:$4 sm:$0xff]   ;;  %v1571_v5 = vld [vmem:[%s2741_s0 + $0x8] ss:$52 sps:$4 sm:$0xff]  }
   0x2   :  { %1563 = vset.pattern.permute.xlu1 %v1644_v1  ;;  %1562 = vset.pattern.permute.xlu0 %v1644_v1  ;;  %v1567_v3 = vld [vmem:[%s2741_s0 + $0xc] ss:$52 sps:$4 sm:$0xff]   ;;  %v1572_v6 = vld [vmem:[%s2741_s0 + $0x68] ss:$52 sps:$4 sm:$0xff]   ;;  %v1577_v9 = vld [vmem:[%s2741_s0 + $0x70] ss:$52 sps:$4 sm:$0xff]  }
   0x3   :  { %361 = vmatprep.subr.bf16.mxu0 %v1564_v0  ;;  %v1569_v4 = vld [vmem:[%s2741_s0 + $0x6c] ss:$52 sps:$4 sm:$0xff]   ;;  %414 = vmatprep.subr.bf16.mxu1 %v1567_v3  ;;  %v1573_v7 = vld [vmem:[%s2741_s0 + $0x74] ss:$52 sps:$4 sm:$0xff]   ;;  %v1578_v10 = vld [vmem:[%s2741_s0 + $0xd0] ss:$52 sps:$4 sm:$0xff]  }
   0x4   :  { %362 = vmatpush1.bf16.msra.mxu0 %v1566_v2  ;;  %415 = vmatpush1.bf16.msra.mxu1 %v1571_v5  ;;  %v1575_v8 = vld [vmem:[%s2741_s0 + $0xd4] ss:$52 sps:$4 sm:$0xff]   ;;  %v1579_v11 = vld [vmem:[%s2741_s0 + $0xdc] ss:$52 sps:$4 sm:$0xff]   ;;  %v1711_v13 = vsel %vm319_vm0, 65535, %v1644_v1  ;;  %v1729_v25 = vld [vmem:[%s2742_s1] sm:$0xff]  }
   0x5   :  { %363 = vmatprep.subr.bf16.mxu0 %v1569_v4  ;;  %416 = vmatprep.subr.bf16.mxu1 %v1573_v7  ;;  %v64_v12 = vld [vmem:[%s2741_s0 + $0x138] sm:$0x11]  ;;  %v65_v16 = vld [vmem:[%s2741_s0 + $0x140] sm:$0x11]  ;;  %v1589_v23 = vld [vmem:[%s2741_s0 + $0x14] ss:$52 sps:$4 sm:$0xff]  }
   0x6   :  { %v1461_v14 = vcombine.high %v64_v12, %v64_v12  ;;  %v1460_v15 = vcombine.low %v64_v12, %v64_v12  ;;  %v1582_v17 = vld [vmem:[%s2741_s0 + $0xd8] ss:$52 sps:$4 sm:$0xff]   ;;  %v1463_v18 = vcombine.high %v65_v16, %v65_v16  ;;  %v1462_v19 = vcombine.low %v65_v16, %v65_v16  ;;  %v1592_v26 = vld [vmem:[%s2741_s0 + $0x1c] ss:$52 sps:$4 sm:$0xff]   ;;  %v1596_v36 = vld [vmem:[%s2741_s0 + $0x80] ss:$52 sps:$4 sm:$0xff]  }
   0x7   :  { %v1587_v27 = vld [vmem:[%s2741_s0 + $0x10] ss:$52 sps:$4 sm:$0xff]   ;;  %v1590_v29 = vld [vmem:[%s2741_s0 + $0x18] ss:$52 sps:$4 sm:$0xff]   ;;  %v1600_v40 = vld [vmem:[%s2741_s0 + $0xe0] ss:$52 sps:$4 sm:$0xff]  }
   0x8   :  { %364 = vmatpush1.bf16.msra.mxu0 %v1572_v6  ;;  %417 = vmatpush1.bf16.msra.mxu1 %v1577_v9  ;;  %v326_v20 = vand.u32 %v1461_v14, %v1711_v13  ;;  %v323_v21 = vand.u32 %v1460_v15, %v1711_v13  ;;  %v332_v22 = vand.u32 %v1463_v18, %v1711_v13  ;;  %v1595_v28 = vld [vmem:[%s2741_s0 + $0x7c] ss:$52 sps:$4 sm:$0xff]   ;;  %v1593_v30 = vld [vmem:[%s2741_s0 + $0x78] ss:$52 sps:$4 sm:$0xff]   ;;  %v1610_v50 = vld [vmem:[%s2741_s0 + $0x20] ss:$52 sps:$4 sm:$0xff]  }
   0x9   :  { %365 = vmatprep.subr.bf16.mxu0 %v1575_v8  ;;  %418 = vmatprep.subr.bf16.mxu1 %v1579_v11  ;;  %v329_v24 = vand.u32 %v1462_v19, %v1711_v13  ;;  %v1598_v31 = vld [vmem:[%s2741_s0 + $0x84] ss:$52 sps:$4 sm:$0xff]   ;;  %v66_v32 = vld [vmem:[%s2741_s0 + $0x148] sm:$0x11]  ;;  %v67_v33 = vld [vmem:[%s2741_s0 + $0x150] sm:$0x11] }
   0xa   :  { %v1602_v34 = vld [vmem:[%s2741_s0 + $0xe4] ss:$52 sps:$4 sm:$0xff]   ;;  %v1465_v35 = vcombine.high %v66_v32, %v66_v32  ;;  %v1769_v37 = vld [vmem:[%s2742_s1 + $0x8] sm:$0xff]   ;;  %v1467_v39 = vcombine.high %v67_v33, %v67_v33  ;;  %v1464_v41 = vcombine.low %v66_v32, %v66_v32  ;;  %v1466_v44 = vcombine.low %v67_v33, %v67_v33  ;;  %v1627_v60 = vld [vmem:[%s2741_s0 + $0xfc] ss:$52 sps:$4 sm:$0xff]  }
   0xb   :  { %v1605_v38 = vld [vmem:[%s2741_s0 + $0xec] ss:$52 sps:$4 sm:$0xff]   ;;  %v1603_v43 = vld [vmem:[%s2741_s0 + $0xe8] ss:$52 sps:$4 sm:$0xff]   ;;  %v1612_v47 = vld [vmem:[%s2741_s0 + $0x24] ss:$52 sps:$4 sm:$0xff]  }
   0xc   :  { %366 = vmatpush1.bf16.msra.mxu0 %v1578_v10  ;;  %419 = vmatpush1.bf16.msra.mxu1 %v1582_v17  ;;  %v338_v42 = vand.u32 %v1465_v35, %v1711_v13  ;;  %v344_v45 = vand.u32 %v1467_v39, %v1711_v13  ;;  %v335_v46 = vand.u32 %v1464_v41, %v1711_v13  ;;  %v1615_v49 = vld [vmem:[%s2741_s0 + $0x2c] ss:$52 sps:$4 sm:$0xff]   ;;  %v1613_v52 = vld [vmem:[%s2741_s0 + $0x28] ss:$52 sps:$4 sm:$0xff]   ;;  %v1619_v59 = vld [vmem:[%s2741_s0 + $0x90] ss:$52 sps:$4 sm:$0xff]  }
   0xd   :  { %367 = vmatprep.subr.bf16.mxu0 %v326_v20  ;;  %420 = vmatprep.subr.bf16.mxu1 %v332_v22  ;;  %v341_v48 = vand.u32 %v1466_v44, %v1711_v13  ;;  %v1618_v51 = vld [vmem:[%s2741_s0 + $0x8c] ss:$52 sps:$4 sm:$0xff]   ;;  %v68_v53 = vld [vmem:[%s2741_s0 + $0x158] sm:$0x11]  ;;  %v1621_v54 = vld [vmem:[%s2741_s0 + $0x94] ss:$52 sps:$4 sm:$0xff]  }
   0xe   :  { %v1616_v55 = vld [vmem:[%s2741_s0 + $0x88] ss:$52 sps:$4 sm:$0xff]   ;;  %v69_v56 = vld [vmem:[%s2741_s0 + $0x160] sm:$0x11]  ;;  %v1469_v58 = vcombine.high %v68_v53, %v68_v53  ;;  %v1468_v63 = vcombine.low %v68_v53, %v68_v53  ;;  %v1625_v2 = vld [vmem:[%s2741_s0 + $0xf8] ss:$52 sps:$4 sm:$0xff]  }
   0xf   :  { %v1624_v57 = vld [vmem:[%s2741_s0 + $0xf4] ss:$52 sps:$4 sm:$0xff]   ;;  %v1471_v61 = vcombine.high %v69_v56, %v69_v56  ;;  %v1622_v62 = vld [vmem:[%s2741_s0 + $0xf0] ss:$52 sps:$4 sm:$0xff]   ;;  %v1470_v3 = vcombine.low %v69_v56, %v69_v56  ;;  %v1633_v8 = vld [vmem:[%s2741_s0 + $0x98] ss:$52 sps:$4 sm:$0xff]  }
  0x10   :  { %368 = vmatpush1.bf16.msra.mxu0 %v323_v21  ;;  %421 = vmatpush1.bf16.msra.mxu1 %v329_v24  ;;  %v350_v0 = vand.u32 %v1469_v58, %v1711_v13  ;;  %v347_v5 = vand.u32 %v1468_v63, %v1711_v13  ;;  %v1632_v6 = vld [vmem:[%s2741_s0 + $0x30] ss:$52 sps:$4 sm:$0xff]   ;;  %v1634_v9 = vld [vmem:[%s2741_s0 + $0x100] ss:$52 sps:$4 sm:$0xff]   ;;  %vm1392_vm3 = vcmask 257024  }
  0x11   :  { %467 = vmatprep.subr.bf16.mxu0 %v1589_v23  ;;  %520 = vmatprep.subr.bf16.mxu1 %v1592_v26  ;;  %v356_v4 = vand.u32 %v1471_v61, %v1711_v13  ;;  %v353_v7 = vand.u32 %v1470_v3, %v1711_v13  ;;  %v1635_v10 = vld [vmem:[%s2741_s0 + $0x168] ss:$0 sps:$4 sm:$0x11]  }
  0x12   :  { %v359_v11 = vand.u32 %v1635_v10, %v1711_v13 }
  0x13   :  { %1473 = vmatmul.mubr.msk.bf16.vlgmr.msra.gmra.mrb[0].mxu0 %vm312_vm1, %v1729_v25  ;;  %1475 = vmatmul.mubr.msk.bf16.vlgmr.msra.gmra.mrb[0].mxu1 %vm312_vm1, %v1729_v25 }
  0x14   :  { %468 = vmatpush1.bf16.msra.mxu0 %v1587_v27  ;;  %403 = vmatprep.mubr.bf16.mxu0 %v1644_v1 }
  0x15   :  { %469 = vmatprep.subr.bf16.mxu0 %v1595_v28  ;;  %521 = vmatpush1.bf16.msra.mxu1 %v1590_v29 }
  0x16   :  { %456 = vmatprep.mubr.bf16.mxu1 %v1644_v1  ;;  %522 = vmatprep.subr.bf16.mxu1 %v1598_v31 }
  0x18   :  { %470 = vmatpush1.bf16.msra.mxu0 %v1593_v30 }
  0x19   :  { %471 = vmatprep.subr.bf16.mxu0 %v1602_v34  ;;  %523 = vmatpush1.bf16.msra.mxu1 %v1596_v36 }
  0x1a   :  { %524 = vmatprep.subr.bf16.mxu1 %v1605_v38 }
  0x1b   :  { %1474 = vmatmul.mubr.msk.bf16.gmra.mrb[4].mxu0 %vm312_vm1, %v1769_v37  ;;  %1476 = vmatmul.mubr.msk.bf16.gmra.mrb[4].mxu1 %vm312_vm1, %v1769_v37 }
  0x1c   :  { %472 = vmatpush1.bf16.msra.mxu0 %v1600_v40  ;;  %499 = vmatprep.mubr.bf16.mxu0 %v1644_v1 }
  0x1d   :  { %473 = vmatprep.subr.bf16.mxu0 %v338_v42  ;;  %525 = vmatpush1.bf16.msra.mxu1 %v1603_v43 }
  0x1e   :  { %552 = vmatprep.mubr.bf16.mxu1 %v1644_v1  ;;  %526 = vmatprep.subr.bf16.mxu1 %v344_v45 }
  0x20   :  { %474 = vmatpush1.bf16.msra.mxu0 %v335_v46 }
  0x21   :  { %573 = vmatprep.subr.bf16.mxu0 %v1612_v47  ;;  %527 = vmatpush1.bf16.msra.mxu1 %v341_v48 }
  0x22   :  { %626 = vmatprep.subr.bf16.mxu1 %v1615_v49 }
  0x23   :  { %1477 = vmatmul.mubr.msk.bf16.vlgmr.msra.gmra.mrb[8].mxu0 %vm312_vm1, %v1729_v25 }
  0x24   :  { %574 = vmatpush1.bf16.msra.mxu0 %v1610_v50  ;;  %509 = vmatprep.mubr.bf16.mxu0 %v1644_v1 }
  0x25   :  { %1479 = vmatmul.mubr.msk.bf16.vlgmr.msra.gmra.mrb[8].mxu1 %vm312_vm1, %v1729_v25  ;;  %575 = vmatprep.subr.bf16.mxu0 %v1618_v51 }
  0x26   :  { %627 = vmatpush1.bf16.msra.mxu1 %v1613_v52  ;;  %562 = vmatprep.mubr.bf16.mxu1 %v1644_v1 }
  0x27   :  { %628 = vmatprep.subr.bf16.mxu1 %v1621_v54 }
  0x28   :  { %576 = vmatpush1.bf16.msra.mxu0 %v1616_v55 }
  0x29   :  { %577 = vmatprep.subr.bf16.mxu0 %v1624_v57 }
  0x2a   :  { %629 = vmatpush1.bf16.msra.mxu1 %v1619_v59 }
  0x2b   :  { %1478 = vmatmul.mubr.msk.bf16.gmra.mrb[12].mxu0 %vm312_vm1, %v1769_v37  ;;  %630 = vmatprep.subr.bf16.mxu1 %v1627_v60 }
  0x2c   :  { %578 = vmatpush1.bf16.msra.mxu0 %v1622_v62  ;;  %605 = vmatprep.mubr.bf16.mxu0 %v1644_v1 }
  0x2d   :  { %1480 = vmatmul.mubr.msk.bf16.gmra.mrb[12].mxu1 %vm312_vm1, %v1769_v37  ;;  %579 = vmatprep.subr.bf16.mxu0 %v350_v0 }
  0x2e   :  { %631 = vmatpush1.bf16.msra.mxu1 %v1625_v2  ;;  %658 = vmatprep.mubr.bf16.mxu1 %v1644_v1 }
  0x2f   :  { %632 = vmatprep.subr.bf16.mxu1 %v356_v4 }
  0x30   :  { %580 = vmatpush1.bf16.msra.mxu0 %v347_v5 }
  0x31   :  { %1549 = vmatprep.subr.bf16.mxu0 %v1632_v6 }
  0x32   :  { %633 = vmatpush1.bf16.msra.mxu1 %v353_v7 }
  0x33   :  { %1481 = vmatmul.mubr.msk.bf16.vlgmr.msra.gmra.mrb[16].mxu0 %vm312_vm1, %v1729_v25 }
  0x34   :  { %1550 = vmatpush3.bf16.msra.mxu0 %v1632_v6  ;;  %615 = vmatprep.mubr.bf16.mxu0 %v1644_v1 }
  0x35   :  { %1483 = vmatmul.mubr.msk.bf16.vlgmr.msra.gmra.mrb[16].mxu1 %vm312_vm1, %v1729_v25  ;;  %1551 = vmatprep.subr.bf16.mxu0 %v1633_v8 }
  0x36   :  { %668 = vmatprep.mubr.bf16.mxu1 %v1644_v1 }
  0x38   :  { %1552 = vmatpush3.bf16.msra.mxu0 %v1633_v8 }
  0x39   :  { %1553 = vmatprep.subr.bf16.mxu0 %v1634_v9 }
  0x3b   :  { %1482 = vmatmul.mubr.msk.bf16.gmra.mrb[20].mxu0 %vm312_vm1, %v1769_v37 }
  0x3c   :  { %1554 = vmatpush3.bf16.msra.mxu0 %v1634_v9  ;;  %1557 = vmatprep.mubr.msk.bf16.mxu0 %vm312_vm1, %v1729_v25 }
  0x3d   :  { %1484 = vmatmul.mubr.msk.bf16.gmra.mrb[20].mxu1 %vm312_vm1, %v1769_v37  ;;  %1555 = vmatprep.subr.bf16.mxu0 %v359_v11 }
  0x40   :  { %1556 = vmatpush3.bf16.msra.mxu0 %v359_v11 }
  0x43   :  { %1558 = vmatmul.mubr.msk.bf16.vlgmr.msra.gmra.mrb[24].mxu0 %vm312_vm1, %v1769_v37 }
  0xe6   :  { %v1876_v1 = vpop.f32.mrb[0].mxu0  ;;  %v1884_v15 = vpop.f32.mrb[0].mxu1 }
  0xe7   :  { %v1878_v12 = vpop.f32.mrb[1].mxu0  ;;  %v1888_v17 = vpop.f32.mrb[1].mxu1 }
  0xe8   :  { %v728_v13 = vadd.f32 %v1878_v12, %v1876_v1  ;;  %v1882_v14 = vpop.f32.mrb[2].mxu0  ;;  %v1893_v20 = vpop.f32.mrb[2].mxu1 }
  0xe9   :  { %v1886_v16 = vpop.f32.mrb[3].mxu0  ;;  %v1895_v21 = vpop.f32.mrb[3].mxu1 }
  0xea   :  { %v744_v18 = vadd.f32 %v1886_v16, %v1882_v14  ;;  %v729_v19 = vadd.f32 %v728_v13, %v1884_v15 }
  0xec   :  { %v730_v22 = vadd.f32 %v729_v19, %v1888_v17  ;;  %v745_v23 = vadd.f32 %v744_v18, %v1893_v20 }
  0xee   :  { %v746_v24 = vadd.f32 %v745_v23, %v1895_v21  ;;  %v1900_v25 = vpop.f32.mrb[4].mxu0  ;;  %v1908_v29 = vpop.f32.mrb[4].mxu1 }
  0xef   :  { %v1902_v26 = vpop.f32.mrb[5].mxu0  ;;  %v1912_v31 = vpop.f32.mrb[5].mxu1 }
  0xf0   :  { %v759_v27 = vadd.f32 %v1902_v26, %v1900_v25  ;;  %v1906_v28 = vpop.f32.mrb[6].mxu0  ;;  %v1917_v34 = vpop.f32.mrb[6].mxu1 }
  0xf1   :  { %v1910_v30 = vpop.f32.mrb[7].mxu0  ;;  %v1919_v35 = vpop.f32.mrb[7].mxu1 }
  0xf2   :  { %v774_v32 = vadd.f32 %v1910_v30, %v1906_v28  ;;  %v760_v33 = vadd.f32 %v759_v27, %v1908_v29 }
  0xf4   :  { %v761_v36 = vadd.f32 %v760_v33, %v1912_v31  ;;  %v775_v37 = vadd.f32 %v774_v32, %v1917_v34 }
  0xf6   :  { %v776_v38 = vadd.f32 %v775_v37, %v1919_v35  ;;  %v1924_v39 = vpop.f32.mrb[8].mxu0 }
  0xf7   :  { %v731_v40 = vadd.f32 %v730_v22, %v1924_v39  ;;  %v1927_v41 = vpop.f32.mrb[9].mxu0 }
  0xf8   :  { %v1929_v42 = vpop.f32.mrb[10].mxu0  ;;  %v1931_v43 = vpop.f32.mrb[8].mxu1 }
  0xf9   :  { %v732_v44 = vadd.f32 %v731_v40, %v1927_v41  ;;  %v747_v45 = vadd.f32 %v746_v24, %v1929_v42  ;;  %v1935_v46 = vpop.f32.mrb[11].mxu0  ;;  %v1937_v47 = vpop.f32.mrb[9].mxu1 }
  0xfa   :  { %v1939_v48 = vpop.f32.mrb[10].mxu1 }
  0xfb   :  { %v748_v49 = vadd.f32 %v747_v45, %v1935_v46  ;;  %v733_v50 = vadd.f32 %v732_v44, %v1931_v43  ;;  %v1943_v51 = vpop.f32.mrb[11].mxu1 }
  0xfd   :  { %v734_v52 = vadd.f32 %v733_v50, %v1937_v47  ;;  %v749_v53 = vadd.f32 %v748_v49, %v1939_v48 }
  0xfe   :  { %v1947_v54 = vpop.f32.mrb[12].mxu0 }
  0xff   :  { %v750_v55 = vadd.f32 %v749_v53, %v1943_v51  ;;  %v762_v56 = vadd.f32 %v761_v36, %v1947_v54  ;;  %v1951_v57 = vpop.f32.mrb[13].mxu0 }
 0x100   :  { %v1953_v58 = vpop.f32.mrb[14].mxu0  ;;  %v1955_v59 = vpop.f32.mrb[12].mxu1 }
 0x101   :  { %v763_v60 = vadd.f32 %v762_v56, %v1951_v57  ;;  %v777_v61 = vadd.f32 %v776_v38, %v1953_v58  ;;  %v1959_v62 = vpop.f32.mrb[15].mxu0  ;;  %v1961_v63 = vpop.f32.mrb[13].mxu1 }
 0x102   :  { %v1963_v0 = vpop.f32.mrb[14].mxu1 }
 0x103   :  { %v778_v2 = vadd.f32 %v777_v61, %v1959_v62  ;;  %v764_v3 = vadd.f32 %v763_v60, %v1955_v59  ;;  %v1967_v4 = vpop.f32.mrb[15].mxu1 }
 0x105   :  { %v765_v5 = vadd.f32 %v764_v3, %v1961_v63  ;;  %v779_v6 = vadd.f32 %v778_v2, %v1963_v0 }
 0x106   :  { %v1971_v7 = vpop.f32.mrb[16].mxu0 }
 0x107   :  { %v780_v8 = vadd.f32 %v779_v6, %v1967_v4  ;;  %v735_v9 = vadd.f32 %v734_v52, %v1971_v7  ;;  %v1975_v10 = vpop.f32.mrb[17].mxu0 }
 0x108   :  { %v1977_v11 = vpop.f32.mrb[18].mxu0  ;;  %v1979_v13 = vpop.f32.mrb[16].mxu1 }
 0x109   :  { %v736_v18 = vadd.f32 %v735_v9, %v1975_v10  ;;  %v751_v19 = vadd.f32 %v750_v55, %v1977_v11  ;;  %v1983_v22 = vpop.f32.mrb[19].mxu0  ;;  %v1985_v23 = vpop.f32.mrb[17].mxu1 }
 0x10a   :  { %v1987_v24 = vpop.f32.mrb[18].mxu1 }
 0x10b   :  { %v752_v27 = vadd.f32 %v751_v19, %v1983_v22  ;;  %v737_v32 = vadd.f32 %v736_v18, %v1979_v13  ;;  %v1991_v33 = vpop.f32.mrb[19].mxu1 }
 0x10d   :  { %v738_v36 = vadd.f32 %v737_v32, %v1985_v23  ;;  %v753_v37 = vadd.f32 %v752_v27, %v1987_v24 }
 0x10e   :  { %v1995_v38 = vpop.f32.mrb[20].mxu0 }
 0x10f   :  { %v754_v40 = vadd.f32 %v753_v37, %v1991_v33  ;;  %v766_v44 = vadd.f32 %v765_v5, %v1995_v38  ;;  %v1999_v45 = vpop.f32.mrb[21].mxu0 }
 0x110   :  { %v2001_v49 = vpop.f32.mrb[22].mxu0  ;;  %v2003_v50 = vpop.f32.mrb[20].mxu1 }
 0x111   :  { %v767_v52 = vadd.f32 %v766_v44, %v1999_v45  ;;  %v781_v53 = vadd.f32 %v780_v8, %v2001_v49  ;;  %v2007_v55 = vpop.f32.mrb[23].mxu0  ;;  %v2009_v56 = vpop.f32.mrb[21].mxu1 }
 0x112   :  { %v2011_v60 = vpop.f32.mrb[22].mxu1 }
 0x113   :  { %v782_v61 = vadd.f32 %v781_v53, %v2007_v55  ;;  %v768_v2 = vadd.f32 %v767_v52, %v2003_v50  ;;  %v2015_v3 = vpop.f32.mrb[23].mxu1 }
 0x115   :  { %v769_v5 = vadd.f32 %v768_v2, %v2009_v56  ;;  %v783_v6 = vadd.f32 %v782_v61, %v2011_v60 }
 0x116   :  { %v2019_v9 = vpop.f32.mrb[24].mxu0 }
 0x117   :  { %v784_v8 = vadd.f32 %v783_v6, %v2015_v3  ;;  %v2022_v18 = vpop.f32.mrb[25].mxu0  ;;  %v770_v19 = vsel %vm739_vm2, %v2019_v9, 0.0 }
 0x118   :  { %v2026_v27 = vpop.f32.mrb[26].mxu0  ;;  %v771_v32 = vadd.f32 %v770_v19, %v769_v5  ;;  %v740_v37 = vsel %vm739_vm2, %v2022_v18, 0.0  ;;  %v1023_v5 = vld [vmem:[%s2743_s2 + $0x8] sm:$0xff]  ;;  %v1024_v19 = vld [vmem:[%s2743_s2 + $0x10] sm:$0xff] }
 0x119   :  { %v785_v44 = vsel %vm739_vm2, %v2026_v27, 0.0  ;;  %v2032_v52 = vpop.f32.mrb[27].mxu0  ;;  %v741_v53 = vadd.f32 %v740_v37, %v738_v36  ;;  %v1025_v36 = vld [vmem:[%s2743_s2 + $0x18] sm:$0xff] }
 0x11a   :  { %v755_v61 = vsel %vm739_vm2, %v2032_v52, 0.0  ;;  %772 = vadd.xlane.f32.xlu1 %v771_v32  ;;  %v786_v2 = vadd.f32 %v785_v44, %v784_v8  ;;  %v1099_v8 = vld [vmem:[%s2744_s3 + $0x8] sm:$0xff]  ;;  %v1100_v32 = vld [vmem:[%s2744_s3 + $0x10] sm:$0xff] }
 0x11b   :  { %742 = vadd.xlane.f32.xlu0 %v741_v53  ;;  %v756_v6 = vadd.f32 %v755_v61, %v754_v40  ;;  %v1098_v40 = vld [vmem:[%s2744_s3] sm:$0xff] }
 0x11e   :  { %787 = vadd.xlane.f32.xlu1 %v786_v2 }
 0x11f   :  { %757 = vadd.xlane.f32.xlu0 %v756_v6 }
 0x12f   :  { %1033 = vperm.xlu1 %1563, %v1023_v5  }
 0x133   :  { %1038 = vperm.xlu1 %1563, %v1024_v19  }
 0x137   :  { %1043 = vperm.xlu1 %1563, %v1025_v36  }
 0x13b   :  { %1104 = vperm.xlu1 %1563, %v1098_v40  }
 0x13f   :  { %1109 = vperm.xlu1 %1563, %v1099_v8  }
 0x143   :  { %1114 = vperm.xlu1 %1563, %v1100_v32  }
 0x1a7   :  { %v773_v37 = vpop.xlane.xlu1 %772 }
 0x1a8   :  { %v792_v44 = vmul.f32 0.0006377551, %v773_v37  ;;  %v743_v36 = vpop.xlane.xlu0 %742 }
 0x1aa   :  { %v2055_v53 = vsub.f32 %v1900_v25, %v792_v44  ;;  %v2058_v61 = vsub.f32 %v1902_v26, %v792_v44  ;;  %v2063_v5 = vsub.f32 %v1908_v29, %v792_v44  ;;  %v2070_v8 = vsub.f32 %v1912_v31, %v792_v44 }
 0x1ab   :  { %v788_v2 = vpop.xlane.xlu1 %787  ;;  %v2073_v25 = vsub.f32 %v1947_v54, %v792_v44 }
 0x1ac   :  { %2764 = vst [vmem:[#allocation2_spill] sm:$0xff] %v2055_v53  ;;  %2765 = vst [vmem:[#allocation3_spill] sm:$0xff] %v2058_v61  ;;  %v2060_v6 = vmul.f32 0.0006377551, %v788_v2  ;;  %v872_v19 = vmul.f32 %v2055_v53, %v2055_v53  ;;  %v873_v40 = vmul.f32 %v2058_v61, %v2058_v61  ;;  %v874_v26 = vmul.f32 %v2063_v5, %v2063_v5  ;;  %v758_v53 = vpop.xlane.xlu0 %757 }
 0x1ad   :  { %2766 = vst [vmem:[#allocation4_spill] sm:$0xff] %v2073_v25  ;;  %v2086_v2 = vsub.f32 %v1951_v57, %v792_v44  ;;  %v875_v31 = vmul.f32 %v2070_v8, %v2070_v8  ;;  %v2090_v61 = vmul.f32 0.0006377551, %v743_v36  ;;  %v2106_v36 = vsub.f32 %v1961_v63, %v792_v44 }
 0x1ae   :  { %v928_v32 = vadd.f32 %v873_v40, %v872_v19  ;;  %v2079_v29 = vsub.f32 %v1906_v28, %v2060_v6  ;;  %v2083_v37 = vsub.f32 %v1910_v30, %v2060_v6  ;;  %v2093_v19 = vsub.f32 %v1955_v59, %v792_v44 }
 0x1af   :  { %v2097_v28 = vsub.f32 %v1917_v34, %v2060_v6  ;;  %v876_v30 = vmul.f32 %v2073_v25, %v2073_v25  ;;  %v2109_v59 = vsub.f32 %v1995_v38, %v792_v44  ;;  %v2116_v34 = vsub.f32 %v1919_v35, %v2060_v6 }
 0x1b0   :  { %2767 = vst [vmem:[#allocation5_spill] sm:$0xff] %v2079_v29  ;;  %2768 = vst [vmem:[#allocation6_spill] sm:$0xff] %v2083_v37  ;;  %v929_v54 = vadd.f32 %v928_v32, %v874_v26  ;;  %v885_v57 = vmul.f32 %v2079_v29, %v2079_v29  ;;  %v886_v26 = vmul.f32 %v2083_v37, %v2083_v37 }
 0x1b1   :  { %v2112_v32 = vsub.f32 %v1999_v45, %v792_v44  ;;  %2769 = vst [vmem:[#allocation7_spill] sm:$0xff] %v2116_v34  ;;  %v877_v37 = vmul.f32 %v2086_v2, %v2086_v2  ;;  %v2126_v29 = vsub.f32 %v2019_v9, %v792_v44  ;;  %v2130_v38 = vsub.f32 %v1953_v58, %v2060_v6 }
 0x1b2   :  { %v930_v40 = vadd.f32 %v929_v54, %v875_v31  ;;  %v2118_v31 = vmul.f32 0.0006377551, %v758_v53  ;;  %v2121_v54 = vsub.f32 %v2003_v50, %v792_v44  ;;  %v887_v35 = vmul.f32 %v2097_v28, %v2097_v28 }
 0x1b3   :  { %2770 = vst [vmem:[#allocation8_spill] sm:$0xff] %v2130_v38  ;;  %v943_v45 = vadd.f32 %v886_v26, %v885_v57  ;;  %v2135_v53 = vsub.f32 %v2009_v56, %v792_v44  ;;  %v878_v50 = vmul.f32 %v2093_v19, %v2093_v19  ;;  %v888_v9 = vmul.f32 %v2116_v34, %v2116_v34 }
 0x1b4   :  { %v931_v63 = vadd.f32 %v930_v40, %v876_v30  ;;  %v2141_v30 = vsub.f32 %v1959_v62, %v2060_v6  ;;  %v2147_v40 = vsub.f32 %v1876_v1, %v2090_v61  ;;  %v2151_v56 = vsub.f32 %v1878_v12, %v2090_v61 }
 0x1b5   :  { %v944_v58 = vadd.f32 %v943_v45, %v887_v35  ;;  %v879_v44 = vmul.f32 %v2106_v36, %v2106_v36  ;;  %v881_v62 = vmul.f32 %v2112_v32, %v2112_v32  ;;  %v884_v26 = vmul.f32 %v2126_v29, %v2126_v29 }
 0x1b6   :  { %v932_v25 = vadd.f32 %v931_v63, %v877_v37  ;;  %2771 = vst [vmem:[#allocation9_spill] sm:$0xff] %v2147_v40  ;;  %2772 = vst [vmem:[#allocation10_spill] sm:$0xff] %v2151_v56  ;;  %v880_v37 = vmul.f32 %v2109_v59, %v2109_v59  ;;  %v2163_v1 = vsub.f32 %v1963_v0, %v2060_v6 }
 0x1b7   :  { %v889_v12 = vmul.f32 %v2130_v38, %v2130_v38  ;;  %v945_v63 = vadd.f32 %v944_v58, %v888_v9  ;;  %v882_v35 = vmul.f32 %v2121_v54, %v2121_v54  ;;  %v2171_v34 = vsub.f32 %v1967_v4, %v2060_v6 }
 0x1b8   :  { %v933_v57 = vadd.f32 %v932_v25, %v878_v50  ;;  %v890_v25 = vmul.f32 %v2141_v30, %v2141_v30  ;;  %v2177_v0 = vsub.f32 %v1884_v15, %v2090_v61  ;;  %v846_v38 = vmul.f32 %v2147_v40, %v2147_v40 }
 0x1b9   :  { %v946_v50 = vadd.f32 %v945_v63, %v889_v12  ;;  %v847_v9 = vmul.f32 %v2151_v56, %v2151_v56  ;;  %v883_v58 = vmul.f32 %v2135_v53, %v2135_v53  ;;  %v2187_v4 = vsub.f32 %v2001_v49, %v2060_v6 }
 0x1ba   :  { %v934_v45 = vadd.f32 %v933_v57, %v879_v44  ;;  %v2191_v57 = vsub.f32 %v1888_v17, %v2090_v61  ;;  %v939_v15 = vsel %vm739_vm2, %v884_v26, 0.0  ;;  %v2196_v12 = vsub.f32 %v2007_v55, %v2060_v6 }
 0x1bb   :  { %v891_v63 = vmul.f32 %v2163_v1, %v2163_v1  ;;  %v947_v56 = vadd.f32 %v946_v50, %v890_v25  ;;  %v2206_v49 = vsub.f32 %v2015_v3, %v2060_v6  ;;  %v892_v17 = vmul.f32 %v2171_v34, %v2171_v34 }
 0x1bc   :  { %v935_v44 = vadd.f32 %v934_v45, %v880_v37  ;;  %v2202_v37 = vsub.f32 %v2011_v60, %v2060_v6  ;;  %v2212_v55 = vsub.f32 %v1924_v39, %v2090_v61  ;;  %v848_v45 = vmul.f32 %v2177_v0, %v2177_v0 }
 0x1bd   :  { %v948_v26 = vadd.f32 %v947_v56, %v891_v63  ;;  %v893_v60 = vmul.f32 %v2187_v4, %v2187_v4  ;;  %v2220_v3 = vsub.f32 %v1927_v41, %v2090_v61  ;;  %v849_v50 = vmul.f32 %v2191_v57, %v2191_v57 }
 0x1be   :  { %v936_v40 = vadd.f32 %v935_v44, %v881_v62  ;;  %v898_v62 = vadd.f32 %v847_v9, %v846_v38  ;;  %v2226_v39 = vsub.f32 %v1882_v14, %v2118_v31  ;;  %v2230_v38 = vsub.f32 %v1886_v16, %v2118_v31 }
 0x1bf   :  { %2773 = vst [vmem:[#allocation11_spill] sm:$0xff] %v2220_v3  ;;  %v949_v56 = vadd.f32 %v948_v26, %v892_v17  ;;  %v894_v41 = vmul.f32 %v2196_v12, %v2196_v12  ;;  %v895_v9 = vmul.f32 %v2202_v37, %v2202_v37  ;;  %v2242_v14 = vsub.f32 %v1931_v43, %v2090_v61 }
 0x1c0   :  { %v937_v25 = vadd.f32 %v936_v40, %v882_v35  ;;  %v899_v44 = vadd.f32 %v898_v62, %v848_v45  ;;  %v2234_v35 = vsub.f32 %v2026_v27, %v2060_v6  ;;  %v850_v16 = vmul.f32 %v2212_v55, %v2212_v55 }
 0x1c1   :  { %v950_v63 = vadd.f32 %v949_v56, %v893_v60  ;;  %2774 = vst [vmem:[#allocation12_spill] sm:$0xff] %v2242_v14  ;;  %v2248_v27 = vsub.f32 %v1937_v47, %v2090_v61  ;;  %v851_v6 = vmul.f32 %v2220_v3, %v2220_v3  ;;  %v2254_v26 = vsub.f32 %v1893_v20, %v2118_v31 }
 0x1c2   :  { %v938_v40 = vadd.f32 %v937_v25, %v883_v58  ;;  %v900_v17 = vadd.f32 %v899_v44, %v849_v50  ;;  %v859_v43 = vmul.f32 %v2226_v39, %v2226_v39  ;;  %v860_v25 = vmul.f32 %v2230_v38, %v2230_v38 }
 0x1c3   :  { %2775 = vst [vmem:[#allocation13_spill] sm:$0xff] %v2248_v27  ;;  %v951_v45 = vadd.f32 %v950_v63, %v894_v41  ;;  %v896_v47 = vmul.f32 %v2206_v49, %v2206_v49  ;;  %v2266_v60 = vsub.f32 %v1971_v7, %v2090_v61  ;;  %v852_v50 = vmul.f32 %v2242_v14, %v2242_v14 }
 0x1c4   :  { %v940_v58 = vadd.f32 %v939_v15, %v938_v40  ;;  %v901_v62 = vadd.f32 %v900_v17, %v850_v16  ;;  %v897_v15 = vmul.f32 %v2234_v35, %v2234_v35  ;;  %v2272_v44 = vsub.f32 %v1895_v21, %v2118_v31 }
 0x1c5   :  { %2776 = vst [vmem:[#allocation14_spill] sm:$0xff] %v2266_v60  ;;  %v952_v20 = vadd.f32 %v951_v45, %v895_v9  ;;  %v2276_v40 = vsub.f32 %v1975_v10, %v2090_v61  ;;  %v853_v41 = vmul.f32 %v2248_v27, %v2248_v27  ;;  %v2282_v7 = vsub.f32 %v1929_v42, %v2118_v31 }
 0x1c6   :  { %941 = vadd.xlane.f32.xlu0 %v940_v58  ;;  %v902_v56 = vadd.f32 %v901_v62, %v851_v6  ;;  %v861_v16 = vmul.f32 %v2254_v26, %v2254_v26  ;;  %v913_v17 = vadd.f32 %v860_v25, %v859_v43  ;;  %v954_v21 = vsel %vm739_vm2, %v897_v15, 0.0 }
 0x1c7   :  { %2777 = vst [vmem:[#allocation15_spill] sm:$0xff] %v2276_v40  ;;  %v953_v9 = vadd.f32 %v952_v20, %v896_v47  ;;  %v2289_v58 = vsub.f32 %v1979_v13, %v2090_v61  ;;  %v854_v10 = vmul.f32 %v2266_v60, %v2266_v60  ;;  %v2295_v6 = vsub.f32 %v1935_v46, %v2118_v31 }
 0x1c8   :  { %v903_v63 = vadd.f32 %v902_v56, %v852_v50  ;;  %v862_v62 = vmul.f32 %v2272_v44, %v2272_v44  ;;  %v914_v47 = vadd.f32 %v913_v17, %v861_v16  ;;  %v2301_v43 = vsub.f32 %v1985_v23, %v2090_v61 }
 0x1c9   :  { %2778 = vst [vmem:[#allocation16_spill] sm:$0xff] %v2289_v58  ;;  %v955_v42 = vadd.f32 %v954_v21, %v953_v9  ;;  %v2305_v13 = vsub.f32 %v2022_v18, %v2090_v61  ;;  %v855_v25 = vmul.f32 %v2276_v40, %v2276_v40  ;;  %v2311_v15 = vsub.f32 %v1939_v48, %v2118_v31 }
 0x1ca   :  { %v904_v45 = vadd.f32 %v903_v63, %v853_v41  ;;  %2779 = vst [vmem:[#allocation17_spill] sm:$0xff] %v2301_v43  ;;  %v863_v20 = vmul.f32 %v2282_v7, %v2282_v7  ;;  %v915_v50 = vadd.f32 %v914_v47, %v862_v62  ;;  %v856_v23 = vmul.f32 %v2289_v58, %v2289_v58 }
 0x1cb   :  { %2780 = vst [vmem:[#allocation18_spill] sm:$0xff] %v2305_v13  ;;  %956 = vadd.xlane.f32.xlu1 %v955_v42  ;;  %v2319_v18 = vsub.f32 %v1943_v51, %v2118_v31  ;;  %v864_v61 = vmul.f32 %v2295_v6, %v2295_v6  ;;  %v857_v48 = vmul.f32 %v2301_v43, %v2301_v43  ;;  %v2788_v43 = vld [vmem:[#allocation8_spill] sm:$0xff] }
 0x1cc   :  { %v905_v46 = vadd.f32 %v904_v45, %v854_v10  ;;  %v916_v41 = vadd.f32 %v915_v50, %v863_v20  ;;  %v858_v9 = vmul.f32 %v2305_v13, %v2305_v13  ;;  %v2329_v16 = vsub.f32 %v1977_v11, %v2118_v31  ;;  %v2787_v13 = vld [vmem:[#allocation7_spill] sm:$0xff] }
 0x1cd   :  { %v865_v17 = vmul.f32 %v2311_v15, %v2311_v15  ;;  %v2335_v10 = vsub.f32 %v1983_v22, %v2118_v31  ;;  %v866_v42 = vmul.f32 %v2319_v18, %v2319_v18  ;;  %v2342_v11 = vsub.f32 %v1987_v24, %v2118_v31 }
 0x1ce   :  { %v906_v56 = vadd.f32 %v905_v46, %v855_v25  ;;  %v917_v51 = vadd.f32 %v916_v41, %v864_v61  ;;  %v909_v62 = vsel %vm739_vm2, %v858_v9, 0.0  ;;  %v867_v25 = vmul.f32 %v2329_v16, %v2329_v16 }
 0x1cf   :  { %v2348_v20 = vsub.f32 %v2032_v52, %v2118_v31  ;;  %v2352_v22 = vsub.f32 %v1991_v33, %v2118_v31  ;;  %v868_v50 = vmul.f32 %v2335_v10, %v2335_v10  ;;  %v869_v24 = vmul.f32 %v2342_v11, %v2342_v11  ;;  %v1022_v31 = vld [vmem:[%s2743_s2] sm:$0xff] }
 0x1d0   :  { %v907_v63 = vadd.f32 %v906_v56, %v856_v23  ;;  %v918_v45 = vadd.f32 %v917_v51, %v865_v17  ;;  %v2369_v17 = vpop.permute.xlu1 %1033 }
 0x1d1   :  { %v871_v61 = vmul.f32 %v2348_v20, %v2348_v20  ;;  %v870_v52 = vmul.f32 %v2352_v22, %v2352_v22 }
 0x1d2   :  { %v908_v21 = vadd.f32 %v907_v63, %v857_v48  ;;  %v919_v46 = vadd.f32 %v918_v45, %v866_v42  ;;  %v1101_v63 = vld [vmem:[%s2744_s3 + $0x18] sm:$0xff] }
 0x1d3   :  { %v924_v9 = vsel %vm739_vm2, %v871_v61, 0.0  ;;  %v2782_v61 = vld [vmem:[#allocation2_spill] sm:$0xff] }
 0x1d4   :  { %v910_v47 = vadd.f32 %v909_v62, %v908_v21  ;;  %v920_v23 = vadd.f32 %v919_v46, %v867_v25  ;;  %v2371_v51 = vpop.permute.xlu1 %1038 }
 0x1d6   :  { %911 = vadd.xlane.f32.xlu0 %v910_v47  ;;  %v921_v56 = vadd.f32 %v920_v23, %v868_v50 }
 0x1d8   :  { %v922_v41 = vadd.f32 %v921_v56, %v869_v24  ;;  %v2373_v21 = vpop.permute.xlu1 %1043 }
 0x1da   :  { %v923_v48 = vadd.f32 %v922_v41, %v870_v52  ;;  %v2783_v41 = vld [vmem:[#allocation3_spill] sm:$0xff] }
 0x1dc   :  { %v925_v33 = vadd.f32 %v924_v9, %v923_v48  ;;  %v2375_v42 = vpop.permute.xlu1 %1104 }
 0x1dd   :  { %2781 = vst [vmem:[#allocation19_spill] sm:$0xff] %v2375_v42 }
 0x1de   :  { %926 = vadd.xlane.f32.xlu1 %v925_v33 }
 0x1e0   :  { %v2377_v45 = vpop.permute.xlu1 %1109 }
 0x1e4   :  { %v2379_v25 = vpop.permute.xlu1 %1114 }
 0x1ec   :  { %1028 = vperm.xlu0 %1562, %v1022_v31  }
 0x1ef   :  { %1119 = vperm.xlu1 %1563, %v1101_v63   ;;  %v2784_v63 = vld [vmem:[#allocation4_spill] sm:$0xff] }
 0x253   :  { %v942_v62 = vpop.xlane.xlu0 %941 }
 0x254   :  { %v960_v47 = vmul.f32 0.0006377551, %v942_v62 }
 0x256   :  { %v964_v46 = vadd.f32 1e-05, %v960_v47 }
 0x258   :  { %1636 = vrsqrt.f32 %v964_v46  ;;  %v957_v50 = vpop.xlane.xlu1 %956 }
 0x259   :  { %v961_v23 = vmul.f32 0.0006377551, %v957_v50 }
 0x25b   :  { %v965_v24 = vadd.f32 1e-05, %v961_v23 }
 0x25d   :  { %1638 = vrsqrt.f32 %v965_v24 }
 0x262   :  { %v1637_v56 = vpop.eup %1636 }
 0x263   :  { %v996_v52 = vmul.f32 %v1637_v56, %v2782_v61  ;;  %v997_v48 = vmul.f32 %v1637_v56, %v2783_v41  ;;  %v998_v9 = vmul.f32 %v1637_v56, %v2063_v5  ;;  %v999_v33 = vmul.f32 %v1637_v56, %v2070_v8  ;;  %v912_v31 = vpop.xlane.xlu0 %911 }
 0x264   :  { %v1000_v62 = vmul.f32 %v1637_v56, %v2784_v63  ;;  %v1001_v42 = vmul.f32 %v1637_v56, %v2086_v2  ;;  %v1002_v47 = vmul.f32 %v1637_v56, %v2093_v19  ;;  %v1003_v46 = vmul.f32 %v1637_v56, %v2106_v36 }
 0x265   :  { %v958_v50 = vmul.f32 0.0006377551, %v912_v31  ;;  %v1004_v23 = vmul.f32 %v1637_v56, %v2109_v59  ;;  %v1005_v24 = vmul.f32 %v1637_v56, %v2112_v32  ;;  %v1006_v61 = vmul.f32 %v1637_v56, %v2121_v54 }
 0x266   :  { %v1007_v5 = vmul.f32 %v1637_v56, %v2135_v53  ;;  %v1008_v8 = vmul.f32 %v1637_v56, %v2126_v29  ;;  %v1072_v41 = vmul.f32 %v2371_v51, %v996_v52  ;;  %v1073_v63 = vmul.f32 %v2371_v51, %v997_v48 }
 0x267   :  { %v962_v2 = vadd.f32 1e-05, %v958_v50  ;;  %v1074_v19 = vmul.f32 %v2371_v51, %v998_v9  ;;  %v1075_v36 = vmul.f32 %v2371_v51, %v999_v33  ;;  %v1076_v31 = vmul.f32 %v2371_v51, %v1000_v62  ;;  %v1639_v29 = vpop.eup %1638  ;;  %v2785_v9 = vld [vmem:[#allocation5_spill] sm:$0xff]  ;;  %v2786_v50 = vld [vmem:[#allocation6_spill] sm:$0xff] }
 0x268   :  { %v1077_v59 = vmul.f32 %v2371_v51, %v1001_v42  ;;  %v1078_v32 = vmul.f32 %v2371_v51, %v1002_v47  ;;  %v1079_v54 = vmul.f32 %v2371_v51, %v1003_v46  ;;  %v1080_v53 = vmul.f32 %v2371_v51, %v1004_v23 }
 0x269   :  { %1640 = vrsqrt.f32 %v962_v2  ;;  %v1081_v56 = vmul.f32 %v2371_v51, %v1005_v24  ;;  %v1082_v52 = vmul.f32 %v2371_v51, %v1006_v61  ;;  %v1083_v48 = vmul.f32 %v2371_v51, %v1007_v5 }
 0x26a   :  { %v1009_v33 = vmul.f32 %v1639_v29, %v2785_v9  ;;  %v1010_v62 = vmul.f32 %v1639_v29, %v2786_v50  ;;  %v1011_v42 = vmul.f32 %v1639_v29, %v2097_v28  ;;  %v1012_v47 = vmul.f32 %v1639_v29, %v2787_v13 }
 0x26b   :  { %v1013_v46 = vmul.f32 %v1639_v29, %v2788_v43  ;;  %v1014_v23 = vmul.f32 %v1639_v29, %v2141_v30  ;;  %v1015_v2 = vmul.f32 %v1639_v29, %v2163_v1  ;;  %v1016_v24 = vmul.f32 %v1639_v29, %v2171_v34  ;;  %v927_v58 = vpop.xlane.xlu1 %926 }
 0x26c   :  { %v1017_v61 = vmul.f32 %v1639_v29, %v2187_v4  ;;  %v1018_v5 = vmul.f32 %v1639_v29, %v2196_v12  ;;  %v1019_v9 = vmul.f32 %v1639_v29, %v2202_v37  ;;  %v1020_v50 = vmul.f32 %v1639_v29, %v2206_v49 }
 0x26d   :  { %v1021_v28 = vmul.f32 %v1639_v29, %v2234_v35  ;;  %v1085_v13 = vmul.f32 %v2373_v21, %v1009_v33  ;;  %v1086_v43 = vmul.f32 %v2373_v21, %v1010_v62  ;;  %v1087_v30 = vmul.f32 %v2373_v21, %v1011_v42 }
 0x26e   :  { %v1088_v1 = vmul.f32 %v2373_v21, %v1012_v47  ;;  %v1089_v34 = vmul.f32 %v2373_v21, %v1013_v46  ;;  %v1090_v4 = vmul.f32 %v2373_v21, %v1014_v23  ;;  %v1091_v12 = vmul.f32 %v2373_v21, %v1015_v2 }
 0x26f   :  { %v959_v37 = vmul.f32 0.0006377551, %v927_v58  ;;  %v1092_v49 = vmul.f32 %v2373_v21, %v1016_v24  ;;  %v1093_v35 = vmul.f32 %v2373_v21, %v1017_v61  ;;  %v1094_v29 = vmul.f32 %v2373_v21, %v1018_v5 }
 0x270   :  { %v1095_v33 = vmul.f32 %v2373_v21, %v1019_v9  ;;  %v1096_v62 = vmul.f32 %v2373_v21, %v1020_v50  ;;  %v1097_v42 = vmul.f32 %v2373_v21, %v1021_v28  ;;  %v1084_v47 = vmul.f32 %v2371_v51, %v1008_v8 }
 0x271   :  { %v963_v46 = vadd.f32 1e-05, %v959_v37  ;;  %v2434_v23 = vadd.f32 %v2379_v25, %v1072_v41  ;;  %v2437_v58 = vadd.f32 %v2379_v25, %v1073_v63  ;;  %v2440_v2 = vadd.f32 %v2379_v25, %v1074_v19  ;;  %v1120_v41 = vpop.permute.xlu1 %1119 }
 0x272   :  { %v2443_v24 = vadd.f32 %v2379_v25, %v1075_v36  ;;  %v2446_v61 = vadd.f32 %v2379_v25, %v1076_v31  ;;  %v2449_v21 = vadd.f32 %v2379_v25, %v1077_v59  ;;  %v2452_v51 = vadd.f32 %v2379_v25, %v1078_v32 }
 0x273   :  { %v2454_v8 = vpop.eup %1640  ;;  %1642 = vrsqrt.f32 %v963_v46  ;;  %v2457_v63 = vadd.f32 %v2379_v25, %v1079_v54  ;;  %v2460_v19 = vadd.f32 %v2379_v25, %v1080_v53  ;;  %v2463_v36 = vadd.f32 %v2379_v25, %v1081_v56 }
 0x274   :  { %v2466_v31 = vadd.f32 %v2379_v25, %v1082_v52  ;;  %v2469_v59 = vadd.f32 %v2379_v25, %v1083_v48  ;;  %v2472_v32 = vadd.f32 %v2379_v25, %v1084_v47  ;;  %v2474_v5 = vadd.f32 %v1120_v41, %v1085_v13 }
 0x275   :  { %v2476_v9 = vadd.f32 %v1120_v41, %v1086_v43  ;;  %v2478_v54 = vadd.f32 %v1120_v41, %v1087_v30  ;;  %v2480_v53 = vadd.f32 %v1120_v41, %v1088_v1  ;;  %v2482_v50 = vadd.f32 %v1120_v41, %v1089_v34 }
 0x276   :  { %v2484_v56 = vadd.f32 %v1120_v41, %v1090_v4  ;;  %v2486_v52 = vadd.f32 %v1120_v41, %v1091_v12  ;;  %v2488_v28 = vadd.f32 %v1120_v41, %v1092_v49  ;;  %v2490_v48 = vadd.f32 %v1120_v41, %v1093_v35 }
 0x277   :  { %v2492_v25 = vadd.f32 %v1120_v41, %v1094_v29  ;;  %v2494_v13 = vadd.f32 %v1120_v41, %v1095_v33  ;;  %v2496_v43 = vadd.f32 %v1120_v41, %v1096_v62  ;;  %v2498_v30 = vadd.f32 %v1120_v41, %v1097_v42 }
 0x27d   :  { %v1643_v12 = vpop.eup %1642 }
 0x27e   :  { %v983_v37 = vmul.f32 %v1643_v12, %v2226_v39  ;;  %v984_v49 = vmul.f32 %v1643_v12, %v2230_v38  ;;  %v985_v35 = vmul.f32 %v1643_v12, %v2254_v26  ;;  %v986_v29 = vmul.f32 %v1643_v12, %v2272_v44 }
 0x27f   :  { %v987_v33 = vmul.f32 %v1643_v12, %v2282_v7  ;;  %v988_v62 = vmul.f32 %v1643_v12, %v2295_v6  ;;  %v989_v42 = vmul.f32 %v1643_v12, %v2311_v15  ;;  %v990_v47 = vmul.f32 %v1643_v12, %v2319_v18 }
 0x280   :  { %v991_v46 = vmul.f32 %v1643_v12, %v2329_v16  ;;  %v992_v41 = vmul.f32 %v1643_v12, %v2335_v10  ;;  %v993_v39 = vmul.f32 %v1643_v12, %v2342_v11  ;;  %v994_v38 = vmul.f32 %v1643_v12, %v2352_v22 }
 0x281   :  { %v995_v26 = vmul.f32 %v1643_v12, %v2348_v20  ;;  %v1059_v44 = vmul.f32 %v2369_v17, %v983_v37  ;;  %v1060_v7 = vmul.f32 %v2369_v17, %v984_v49  ;;  %v1061_v6 = vmul.f32 %v2369_v17, %v985_v35 }
 0x282   :  { %v1062_v15 = vmul.f32 %v2369_v17, %v986_v29  ;;  %v1063_v18 = vmul.f32 %v2369_v17, %v987_v33  ;;  %v1064_v16 = vmul.f32 %v2369_v17, %v988_v62  ;;  %v1065_v10 = vmul.f32 %v2369_v17, %v989_v42 }
 0x283   :  { %v1066_v11 = vmul.f32 %v2369_v17, %v990_v47  ;;  %v1067_v22 = vmul.f32 %v2369_v17, %v991_v46  ;;  %v1068_v20 = vmul.f32 %v2369_v17, %v992_v41  ;;  %v1069_v12 = vmul.f32 %v2369_v17, %v993_v39 }
 0x284   :  { %v1070_v37 = vmul.f32 %v2369_v17, %v994_v38  ;;  %v1071_v49 = vmul.f32 %v2369_v17, %v995_v26  ;;  %v1135_v35 = vadd.f32 %v2377_v45, %v1059_v44  ;;  %v1136_v29 = vadd.f32 %v2377_v45, %v1060_v7 }
 0x285   :  { %v1137_v33 = vadd.f32 %v2377_v45, %v1061_v6  ;;  %v1138_v62 = vadd.f32 %v2377_v45, %v1062_v15  ;;  %v1139_v42 = vadd.f32 %v2377_v45, %v1063_v18  ;;  %v1140_v47 = vadd.f32 %v2377_v45, %v1064_v16 }
 0x286   :  { %v1141_v46 = vadd.f32 %v2377_v45, %v1065_v10  ;;  %v1142_v41 = vadd.f32 %v2377_v45, %v1066_v11  ;;  %v1143_v39 = vadd.f32 %v2377_v45, %v1067_v22  ;;  %v1144_v17 = vadd.f32 %v2377_v45, %v1068_v20 }
 0x287   :  { %v1145_v38 = vadd.f32 %v2377_v45, %v1069_v12  ;;  %v1146_v26 = vadd.f32 %v2377_v45, %v1070_v37  ;;  %v1147_v44 = vadd.f32 %v2377_v45, %v1071_v49  ;;  %v1187_v7 = vmax.f32 %v1135_v35, 0.0 }
 0x288   :  { %v1188_v6 = vmax.f32 %v1136_v29, 0.0  ;;  %v1189_v15 = vmax.f32 %v1137_v33, 0.0  ;;  %v1190_v18 = vmax.f32 %v1138_v62, 0.0  ;;  %v1191_v16 = vmax.f32 %v1139_v42, 0.0 }
 0x289   :  { %v1192_v4 = vmax.f32 %v1140_v47, 0.0  ;;  %v1193_v34 = vmax.f32 %v1141_v46, 0.0  ;;  %v1194_v10 = vmax.f32 %v1142_v41, 0.0  ;;  %v1195_v1 = vmax.f32 %v1143_v39, 0.0 }
 0x28a   :  { %v1196_v11 = vmax.f32 %v1144_v17, 0.0  ;;  %v1197_v40 = vmax.f32 %v1145_v38, 0.0  ;;  %v1198_v22 = vmax.f32 %v1146_v26, 0.0  ;;  %v1199_v60 = vmax.f32 %v1147_v44, 0.0  ;;  %v1029_v44 = vpop.permute.xlu0 %1028 }
 0x28b   :  { %v1522_v20 = vpack.c.bf16 %v1188_v6, %v1187_v7  ;;  %v1523_v27 = vpack.c.bf16 %v1190_v18, %v1189_v15  ;;  %v1524_v12 = vpack.c.bf16 %v1192_v4, %v1191_v16  ;;  %v1525_v14 = vpack.c.bf16 %v1194_v10, %v1193_v34  ;;  %v2816_v7 = vld [vmem:[#allocation12_spill] sm:$0xff]  ;;  %v2817_v6 = vld [vmem:[#allocation13_spill] sm:$0xff]  ;;  %v2818_v18 = vld [vmem:[#allocation14_spill] sm:$0xff] }
 0x28c   :  { %v1526_v37 = vpack.c.bf16 %v1196_v11, %v1195_v1  ;;  %v1527_v3 = vpack.c.bf16 %v1198_v22, %v1197_v40  ;;  %v1528_v45 = vpack.c.bf16 %v1199_v60, %v1199_v60  ;;  %v1224_v49 = vmax.f32 %v2496_v43, 0.0  ;;  %v2819_v10 = vld [vmem:[#allocation15_spill] sm:$0xff]  ;;  %v2820_v22 = vld [vmem:[#allocation16_spill] sm:$0xff] }
 0x28d   :  { %1394 = vst [vmem:[%s2745_s4 + $0x34] sm:$0xff] %v1522_v20  ;;  %1395 = vst [vmem:[%s2745_s4 + $0x3c] sm:$0xff] %v1523_v27  ;;  %v1225_v60 = vmax.f32 %v2498_v30, 0.0  ;;  %v2789_v40 = vmax.f32 %v2434_v23, 0.0  ;;  %v2790_v43 = vmax.f32 %v2437_v58, 0.0  ;;  %v2791_v34 = vmax.f32 %v2440_v2, 0.0 }
 0x28e   :  { %1396 = vst [vmem:[%s2745_s4 + $0x44] sm:$0xff] %v1524_v12  ;;  %1397 = vst [vmem:[%s2745_s4 + $0x4c] sm:$0xff] %v1525_v14  ;;  %v2792_v4 = vmax.f32 %v2443_v24, 0.0  ;;  %v2793_v35 = vmax.f32 %v2446_v61, 0.0  ;;  %v2794_v29 = vmax.f32 %v2449_v21, 0.0  ;;  %v2795_v14 = vmax.f32 %v2452_v51, 0.0 }
 0x28f   :  { %v1529_v1 = vpack.c.bf16 %v2790_v43, %v2789_v40  ;;  %1398 = vst [vmem:[%s2745_s4 + $0x54] sm:$0xff] %v1526_v37  ;;  %1399 = vst [vmem:[%s2745_s4 + $0x5c] sm:$0xff] %v1527_v3  ;;  %v2796_v23 = vmax.f32 %v2457_v63, 0.0  ;;  %v2797_v2 = vmax.f32 %v2460_v19, 0.0  ;;  %v2798_v24 = vmax.f32 %v2463_v36, 0.0  ;;  %v2821_v12 = vld [vmem:[#allocation17_spill] sm:$0xff] }
 0x290   :  { %v1530_v27 = vpack.c.bf16 %v2792_v4, %v2791_v34  ;;  %v1531_v33 = vpack.c.bf16 %v2794_v29, %v2793_v35  ;;  %1400 = vst.msk [vmem:[%s2745_s4 + $0x64] sm:$0xf] %vm1392_vm3, %v1528_v45  ;;  %v2799_v21 = vmax.f32 %v2466_v31, 0.0  ;;  %v2800_v30 = vmax.f32 %v2469_v59, 0.0  ;;  %v2822_v45 = vld [vmem:[#allocation18_spill] sm:$0xff] }
 0x291   :  { %v1532_v58 = vpack.c.bf16 %v2796_v23, %v2795_v14  ;;  %v1533_v61 = vpack.c.bf16 %v2798_v24, %v2797_v2  ;;  %v2801_v62 = vmax.f32 %v2472_v32, 0.0  ;;  %v2802_v47 = vmax.f32 %v2474_v5, 0.0  ;;  %1401 = vst [vmem:[%s2745_s4 + $0x68] sm:$0xff] %v1529_v1  ;;  %v2823_v2 = vld [vmem:[#allocation19_spill] sm:$0xff] }
 0x292   :  { %v1534_v3 = vpack.c.bf16 %v2800_v30, %v2799_v21  ;;  %v2803_v51 = vmax.f32 %v2476_v9, 0.0  ;;  %v2804_v46 = vmax.f32 %v2478_v54, 0.0  ;;  %v2805_v19 = vmax.f32 %v2480_v53, 0.0  ;;  %1402 = vst [vmem:[%s2745_s4 + $0x70] sm:$0xff] %v1530_v27  ;;  %1403 = vst [vmem:[%s2745_s4 + $0x78] sm:$0xff] %v1531_v33 }
 0x293   :  { %v1535_v42 = vpack.c.bf16 %v2801_v62, %v2801_v62  ;;  %v2806_v41 = vmax.f32 %v2482_v50, 0.0  ;;  %v2807_v31 = vmax.f32 %v2484_v56, 0.0  ;;  %v2808_v39 = vmax.f32 %v2486_v52, 0.0  ;;  %1404 = vst [vmem:[%s2745_s4 + $0x80] sm:$0xff] %v1532_v58  ;;  %1405 = vst [vmem:[%s2745_s4 + $0x88] sm:$0xff] %v1533_v61  ;;  %v2813_v52 = vld [vmem:[#allocation9_spill] sm:$0xff] }
 0x294   :  { %v1536_v63 = vpack.c.bf16 %v2803_v51, %v2802_v47  ;;  %v1537_v36 = vpack.c.bf16 %v2805_v19, %v2804_v46  ;;  %v2809_v32 = vmax.f32 %v2488_v28, 0.0  ;;  %v2810_v5 = vmax.f32 %v2490_v48, 0.0  ;;  %1406 = vst [vmem:[%s2745_s4 + $0x90] sm:$0xff] %v1534_v3  ;;  %v2814_v48 = vld [vmem:[#allocation10_spill] sm:$0xff] }
 0x295   :  { %v1538_v59 = vpack.c.bf16 %v2807_v31, %v2806_v41  ;;  %v2811_v9 = vmax.f32 %v2492_v25, 0.0  ;;  %v2812_v53 = vmax.f32 %v2494_v13, 0.0  ;;  %v1542_v56 = vpack.c.bf16 %v1225_v60, %v1225_v60  ;;  %1407 = vst.msk [vmem:[%s2745_s4 + $0x98] sm:$0xf] %vm1392_vm3, %v1535_v42 }
 0x296   :  { %v1539_v17 = vpack.c.bf16 %v2809_v32, %v2808_v39  ;;  %v970_v28 = vmul.f32 %v2454_v8, %v2813_v52  ;;  %1408 = vst [vmem:[%s2745_s4 + $0x9c] sm:$0xff] %v1536_v63  ;;  %1409 = vst [vmem:[%s2745_s4 + $0xa4] sm:$0xff] %v1537_v36  ;;  %v971_v25 = vmul.f32 %v2454_v8, %v2814_v48 }
 0x297   :  { %v1540_v54 = vpack.c.bf16 %v2811_v9, %v2810_v5  ;;  %v1541_v50 = vpack.c.bf16 %v1224_v49, %v2812_v53  ;;  %1410 = vst [vmem:[%s2745_s4 + $0xac] sm:$0xff] %v1538_v59  ;;  %v972_v13 = vmul.f32 %v2454_v8, %v2177_v0  ;;  %v973_v38 = vmul.f32 %v2454_v8, %v2191_v57  ;;  %v2815_v0 = vld [vmem:[#allocation11_spill] sm:$0xff] }
 0x298   :  { %1411 = vst [vmem:[%s2745_s4 + $0xb4] sm:$0xff] %v1539_v17  ;;  %v974_v26 = vmul.f32 %v2454_v8, %v2212_v55  ;;  %1414 = vst.msk [vmem:[%s2745_s4 + $0xcc] sm:$0xf] %vm1392_vm3, %v1542_v56  ;;  %v975_v57 = vmul.f32 %v2454_v8, %v2815_v0  ;;  %v976_v55 = vmul.f32 %v2454_v8, %v2816_v7 }
 0x299   :  { %1412 = vst [vmem:[%s2745_s4 + $0xbc] sm:$0xff] %v1540_v54  ;;  %1413 = vst [vmem:[%s2745_s4 + $0xc4] sm:$0xff] %v1541_v50  ;;  %v977_v15 = vmul.f32 %v2454_v8, %v2817_v6  ;;  %v978_v16 = vmul.f32 %v2454_v8, %v2818_v18  ;;  %v979_v11 = vmul.f32 %v2454_v8, %v2819_v10 }
 0x29a   :  { %v980_v20 = vmul.f32 %v2454_v8, %v2820_v22  ;;  %v981_v37 = vmul.f32 %v2454_v8, %v2821_v12  ;;  %v982_v49 = vmul.f32 %v2454_v8, %v2822_v45  ;;  %v1046_v60 = vmul.f32 %v1029_v44, %v970_v28 }
 0x29b   :  { %v1047_v40 = vmul.f32 %v1029_v44, %v971_v25  ;;  %v1048_v43 = vmul.f32 %v1029_v44, %v972_v13  ;;  %v1049_v1 = vmul.f32 %v1029_v44, %v973_v38  ;;  %v1050_v34 = vmul.f32 %v1029_v44, %v974_v26 }
 0x29c   :  { %v1051_v4 = vmul.f32 %v1029_v44, %v975_v57  ;;  %v1052_v27 = vmul.f32 %v1029_v44, %v976_v55  ;;  %v1053_v35 = vmul.f32 %v1029_v44, %v977_v15  ;;  %v1054_v29 = vmul.f32 %v1029_v44, %v978_v16 }
 0x29d   :  { %v1055_v33 = vmul.f32 %v1029_v44, %v979_v11  ;;  %v1056_v14 = vmul.f32 %v1029_v44, %v980_v20  ;;  %v1057_v23 = vmul.f32 %v1029_v44, %v981_v37  ;;  %v1058_v58 = vmul.f32 %v1029_v44, %v982_v49 }
 0x29e   :  { %v1122_v24 = vadd.f32 %v2823_v2, %v1046_v60  ;;  %v1123_v61 = vadd.f32 %v2823_v2, %v1047_v40  ;;  %v1124_v21 = vadd.f32 %v2823_v2, %v1048_v43  ;;  %v1125_v8 = vadd.f32 %v2823_v2, %v1049_v1 }
 0x29f   :  { %v1126_v30 = vadd.f32 %v2823_v2, %v1050_v34  ;;  %v1127_v3 = vadd.f32 %v2823_v2, %v1051_v4  ;;  %v1128_v62 = vadd.f32 %v2823_v2, %v1052_v27  ;;  %v1129_v42 = vadd.f32 %v2823_v2, %v1053_v35 }
 0x2a0   :  { %v1130_v47 = vadd.f32 %v2823_v2, %v1054_v29  ;;  %v1131_v51 = vadd.f32 %v2823_v2, %v1055_v33  ;;  %v1132_v63 = vadd.f32 %v2823_v2, %v1056_v14  ;;  %v1133_v46 = vadd.f32 %v2823_v2, %v1057_v23 }
 0x2a1   :  { %v1134_v19 = vadd.f32 %v2823_v2, %v1058_v58  ;;  %v1174_v36 = vmax.f32 %v1122_v24, 0.0  ;;  %v1175_v41 = vmax.f32 %v1123_v61, 0.0  ;;  %v1176_v31 = vmax.f32 %v1124_v21, 0.0 }
 0x2a2   :  { %v1177_v59 = vmax.f32 %v1125_v8, 0.0  ;;  %v1178_v39 = vmax.f32 %v1126_v30, 0.0  ;;  %v1179_v32 = vmax.f32 %v1127_v3, 0.0  ;;  %v1180_v17 = vmax.f32 %v1128_v62, 0.0 }
 0x2a3   :  { %v1181_v5 = vmax.f32 %v1129_v42, 0.0  ;;  %v1182_v9 = vmax.f32 %v1130_v47, 0.0  ;;  %v1183_v54 = vmax.f32 %v1131_v51, 0.0  ;;  %v1184_v53 = vmax.f32 %v1132_v63, 0.0 }
 0x2a4   :  { %v1185_v50 = vmax.f32 %v1133_v46, 0.0  ;;  %v1186_v56 = vmax.f32 %v1134_v19, 0.0  ;;  %v1515_v52 = vpack.c.bf16 %v1175_v41, %v1174_v36  ;;  %v1516_v28 = vpack.c.bf16 %v1177_v59, %v1176_v31 }
 0x2a5   :  { %v1517_v48 = vpack.c.bf16 %v1179_v32, %v1178_v39  ;;  %v1518_v25 = vpack.c.bf16 %v1181_v5, %v1180_v17  ;;  %v1519_v13 = vpack.c.bf16 %v1183_v54, %v1182_v9 }
 0x2a6   :  { %v1520_v38 = vpack.c.bf16 %v1185_v50, %v1184_v53  ;;  %v1521_v26 = vpack.c.bf16 %v1186_v56, %v1186_v56  ;;  %1386 = vst [vmem:[%s2745_s4] sm:$0xff] %v1515_v52  ;;  %1387 = vst [vmem:[%s2745_s4 + $0x8] sm:$0xff] %v1516_v28 }
 0x2a7   :  { %1388 = vst [vmem:[%s2745_s4 + $0x10] sm:$0xff] %v1517_v48  ;;  %1389 = vst [vmem:[%s2745_s4 + $0x18] sm:$0xff] %v1518_v25 }
 0x2a8   :  { %1390 = vst [vmem:[%s2745_s4 + $0x20] sm:$0xff] %v1519_v13  ;;  %1391 = vst [vmem:[%s2745_s4 + $0x28] sm:$0xff] %v1520_v38 }
 0x2a9   :  { %1393 = vst.msk [vmem:[%s2745_s4 + $0x30] sm:$0xf] %vm1392_vm3, %v1521_v26 }

// kernel: s6_model_forward.3
= control target key start
LH: loop header
LB: loop body
LE: loop exit
PB: predicated region body
PF: predicated region fallthrough
CT: control target
= control target key end

     0   :  { %vm86_vm0 = vcmask 326656   ;;  %v8650_v1 = vmov 0   ;;  %vm155_vm1 = vcmask 1047680   ;;  %vm140_vm2 = vcmask 130048   ;;  %s10945_s26 = smov 113   ;;  %s10941_s27 = smov 111   ;;  %s10903_s0 = inlined_call_operand.vmem [shape: bf16[32,392], index: 0, kind: input, shape index: {}]   ;;  %s10904_s1 = inlined_call_operand.vmem [shape: bf16[9,28,32], index: 1, kind: input, shape index: {}]   ;;  %s10905_s17 = inlined_call_operand.vmem [shape: f32[9,392], index: 17, kind: input, shape index: {}]   ;;  %s10906_s2 = inlined_call_operand.vmem [shape: f32[28,1], index: 2, kind: input, shape index: {}]   ;;  %s10907_s3 = inlined_call_operand.vmem [shape: f32[28,1], index: 3, kind: input, shape index: {}]   ;;  %s10908_s4 = inlined_call_operand.vmem [shape: bf16[9,16,28], index: 4, kind: input, shape index: {}]   ;;  %s10909_s5 = inlined_call_operand.vmem [shape: f32[16,1], index: 5, kind: input, shape index: {}]   ;;  %s10910_s6 = inlined_call_operand.vmem [shape: f32[16,1], index: 6, kind: input, shape index: {}]   ;;  %s10911_s20 = inlined_call_operand.vmem [shape: bf16[4,392,98], index: 20, kind: input, shape index: {}]   ;;  %s10912_s7 = inlined_call_operand.vmem [shape: bf16[9,8,16], index: 7, kind: input, shape index: {}]   ;;  %s10913_s18 = inlined_call_operand.vmem [shape: f32[9,98], index: 18, kind: input, shape index: {}]   ;;  %s10914_s8 = inlined_call_operand.vmem [shape: f32[8,1], index: 8, kind: input, shape index: {}]   ;;  %s10915_s21 = inlined_call_operand.vmem [shape: bf16[4,98,18], index: 21, kind: input, shape index: {}]   ;;  %s10916_s9 = inlined_call_operand.vmem [shape: f32[8,1], index: 9, kind: input, shape index: {}]   ;;  %s10917_s10 = inlined_call_operand.vmem [shape: bf16[9,4,8], index: 10, kind: input, shape index: {}]   ;;  %s10918_s19 = inlined_call_operand.vmem [shape: f32[9,18], index: 19, kind: input, shape index: {}]   ;;  %s10919_s11 = inlined_call_operand.vmem [shape: f32[4,1], index: 11, kind: input, shape index: {}]   ;;  %s10920_s12 = inlined_call_operand.vmem [shape: f32[4,1], index: 12, kind: input, shape index: {}]   ;;  %s10921_s14 = inlined_call_operand.vmem [shape: f32[8,1], index: 14, kind: input, shape index: {}]   ;;  %s10922_s16 = inlined_call_operand.vmem [shape: f32[10,1], index: 16, kind: input, shape index: {}]   ;;  %s10923_s13 = inlined_call_operand.vmem [shape: bf16[9,8,4], index: 13, kind: input, shape index: {}]   ;;  %s10924_s22 = inlined_call_operand.vmem [shape: f32[18,2], index: 22, kind: input, shape index: {}]   ;;  %s10925_s15 = inlined_call_operand.vmem [shape: f32[10,8], index: 15, kind: input, shape index: {}]   ;;  %s10926_s23 = inlined_call_operand.vmem [shape: f32[10,2], index: 23, kind: output, shape index: {}]  }
   0x1   :  { %10953 = sst [smem:[#allocation3_spill]] %s10903_s0  ;;  %83 = vst [vmem:[#allocation2] sm:$0xff] %v8650_v1  ;;  %88 = vst [vmem:[#allocation2 + $0x20] sm:$0xff] %v8650_v1  ;;  %265 = vmatprep.mubr.bf16.mxu0 %v8650_v1  ;;  %318 = vmatprep.mubr.bf16.mxu1 %v8650_v1  ;;  %vm159_vm3 = vcmask 195584   ;;  %s10937_s28 = smov 98   ;;  %vm211_vm4 = vcmask 1039360  }
   0x2   :  { %10954 = sst [smem:[#allocation4_spill]] %s10904_s1  ;;  %s10961_s24 = sld [smem:[#allocation3_spill]]  ;;  %87 = vst.msk [vmem:[#allocation2 + $0x18] sm:$0xff] %vm86_vm0, %v8650_v1  ;;  %91 = vst.msk [vmem:[#allocation2 + $0x38] sm:$0xff] %vm86_vm0, %v8650_v1  ;;  %8456 = vset.pattern.permute.xlu1 %v8650_v1  ;;  %8457 = vset.pattern.permute.xlu0 %v8650_v1  ;;  %vm226_vm5 = vcmask 261120   ;;  %vm424_vm6 = vcmask 1031168  }
   0x3   :  { %10955 = sst [smem:[#allocation5_spill]] %s10905_s17  ;;  %s10951_s1 = smov 16   ;;  %vm637_vm7 = vcmask 1022976   ;;  %vm850_vm8 = vcmask 924672   ;;  %vm1063_vm9 = vcmask 916480   ;;  %vm1276_vm10 = vcmask 908288  }
   0x4   :  { %10956 = sst [smem:[#allocation6_spill]] %s10906_s2  ;;  %s10943_s17 = smov 112   ;;  %vm1489_vm11 = vcmask 809984   ;;  %vm1702_vm12 = vcmask 801792   ;;  %vm1915_vm13 = vcmask 793600   ;;  %vm2099_vm14 = vcmask 64512  }
   0x5   :  { %10957 = sst [smem:[#allocation7_spill]] %s10907_s3  ;;  %s10962_s0 = sld [smem:[#allocation4_spill]]  ;;  %vm2116_vm15 = vcmask 1043456  }
   0x6   :  { %10958 = sst [smem:[#allocation8_spill]] %s10908_s4  ;;  %s10949_s4 = smov 126  }
   0x7   :  { %10959 = sst [smem:[#allocation9_spill]] %s10909_s5  ;;  %s10947_s5 = smov 125  }
   0x8   :  { %10960 = sst [smem:[#allocation10_spill]] %s10910_s6  ;;  %v8458_v0 = vld [vmem:[%s10961_s24 + $0x8] ss:$16 sps:$4 sm:$0xff]   ;;  %v8460_v2 = vld [vmem:[%s10961_s24 + $0xc] ss:$16 sps:$4 sm:$0xff]   ;;  %s10939_s6 = smov 99  }
   0x9   :  { %128 = vrot.lane.b32.xlu1 %v8458_v0, %s10951_s1  ;;  %v8461_v3 = vld [vmem:[%s10961_s24] ss:$16 sps:$4 sm:$0xff]   ;;  %v8463_v4 = vld [vmem:[%s10961_s24 + $0x4] ss:$16 sps:$4 sm:$0xff]   ;;  %v8467_v7 = vld [vmem:[%s10961_s24 + $0x2c] ss:$16 sps:$4 sm:$0xff]  }
   0xa   :  { %124 = vrot.lane.b32.xlu0 %v8461_v3, %s10951_s1  ;;  %v8464_v5 = vld [vmem:[%s10961_s24 + $0x24] ss:$16 sps:$4 sm:$0xff]   ;;  %v8466_v6 = vld [vmem:[%s10961_s24 + $0x20] ss:$16 sps:$4 sm:$0xff]   ;;  %v8469_v8 = vld [vmem:[%s10961_s24 + $0x28] ss:$16 sps:$4 sm:$0xff]  }
   0xb   :  { %s8652_s24 = smov 127   ;;  %v8470_v40 = vld [vmem:[%s10962_s0] sm:$0xff]   ;;  %s10935_s3 = smov 97   ;;  %v8471_v48 = vld [vmem:[%s10962_s0 + $0x8] sm:$0x3f]   ;;  %v8472_v56 = vld [vmem:[%s10962_s0 + $0x10] sm:$0xff]  }
   0xc   :  { %v8473_v0 = vld [vmem:[%s10962_s0 + $0x18] sm:$0x3f]   ;;  %s10963_s2 = sld [smem:[#allocation5_spill]]  ;;  %s10965_s25 = sld [smem:[#allocation7_spill]] }
   0xd   :  { %130 = vrot.lane.b32.xlu1 %v8460_v2, %s10951_s1  ;;  %s10976_s29 = sld [smem:[#allocation10_spill]]  ;;  %s8663_s30 = smov 119  }
   0xe   :  { %126 = vrot.lane.b32.xlu0 %v8463_v4, %s10951_s1 }
  0x11   :  { %134 = vrot.lane.b32.xlu1 %v8464_v5, %s10951_s1 }
  0x12   :  { %132 = vrot.lane.b32.xlu0 %v8466_v6, %s10951_s1 }
  0x15   :  { %138 = vrot.lane.b32.xlu1 %v8467_v7, %s10951_s1 }
  0x16   :  { %136 = vrot.lane.b32.xlu0 %v8469_v8, %s10951_s1 }
  0x7b   :  { %v129_v9 = vpop.permute.xlu1 %128 }
  0x7c   :  { %v125_v10 = vpop.permute.xlu0 %124 }
  0x7d   :  { %156 = vst.msk [vmem:[#allocation2] sm:$0xff] %vm155_vm1, %v125_v10 }
  0x7f   :  { %v131_v11 = vpop.permute.xlu1 %130 }
  0x80   :  { %v143_v12 = vsel %vm140_vm2, %v129_v9, %v131_v11  ;;  %v127_v13 = vpop.permute.xlu0 %126 }
  0x81   :  { %160 = vst.msk [vmem:[#allocation2 + $0x18] sm:$0xff] %vm159_vm3, %v143_v12  ;;  %v8842_v14 = vsel %vm140_vm2, %v127_v13, %v129_v9  ;;  %v8860_v21 = vsel %vm140_vm2, %v125_v10, %v127_v13  ;;  %v8474_v9 = vld [vmem:[%s10962_s0 + $0x20] sm:$0xff]  }
  0x82   :  { %199 = vrot.lane.b32.xlu1 %v8842_v14, %s8652_s24 }
  0x83   :  { %v135_v15 = vpop.permute.xlu1 %134 }
  0x84   :  { %v133_v16 = vpop.permute.xlu0 %132  ;;  %v8846_v17 = vld [vmem:[#allocation2] sm:$0xff] }
  0x85   :  { %v8849_v18 = vsel %vm140_vm2, %v133_v16, %v135_v15  ;;  %161 = vst.msk [vmem:[#allocation2 + $0x20] sm:$0xff] %vm155_vm1, %v133_v16  ;;  %195 = vrot.lane.b32.xlu0 %v8846_v17, %s8652_s24  ;;  %2315 = vst [vmem:[#allocation2] sm:$0xff] %v8650_v1 }
  0x86   :  { %162 = vst [vmem:[#allocation2 + $0x28] sm:$0xff] %v8849_v18 }
  0x87   :  { %v139_v19 = vpop.permute.xlu1 %138  ;;  %2320 = vst [vmem:[#allocation2 + $0x28] sm:$0x3f] %v8650_v1 }
  0x88   :  { %v8857_v20 = vld [vmem:[#allocation2 + $0x18] sm:$0xff]  ;;  %v137_v22 = vpop.permute.xlu0 %136 }
  0x89   :  { %201 = vrot.lane.b32.xlu1 %v8857_v20, %s8652_s24  ;;  %2318 = vst.msk [vmem:[#allocation2 + $0x18] sm:$0xff] %vm86_vm0, %v8650_v1  ;;  %v8867_v23 = vsel %vm140_vm2, %v135_v15, %v137_v22  ;;  %v146_v24 = vsel %vm140_vm2, %v137_v22, %v139_v19  ;;  %197 = vrot.lane.b32.xlu0 %v8860_v21, %s8652_s24  ;;  %vm2122_vm0 = vcmask 60416  }
  0x8a   :  { %163 = vst [vmem:[#allocation2 + $0x30] sm:$0xff] %v8867_v23  ;;  %164 = vst.msk [vmem:[#allocation2 + $0x38] sm:$0xff] %vm159_vm3, %v146_v24 }
  0x8b   :  { %2321 = vst [vmem:[#allocation2 + $0x30] sm:$0x3f] %v8650_v1 }
  0x8c   :  { %v8875_v25 = vld [vmem:[#allocation2 + $0x20] sm:$0xff] }
  0x8d   :  { %207 = vrot.lane.b32.xlu1 %v8867_v23, %s8652_s24  ;;  %2319 = vst [vmem:[#allocation2 + $0x20] sm:$0x3f] %v8650_v1  ;;  %205 = vrot.lane.b32.xlu0 %v8849_v18, %s8652_s24 }
  0x91   :  { %203 = vrot.lane.b32.xlu0 %v8875_v25, %s8652_s24  ;;  %v8884_v26 = vld [vmem:[#allocation2 + $0x38] sm:$0xff] }
  0x92   :  { %209 = vrot.lane.b32.xlu1 %v8884_v26, %s8652_s24 }
  0x95   :  { %408 = vrot.lane.b32.xlu0 %v8846_v17, %s10949_s4 }
  0x96   :  { %412 = vrot.lane.b32.xlu1 %v8842_v14, %s10949_s4 }
  0x99   :  { %410 = vrot.lane.b32.xlu0 %v8860_v21, %s10949_s4 }
  0x9a   :  { %414 = vrot.lane.b32.xlu1 %v8857_v20, %s10949_s4 }
  0x9d   :  { %418 = vrot.lane.b32.xlu0 %v8849_v18, %s10949_s4 }
  0x9e   :  { %420 = vrot.lane.b32.xlu1 %v8867_v23, %s10949_s4 }
  0xa1   :  { %416 = vrot.lane.b32.xlu0 %v8875_v25, %s10949_s4 }
  0xa2   :  { %422 = vrot.lane.b32.xlu1 %v8884_v26, %s10949_s4  ;;  %s10966_s4 = smov 126  }
  0xa5   :  { %621 = vrot.lane.b32.xlu0 %v8846_v17, %s10947_s5 }
  0xa6   :  { %625 = vrot.lane.b32.xlu1 %v8842_v14, %s10947_s5 }
  0xa9   :  { %623 = vrot.lane.b32.xlu0 %v8860_v21, %s10947_s5 }
  0xaa   :  { %627 = vrot.lane.b32.xlu1 %v8857_v20, %s10947_s5 }
  0xad   :  { %631 = vrot.lane.b32.xlu0 %v8849_v18, %s10947_s5 }
  0xae   :  { %633 = vrot.lane.b32.xlu1 %v8867_v23, %s10947_s5 }
  0xb1   :  { %629 = vrot.lane.b32.xlu0 %v8875_v25, %s10947_s5 }
  0xb2   :  { %635 = vrot.lane.b32.xlu1 %v8884_v26, %s10947_s5  ;;  %s10967_s5 = smov 125  }
  0xb5   :  { %834 = vrot.lane.b32.xlu0 %v8846_v17, %s10945_s26 }
  0xb6   :  { %838 = vrot.lane.b32.xlu1 %v8842_v14, %s10945_s26 }
  0xb9   :  { %836 = vrot.lane.b32.xlu0 %v8860_v21, %s10945_s26 }
  0xba   :  { %840 = vrot.lane.b32.xlu1 %v8857_v20, %s10945_s26 }
  0xbd   :  { %844 = vrot.lane.b32.xlu0 %v8849_v18, %s10945_s26 }
  0xbe   :  { %846 = vrot.lane.b32.xlu1 %v8867_v23, %s10945_s26 }
  0xc1   :  { %842 = vrot.lane.b32.xlu0 %v8875_v25, %s10945_s26 }
  0xc2   :  { %848 = vrot.lane.b32.xlu1 %v8884_v26, %s10945_s26  ;;  %s10968_s26 = smov 113  }
  0xc5   :  { %1047 = vrot.lane.b32.xlu0 %v8846_v17, %s10943_s17 }
  0xc6   :  { %1051 = vrot.lane.b32.xlu1 %v8842_v14, %s10943_s17 }
  0xc9   :  { %1049 = vrot.lane.b32.xlu0 %v8860_v21, %s10943_s17 }
  0xca   :  { %1053 = vrot.lane.b32.xlu1 %v8857_v20, %s10943_s17 }
  0xcd   :  { %1057 = vrot.lane.b32.xlu0 %v8849_v18, %s10943_s17 }
  0xce   :  { %1059 = vrot.lane.b32.xlu1 %v8867_v23, %s10943_s17 }
  0xd1   :  { %1055 = vrot.lane.b32.xlu0 %v8875_v25, %s10943_s17 }
  0xd2   :  { %1061 = vrot.lane.b32.xlu1 %v8884_v26, %s10943_s17  ;;  %s10969_s17 = smov 112  }
  0xd5   :  { %1260 = vrot.lane.b32.xlu0 %v8846_v17, %s10941_s27 }
  0xd6   :  { %1264 = vrot.lane.b32.xlu1 %v8842_v14, %s10941_s27 }
  0xd9   :  { %1262 = vrot.lane.b32.xlu0 %v8860_v21, %s10941_s27 }
  0xda   :  { %1266 = vrot.lane.b32.xlu1 %v8857_v20, %s10941_s27 }
  0xdd   :  { %1270 = vrot.lane.b32.xlu0 %v8849_v18, %s10941_s27 }
  0xde   :  { %1272 = vrot.lane.b32.xlu1 %v8867_v23, %s10941_s27 }
  0xe1   :  { %1268 = vrot.lane.b32.xlu0 %v8875_v25, %s10941_s27 }
  0xe2   :  { %1274 = vrot.lane.b32.xlu1 %v8884_v26, %s10941_s27  ;;  %s10970_s27 = smov 111  }
  0xe5   :  { %1473 = vrot.lane.b32.xlu0 %v8846_v17, %s10939_s6 }
  0xe6   :  { %1477 = vrot.lane.b32.xlu1 %v8842_v14, %s10939_s6 }
  0xe9   :  { %1475 = vrot.lane.b32.xlu0 %v8860_v21, %s10939_s6 }
  0xea   :  { %1479 = vrot.lane.b32.xlu1 %v8857_v20, %s10939_s6 }
  0xed   :  { %1483 = vrot.lane.b32.xlu0 %v8849_v18, %s10939_s6 }
  0xee   :  { %1485 = vrot.lane.b32.xlu1 %v8867_v23, %s10939_s6 }
  0xf1   :  { %1481 = vrot.lane.b32.xlu0 %v8875_v25, %s10939_s6 }
  0xf2   :  { %1487 = vrot.lane.b32.xlu1 %v8884_v26, %s10939_s6  ;;  %s10971_s6 = smov 99  }
  0xf4   :  { %v200_v27 = vpop.permute.xlu1 %199 }
  0xf5   :  { %1688 = vrot.lane.b32.xlu0 %v8860_v21, %s10937_s28 }
  0xf6   :  { %1690 = vrot.lane.b32.xlu1 %v8842_v14, %s10937_s28 }
  0xf7   :  { %v196_v28 = vpop.permute.xlu0 %195 }
  0xf9   :  { %1686 = vrot.lane.b32.xlu0 %v8846_v17, %s10937_s28 }
  0xfa   :  { %1692 = vrot.lane.b32.xlu1 %v8857_v20, %s10937_s28 }
  0xfb   :  { %v202_v29 = vpop.permute.xlu1 %201  ;;  %v198_v30 = vpop.permute.xlu0 %197 }
  0xfc   :  { %286 = vmatprep.subr.bf16.mxu1 %v202_v29  ;;  %v214_v31 = vsel %vm211_vm4, %v200_v27, %v202_v29  ;;  %v213_v32 = vsel %vm211_vm4, %v198_v30, %v200_v27  ;;  %v212_v33 = vsel %vm211_vm4, %v196_v28, %v198_v30 }
  0xfd   :  { %287 = vmatpush1.bf16.msra.mxu1 %v214_v31  ;;  %1696 = vrot.lane.b32.xlu0 %v8849_v18, %s10937_s28 }
  0xfe   :  { %233 = vmatprep.subr.bf16.mxu0 %v213_v32  ;;  %1698 = vrot.lane.b32.xlu1 %v8867_v23, %s10937_s28 }
  0xff   :  { %234 = vmatpush1.bf16.msra.mxu0 %v212_v33  ;;  %v208_v34 = vpop.permute.xlu1 %207  ;;  %v206_v35 = vpop.permute.xlu0 %205  ;;  %v8477_v33 = vld [vmem:[%s10962_s0 + $0x38] sm:$0x3f]  }
 0x100   :  { %v216_v36 = vsel %vm211_vm4, %v206_v35, %v208_v34 }
 0x101   :  { %1694 = vrot.lane.b32.xlu0 %v8875_v25, %s10937_s28  ;;  %235 = vmatprep.subr.bf16.mxu0 %v216_v36 }
 0x102   :  { %1700 = vrot.lane.b32.xlu1 %v8884_v26, %s10937_s28  ;;  %s10974_s28 = sld [smem:[#allocation8_spill]] }
 0x103   :  { %v204_v37 = vpop.permute.xlu0 %203 }
 0x104   :  { %v215_v38 = vsel %vm211_vm4, %v204_v37, %v206_v35  ;;  %v210_v39 = vpop.permute.xlu1 %209 }
 0x105   :  { %1901 = vrot.lane.b32.xlu0 %v8860_v21, %s10935_s3  ;;  %236 = vmatpush1.bf16.msra.mxu0 %v215_v38  ;;  %v217_v41 = vsel %vm211_vm4, %v208_v34, %v210_v39 }
 0x106   :  { %288 = vmatprep.subr.bf16.mxu1 %v210_v39  ;;  %1903 = vrot.lane.b32.xlu1 %v8842_v14, %s10935_s3 }
 0x107   :  { %v409_v42 = vpop.permute.xlu0 %408  ;;  %289 = vmatpush1.bf16.msra.mxu1 %v217_v41  ;;  %v8478_v41 = vld [vmem:[%s10962_s0 + $0x40] sm:$0xff]  }
 0x108   :  { %7433 = vmatmul.mubr.msk.bf16.vlgmr.msra.gmra.mrb[0].mxu0 %vm226_vm5, %v8470_v40  ;;  %v413_v43 = vpop.permute.xlu1 %412 }
 0x109   :  { %1899 = vrot.lane.b32.xlu0 %v8846_v17, %s10935_s3  ;;  %275 = vmatprep.mubr.bf16.mxu0 %v8650_v1  ;;  %v8475_v17 = vld [vmem:[%s10962_s0 + $0x28] sm:$0x3f]  }
 0x10a   :  { %7435 = vmatmul.mubr.msk.bf16.vlgmr.msra.gmra.mrb[0].mxu1 %vm226_vm5, %v8470_v40  ;;  %1905 = vrot.lane.b32.xlu1 %v8857_v20, %s10935_s3 }
 0x10b   :  { %v411_v44 = vpop.permute.xlu0 %410  ;;  %328 = vmatprep.mubr.bf16.mxu1 %v8650_v1 }
 0x10c   :  { %v426_v45 = vsel %vm424_vm6, %v411_v44, %v413_v43  ;;  %v425_v46 = vsel %vm424_vm6, %v409_v42, %v411_v44  ;;  %v415_v47 = vpop.permute.xlu1 %414 }
 0x10d   :  { %1909 = vrot.lane.b32.xlu0 %v8849_v18, %s10935_s3  ;;  %445 = vmatprep.subr.bf16.mxu0 %v426_v45  ;;  %v427_v49 = vsel %vm424_vm6, %v413_v43, %v415_v47 }
 0x10e   :  { %446 = vmatpush1.bf16.msra.mxu0 %v425_v46  ;;  %498 = vmatprep.subr.bf16.mxu1 %v415_v47 }
 0x10f   :  { %v419_v50 = vpop.permute.xlu0 %418  ;;  %1911 = vrot.lane.b32.xlu1 %v8867_v23, %s10935_s3  ;;  %499 = vmatpush1.bf16.msra.mxu1 %v427_v49  ;;  %v8479_v49 = vld [vmem:[%s10962_s0 + $0x48] sm:$0x3f]  }
 0x110   :  { %7434 = vmatmul.mubr.msk.bf16.gmra.mrb[4].mxu0 %vm226_vm5, %v8471_v48  ;;  %v421_v51 = vpop.permute.xlu1 %420 }
 0x111   :  { %1907 = vrot.lane.b32.xlu0 %v8875_v25, %s10935_s3  ;;  %v429_v52 = vsel %vm424_vm6, %v419_v50, %v421_v51  ;;  %477 = vmatprep.mubr.bf16.mxu0 %v8650_v1  ;;  %v8476_v25 = vld [vmem:[%s10962_s0 + $0x30] sm:$0xff]  }
 0x112   :  { %7436 = vmatmul.mubr.msk.bf16.gmra.mrb[4].mxu1 %vm226_vm5, %v8471_v48  ;;  %447 = vmatprep.subr.bf16.mxu0 %v429_v52 }
 0x113   :  { %v417_v53 = vpop.permute.xlu0 %416  ;;  %1913 = vrot.lane.b32.xlu1 %v8884_v26, %s10935_s3  ;;  %530 = vmatprep.mubr.bf16.mxu1 %v8650_v1 }
 0x114   :  { %v428_v54 = vsel %vm424_vm6, %v417_v53, %v419_v50  ;;  %v423_v55 = vpop.permute.xlu1 %422 }
 0x115   :  { %448 = vmatpush1.bf16.msra.mxu0 %v428_v54  ;;  %500 = vmatprep.subr.bf16.mxu1 %v423_v55  ;;  %v430_v57 = vsel %vm424_vm6, %v421_v51, %v423_v55 }
 0x116   :  { %501 = vmatpush1.bf16.msra.mxu1 %v430_v57  ;;  %v8480_v57 = vld [vmem:[%s10962_s0 + $0x50] sm:$0xff]  }
 0x117   :  { %v622_v58 = vpop.permute.xlu0 %621 }
 0x118   :  { %7443 = vmatmul.mubr.msk.bf16.vlgmr.msra.gmra.mrb[8].mxu0 %vm226_vm5, %v8472_v56  ;;  %v626_v59 = vpop.permute.xlu1 %625 }
 0x119   :  { %487 = vmatprep.mubr.bf16.mxu0 %v8650_v1 }
 0x11a   :  { %7445 = vmatmul.mubr.msk.bf16.vlgmr.msra.gmra.mrb[8].mxu1 %vm226_vm5, %v8472_v56 }
 0x11b   :  { %v624_v60 = vpop.permute.xlu0 %623  ;;  %540 = vmatprep.mubr.bf16.mxu1 %v8650_v1 }
 0x11c   :  { %v639_v61 = vsel %vm637_vm7, %v624_v60, %v626_v59  ;;  %v638_v62 = vsel %vm637_vm7, %v622_v58, %v624_v60  ;;  %v628_v63 = vpop.permute.xlu1 %627 }
 0x11d   :  { %658 = vmatprep.subr.bf16.mxu0 %v639_v61  ;;  %711 = vmatprep.subr.bf16.mxu1 %v628_v63  ;;  %v640_v2 = vsel %vm637_vm7, %v626_v59, %v628_v63 }
 0x11e   :  { %659 = vmatpush1.bf16.msra.mxu0 %v638_v62  ;;  %712 = vmatpush1.bf16.msra.mxu1 %v640_v2  ;;  %v8481_v2 = vld [vmem:[%s10962_s0 + $0x58] sm:$0x3f]  }
 0x11f   :  { %v632_v3 = vpop.permute.xlu0 %631 }
 0x120   :  { %7444 = vmatmul.mubr.msk.bf16.gmra.mrb[12].mxu0 %vm226_vm5, %v8473_v0  ;;  %v634_v4 = vpop.permute.xlu1 %633 }
 0x121   :  { %v642_v5 = vsel %vm637_vm7, %v632_v3, %v634_v4  ;;  %690 = vmatprep.mubr.bf16.mxu0 %v8650_v1 }
 0x122   :  { %7446 = vmatmul.mubr.msk.bf16.gmra.mrb[12].mxu1 %vm226_vm5, %v8473_v0  ;;  %660 = vmatprep.subr.bf16.mxu0 %v642_v5 }
 0x123   :  { %v630_v6 = vpop.permute.xlu0 %629  ;;  %743 = vmatprep.mubr.bf16.mxu1 %v8650_v1 }
 0x124   :  { %v641_v7 = vsel %vm637_vm7, %v630_v6, %v632_v3  ;;  %v636_v8 = vpop.permute.xlu1 %635 }
 0x125   :  { %661 = vmatpush1.bf16.msra.mxu0 %v641_v7  ;;  %713 = vmatprep.subr.bf16.mxu1 %v636_v8  ;;  %v643_v10 = vsel %vm637_vm7, %v634_v4, %v636_v8 }
 0x126   :  { %714 = vmatpush1.bf16.msra.mxu1 %v643_v10  ;;  %v8482_v10 = vld [vmem:[%s10962_s0 + $0x60] sm:$0xff]  }
 0x127   :  { %v835_v11 = vpop.permute.xlu0 %834 }
 0x128   :  { %7454 = vmatmul.mubr.msk.bf16.vlgmr.msra.gmra.mrb[16].mxu0 %vm226_vm5, %v8474_v9  ;;  %v839_v12 = vpop.permute.xlu1 %838 }
 0x129   :  { %700 = vmatprep.mubr.bf16.mxu0 %v8650_v1 }
 0x12a   :  { %7456 = vmatmul.mubr.msk.bf16.vlgmr.msra.gmra.mrb[16].mxu1 %vm226_vm5, %v8474_v9 }
 0x12b   :  { %v837_v13 = vpop.permute.xlu0 %836  ;;  %753 = vmatprep.mubr.bf16.mxu1 %v8650_v1 }
 0x12c   :  { %v852_v14 = vsel %vm850_vm8, %v837_v13, %v839_v12  ;;  %v851_v15 = vsel %vm850_vm8, %v835_v11, %v837_v13  ;;  %v841_v16 = vpop.permute.xlu1 %840 }
 0x12d   :  { %871 = vmatprep.subr.bf16.mxu0 %v852_v14  ;;  %924 = vmatprep.subr.bf16.mxu1 %v841_v16  ;;  %v853_v18 = vsel %vm850_vm8, %v839_v12, %v841_v16 }
 0x12e   :  { %872 = vmatpush1.bf16.msra.mxu0 %v851_v15  ;;  %925 = vmatpush1.bf16.msra.mxu1 %v853_v18  ;;  %v8483_v18 = vld [vmem:[%s10962_s0 + $0x68] sm:$0x3f]  }
 0x12f   :  { %v845_v19 = vpop.permute.xlu0 %844 }
 0x130   :  { %7455 = vmatmul.mubr.msk.bf16.gmra.mrb[20].mxu0 %vm226_vm5, %v8475_v17  ;;  %v847_v20 = vpop.permute.xlu1 %846 }
 0x131   :  { %v855_v21 = vsel %vm850_vm8, %v845_v19, %v847_v20  ;;  %903 = vmatprep.mubr.bf16.mxu0 %v8650_v1 }
 0x132   :  { %7457 = vmatmul.mubr.msk.bf16.gmra.mrb[20].mxu1 %vm226_vm5, %v8475_v17  ;;  %873 = vmatprep.subr.bf16.mxu0 %v855_v21 }
 0x133   :  { %v843_v22 = vpop.permute.xlu0 %842  ;;  %956 = vmatprep.mubr.bf16.mxu1 %v8650_v1 }
 0x134   :  { %v854_v23 = vsel %vm850_vm8, %v843_v22, %v845_v19  ;;  %v849_v24 = vpop.permute.xlu1 %848 }
 0x135   :  { %874 = vmatpush1.bf16.msra.mxu0 %v854_v23  ;;  %926 = vmatprep.subr.bf16.mxu1 %v849_v24  ;;  %v856_v26 = vsel %vm850_vm8, %v847_v20, %v849_v24 }
 0x136   :  { %927 = vmatpush1.bf16.msra.mxu1 %v856_v26  ;;  %v8484_v26 = vld [vmem:[%s10962_s0 + $0x70] sm:$0xff]  }
 0x137   :  { %v1048_v27 = vpop.permute.xlu0 %1047 }
 0x138   :  { %7465 = vmatmul.mubr.msk.bf16.vlgmr.msra.gmra.mrb[24].mxu0 %vm226_vm5, %v8476_v25  ;;  %v1052_v28 = vpop.permute.xlu1 %1051 }
 0x139   :  { %913 = vmatprep.mubr.bf16.mxu0 %v8650_v1 }
 0x13a   :  { %7467 = vmatmul.mubr.msk.bf16.vlgmr.msra.gmra.mrb[24].mxu1 %vm226_vm5, %v8476_v25 }
 0x13b   :  { %v1050_v29 = vpop.permute.xlu0 %1049  ;;  %966 = vmatprep.mubr.bf16.mxu1 %v8650_v1 }
 0x13c   :  { %v1065_v30 = vsel %vm1063_vm9, %v1050_v29, %v1052_v28  ;;  %v1064_v31 = vsel %vm1063_vm9, %v1048_v27, %v1050_v29  ;;  %v1054_v32 = vpop.permute.xlu1 %1053 }
 0x13d   :  { %1084 = vmatprep.subr.bf16.mxu0 %v1065_v30  ;;  %1137 = vmatprep.subr.bf16.mxu1 %v1054_v32  ;;  %v1066_v34 = vsel %vm1063_vm9, %v1052_v28, %v1054_v32 }
 0x13e   :  { %1085 = vmatpush1.bf16.msra.mxu0 %v1064_v31  ;;  %1138 = vmatpush1.bf16.msra.mxu1 %v1066_v34  ;;  %v8485_v34 = vld [vmem:[%s10962_s0 + $0x78] sm:$0x3f]  }
 0x13f   :  { %v1058_v35 = vpop.permute.xlu0 %1057 }
 0x140   :  { %7466 = vmatmul.mubr.msk.bf16.gmra.mrb[28].mxu0 %vm226_vm5, %v8477_v33  ;;  %v1060_v36 = vpop.permute.xlu1 %1059 }
 0x141   :  { %v1068_v37 = vsel %vm1063_vm9, %v1058_v35, %v1060_v36  ;;  %1116 = vmatprep.mubr.bf16.mxu0 %v8650_v1 }
 0x142   :  { %7468 = vmatmul.mubr.msk.bf16.gmra.mrb[28].mxu1 %vm226_vm5, %v8477_v33  ;;  %1086 = vmatprep.subr.bf16.mxu0 %v1068_v37 }
 0x143   :  { %v1056_v38 = vpop.permute.xlu0 %1055  ;;  %1169 = vmatprep.mubr.bf16.mxu1 %v8650_v1 }
 0x144   :  { %v1067_v39 = vsel %vm1063_vm9, %v1056_v38, %v1058_v35  ;;  %v1062_v40 = vpop.permute.xlu1 %1061 }
 0x145   :  { %1087 = vmatpush1.bf16.msra.mxu0 %v1067_v39  ;;  %1139 = vmatprep.subr.bf16.mxu1 %v1062_v40  ;;  %v1069_v42 = vsel %vm1063_vm9, %v1060_v36, %v1062_v40 }
 0x146   :  { %1140 = vmatpush1.bf16.msra.mxu1 %v1069_v42 }
 0x147   :  { %v1261_v43 = vpop.permute.xlu0 %1260 }
 0x148   :  { %7476 = vmatmul.mubr.msk.bf16.vlgmr.msra.gmra.mrb[32].mxu0 %vm226_vm5, %v8478_v41  ;;  %v1265_v44 = vpop.permute.xlu1 %1264 }
 0x149   :  { %1126 = vmatprep.mubr.bf16.mxu0 %v8650_v1 }
 0x14a   :  { %7478 = vmatmul.mubr.msk.bf16.vlgmr.msra.gmra.mrb[32].mxu1 %vm226_vm5, %v8478_v41  ;;  %v8486_v41 = vld [vmem:[%s10962_s0 + $0x80] sm:$0xff]  }
 0x14b   :  { %v1263_v45 = vpop.permute.xlu0 %1262  ;;  %1179 = vmatprep.mubr.bf16.mxu1 %v8650_v1 }
 0x14c   :  { %v1278_v46 = vsel %vm1276_vm10, %v1263_v45, %v1265_v44  ;;  %v1277_v47 = vsel %vm1276_vm10, %v1261_v43, %v1263_v45  ;;  %v1267_v48 = vpop.permute.xlu1 %1266 }
 0x14d   :  { %1297 = vmatprep.subr.bf16.mxu0 %v1278_v46  ;;  %1350 = vmatprep.subr.bf16.mxu1 %v1267_v48  ;;  %v1279_v50 = vsel %vm1276_vm10, %v1265_v44, %v1267_v48  ;;  %v8487_v44 = vld [vmem:[%s10962_s0 + $0x88] sm:$0x3f]   ;;  %v341_v46 = vlaneseq  ;;  %s10964_s0 = sld [smem:[#allocation6_spill]] }
 0x14e   :  { %1298 = vmatpush1.bf16.msra.mxu0 %v1277_v47  ;;  %1351 = vmatpush1.bf16.msra.mxu1 %v1279_v50 }
 0x14f   :  { %v1271_v51 = vpop.permute.xlu0 %1270 }
 0x150   :  { %7477 = vmatmul.mubr.msk.bf16.gmra.mrb[36].mxu0 %vm226_vm5, %v8479_v49  ;;  %v1273_v52 = vpop.permute.xlu1 %1272 }
 0x151   :  { %v1281_v53 = vsel %vm1276_vm10, %v1271_v51, %v1273_v52  ;;  %1329 = vmatprep.mubr.bf16.mxu0 %v8650_v1 }
 0x152   :  { %7479 = vmatmul.mubr.msk.bf16.gmra.mrb[36].mxu1 %vm226_vm5, %v8479_v49  ;;  %1299 = vmatprep.subr.bf16.mxu0 %v1281_v53  ;;  %v342_v53 = vshrl.u32 %v341_v46, 7 }
 0x153   :  { %v1269_v54 = vpop.permute.xlu0 %1268  ;;  %1382 = vmatprep.mubr.bf16.mxu1 %v8650_v1 }
 0x154   :  { %v1280_v55 = vsel %vm1276_vm10, %v1269_v54, %v1271_v51  ;;  %v1275_v56 = vpop.permute.xlu1 %1274 }
 0x155   :  { %1300 = vmatpush1.bf16.msra.mxu0 %v1280_v55  ;;  %1352 = vmatprep.subr.bf16.mxu1 %v1275_v56  ;;  %v1282_v58 = vsel %vm1276_vm10, %v1273_v52, %v1275_v56  ;;  %v339_v56 = vld [vmem:[%s10963_s2] ss:$8 sm:$0xf] }
 0x156   :  { %1353 = vmatpush1.bf16.msra.mxu1 %v1282_v58  ;;  %v9201_v58 = vsub.s32 1, %v342_v53 }
 0x157   :  { %v1474_v59 = vpop.permute.xlu0 %1473 }
 0x158   :  { %7487 = vmatmul.mubr.msk.bf16.vlgmr.msra.gmra.mrb[40].mxu0 %vm226_vm5, %v8480_v57  ;;  %v1478_v60 = vpop.permute.xlu1 %1477 }
 0x159   :  { %1339 = vmatprep.mubr.bf16.mxu0 %v8650_v1 }
 0x15a   :  { %7489 = vmatmul.mubr.msk.bf16.vlgmr.msra.gmra.mrb[40].mxu1 %vm226_vm5, %v8480_v57  ;;  %v9199_v57 = vsub.s32 0, %v342_v53 }
 0x15b   :  { %v1476_v61 = vpop.permute.xlu0 %1475  ;;  %1392 = vmatprep.mubr.bf16.mxu1 %v8650_v1 }
 0x15c   :  { %v1491_v62 = vsel %vm1489_vm11, %v1476_v61, %v1478_v60  ;;  %v1490_v63 = vsel %vm1489_vm11, %v1474_v59, %v1476_v61  ;;  %v1480_v0 = vpop.permute.xlu1 %1479  ;;  %v9203_v59 = vsub.s32 2, %v342_v53 }
 0x15d   :  { %1510 = vmatprep.subr.bf16.mxu0 %v1491_v62  ;;  %1563 = vmatprep.subr.bf16.mxu1 %v1480_v0  ;;  %v1492_v3 = vsel %vm1489_vm11, %v1478_v60, %v1480_v0  ;;  %v7447_v62 = vld [vmem:[%s10963_s2 + $0x1] ss:$8 sm:$0xf] }
 0x15e   :  { %1511 = vmatpush1.bf16.msra.mxu0 %v1490_v63  ;;  %1564 = vmatpush1.bf16.msra.mxu1 %v1492_v3 }
 0x15f   :  { %v1484_v4 = vpop.permute.xlu0 %1483 }
 0x160   :  { %7488 = vmatmul.mubr.msk.bf16.gmra.mrb[44].mxu0 %vm226_vm5, %v8481_v2  ;;  %v1486_v5 = vpop.permute.xlu1 %1485 }
 0x161   :  { %v1494_v6 = vsel %vm1489_vm11, %v1484_v4, %v1486_v5  ;;  %1542 = vmatprep.mubr.bf16.mxu0 %v8650_v1 }
 0x162   :  { %7490 = vmatmul.mubr.msk.bf16.gmra.mrb[44].mxu1 %vm226_vm5, %v8481_v2  ;;  %1512 = vmatprep.subr.bf16.mxu0 %v1494_v6  ;;  %v9210_v2 = vsub.s32 3, %v342_v53  ;;  %v557_v6 = vrot.slane %v7447_v62, %v9199_v57 }
 0x163   :  { %v1482_v7 = vpop.permute.xlu0 %1481  ;;  %1595 = vmatprep.mubr.bf16.mxu1 %v8650_v1 }
 0x164   :  { %v1493_v8 = vsel %vm1489_vm11, %v1482_v7, %v1484_v4  ;;  %v1488_v9 = vpop.permute.xlu1 %1487  ;;  %v344_v4 = vrot.slane %v339_v56, %v9199_v57  ;;  %v348_v7 = vrot.slane %v339_v56, %v9201_v58 }
 0x165   :  { %1513 = vmatpush1.bf16.msra.mxu0 %v1493_v8  ;;  %1565 = vmatprep.subr.bf16.mxu1 %v1488_v9  ;;  %v1495_v11 = vsel %vm1489_vm11, %v1486_v5, %v1488_v9  ;;  %v352_v8 = vrot.slane %v339_v56, %v9203_v59  ;;  %v561_v9 = vrot.slane %v7447_v62, %v9201_v58 }
 0x166   :  { %1566 = vmatpush1.bf16.msra.mxu1 %v1495_v11  ;;  %v9223_v11 = vrot.slane %v339_v56, %v9210_v2 }
 0x167   :  { %v1689_v12 = vpop.permute.xlu0 %1688 }
 0x168   :  { %7498 = vmatmul.mubr.msk.bf16.vlgmr.msra.gmra.mrb[48].mxu0 %vm226_vm5, %v8482_v10  ;;  %v1691_v13 = vpop.permute.xlu1 %1690 }
 0x169   :  { %v1704_v14 = vsel %vm1702_vm12, %v1689_v12, %v1691_v13  ;;  %1552 = vmatprep.mubr.bf16.mxu0 %v8650_v1 }
 0x16a   :  { %7500 = vmatmul.mubr.msk.bf16.vlgmr.msra.gmra.mrb[48].mxu1 %vm226_vm5, %v8482_v10  ;;  %1723 = vmatprep.subr.bf16.mxu0 %v1704_v14  ;;  %v565_v10 = vrot.slane %v7447_v62, %v9203_v59 }
 0x16b   :  { %v1687_v15 = vpop.permute.xlu0 %1686  ;;  %1605 = vmatprep.mubr.bf16.mxu1 %v8650_v1 }
 0x16c   :  { %v1703_v16 = vsel %vm1702_vm12, %v1687_v15, %v1689_v12  ;;  %v1693_v17 = vpop.permute.xlu1 %1692 }
 0x16d   :  { %1724 = vmatpush1.bf16.msra.mxu0 %v1703_v16  ;;  %1776 = vmatprep.subr.bf16.mxu1 %v1693_v17  ;;  %v1705_v19 = vsel %vm1702_vm12, %v1691_v13, %v1693_v17  ;;  %v9226_v13 = vrot.slane %v7447_v62, %v9210_v2 }
 0x16e   :  { %1777 = vmatpush1.bf16.msra.mxu1 %v1705_v19 }
 0x16f   :  { %v1697_v20 = vpop.permute.xlu0 %1696 }
 0x170   :  { %7499 = vmatmul.mubr.msk.bf16.gmra.mrb[52].mxu0 %vm226_vm5, %v8483_v18  ;;  %v1699_v21 = vpop.permute.xlu1 %1698 }
 0x171   :  { %v1707_v22 = vsel %vm1702_vm12, %v1697_v20, %v1699_v21  ;;  %1755 = vmatprep.mubr.bf16.mxu0 %v8650_v1 }
 0x172   :  { %7501 = vmatmul.mubr.msk.bf16.gmra.mrb[52].mxu1 %vm226_vm5, %v8483_v18  ;;  %1725 = vmatprep.subr.bf16.mxu0 %v1707_v22 }
 0x173   :  { %v1695_v23 = vpop.permute.xlu0 %1694  ;;  %1808 = vmatprep.mubr.bf16.mxu1 %v8650_v1 }
 0x174   :  { %v1706_v24 = vsel %vm1702_vm12, %v1695_v23, %v1697_v20  ;;  %v1701_v25 = vpop.permute.xlu1 %1700 }
 0x175   :  { %1726 = vmatpush1.bf16.msra.mxu0 %v1706_v24  ;;  %1778 = vmatprep.subr.bf16.mxu1 %v1701_v25  ;;  %v1708_v27 = vsel %vm1702_vm12, %v1699_v21, %v1701_v25 }
 0x176   :  { %1779 = vmatpush1.bf16.msra.mxu1 %v1708_v27 }
 0x177   :  { %v1902_v28 = vpop.permute.xlu0 %1901 }
 0x178   :  { %7509 = vmatmul.mubr.msk.bf16.vlgmr.msra.gmra.mrb[56].mxu0 %vm226_vm5, %v8484_v26  ;;  %v1904_v29 = vpop.permute.xlu1 %1903 }
 0x179   :  { %v1917_v30 = vsel %vm1915_vm13, %v1902_v28, %v1904_v29  ;;  %1765 = vmatprep.mubr.bf16.mxu0 %v8650_v1 }
 0x17a   :  { %7511 = vmatmul.mubr.msk.bf16.vlgmr.msra.gmra.mrb[56].mxu1 %vm226_vm5, %v8484_v26  ;;  %1936 = vmatprep.subr.bf16.mxu0 %v1917_v30 }
 0x17b   :  { %v1900_v31 = vpop.permute.xlu0 %1899  ;;  %1818 = vmatprep.mubr.bf16.mxu1 %v8650_v1 }
 0x17c   :  { %v1916_v32 = vsel %vm1915_vm13, %v1900_v31, %v1902_v28  ;;  %v1906_v33 = vpop.permute.xlu1 %1905 }
 0x17d   :  { %1937 = vmatpush1.bf16.msra.mxu0 %v1916_v32  ;;  %1989 = vmatprep.subr.bf16.mxu1 %v1906_v33  ;;  %v1918_v35 = vsel %vm1915_vm13, %v1904_v29, %v1906_v33 }
 0x17e   :  { %1990 = vmatpush1.bf16.msra.mxu1 %v1918_v35 }
 0x17f   :  { %v1910_v36 = vpop.permute.xlu0 %1909 }
 0x180   :  { %7510 = vmatmul.mubr.msk.bf16.gmra.mrb[60].mxu0 %vm226_vm5, %v8485_v34 }
 0x181   :  { %v1912_v37 = vpop.permute.xlu1 %1911  ;;  %1968 = vmatprep.mubr.bf16.mxu0 %v8650_v1 }
 0x182   :  { %7512 = vmatmul.mubr.msk.bf16.gmra.mrb[60].mxu1 %vm226_vm5, %v8485_v34  ;;  %v1920_v38 = vsel %vm1915_vm13, %v1910_v36, %v1912_v37 }
 0x183   :  { %v1908_v39 = vpop.permute.xlu0 %1907  ;;  %1938 = vmatprep.subr.bf16.mxu0 %v1920_v38  ;;  %2021 = vmatprep.mubr.bf16.mxu1 %v8650_v1 }
 0x184   :  { %v1919_v40 = vsel %vm1915_vm13, %v1908_v39, %v1910_v36 }
 0x185   :  { %1939 = vmatpush1.bf16.msra.mxu0 %v1919_v40  ;;  %v1914_v42 = vpop.permute.xlu1 %1913 }
 0x186   :  { %1991 = vmatprep.subr.bf16.mxu1 %v1914_v42  ;;  %v1921_v43 = vsel %vm1915_vm13, %v1912_v37, %v1914_v42 }
 0x187   :  { %1992 = vmatpush1.bf16.msra.mxu1 %v1921_v43  ;;  %v7458_v43 = vld [vmem:[%s10963_s2 + $0x2] ss:$8 sm:$0xf] }
 0x188   :  { %7520 = vmatmul.mubr.msk.bf16.vlgmr.msra.gmra.mrb[64].mxu0 %vm226_vm5, %v8486_v41 }
 0x189   :  { %1978 = vmatprep.mubr.bf16.mxu0 %v8650_v1 }
 0x18a   :  { %7522 = vmatmul.mubr.msk.bf16.vlgmr.msra.gmra.mrb[64].mxu1 %vm226_vm5, %v8486_v41 }
 0x18b   :  { %2031 = vmatprep.mubr.bf16.mxu1 %v8650_v1 }
 0x190   :  { %7521 = vmatmul.mubr.msk.bf16.gmra.mrb[68].mxu0 %vm226_vm5, %v8487_v44 }
 0x191   :  { %2478 = vmatprep.mubr.bf16.mxu0 %v8650_v1 }
 0x192   :  { %7523 = vmatmul.mubr.msk.bf16.gmra.mrb[68].mxu1 %vm226_vm5, %v8487_v44  ;;  %vm2322_vm5 = vcmask 324608  }
 0x193   :  { %2521 = vmatprep.mubr.bf16.mxu1 %v8650_v1 }
 0x1db   :  { %v267_v45 = vpop.f32.mrb[0].mxu0 }
 0x1dc   :  { %v269_v47 = vpop.f32.mrb[1].mxu0  ;;  %v361_v14 = vmul.f32 %v344_v4, %v267_v45 }
 0x1dd   :  { %v271_v48 = vpop.f32.mrb[2].mxu0  ;;  %v320_v49 = vpop.f32.mrb[0].mxu1  ;;  %v362_v17 = vmul.f32 %v348_v7, %v269_v47 }
 0x1de   :  { %v273_v50 = vpop.f32.mrb[3].mxu0  ;;  %v322_v51 = vpop.f32.mrb[1].mxu1  ;;  %v365_v18 = vmul.f32 %v344_v4, %v271_v48  ;;  %v363_v19 = vmul.f32 %v352_v8, %v320_v49 }
 0x1df   :  { %v324_v52 = vpop.f32.mrb[2].mxu1  ;;  %v366_v23 = vmul.f32 %v348_v7, %v273_v50  ;;  %v364_v29 = vmul.f32 %v9223_v11, %v322_v51  ;;  %v9240_v50 = vrot.slane %v7458_v43, %v9199_v57  ;;  %v9243_v51 = vrot.slane %v7458_v43, %v9201_v58 }
 0x1e0   :  { %v326_v54 = vpop.f32.mrb[3].mxu1  ;;  %v367_v34 = vmul.f32 %v352_v8, %v324_v52 }
 0x1e1   :  { %v368_v39 = vmul.f32 %v9223_v11, %v326_v54 }
 0x1e3   :  { %v277_v55 = vpop.f32.mrb[4].mxu0 }
 0x1e4   :  { %v279_v1 = vpop.f32.mrb[5].mxu0  ;;  %v369_v47 = vmul.f32 %v344_v4, %v277_v55 }
 0x1e5   :  { %v281_v60 = vpop.f32.mrb[6].mxu0  ;;  %v330_v61 = vpop.f32.mrb[4].mxu1  ;;  %v370_v52 = vmul.f32 %v348_v7, %v279_v1 }
 0x1e6   :  { %v283_v63 = vpop.f32.mrb[7].mxu0  ;;  %v9208_v0 = vpop.f32.mrb[5].mxu1  ;;  %v373_v53 = vmul.f32 %v344_v4, %v281_v60  ;;  %v371_v54 = vmul.f32 %v352_v8, %v330_v61 }
 0x1e7   :  { %v9212_v3 = vpop.f32.mrb[6].mxu1 }
 0x1e8   :  { %v9215_v5 = vpop.f32.mrb[7].mxu1  ;;  %v375_v1 = vmul.f32 %v352_v8, %v9212_v3 }
 0x1eb   :  { %v479_v12 = vpop.f32.mrb[8].mxu0 }
 0x1ec   :  { %v574_v15 = vmul.f32 %v557_v6, %v479_v12  ;;  %v481_v16 = vpop.f32.mrb[9].mxu0 }
 0x1ed   :  { %v575_v20 = vmul.f32 %v561_v9, %v481_v16  ;;  %v483_v21 = vpop.f32.mrb[10].mxu0  ;;  %v532_v22 = vpop.f32.mrb[8].mxu1 }
 0x1ee   :  { %v9228_v24 = vadd.f32 %v574_v15, %v361_v14  ;;  %v578_v25 = vmul.f32 %v557_v6, %v483_v21  ;;  %v485_v26 = vpop.f32.mrb[11].mxu0  ;;  %v576_v27 = vmul.f32 %v565_v10, %v532_v22  ;;  %v534_v28 = vpop.f32.mrb[9].mxu1  ;;  %v374_v14 = vmul.f32 %v348_v7, %v283_v63 }
 0x1ef   :  { %v9231_v30 = vadd.f32 %v575_v20, %v362_v17  ;;  %v579_v31 = vmul.f32 %v561_v9, %v485_v26  ;;  %v577_v32 = vmul.f32 %v9226_v13, %v534_v28  ;;  %v536_v33 = vpop.f32.mrb[10].mxu1  ;;  %v376_v63 = vmul.f32 %v9223_v11, %v9215_v5 }
 0x1f0   :  { %v594_v35 = vadd.f32 %v578_v25, %v365_v18  ;;  %v592_v36 = vadd.f32 %v576_v27, %v363_v19  ;;  %v580_v37 = vmul.f32 %v565_v10, %v536_v33  ;;  %v538_v38 = vpop.f32.mrb[11].mxu1  ;;  %v372_v19 = vmul.f32 %v9223_v11, %v9208_v0 }
 0x1f1   :  { %v595_v40 = vadd.f32 %v579_v31, %v366_v23  ;;  %v593_v41 = vadd.f32 %v577_v32, %v364_v29  ;;  %v581_v42 = vmul.f32 %v9226_v13, %v538_v38  ;;  %v778_v0 = vrot.slane %v7458_v43, %v9203_v59 }
 0x1f2   :  { %v596_v44 = vadd.f32 %v580_v37, %v367_v34  ;;  %v782_v29 = vrot.slane %v7458_v43, %v9210_v2 }
 0x1f3   :  { %v597_v45 = vadd.f32 %v581_v42, %v368_v39  ;;  %v489_v46 = vpop.f32.mrb[12].mxu0 }
 0x1f4   :  { %v582_v48 = vmul.f32 %v557_v6, %v489_v46  ;;  %v491_v49 = vpop.f32.mrb[13].mxu0 }
 0x1f5   :  { %v583_v56 = vmul.f32 %v561_v9, %v491_v49  ;;  %v493_v62 = vpop.f32.mrb[14].mxu0  ;;  %v542_v12 = vpop.f32.mrb[12].mxu1 }
 0x1f6   :  { %v598_v15 = vadd.f32 %v582_v48, %v369_v47  ;;  %v586_v16 = vmul.f32 %v557_v6, %v493_v62  ;;  %v495_v17 = vpop.f32.mrb[15].mxu0  ;;  %v584_v18 = vmul.f32 %v565_v10, %v542_v12  ;;  %v544_v55 = vpop.f32.mrb[13].mxu1 }
 0x1f7   :  { %v599_v20 = vadd.f32 %v583_v56, %v370_v52  ;;  %v587_v21 = vmul.f32 %v561_v9, %v495_v17  ;;  %v585_v22 = vmul.f32 %v9226_v13, %v544_v55  ;;  %v546_v23 = vpop.f32.mrb[14].mxu1 }
 0x1f8   :  { %v602_v60 = vadd.f32 %v586_v16, %v373_v53  ;;  %v600_v61 = vadd.f32 %v584_v18, %v371_v54  ;;  %v588_v4 = vmul.f32 %v565_v10, %v546_v23  ;;  %v548_v25 = vpop.f32.mrb[15].mxu1 }
 0x1f9   :  { %v603_v6 = vadd.f32 %v587_v21, %v374_v14  ;;  %v601_v7 = vadd.f32 %v585_v22, %v372_v19  ;;  %v589_v26 = vmul.f32 %v9226_v13, %v548_v25 }
 0x1fa   :  { %v604_v27 = vadd.f32 %v588_v4, %v375_v1 }
 0x1fb   :  { %v605_v9 = vadd.f32 %v589_v26, %v376_v63  ;;  %v692_v28 = vpop.f32.mrb[16].mxu0 }
 0x1fc   :  { %v787_v3 = vmul.f32 %v9240_v50, %v692_v28  ;;  %v694_v8 = vpop.f32.mrb[17].mxu0 }
 0x1fd   :  { %v788_v10 = vmul.f32 %v9243_v51, %v694_v8  ;;  %v696_v31 = vpop.f32.mrb[18].mxu0  ;;  %v745_v32 = vpop.f32.mrb[16].mxu1 }
 0x1fe   :  { %v803_v5 = vadd.f32 %v787_v3, %v9228_v24  ;;  %v791_v11 = vmul.f32 %v9240_v50, %v696_v31  ;;  %v698_v33 = vpop.f32.mrb[19].mxu0  ;;  %v789_v13 = vmul.f32 %v778_v0, %v745_v32  ;;  %v747_v34 = vpop.f32.mrb[17].mxu1 }
 0x1ff   :  { %v804_v37 = vadd.f32 %v788_v10, %v9231_v30  ;;  %v792_v38 = vmul.f32 %v9243_v51, %v698_v33  ;;  %v790_v39 = vmul.f32 %v782_v29, %v747_v34  ;;  %v749_v42 = vpop.f32.mrb[18].mxu1 }
 0x200   :  { %v807_v43 = vadd.f32 %v791_v11, %v594_v35  ;;  %v805_v46 = vadd.f32 %v789_v13, %v592_v36  ;;  %v793_v47 = vmul.f32 %v778_v0, %v749_v42  ;;  %v751_v48 = vpop.f32.mrb[19].mxu1  ;;  %v7469_v35 = vld [vmem:[%s10963_s2 + $0x3] ss:$8 sm:$0xf] }
 0x201   :  { %v808_v49 = vadd.f32 %v792_v38, %v595_v40  ;;  %v806_v52 = vadd.f32 %v790_v39, %v593_v41  ;;  %v794_v53 = vmul.f32 %v782_v29, %v751_v48  ;;  %v983_v4 = vrot.slane %v7469_v35, %v9199_v57 }
 0x202   :  { %v809_v54 = vadd.f32 %v793_v47, %v596_v44  ;;  %v991_v28 = vrot.slane %v7469_v35, %v9203_v59 }
 0x203   :  { %v810_v24 = vadd.f32 %v794_v53, %v597_v45  ;;  %v702_v56 = vpop.f32.mrb[20].mxu0 }
 0x204   :  { %v795_v62 = vmul.f32 %v9240_v50, %v702_v56  ;;  %v704_v12 = vpop.f32.mrb[21].mxu0 }
 0x205   :  { %v796_v14 = vmul.f32 %v9243_v51, %v704_v12  ;;  %v706_v30 = vpop.f32.mrb[22].mxu0  ;;  %v755_v16 = vpop.f32.mrb[20].mxu1 }
 0x206   :  { %v811_v36 = vadd.f32 %v795_v62, %v598_v15  ;;  %v799_v17 = vmul.f32 %v9240_v50, %v706_v30  ;;  %v708_v40 = vpop.f32.mrb[23].mxu0  ;;  %v797_v41 = vmul.f32 %v778_v0, %v755_v16  ;;  %v757_v18 = vpop.f32.mrb[21].mxu1  ;;  %v987_v15 = vrot.slane %v7469_v35, %v9201_v58 }
 0x207   :  { %v812_v44 = vadd.f32 %v796_v14, %v599_v20  ;;  %v800_v45 = vmul.f32 %v9243_v51, %v708_v40  ;;  %v798_v55 = vmul.f32 %v782_v29, %v757_v18  ;;  %v759_v19 = vpop.f32.mrb[22].mxu1  ;;  %v995_v51 = vrot.slane %v7469_v35, %v9210_v2 }
 0x208   :  { %v815_v21 = vadd.f32 %v799_v17, %v602_v60  ;;  %v813_v22 = vadd.f32 %v797_v41, %v600_v61  ;;  %v801_v23 = vmul.f32 %v778_v0, %v759_v19  ;;  %v761_v1 = vpop.f32.mrb[23].mxu1 }
 0x209   :  { %v816_v25 = vadd.f32 %v800_v45, %v603_v6  ;;  %v814_v63 = vadd.f32 %v798_v55, %v601_v7  ;;  %v802_v26 = vmul.f32 %v782_v29, %v761_v1 }
 0x20a   :  { %v817_v50 = vadd.f32 %v801_v23, %v604_v27 }
 0x20b   :  { %v818_v3 = vadd.f32 %v802_v26, %v605_v9  ;;  %v905_v20 = vpop.f32.mrb[24].mxu0 }
 0x20c   :  { %v1000_v8 = vmul.f32 %v983_v4, %v905_v20  ;;  %v907_v10 = vpop.f32.mrb[25].mxu0 }
 0x20d   :  { %v1001_v60 = vmul.f32 %v987_v15, %v907_v10  ;;  %v909_v61 = vpop.f32.mrb[26].mxu0  ;;  %v958_v0 = vpop.f32.mrb[24].mxu1 }
 0x20e   :  { %v1016_v31 = vadd.f32 %v1000_v8, %v803_v5  ;;  %v1004_v32 = vmul.f32 %v983_v4, %v909_v61  ;;  %v911_v11 = vpop.f32.mrb[27].mxu0  ;;  %v1002_v6 = vmul.f32 %v991_v28, %v958_v0  ;;  %v960_v7 = vpop.f32.mrb[25].mxu1 }
 0x20f   :  { %v1017_v29 = vadd.f32 %v1001_v60, %v804_v37  ;;  %v1005_v33 = vmul.f32 %v987_v15, %v911_v11  ;;  %v1003_v13 = vmul.f32 %v995_v51, %v960_v7  ;;  %v962_v27 = vpop.f32.mrb[26].mxu1  ;;  %v7480_v37 = vld [vmem:[%s10963_s2 + $0x4] ss:$8 sm:$0xf] }
 0x210   :  { %v1020_v34 = vadd.f32 %v1004_v32, %v807_v43  ;;  %v1018_v38 = vadd.f32 %v1002_v6, %v805_v46  ;;  %v1006_v9 = vmul.f32 %v991_v28, %v962_v27  ;;  %v964_v39 = vpop.f32.mrb[27].mxu1  ;;  %v1196_v19 = vrot.slane %v7480_v37, %v9199_v57 }
 0x211   :  { %v1021_v42 = vadd.f32 %v1005_v33, %v808_v49  ;;  %v1019_v47 = vadd.f32 %v1003_v13, %v806_v52  ;;  %v1007_v48 = vmul.f32 %v995_v51, %v964_v39  ;;  %v1200_v20 = vrot.slane %v7480_v37, %v9201_v58 }
 0x212   :  { %v1022_v53 = vadd.f32 %v1006_v9, %v809_v54 }
 0x213   :  { %v1023_v56 = vadd.f32 %v1007_v48, %v810_v24  ;;  %v915_v62 = vpop.f32.mrb[28].mxu0 }
 0x214   :  { %v1008_v12 = vmul.f32 %v983_v4, %v915_v62  ;;  %v917_v5 = vpop.f32.mrb[29].mxu0 }
 0x215   :  { %v1009_v14 = vmul.f32 %v987_v15, %v917_v5  ;;  %v919_v30 = vpop.f32.mrb[30].mxu0  ;;  %v968_v16 = vpop.f32.mrb[28].mxu1 }
 0x216   :  { %v1024_v35 = vadd.f32 %v1008_v12, %v811_v36  ;;  %v1012_v43 = vmul.f32 %v983_v4, %v919_v30  ;;  %v921_v46 = vpop.f32.mrb[31].mxu0  ;;  %v1010_v17 = vmul.f32 %v991_v28, %v968_v16  ;;  %v970_v40 = vpop.f32.mrb[29].mxu1  ;;  %v1204_v4 = vrot.slane %v7480_v37, %v9203_v59 }
 0x217   :  { %v1025_v49 = vadd.f32 %v1009_v14, %v812_v44  ;;  %v1013_v52 = vmul.f32 %v987_v15, %v921_v46  ;;  %v1011_v41 = vmul.f32 %v995_v51, %v970_v40  ;;  %v972_v54 = vpop.f32.mrb[30].mxu1  ;;  %v1208_v44 = vrot.slane %v7480_v37, %v9210_v2 }
 0x218   :  { %v1028_v24 = vadd.f32 %v1012_v43, %v815_v21  ;;  %v1026_v18 = vadd.f32 %v1010_v17, %v813_v22  ;;  %v1014_v45 = vmul.f32 %v991_v28, %v972_v54  ;;  %v974_v55 = vpop.f32.mrb[31].mxu1 }
 0x219   :  { %v1029_v23 = vadd.f32 %v1013_v52, %v816_v25  ;;  %v1027_v1 = vadd.f32 %v1011_v41, %v814_v63  ;;  %v1015_v26 = vmul.f32 %v995_v51, %v974_v55 }
 0x21a   :  { %v1030_v36 = vadd.f32 %v1014_v45, %v817_v50 }
 0x21b   :  { %v1031_v8 = vadd.f32 %v1015_v26, %v818_v3  ;;  %v1118_v10 = vpop.f32.mrb[32].mxu0 }
 0x21c   :  { %v1213_v15 = vmul.f32 %v1196_v19, %v1118_v10  ;;  %v1120_v60 = vpop.f32.mrb[33].mxu0 }
 0x21d   :  { %v1214_v21 = vmul.f32 %v1200_v20, %v1120_v60  ;;  %v1122_v22 = vpop.f32.mrb[34].mxu0  ;;  %v1171_v28 = vpop.f32.mrb[32].mxu1 }
 0x21e   :  { %v1229_v61 = vadd.f32 %v1213_v15, %v1016_v31  ;;  %v1217_v0 = vmul.f32 %v1196_v19, %v1122_v22  ;;  %v1124_v32 = vpop.f32.mrb[35].mxu0  ;;  %v1215_v25 = vmul.f32 %v1204_v4, %v1171_v28  ;;  %v1173_v63 = vpop.f32.mrb[33].mxu1 }
 0x21f   :  { %v1230_v51 = vadd.f32 %v1214_v21, %v1017_v29  ;;  %v1218_v11 = vmul.f32 %v1200_v20, %v1124_v32  ;;  %v1216_v6 = vmul.f32 %v1208_v44, %v1173_v63  ;;  %v1175_v50 = vpop.f32.mrb[34].mxu1  ;;  %v7491_v29 = vld [vmem:[%s10963_s2 + $0x5] ss:$8 sm:$0xf] }
 0x220   :  { %v1233_v7 = vadd.f32 %v1217_v0, %v1020_v34  ;;  %v1231_v33 = vadd.f32 %v1215_v25, %v1018_v38  ;;  %v1219_v3 = vmul.f32 %v1204_v4, %v1175_v50  ;;  %v1177_v13 = vpop.f32.mrb[35].mxu1  ;;  %v1409_v54 = vrot.slane %v7491_v29, %v9199_v57 }
 0x221   :  { %v1234_v27 = vadd.f32 %v1218_v11, %v1021_v42  ;;  %v1232_v9 = vadd.f32 %v1216_v6, %v1019_v47  ;;  %v1220_v39 = vmul.f32 %v1208_v44, %v1177_v13  ;;  %v1413_v10 = vrot.slane %v7491_v29, %v9201_v58 }
 0x222   :  { %v1235_v48 = vadd.f32 %v1219_v3, %v1022_v53 }
 0x223   :  { %v1236_v62 = vadd.f32 %v1220_v39, %v1023_v56  ;;  %v1128_v12 = vpop.f32.mrb[36].mxu0 }
 0x224   :  { %v1221_v5 = vmul.f32 %v1196_v19, %v1128_v12  ;;  %v1130_v31 = vpop.f32.mrb[37].mxu0 }
 0x225   :  { %v1222_v14 = vmul.f32 %v1200_v20, %v1130_v31  ;;  %v1132_v30 = vpop.f32.mrb[38].mxu0  ;;  %v1181_v16 = vpop.f32.mrb[36].mxu1 }
 0x226   :  { %v1237_v37 = vadd.f32 %v1221_v5, %v1024_v35  ;;  %v1225_v34 = vmul.f32 %v1196_v19, %v1132_v30  ;;  %v1134_v38 = vpop.f32.mrb[39].mxu0  ;;  %v1223_v43 = vmul.f32 %v1204_v4, %v1181_v16  ;;  %v1183_v46 = vpop.f32.mrb[37].mxu1  ;;  %v1417_v19 = vrot.slane %v7491_v29, %v9203_v59 }
 0x227   :  { %v1238_v42 = vadd.f32 %v1222_v14, %v1025_v49  ;;  %v1226_v47 = vmul.f32 %v1200_v20, %v1134_v38  ;;  %v1224_v17 = vmul.f32 %v1208_v44, %v1183_v46  ;;  %v1185_v53 = vpop.f32.mrb[38].mxu1  ;;  %v1421_v49 = vrot.slane %v7491_v29, %v9210_v2 }
 0x228   :  { %v1241_v56 = vadd.f32 %v1225_v34, %v1028_v24  ;;  %v1239_v40 = vadd.f32 %v1223_v43, %v1026_v18  ;;  %v1227_v52 = vmul.f32 %v1204_v4, %v1185_v53  ;;  %v1187_v41 = vpop.f32.mrb[39].mxu1 }
 0x229   :  { %v1242_v45 = vadd.f32 %v1226_v47, %v1029_v23  ;;  %v1240_v55 = vadd.f32 %v1224_v17, %v1027_v1  ;;  %v1228_v26 = vmul.f32 %v1208_v44, %v1187_v41 }
 0x22a   :  { %v1243_v35 = vadd.f32 %v1227_v52, %v1030_v36 }
 0x22b   :  { %v1244_v15 = vadd.f32 %v1228_v26, %v1031_v8  ;;  %v1331_v60 = vpop.f32.mrb[40].mxu0 }
 0x22c   :  { %v1426_v20 = vmul.f32 %v1409_v54, %v1331_v60  ;;  %v1333_v21 = vpop.f32.mrb[41].mxu0 }
 0x22d   :  { %v1427_v24 = vmul.f32 %v1413_v10, %v1333_v21  ;;  %v1335_v18 = vpop.f32.mrb[42].mxu0  ;;  %v1384_v4 = vpop.f32.mrb[40].mxu1 }
 0x22e   :  { %v1442_v22 = vadd.f32 %v1426_v20, %v1229_v61  ;;  %v1430_v28 = vmul.f32 %v1409_v54, %v1335_v18  ;;  %v1337_v0 = vpop.f32.mrb[43].mxu0  ;;  %v1428_v23 = vmul.f32 %v1417_v19, %v1384_v4  ;;  %v1386_v1 = vpop.f32.mrb[41].mxu1 }
 0x22f   :  { %v1443_v44 = vadd.f32 %v1427_v24, %v1230_v51  ;;  %v1431_v32 = vmul.f32 %v1413_v10, %v1337_v0  ;;  %v1429_v25 = vmul.f32 %v1421_v49, %v1386_v1  ;;  %v1388_v36 = vpop.f32.mrb[42].mxu1  ;;  %v7502_v51 = vld [vmem:[%s10963_s2 + $0x6] ss:$8 sm:$0xf] }
 0x230   :  { %v1446_v63 = vadd.f32 %v1430_v28, %v1233_v7  ;;  %v1444_v11 = vadd.f32 %v1428_v23, %v1231_v33  ;;  %v1432_v8 = vmul.f32 %v1417_v19, %v1388_v36  ;;  %v1390_v6 = vpop.f32.mrb[43].mxu1  ;;  %v1622_v53 = vrot.slane %v7502_v51, %v9199_v57 }
 0x231   :  { %v1447_v50 = vadd.f32 %v1431_v32, %v1234_v27  ;;  %v1445_v3 = vadd.f32 %v1429_v25, %v1232_v9  ;;  %v1433_v13 = vmul.f32 %v1421_v49, %v1390_v6  ;;  %v1626_v60 = vrot.slane %v7502_v51, %v9201_v58 }
 0x232   :  { %v1448_v39 = vadd.f32 %v1432_v8, %v1235_v48 }
 0x233   :  { %v1449_v12 = vadd.f32 %v1433_v13, %v1236_v62  ;;  %v1341_v5 = vpop.f32.mrb[44].mxu0 }
 0x234   :  { %v1434_v31 = vmul.f32 %v1409_v54, %v1341_v5  ;;  %v1343_v61 = vpop.f32.mrb[45].mxu0 }
 0x235   :  { %v1435_v14 = vmul.f32 %v1413_v10, %v1343_v61  ;;  %v1345_v30 = vpop.f32.mrb[46].mxu0  ;;  %v1394_v16 = vpop.f32.mrb[44].mxu1 }
 0x236   :  { %v1450_v29 = vadd.f32 %v1434_v31, %v1237_v37  ;;  %v1438_v7 = vmul.f32 %v1409_v54, %v1345_v30  ;;  %v1347_v33 = vpop.f32.mrb[47].mxu0  ;;  %v1436_v34 = vmul.f32 %v1417_v19, %v1394_v16  ;;  %v1396_v38 = vpop.f32.mrb[45].mxu1  ;;  %v1630_v54 = vrot.slane %v7502_v51, %v9203_v59 }
 0x237   :  { %v1451_v27 = vadd.f32 %v1435_v14, %v1238_v42  ;;  %v1439_v9 = vmul.f32 %v1413_v10, %v1347_v33  ;;  %v1437_v43 = vmul.f32 %v1421_v49, %v1396_v38  ;;  %v1398_v48 = vpop.f32.mrb[46].mxu1  ;;  %v1634_v42 = vrot.slane %v7502_v51, %v9210_v2 }
 0x238   :  { %v1454_v62 = vadd.f32 %v1438_v7, %v1241_v56  ;;  %v1452_v46 = vadd.f32 %v1436_v34, %v1239_v40  ;;  %v1440_v47 = vmul.f32 %v1417_v19, %v1398_v48  ;;  %v1400_v17 = vpop.f32.mrb[47].mxu1 }
 0x239   :  { %v1455_v52 = vadd.f32 %v1439_v9, %v1242_v45  ;;  %v1453_v41 = vadd.f32 %v1437_v43, %v1240_v55  ;;  %v1441_v26 = vmul.f32 %v1421_v49, %v1400_v17 }
 0x23a   :  { %v1456_v37 = vadd.f32 %v1440_v47, %v1243_v35 }
 0x23b   :  { %v1457_v20 = vadd.f32 %v1441_v26, %v1244_v15  ;;  %v1544_v21 = vpop.f32.mrb[48].mxu0 }
 0x23c   :  { %v1639_v10 = vmul.f32 %v1622_v53, %v1544_v21  ;;  %v1546_v24 = vpop.f32.mrb[49].mxu0 }
 0x23d   :  { %v1640_v56 = vmul.f32 %v1626_v60, %v1546_v24  ;;  %v1548_v40 = vpop.f32.mrb[50].mxu0  ;;  %v1597_v19 = vpop.f32.mrb[48].mxu1 }
 0x23e   :  { %v1655_v18 = vadd.f32 %v1639_v10, %v1442_v22  ;;  %v1643_v4 = vmul.f32 %v1622_v53, %v1548_v40  ;;  %v1550_v28 = vpop.f32.mrb[51].mxu0  ;;  %v1641_v45 = vmul.f32 %v1630_v54, %v1597_v19  ;;  %v1599_v55 = vpop.f32.mrb[49].mxu1 }
 0x23f   :  { %v1656_v49 = vadd.f32 %v1640_v56, %v1443_v44  ;;  %v1644_v0 = vmul.f32 %v1626_v60, %v1550_v28  ;;  %v1642_v23 = vmul.f32 %v1634_v42, %v1599_v55  ;;  %v1601_v35 = vpop.f32.mrb[50].mxu1  ;;  %v7513_v44 = vld [vmem:[%s10963_s2 + $0x7] ss:$8 sm:$0xf] }
 0x240   :  { %v1659_v1 = vadd.f32 %v1643_v4, %v1446_v63  ;;  %v1657_v32 = vadd.f32 %v1641_v45, %v1444_v11  ;;  %v1645_v15 = vmul.f32 %v1630_v54, %v1601_v35  ;;  %v1603_v25 = vpop.f32.mrb[51].mxu1  ;;  %v1835_v48 = vrot.slane %v7513_v44, %v9199_v57 }
 0x241   :  { %v1660_v36 = vadd.f32 %v1644_v0, %v1447_v50  ;;  %v1658_v8 = vadd.f32 %v1642_v23, %v1445_v3  ;;  %v1646_v6 = vmul.f32 %v1634_v42, %v1603_v25  ;;  %v1839_v21 = vrot.slane %v7513_v44, %v9201_v58 }
 0x242   :  { %v1661_v13 = vadd.f32 %v1645_v15, %v1448_v39 }
 0x243   :  { %v1662_v5 = vadd.f32 %v1646_v6, %v1449_v12  ;;  %v1554_v31 = vpop.f32.mrb[52].mxu0 }
 0x244   :  { %v1647_v61 = vmul.f32 %v1622_v53, %v1554_v31  ;;  %v1556_v22 = vpop.f32.mrb[53].mxu0 }
 0x245   :  { %v1648_v14 = vmul.f32 %v1626_v60, %v1556_v22  ;;  %v1558_v30 = vpop.f32.mrb[54].mxu0  ;;  %v1607_v16 = vpop.f32.mrb[52].mxu1 }
 0x246   :  { %v1663_v51 = vadd.f32 %v1647_v61, %v1450_v29  ;;  %v1651_v63 = vmul.f32 %v1622_v53, %v1558_v30  ;;  %v1560_v11 = vpop.f32.mrb[55].mxu0  ;;  %v1649_v7 = vmul.f32 %v1630_v54, %v1607_v16  ;;  %v1609_v33 = vpop.f32.mrb[53].mxu1  ;;  %v1843_v53 = vrot.slane %v7513_v44, %v9203_v59 }
 0x247   :  { %v1664_v50 = vadd.f32 %v1648_v14, %v1451_v27  ;;  %v1652_v3 = vmul.f32 %v1626_v60, %v1560_v11  ;;  %v1650_v34 = vmul.f32 %v1634_v42, %v1609_v33  ;;  %v1611_v39 = vpop.f32.mrb[54].mxu1  ;;  %v1847_v27 = vrot.slane %v7513_v44, %v9210_v2 }
 0x248   :  { %v1667_v12 = vadd.f32 %v1651_v63, %v1454_v62  ;;  %v1665_v38 = vadd.f32 %v1649_v7, %v1452_v46  ;;  %v1653_v9 = vmul.f32 %v1630_v54, %v1611_v39  ;;  %v1613_v43 = vpop.f32.mrb[55].mxu1 }
 0x249   :  { %v1668_v47 = vadd.f32 %v1652_v3, %v1455_v52  ;;  %v1666_v17 = vadd.f32 %v1650_v34, %v1453_v41  ;;  %v1654_v26 = vmul.f32 %v1634_v42, %v1613_v43 }
 0x24a   :  { %v1669_v29 = vadd.f32 %v1653_v9, %v1456_v37 }
 0x24b   :  { %v1670_v10 = vadd.f32 %v1654_v26, %v1457_v20  ;;  %v1757_v24 = vpop.f32.mrb[56].mxu0 }
 0x24c   :  { %v1852_v60 = vmul.f32 %v1835_v48, %v1757_v24  ;;  %v1759_v56 = vpop.f32.mrb[57].mxu0 }
 0x24d   :  { %v1853_v62 = vmul.f32 %v1839_v21, %v1759_v56  ;;  %v1761_v46 = vpop.f32.mrb[58].mxu0  ;;  %v1810_v54 = vpop.f32.mrb[56].mxu1 }
 0x24e   :  { %v1868_v40 = vadd.f32 %v1852_v60, %v1655_v18  ;;  %v1856_v19 = vmul.f32 %v1835_v48, %v1761_v46  ;;  %v1763_v4 = vpop.f32.mrb[59].mxu0  ;;  %v1854_v52 = vmul.f32 %v1843_v53, %v1810_v54  ;;  %v1812_v41 = vpop.f32.mrb[57].mxu1 }
 0x24f   :  { %v1869_v42 = vadd.f32 %v1853_v62, %v1656_v49  ;;  %v1857_v28 = vmul.f32 %v1839_v21, %v1763_v4  ;;  %v1855_v45 = vmul.f32 %v1847_v27, %v1812_v41  ;;  %v1814_v37 = vpop.f32.mrb[58].mxu1  ;;  %v7524_v49 = vld [vmem:[%s10963_s2 + $0x20] ss:$8 sm:$0xf] }
 0x250   :  { %v1872_v55 = vadd.f32 %v1856_v19, %v1659_v1  ;;  %v1870_v0 = vadd.f32 %v1854_v52, %v1657_v32  ;;  %v1858_v20 = vmul.f32 %v1843_v53, %v1814_v37  ;;  %v1816_v23 = vpop.f32.mrb[59].mxu1  ;;  %v2048_v39 = vrot.slane %v7524_v49, %v9199_v57 }
 0x251   :  { %v1873_v35 = vadd.f32 %v1857_v28, %v1660_v36  ;;  %v1871_v15 = vadd.f32 %v1855_v45, %v1658_v8  ;;  %v1859_v25 = vmul.f32 %v1847_v27, %v1816_v23 }
 0x252   :  { %v1874_v6 = vadd.f32 %v1858_v20, %v1661_v13 }
 0x253   :  { %v1875_v31 = vadd.f32 %v1859_v25, %v1662_v5  ;;  %v1767_v61 = vpop.f32.mrb[60].mxu0 }
 0x254   :  { %v1860_v22 = vmul.f32 %v1835_v48, %v1767_v61  ;;  %v1769_v18 = vpop.f32.mrb[61].mxu0 }
 0x255   :  { %v1861_v14 = vmul.f32 %v1839_v21, %v1769_v18  ;;  %v1771_v30 = vpop.f32.mrb[62].mxu0  ;;  %v1820_v16 = vpop.f32.mrb[60].mxu1 }
 0x256   :  { %v1876_v44 = vadd.f32 %v1860_v22, %v1663_v51  ;;  %v1864_v1 = vmul.f32 %v1835_v48, %v1771_v30  ;;  %v1773_v32 = vpop.f32.mrb[63].mxu0  ;;  %v1862_v63 = vmul.f32 %v1843_v53, %v1820_v16  ;;  %v1822_v11 = vpop.f32.mrb[61].mxu1  ;;  %v2052_v51 = vrot.slane %v7524_v49, %v9201_v58 }
 0x257   :  { %v1877_v36 = vadd.f32 %v1861_v14, %v1664_v50  ;;  %v1865_v8 = vmul.f32 %v1839_v21, %v1773_v32  ;;  %v1863_v7 = vmul.f32 %v1847_v27, %v1822_v11  ;;  %v1824_v13 = vpop.f32.mrb[62].mxu1  ;;  %v2056_v50 = vrot.slane %v7524_v49, %v9203_v59 }
 0x258   :  { %v9302_v5 = vadd.f32 %v1864_v1, %v1667_v12  ;;  %v9304_v33 = vadd.f32 %v1862_v63, %v1665_v38  ;;  %v1866_v3 = vmul.f32 %v1843_v53, %v1824_v13  ;;  %v1826_v34 = vpop.f32.mrb[63].mxu1  ;;  %v2060_v12 = vrot.slane %v7524_v49, %v9210_v2 }
 0x259   :  { %v1881_v9 = vadd.f32 %v1865_v8, %v1668_v47  ;;  %v1879_v43 = vadd.f32 %v1863_v7, %v1666_v17  ;;  %v1867_v26 = vmul.f32 %v1847_v27, %v1826_v34 }
 0x25a   :  { %v9308_v48 = vadd.f32 %v1866_v3, %v1669_v29 }
 0x25b   :  { %v9311_v21 = vadd.f32 %v1867_v26, %v1670_v10  ;;  %v1970_v24 = vpop.f32.mrb[64].mxu0 }
 0x25c   :  { %v2065_v38 = vmul.f32 %v2048_v39, %v1970_v24  ;;  %v1972_v60 = vpop.f32.mrb[65].mxu0 }
 0x25d   :  { %v2066_v53 = vmul.f32 %v2052_v51, %v1972_v60  ;;  %v1974_v56 = vpop.f32.mrb[66].mxu0  ;;  %v2023_v62 = vpop.f32.mrb[64].mxu1 }
 0x25e   :  { %v9314_v46 = vadd.f32 %v2065_v38, %v1868_v40  ;;  %v2069_v47 = vmul.f32 %v2048_v39, %v1974_v56  ;;  %v1976_v17 = vpop.f32.mrb[67].mxu0  ;;  %v2067_v27 = vmul.f32 %v2056_v50, %v2023_v62  ;;  %v2025_v54 = vpop.f32.mrb[65].mxu1 }
 0x25f   :  { %v9316_v29 = vadd.f32 %v2066_v53, %v1869_v42  ;;  %v2070_v19 = vmul.f32 %v2052_v51, %v1976_v17  ;;  %v2068_v4 = vmul.f32 %v2060_v12, %v2025_v54  ;;  %v2027_v10 = vpop.f32.mrb[66].mxu1 }
 0x260   :  { %v9318_v52 = vadd.f32 %v2069_v47, %v1872_v55  ;;  %v9320_v41 = vadd.f32 %v2067_v27, %v1870_v0  ;;  %v2071_v28 = vmul.f32 %v2056_v50, %v2027_v10  ;;  %v2029_v45 = vpop.f32.mrb[67].mxu1 }
 0x261   :  { %v2097_v40 = vadd.f32 %v9316_v29, %v9314_v46  ;;  %v9324_v37 = vadd.f32 %v2070_v19, %v1873_v35  ;;  %v2084_v20 = vadd.f32 %v2068_v4, %v1871_v15  ;;  %v2072_v23 = vmul.f32 %v2060_v12, %v2029_v45 }
 0x262   :  { %v9326_v25 = vadd.f32 %v2071_v28, %v1874_v6 }
 0x263   :  { %v2104_v42 = vadd.f32 %v9324_v37, %v9318_v52  ;;  %v9330_v61 = vadd.f32 %v2072_v23, %v1875_v31  ;;  %v1980_v55 = vpop.f32.mrb[68].mxu0  ;;  %v2098_v0 = vadd.f32 %v2097_v40, %v9320_v41  ;;  %v2100_v14 = vsel %vm2099_vm14, %v2084_v20, 0.0 }
 0x264   :  { %v2073_v22 = vmul.f32 %v2048_v39, %v1980_v55  ;;  %v1982_v18 = vpop.f32.mrb[69].mxu0 }
 0x265   :  { %v2074_v30 = vmul.f32 %v2052_v51, %v1982_v18  ;;  %v1984_v16 = vpop.f32.mrb[70].mxu0  ;;  %v2033_v35 = vpop.f32.mrb[68].mxu1  ;;  %v2101_v15 = vadd.f32 %v2100_v14, %v2098_v0  ;;  %v2105_v6 = vadd.f32 %v2104_v42, %v9326_v25  ;;  %v2106_v11 = vsel %vm2099_vm14, %v9330_v61, 0.0 }
 0x266   :  { %v9335_v49 = vadd.f32 %v2073_v22, %v1876_v44  ;;  %v2077_v1 = vmul.f32 %v2048_v39, %v1984_v16  ;;  %v1986_v32 = vpop.f32.mrb[71].mxu0  ;;  %v2075_v31 = vmul.f32 %v2056_v50, %v2033_v35  ;;  %v2035_v63 = vpop.f32.mrb[69].mxu1 }
 0x267   :  { %v9339_v8 = vadd.f32 %v2074_v30, %v1877_v36  ;;  %v2078_v7 = vmul.f32 %v2052_v51, %v1986_v32  ;;  %v2076_v13 = vmul.f32 %v2060_v12, %v2035_v63  ;;  %2102 = vadd.xlane.f32.xlu0 %v2101_v15  ;;  %v2037_v3 = vpop.f32.mrb[70].mxu1  ;;  %v2107_v34 = vadd.f32 %v2106_v11, %v2105_v6 }
 0x268   :  { %v2093_v26 = vadd.f32 %v2077_v1, %v9302_v5  ;;  %v9343_v24 = vadd.f32 %v2075_v31, %v9304_v33  ;;  %v2079_v44 = vmul.f32 %v2056_v50, %v2037_v3  ;;  %v2039_v39 = vpop.f32.mrb[71].mxu1 }
 0x269   :  { %v2094_v38 = vadd.f32 %v2078_v7, %v1881_v9  ;;  %v9345_v60 = vadd.f32 %v2076_v13, %v1879_v43  ;;  %v2080_v53 = vmul.f32 %v2060_v12, %v2039_v39  ;;  %2108 = vadd.xlane.f32.xlu1 %v2107_v34  ;;  %v2110_v5 = vadd.f32 %v9339_v8, %v9335_v49 }
 0x26a   :  { %v2117_v36 = vsel %vm2116_vm15, %v2093_v26, 0.0  ;;  %v2095_v51 = vadd.f32 %v2079_v44, %v9308_v48 }
 0x26b   :  { %v2118_v56 = vsel %vm2116_vm15, %v2094_v38, 0.0  ;;  %v2096_v62 = vadd.f32 %v2080_v53, %v9311_v21  ;;  %v2111_v47 = vadd.f32 %v2110_v5, %v9343_v24  ;;  %v2112_v48 = vsel %vm2099_vm14, %v9345_v60, 0.0  ;;  %v2219_v21 = vld [vmem:[%s10964_s0] sm:$0xff] }
 0x26c   :  { %v2119_v33 = vadd.f32 %v2118_v56, %v2117_v36  ;;  %v2120_v50 = vsel %vm2116_vm15, %v2095_v51, 0.0 }
 0x26d   :  { %v2123_v43 = vsel %vm2122_vm0, %v2096_v62, 0.0  ;;  %v2113_v17 = vadd.f32 %v2112_v48, %v2111_v47 }
 0x26e   :  { %v2121_v9 = vadd.f32 %v2120_v50, %v2119_v33 }
 0x270   :  { %v2124_v12 = vadd.f32 %v2123_v43, %v2121_v9 }
 0x272   :  { %2125 = vadd.xlane.f32.xlu0 %v2124_v12 }
 0x276   :  { %2114 = vadd.xlane.f32.xlu0 %v2113_v17 }
 0x27a   :  { %2225 = vperm.xlu1 %8456, %v2219_v21   ;;  %v2259_v21 = vld [vmem:[%s10965_s25] sm:$0xff] }
 0x2f4   :  { %v2103_v27 = vpop.xlane.xlu0 %2102 }
 0x2f5   :  { %v2128_v54 = vmul.f32 0.0025510204, %v2103_v27  ;;  %v2220_v27 = vld [vmem:[%s10964_s0 + $0x8] sm:$0xff] }
 0x2f6   :  { %v2109_v19 = vpop.xlane.xlu1 %2108 }
 0x2f7   :  { %v2129_v4 = vmul.f32 0.0025510204, %v2109_v19  ;;  %v9362_v10 = vsub.f32 %v9314_v46, %v2128_v54  ;;  %v9365_v28 = vsub.f32 %v9316_v29, %v2128_v54  ;;  %v9368_v45 = vsub.f32 %v9320_v41, %v2128_v54  ;;  %v2221_v19 = vld [vmem:[%s10964_s0 + $0x10] sm:$0xff] }
 0x2f8   :  { %v9370_v40 = vsub.f32 %v2084_v20, %v2128_v54  ;;  %v2260_v54 = vld [vmem:[%s10965_s25 + $0x8] sm:$0xff] }
 0x2f9   :  { %v2148_v23 = vmul.f32 %v9362_v10, %v9362_v10  ;;  %v2149_v42 = vmul.f32 %v9365_v28, %v9365_v28  ;;  %v9377_v55 = vsub.f32 %v9318_v52, %v2129_v4  ;;  %v9382_v29 = vsub.f32 %v9324_v37, %v2129_v4 }
 0x2fa   :  { %v2151_v46 = vmul.f32 %v9370_v40, %v9370_v40  ;;  %v9385_v41 = vsub.f32 %v9326_v25, %v2129_v4  ;;  %v9388_v20 = vsub.f32 %v9330_v61, %v2129_v4  ;;  %v2150_v0 = vmul.f32 %v9368_v45, %v9368_v45  ;;  %v2222_v4 = vld [vmem:[%s10964_s0 + $0x18] sm:$0xf]  ;;  %s10972_s0 = smov 98  }
 0x2fb   :  { %v2164_v22 = vadd.f32 %v2149_v42, %v2148_v23  ;;  %v2152_v52 = vmul.f32 %v9377_v55, %v9377_v55  ;;  %v2153_v18 = vmul.f32 %v9382_v29, %v9382_v29  ;;  %v2261_v23 = vld [vmem:[%s10965_s25 + $0x10] sm:$0xff]  ;;  %v2262_v42 = vld [vmem:[%s10965_s25 + $0x18] sm:$0xf] }
 0x2fc   :  { %v2155_v37 = vmul.f32 %v9388_v20, %v9388_v20  ;;  %v2166_v25 = vsel %vm2099_vm14, %v2151_v46, 0.0  ;;  %v2154_v61 = vmul.f32 %v9385_v41, %v9385_v41  ;;  %v2226_v46 = vpop.permute.xlu1 %2225 }
 0x2fd   :  { %v2165_v14 = vadd.f32 %v2164_v22, %v2150_v0  ;;  %v2170_v30 = vadd.f32 %v2153_v18, %v2152_v52 }
 0x2fe   :  { %v2172_v1 = vsel %vm2099_vm14, %v2155_v37, 0.0 }
 0x2ff   :  { %v2126_v16 = vpop.xlane.xlu0 %2125  ;;  %v2167_v35 = vadd.f32 %v2166_v25, %v2165_v14  ;;  %v2171_v6 = vadd.f32 %v2170_v30, %v2154_v61 }
 0x300   :  { %v2131_v15 = vmul.f32 0.0025510204, %v2126_v16 }
 0x301   :  { %2168 = vadd.xlane.f32.xlu1 %v2167_v35  ;;  %v2173_v63 = vadd.f32 %v2172_v1, %v2171_v6 }
 0x302   :  { %v9402_v32 = vsub.f32 %v2093_v26, %v2131_v15  ;;  %v9404_v31 = vsub.f32 %v2094_v38, %v2131_v15  ;;  %v9406_v11 = vsub.f32 %v2095_v51, %v2131_v15  ;;  %v9408_v13 = vsub.f32 %v2096_v62, %v2131_v15 }
 0x303   :  { %v2115_v7 = vpop.xlane.xlu0 %2114  ;;  %2174 = vadd.xlane.f32.xlu0 %v2173_v63 }
 0x304   :  { %v2130_v3 = vmul.f32 0.0025510204, %v2115_v7  ;;  %v2160_v34 = vmul.f32 %v9402_v32, %v9402_v32  ;;  %v2161_v44 = vmul.f32 %v9404_v31, %v9404_v31  ;;  %v2162_v26 = vmul.f32 %v9406_v11, %v9406_v11 }
 0x305   :  { %v2163_v39 = vmul.f32 %v9408_v13, %v9408_v13 }
 0x306   :  { %v2182_v38 = vsel %vm2116_vm15, %v2160_v34, 0.0  ;;  %v2183_v53 = vsel %vm2116_vm15, %v2161_v44, 0.0  ;;  %v9421_v36 = vsub.f32 %v9335_v49, %v2130_v3  ;;  %v9424_v56 = vsub.f32 %v9339_v8, %v2130_v3 }
 0x307   :  { %v2184_v51 = vadd.f32 %v2183_v53, %v2182_v38  ;;  %v9427_v62 = vsub.f32 %v9343_v24, %v2130_v3  ;;  %v2185_v5 = vsel %vm2116_vm15, %v2162_v26, 0.0  ;;  %v9431_v33 = vsub.f32 %v9345_v60, %v2130_v3 }
 0x308   :  { %v2156_v50 = vmul.f32 %v9421_v36, %v9421_v36  ;;  %v2157_v49 = vmul.f32 %v9424_v56, %v9424_v56  ;;  %v2187_v43 = vsel %vm2122_vm0, %v2163_v39, 0.0  ;;  %vm5199_vm0 = vcmask 15360  }
 0x309   :  { %v2186_v9 = vadd.f32 %v2185_v5, %v2184_v51  ;;  %v2159_v8 = vmul.f32 %v9431_v33, %v9431_v33  ;;  %v2158_v24 = vmul.f32 %v9427_v62, %v9427_v62 }
 0x30a   :  { %v2176_v47 = vadd.f32 %v2157_v49, %v2156_v50 }
 0x30b   :  { %v2188_v12 = vadd.f32 %v2187_v43, %v2186_v9  ;;  %v2178_v48 = vsel %vm2099_vm14, %v2159_v8, 0.0 }
 0x30c   :  { %v2177_v60 = vadd.f32 %v2176_v47, %v2158_v24 }
 0x30d   :  { %2189 = vadd.xlane.f32.xlu0 %v2188_v12 }
 0x30e   :  { %v2179_v17 = vadd.f32 %v2178_v48, %v2177_v60 }
 0x310   :  { %2180 = vadd.xlane.f32.xlu1 %v2179_v17 }
 0x321   :  { %2265 = vperm.xlu1 %8456, %v2259_v21  }
 0x323   :  { %2230 = vperm.xlu0 %8457, %v2220_v27  }
 0x325   :  { %2270 = vperm.xlu1 %8456, %v2260_v54  }
 0x329   :  { %2235 = vperm.xlu1 %8456, %v2221_v19  }
 0x32d   :  { %2240 = vperm.xlu1 %8456, %v2222_v4  }
 0x331   :  { %2275 = vperm.xlu1 %8456, %v2261_v23  }
 0x335   :  { %2280 = vperm.xlu1 %8456, %v2262_v42  }
 0x38e   :  { %v2169_v0 = vpop.xlane.xlu1 %2168 }
 0x38f   :  { %v2191_v22 = vmul.f32 0.0025510204, %v2169_v0 }
 0x390   :  { %v2175_v18 = vpop.xlane.xlu0 %2174 }
 0x391   :  { %v2195_v52 = vadd.f32 1e-05, %v2191_v22  ;;  %v2192_v14 = vmul.f32 0.0025510204, %v2175_v18 }
 0x393   :  { %8625 = vrsqrt.f32 %v2195_v52  ;;  %v2196_v37 = vadd.f32 1e-05, %v2192_v14 }
 0x395   :  { %8627 = vrsqrt.f32 %v2196_v37 }
 0x39a   :  { %v2190_v25 = vpop.xlane.xlu0 %2189 }
 0x39b   :  { %v2194_v61 = vmul.f32 0.0025510204, %v2190_v25 }
 0x39d   :  { %v8626_v30 = vpop.eup %8625  ;;  %v2181_v16 = vpop.xlane.xlu1 %2180  ;;  %v2198_v63 = vadd.f32 1e-05, %v2194_v61 }
 0x39e   :  { %v2203_v35 = vmul.f32 %v8626_v30, %v9362_v10  ;;  %v2205_v15 = vmul.f32 %v8626_v30, %v9368_v45  ;;  %v2193_v6 = vmul.f32 0.0025510204, %v2181_v16  ;;  %v2204_v7 = vmul.f32 %v8626_v30, %v9365_v28 }
 0x39f   :  { %v8628_v1 = vpop.eup %8627  ;;  %v2206_v10 = vmul.f32 %v8626_v30, %v9370_v40 }
 0x3a0   :  { %v2243_v3 = vmul.f32 %v2226_v46, %v2203_v35  ;;  %v2197_v34 = vadd.f32 1e-05, %v2193_v6  ;;  %v2207_v44 = vmul.f32 %v8628_v1, %v9377_v55  ;;  %v2208_v26 = vmul.f32 %v8628_v1, %v9382_v29 }
 0x3a1   :  { %v2245_v39 = vmul.f32 %v2226_v46, %v2205_v15  ;;  %v2266_v38 = vpop.permute.xlu1 %2265  ;;  %v2209_v51 = vmul.f32 %v8628_v1, %v9385_v41  ;;  %v2210_v45 = vmul.f32 %v8628_v1, %v9388_v20  ;;  %v2244_v5 = vmul.f32 %v2226_v46, %v2204_v7 }
 0x3a2   :  { %v2231_v53 = vpop.permute.xlu0 %2230  ;;  %8629 = vrsqrt.f32 %v2197_v34  ;;  %v2283_v49 = vadd.f32 %v2266_v38, %v2243_v3  ;;  %v2246_v47 = vmul.f32 %v2226_v46, %v2206_v10 }
 0x3a3   :  { %v2247_v50 = vmul.f32 %v2231_v53, %v2207_v44  ;;  %v2248_v9 = vmul.f32 %v2231_v53, %v2208_v26  ;;  %v2249_v28 = vmul.f32 %v2231_v53, %v2209_v51  ;;  %8631 = vrsqrt.f32 %v2198_v63  ;;  %v9484_v51 = vld [vmem:[#allocation2] sm:$0xff] }
 0x3a4   :  { %v2285_v43 = vadd.f32 %v2266_v38, %v2245_v39  ;;  %v2250_v8 = vmul.f32 %v2231_v53, %v2210_v45  ;;  %v2284_v60 = vadd.f32 %v2266_v38, %v2244_v5  ;;  %v2299_v41 = vmax.f32 %v2283_v49, 0.0  ;;  %2323 = vst.msk [vmem:[#allocation2 + $0x38] sm:$0x3f] %vm2322_vm5, %v9484_v51 }
 0x3a5   :  { %v2271_v55 = vpop.permute.xlu1 %2270  ;;  %v2286_v23 = vadd.f32 %v2266_v38, %v2246_v47  ;;  %vm2378_vm5 = vcmask 193536  }
 0x3a6   :  { %v2287_v29 = vadd.f32 %v2271_v55, %v2247_v50  ;;  %v2288_v12 = vadd.f32 %v2271_v55, %v2248_v9  ;;  %v2289_v24 = vadd.f32 %v2271_v55, %v2249_v28  ;;  %v2301_v17 = vmax.f32 %v2285_v43, 0.0 }
 0x3a7   :  { %v2290_v20 = vadd.f32 %v2271_v55, %v2250_v8  ;;  %v2300_v42 = vmax.f32 %v2284_v60, 0.0  ;;  %v2302_v61 = vmax.f32 %v2286_v23, 0.0 }
 0x3a8   :  { %v2303_v48 = vmax.f32 %v2287_v29, 0.0  ;;  %v2305_v40 = vmax.f32 %v2289_v24, 0.0  ;;  %v2304_v27 = vmax.f32 %v2288_v12, 0.0 }
 0x3a9   :  { %v2236_v21 = vpop.permute.xlu1 %2235  ;;  %v2306_v18 = vmax.f32 %v2290_v20, 0.0 }
 0x3aa   :  { %v2326_v54 = vpack.c.bf16 %v2305_v40, %v2301_v17  ;;  %v2324_v19 = vpack.c.bf16 %v2303_v48, %v2299_v41  ;;  %v2325_v14 = vpack.c.bf16 %v2304_v27, %v2300_v42 }
 0x3ab   :  { %v2327_v6 = vpack.c.bf16 %v2306_v18, %v2302_v61 }
 0x3ac   :  { %v8630_v4 = vpop.eup %8629  ;;  %2344 = vrot.lane.b32.xlu0 %v2326_v54, %s10951_s1  ;;  %2340 = vrot.lane.b32.xlu1 %v2324_v19, %s10951_s1 }
 0x3ad   :  { %v2212_v0 = vmul.f32 %v8630_v4, %v9424_v56  ;;  %v2241_v46 = vpop.permute.xlu1 %2240  ;;  %v2211_v22 = vmul.f32 %v8630_v4, %v9421_v36  ;;  %v8632_v52 = vpop.eup %8631  ;;  %v2214_v37 = vmul.f32 %v8630_v4, %v9431_v33  ;;  %v2213_v25 = vmul.f32 %v8630_v4, %v9427_v62 }
 0x3ae   :  { %v2216_v35 = vmul.f32 %v8632_v52, %v9404_v31  ;;  %v2218_v15 = vmul.f32 %v8632_v52, %v9408_v13  ;;  %v2215_v36 = vmul.f32 %v8632_v52, %v9402_v32  ;;  %v2217_v1 = vmul.f32 %v8632_v52, %v9406_v11 }
 0x3af   :  { %v2252_v30 = vmul.f32 %v2236_v21, %v2212_v0  ;;  %v2251_v16 = vmul.f32 %v2236_v21, %v2211_v22  ;;  %v2254_v63 = vmul.f32 %v2236_v21, %v2214_v37  ;;  %v2253_v3 = vmul.f32 %v2236_v21, %v2213_v25 }
 0x3b0   :  { %2342 = vrot.lane.b32.xlu1 %v2325_v14, %s10951_s1  ;;  %v2256_v7 = vmul.f32 %v2241_v46, %v2216_v35  ;;  %v2258_v33 = vmul.f32 %v2241_v46, %v2218_v15  ;;  %v2255_v34 = vmul.f32 %v2241_v46, %v2215_v36  ;;  %v2257_v26 = vmul.f32 %v2241_v46, %v2217_v1 }
 0x3b1   :  { %v2276_v56 = vpop.permute.xlu1 %2275 }
 0x3b2   :  { %v2292_v62 = vadd.f32 %v2276_v56, %v2252_v30  ;;  %v2291_v44 = vadd.f32 %v2276_v56, %v2251_v16  ;;  %v2294_v32 = vadd.f32 %v2276_v56, %v2254_v63  ;;  %v2293_v11 = vadd.f32 %v2276_v56, %v2253_v3 }
 0x3b4   :  { %2346 = vrot.lane.b32.xlu1 %v2327_v6, %s10951_s1  ;;  %v2308_v10 = vmax.f32 %v2292_v62, 0.0  ;;  %v2307_v5 = vmax.f32 %v2291_v44, 0.0  ;;  %v2310_v55 = vmax.f32 %v2294_v32, 0.0  ;;  %v2309_v8 = vmax.f32 %v2293_v11, 0.0 }
 0x3b5   :  { %v2281_v39 = vpop.permute.xlu1 %2280 }
 0x3b6   :  { %v2296_v31 = vadd.f32 %v2281_v39, %v2256_v7  ;;  %v2298_v13 = vadd.f32 %v2281_v39, %v2258_v33  ;;  %v2295_v38 = vadd.f32 %v2281_v39, %v2255_v34  ;;  %v2297_v53 = vadd.f32 %v2281_v39, %v2257_v26 }
 0x3b8   :  { %v2312_v45 = vmax.f32 %v2296_v31, 0.0  ;;  %v2311_v50 = vmax.f32 %v2295_v38, 0.0  ;;  %v2314_v9 = vmax.f32 %v2298_v13, 0.0  ;;  %v2313_v43 = vmax.f32 %v2297_v53, 0.0 }
 0x3ba   :  { %v2328_v28 = vpack.c.bf16 %v2311_v50, %v2307_v5  ;;  %v2329_v49 = vpack.c.bf16 %v2312_v45, %v2308_v10  ;;  %v2330_v29 = vpack.c.bf16 %v2313_v43, %v2309_v8  ;;  %v2331_v12 = vpack.c.bf16 %v2314_v9, %v2310_v55 }
 0x3bc   :  { %2348 = vrot.lane.b32.xlu0 %v2328_v28, %s10951_s1  ;;  %2350 = vrot.lane.b32.xlu1 %v2329_v49, %s10951_s1 }
 0x3c0   :  { %2352 = vrot.lane.b32.xlu0 %v2330_v29, %s10951_s1  ;;  %2354 = vrot.lane.b32.xlu1 %v2331_v12, %s10951_s1 }
 0x41e   :  { %v2341_v24 = vpop.permute.xlu1 %2340  ;;  %v2345_v47 = vpop.permute.xlu0 %2344 }
 0x41f   :  { %2370 = vst.msk [vmem:[#allocation2] sm:$0xff] %vm155_vm1, %v2341_v24  ;;  %vm2374_vm1 = vcmask 1045632  }
 0x422   :  { %v2343_v60 = vpop.permute.xlu1 %2342 }
 0x423   :  { %v9493_v41 = vsel %vm140_vm2, %v2341_v24, %v2343_v60  ;;  %v9496_v48 = vsel %vm140_vm2, %v2343_v60, %v2345_v47 }
 0x424   :  { %2407 = vrot.lane.b32.xlu1 %v9496_v48, %s8652_s24 }
 0x426   :  { %v2347_v17 = vpop.permute.xlu1 %2346  ;;  %v9500_v40 = vld [vmem:[#allocation2] sm:$0xff] }
 0x427   :  { %v2358_v21 = vsel %vm140_vm2, %v2345_v47, %v2347_v17  ;;  %2403 = vrot.lane.b32.xlu0 %v9500_v40, %s8652_s24  ;;  %5198 = vst [vmem:[#allocation2] sm:$0xff] %v9484_v51 }
 0x428   :  { %2373 = vst.msk [vmem:[#allocation2 + $0x18] sm:$0xff] %vm159_vm3, %v2358_v21  ;;  %vm2433_vm3 = vcmask 1045504  }
 0x42b   :  { %2578 = vrot.lane.b32.xlu0 %v9500_v40, %s10966_s4 }
 0x42e   :  { %v2349_v20 = vpop.permute.xlu0 %2348  ;;  %v2351_v27 = vpop.permute.xlu1 %2350 }
 0x42f   :  { %2375 = vst.msk [vmem:[#allocation2 + $0x20] sm:$0x3f] %vm2374_vm1, %v2349_v20  ;;  %v2359_v54 = vsel %vm140_vm2, %v2349_v20, %v2351_v27  ;;  %2751 = vrot.lane.b32.xlu0 %v9500_v40, %s10967_s5  ;;  %v9512_v19 = vld [vmem:[#allocation2 + $0x18] sm:$0xff]  ;;  %vm2429_vm1 = vcmask 228352  }
 0x430   :  { %2376 = vst [vmem:[#allocation2 + $0x28] sm:$0x3f] %v2359_v54  ;;  %2409 = vrot.lane.b32.xlu1 %v9512_v19, %s8652_s24 }
 0x432   :  { %v2353_v4 = vpop.permute.xlu0 %2352  ;;  %v2355_v23 = vpop.permute.xlu1 %2354 }
 0x433   :  { %v2360_v42 = vsel %vm140_vm2, %v2351_v27, %v2353_v4  ;;  %v2361_v0 = vsel %vm140_vm2, %v2353_v4, %v2355_v23  ;;  %2924 = vrot.lane.b32.xlu0 %v9500_v40, %s10968_s26  ;;  %v8488_v27 = vld [vmem:[%s10974_s28] sm:$0xff]  }
 0x434   :  { %2377 = vst [vmem:[#allocation2 + $0x30] sm:$0x3f] %v2360_v42  ;;  %2379 = vst.msk [vmem:[#allocation2 + $0x38] sm:$0x3f] %vm2378_vm5, %v2361_v0  ;;  %2582 = vrot.lane.b32.xlu1 %v9496_v48, %s10966_s4  ;;  %vm7388_vm5 = vcmask 9216  }
 0x436   :  { %v2384_v46 = vld [vmem:[#allocation2 + $0x20] sm:$0x3f] }
 0x437   :  { %3097 = vrot.lane.b32.xlu0 %v9500_v40, %s10969_s17  ;;  %v9562_v22 = vld [vmem:[#allocation2 + $0x28] sm:$0x3f] }
 0x438   :  { %2584 = vrot.lane.b32.xlu1 %v9512_v19, %s10966_s4 }
 0x43b   :  { %3270 = vrot.lane.b32.xlu0 %v9500_v40, %s10970_s27  ;;  %v9570_v52 = vld [vmem:[#allocation2 + $0x38] sm:$0x3f]  ;;  %v2386_v18 = vld [vmem:[#allocation2 + $0x30] sm:$0x3f] }
 0x43c   :  { %2755 = vrot.lane.b32.xlu1 %v9496_v48, %s10967_s5 }
 0x43f   :  { %2405 = vrot.lane.b32.xlu0 %v9493_v41, %s8652_s24 }
 0x440   :  { %2757 = vrot.lane.b32.xlu1 %v9512_v19, %s10967_s5 }
 0x443   :  { %2580 = vrot.lane.b32.xlu0 %v9493_v41, %s10966_s4 }
 0x444   :  { %2928 = vrot.lane.b32.xlu1 %v9496_v48, %s10968_s26 }
 0x447   :  { %2753 = vrot.lane.b32.xlu0 %v9493_v41, %s10967_s5 }
 0x448   :  { %2930 = vrot.lane.b32.xlu1 %v9512_v19, %s10968_s26 }
 0x44b   :  { %2926 = vrot.lane.b32.xlu0 %v9493_v41, %s10968_s26 }
 0x44c   :  { %3101 = vrot.lane.b32.xlu1 %v9496_v48, %s10969_s17 }
 0x44f   :  { %3099 = vrot.lane.b32.xlu0 %v9493_v41, %s10969_s17 }
 0x450   :  { %3103 = vrot.lane.b32.xlu1 %v9512_v19, %s10969_s17 }
 0x453   :  { %3272 = vrot.lane.b32.xlu0 %v9493_v41, %s10970_s27 }
 0x454   :  { %3274 = vrot.lane.b32.xlu1 %v9496_v48, %s10970_s27 }
 0x457   :  { %3445 = vrot.lane.b32.xlu0 %v9493_v41, %s10971_s6 }
 0x458   :  { %3276 = vrot.lane.b32.xlu1 %v9512_v19, %s10970_s27 }
 0x45b   :  { %2411 = vrot.lane.b32.xlu0 %v2384_v46, %s8652_s24 }
 0x45c   :  { %3447 = vrot.lane.b32.xlu1 %v9496_v48, %s10971_s6 }
 0x45f   :  { %2586 = vrot.lane.b32.xlu0 %v2384_v46, %s10966_s4 }
 0x460   :  { %2413 = vrot.lane.b32.xlu1 %v9562_v22, %s8652_s24 }
 0x463   :  { %2759 = vrot.lane.b32.xlu0 %v2384_v46, %s10967_s5 }
 0x464   :  { %3449 = vrot.lane.b32.xlu1 %v9512_v19, %s10971_s6 }
 0x467   :  { %2932 = vrot.lane.b32.xlu0 %v2384_v46, %s10968_s26 }
 0x468   :  { %2417 = vrot.lane.b32.xlu1 %v9570_v52, %s8652_s24 }
 0x46b   :  { %3105 = vrot.lane.b32.xlu0 %v2384_v46, %s10969_s17 }
 0x46c   :  { %2588 = vrot.lane.b32.xlu1 %v9562_v22, %s10966_s4 }
 0x46f   :  { %3278 = vrot.lane.b32.xlu0 %v2384_v46, %s10970_s27 }
 0x470   :  { %2592 = vrot.lane.b32.xlu1 %v9570_v52, %s10966_s4 }
 0x473   :  { %2415 = vrot.lane.b32.xlu0 %v2386_v18, %s8652_s24  ;;  %s10973_s24 = smov 97  }
 0x474   :  { %2761 = vrot.lane.b32.xlu1 %v9562_v22, %s10967_s5 }
 0x477   :  { %3443 = vrot.lane.b32.xlu0 %v9500_v40, %s10971_s6 }
 0x478   :  { %3620 = vrot.lane.b32.xlu1 %v9496_v48, %s10972_s0 }
 0x47b   :  { %2590 = vrot.lane.b32.xlu0 %v2386_v18, %s10966_s4  ;;  %s8664_s4 = smov 120  }
 0x47c   :  { %2765 = vrot.lane.b32.xlu1 %v9570_v52, %s10967_s5 }
 0x47f   :  { %3451 = vrot.lane.b32.xlu0 %v2384_v46, %s10971_s6 }
 0x480   :  { %2934 = vrot.lane.b32.xlu1 %v9562_v22, %s10968_s26 }
 0x483   :  { %2763 = vrot.lane.b32.xlu0 %v2386_v18, %s10967_s5  ;;  %s8665_s5 = smov 118  }
 0x484   :  { %3622 = vrot.lane.b32.xlu1 %v9512_v19, %s10972_s0 }
 0x487   :  { %3618 = vrot.lane.b32.xlu0 %v9493_v41, %s10972_s0 }
 0x488   :  { %2938 = vrot.lane.b32.xlu1 %v9570_v52, %s10968_s26 }
 0x48b   :  { %2936 = vrot.lane.b32.xlu0 %v2386_v18, %s10968_s26 }
 0x48c   :  { %3107 = vrot.lane.b32.xlu1 %v9562_v22, %s10969_s17 }
 0x48f   :  { %3616 = vrot.lane.b32.xlu0 %v9500_v40, %s10972_s0 }
 0x490   :  { %3111 = vrot.lane.b32.xlu1 %v9570_v52, %s10969_s17 }
 0x493   :  { %3109 = vrot.lane.b32.xlu0 %v2386_v18, %s10969_s17 }
 0x494   :  { %3280 = vrot.lane.b32.xlu1 %v9562_v22, %s10970_s27 }
 0x496   :  { %v2408_v25 = vpop.permute.xlu1 %2407 }
 0x497   :  { %3624 = vrot.lane.b32.xlu0 %v2384_v46, %s10972_s0 }
 0x498   :  { %3793 = vrot.lane.b32.xlu1 %v9496_v48, %s10973_s24 }
 0x499   :  { %v2404_v14 = vpop.permute.xlu0 %2403 }
 0x49b   :  { %3282 = vrot.lane.b32.xlu0 %v2386_v18, %s10970_s27 }
 0x49c   :  { %3284 = vrot.lane.b32.xlu1 %v9570_v52, %s10970_s27 }
 0x49d   :  { %v9616_v37 = vpop.permute.xlu0 %2578 }
 0x49f   :  { %3791 = vrot.lane.b32.xlu0 %v9493_v41, %s10973_s24 }
 0x4a0   :  { %3453 = vrot.lane.b32.xlu1 %v9562_v22, %s10971_s6 }
 0x4a1   :  { %v9622_v61 = vpop.permute.xlu0 %2751 }
 0x4a2   :  { %v2410_v30 = vpop.permute.xlu1 %2409 }
 0x4a3   :  { %3455 = vrot.lane.b32.xlu0 %v2386_v18, %s10971_s6  ;;  %2489 = vmatprep.subr.bf16.mxu1 %v2410_v30  ;;  %v2421_v16 = vsel %vm211_vm4, %v2408_v25, %v2410_v30 }
 0x4a4   :  { %3795 = vrot.lane.b32.xlu1 %v9512_v19, %s10973_s24  ;;  %2490 = vmatpush1.bf16.msra.mxu1 %v2421_v16 }
 0x4a5   :  { %v9628_v35 = vpop.permute.xlu0 %2924 }
 0x4a6   :  { %v9630_v15 = vpop.permute.xlu1 %2582 }
 0x4a7   :  { %3789 = vrot.lane.b32.xlu0 %v9500_v40, %s10973_s24 }
 0x4a8   :  { %3457 = vrot.lane.b32.xlu1 %v9570_v52, %s10971_s6  ;;  %s8666_s6 = smov 105  }
 0x4a9   :  { %v9636_v56 = vpop.permute.xlu0 %3097 }
 0x4aa   :  { %v9638_v6 = vpop.permute.xlu1 %2584 }
 0x4ab   :  { %3628 = vrot.lane.b32.xlu0 %v2386_v18, %s10972_s0  ;;  %v2596_v42 = vsel %vm424_vm6, %v9630_v15, %v9638_v6 }
 0x4ac   :  { %3626 = vrot.lane.b32.xlu1 %v9562_v22, %s10972_s0 }
 0x4ad   :  { %v9643_v36 = vpop.permute.xlu0 %3270 }
 0x4ae   :  { %v9645_v1 = vpop.permute.xlu1 %2755 }
 0x4af   :  { %3797 = vrot.lane.b32.xlu0 %v2384_v46, %s10973_s24 }
 0x4b0   :  { %3630 = vrot.lane.b32.xlu1 %v9570_v52, %s10972_s0  ;;  %s8668_s0 = smov 104  }
 0x4b1   :  { %v2406_v63 = vpop.permute.xlu0 %2405 }
 0x4b2   :  { %v9650_v7 = vpop.permute.xlu1 %2757  ;;  %v2420_v33 = vsel %vm211_vm4, %v2406_v63, %v2408_v25  ;;  %v2419_v3 = vsel %vm211_vm4, %v2404_v14, %v2406_v63  ;;  %v8489_v25 = vld [vmem:[%s10974_s28 + $0x8] sm:$0xff]  }
 0x4b3   :  { %3801 = vrot.lane.b32.xlu0 %v2386_v18, %s10973_s24  ;;  %2446 = vmatprep.subr.bf16.mxu0 %v2420_v33  ;;  %v2769_v63 = vsel %vm637_vm7, %v9645_v1, %v9650_v7 }
 0x4b4   :  { %3799 = vrot.lane.b32.xlu1 %v9562_v22, %s10973_s24  ;;  %2447 = vmatpush1.bf16.msra.mxu0 %v2419_v3 }
 0x4b5   :  { %v2581_v62 = vpop.permute.xlu0 %2580 }
 0x4b6   :  { %v9657_v34 = vpop.permute.xlu1 %2928  ;;  %v2595_v54 = vsel %vm424_vm6, %v2581_v62, %v9630_v15  ;;  %v2594_v23 = vsel %vm424_vm6, %v9616_v37, %v2581_v62 }
 0x4b8   :  { %3803 = vrot.lane.b32.xlu1 %v9570_v52, %s10973_s24  ;;  %s10975_s24 = sld [smem:[#allocation9_spill]] }
 0x4b9   :  { %v9661_v44 = vpop.permute.xlu0 %2753 }
 0x4ba   :  { %v9663_v26 = vpop.permute.xlu1 %2930  ;;  %v2768_v30 = vsel %vm637_vm7, %v9661_v44, %v9645_v1 }
 0x4bd   :  { %v9665_v39 = vpop.permute.xlu0 %2926 }
 0x4be   :  { %v9667_v31 = vpop.permute.xlu1 %3101 }
 0x4c1   :  { %v9669_v13 = vpop.permute.xlu0 %3099 }
 0x4c2   :  { %v9671_v38 = vpop.permute.xlu1 %3103 }
 0x4c5   :  { %v9673_v53 = vpop.permute.xlu0 %3272 }
 0x4c6   :  { %v9675_v32 = vpop.permute.xlu1 %3274 }
 0x4c9   :  { %v9677_v11 = vpop.permute.xlu0 %3445 }
 0x4ca   :  { %v9679_v10 = vpop.permute.xlu1 %3276 }
 0x4cd   :  { %v2412_v45 = vpop.permute.xlu0 %2411 }
 0x4ce   :  { %v9681_v5 = vpop.permute.xlu1 %3447 }
 0x4cf   :  { %v9686_v50 = vsel %vm1489_vm11, %v9677_v11, %v9681_v5 }
 0x4d1   :  { %v2587_v9 = vpop.permute.xlu0 %2586 }
 0x4d2   :  { %v2414_v28 = vpop.permute.xlu1 %2413 }
 0x4d3   :  { %v2422_v60 = vsel %vm211_vm4, %v2412_v45, %v2414_v28 }
 0x4d4   :  { %v2435_v21 = vsel %vm2433_vm3, %v2422_v60, 0 }
 0x4d5   :  { %v2760_v49 = vpop.permute.xlu0 %2759 }
 0x4d6   :  { %v9688_v43 = vpop.permute.xlu1 %3449 }
 0x4d9   :  { %v9690_v55 = vpop.permute.xlu0 %2932 }
 0x4da   :  { %v2418_v8 = vpop.permute.xlu1 %2417 }
 0x4db   :  { %7528 = vmatprep.subr.msk.bf16.mxu1 %vm2433_vm3, %v2418_v8 }
 0x4dd   :  { %v9693_v29 = vpop.permute.xlu0 %3105 }
 0x4de   :  { %v2589_v12 = vpop.permute.xlu1 %2588 }
 0x4df   :  { %v2597_v0 = vsel %vm424_vm6, %v2587_v9, %v2589_v12 }
 0x4e0   :  { %v2608_v14 = vsel %vm2433_vm3, %v2597_v0, 0 }
 0x4e1   :  { %v9695_v24 = vpop.permute.xlu0 %3278 }
 0x4e2   :  { %v2593_v47 = vpop.permute.xlu1 %2592 }
 0x4e5   :  { %v2416_v41 = vpop.permute.xlu0 %2415 }
 0x4e6   :  { %v2423_v48 = vsel %vm211_vm4, %v2414_v28, %v2416_v41  ;;  %v2424_v17 = vsel %vm211_vm4, %v2416_v41, %v2418_v8  ;;  %v2762_v40 = vpop.permute.xlu1 %2761  ;;  %v2940_v8 = vsel %vm850_vm8, %v9628_v35, %v9665_v39  ;;  %vm8662_vm4 = vmmov 0  }
 0x4e7   :  { %v2441_v20 = vsel %vm2433_vm3, %v2424_v17, 0  ;;  %7526 = vmatprep.subr.msk.bf16.mxu0 %vm2433_vm3, %v2423_v48  ;;  %v2770_v33 = vsel %vm637_vm7, %v2760_v49, %v2762_v40 }
 0x4e8   :  { %2449 = vmatpush1.bf16.msra.mxu0 %v2435_v21  ;;  %2492 = vmatpush1.bf16.msra.mxu1 %v2441_v20  ;;  %v3113_v21 = vsel %vm1063_vm9, %v9636_v56, %v9669_v13  ;;  %v3115_v20 = vsel %vm1063_vm9, %v9667_v31, %v9671_v38 }
 0x4e9   :  { %v9708_v19 = vpop.permute.xlu0 %3443  ;;  %2619 = vmatprep.subr.bf16.mxu0 %v2595_v54  ;;  %2662 = vmatprep.subr.bf16.mxu1 %v9638_v6  ;;  %v2767_v6 = vsel %vm637_vm7, %v9622_v61, %v9661_v44  ;;  %v2781_v61 = vsel %vm2433_vm3, %v2770_v33, 0  ;;  %v2941_v44 = vsel %vm850_vm8, %v9665_v39, %v9657_v34  ;;  %v3114_v39 = vsel %vm1063_vm9, %v9669_v13, %v9667_v31  ;;  %v8492_v13 = vld [vmem:[%s10974_s28 + $0x20] sm:$0xff]  }
 0x4ea   :  { %v9711_v4 = vpop.permute.xlu1 %3620 }
 0x4eb   :  { %7527 = vmatmul.mubr.msk.bf16.vlgmr.msra.gmra.mrb[72].mxu0 %vm2429_vm1, %v8488_v27  ;;  %7529 = vmatmul.mubr.msk.bf16.vlgmr.msra.gmra.mrb[72].mxu1 %vm2429_vm1, %v8488_v27 }
 0x4ec   :  { %2620 = vmatpush1.bf16.msra.mxu0 %v2594_v23  ;;  %2663 = vmatpush1.bf16.msra.mxu1 %v2596_v42 }
 0x4ed   :  { %v2591_v46 = vpop.permute.xlu0 %2590  ;;  %7535 = vmatprep.subr.msk.bf16.mxu1 %vm2433_vm3, %v2593_v47  ;;  %2651 = vmatprep.mubr.bf16.mxu0 %v9484_v51 }
 0x4ee   :  { %v2598_v22 = vsel %vm424_vm6, %v2589_v12, %v2591_v46  ;;  %v2599_v52 = vsel %vm424_vm6, %v2591_v46, %v2593_v47  ;;  %v2766_v18 = vpop.permute.xlu1 %2765  ;;  %2694 = vmatprep.mubr.bf16.mxu1 %v9484_v51  ;;  %v2942_v12 = vsel %vm850_vm8, %v9657_v34, %v9663_v26  ;;  %vm5206_vm6 = vcmask 932992  }
 0x4ef   :  { %v2614_v37 = vsel %vm2433_vm3, %v2599_v52, 0  ;;  %7533 = vmatprep.subr.msk.bf16.mxu0 %vm2433_vm3, %v2598_v22  ;;  %v3288_v22 = vsel %vm1276_vm10, %v9675_v32, %v9679_v10  ;;  %v3286_v52 = vsel %vm1276_vm10, %v9643_v36, %v9673_v53  ;;  %v8493_v36 = vld [vmem:[%s10974_s28 + $0x28] sm:$0xff]  }
 0x4f0   :  { %2622 = vmatpush1.bf16.msra.mxu0 %v2608_v14  ;;  %2665 = vmatpush1.bf16.msra.mxu1 %v2614_v37 }
 0x4f1   :  { %v9735_v16 = vpop.permute.xlu0 %3451  ;;  %2792 = vmatprep.subr.bf16.mxu0 %v2768_v30  ;;  %2835 = vmatprep.subr.bf16.mxu1 %v9650_v7  ;;  %v8490_v7 = vld [vmem:[%s10974_s28 + $0x10] sm:$0xff]  }
 0x4f2   :  { %v2935_v15 = vpop.permute.xlu1 %2934 }
 0x4f3   :  { %7534 = vmatmul.mubr.msk.bf16.vlgmr.msra.gmra.mrb[76].mxu0 %vm2429_vm1, %v8489_v25  ;;  %7536 = vmatmul.mubr.msk.bf16.vlgmr.msra.gmra.mrb[76].mxu1 %vm2429_vm1, %v8489_v25  ;;  %v2943_v47 = vsel %vm850_vm8, %v9690_v55, %v2935_v15 }
 0x4f4   :  { %2793 = vmatpush1.bf16.msra.mxu0 %v2767_v6  ;;  %2836 = vmatpush1.bf16.msra.mxu1 %v2769_v63  ;;  %v2954_v35 = vsel %vm2433_vm3, %v2943_v47, 0  ;;  %v3461_v6 = vsel %vm1489_vm11, %v9681_v5, %v9688_v43  ;;  %v8494_v5 = vld [vmem:[%s10974_s28 + $0x30] sm:$0xff]  }
 0x4f5   :  { %v2764_v3 = vpop.permute.xlu0 %2763  ;;  %7543 = vmatprep.subr.msk.bf16.mxu1 %vm2433_vm3, %v2766_v18  ;;  %2824 = vmatprep.mubr.bf16.mxu0 %v9484_v51 }
 0x4f6   :  { %v2771_v62 = vsel %vm637_vm7, %v2762_v40, %v2764_v3  ;;  %v2772_v45 = vsel %vm637_vm7, %v2764_v3, %v2766_v18  ;;  %v9751_v9 = vpop.permute.xlu1 %3622  ;;  %2867 = vmatprep.mubr.bf16.mxu1 %v9484_v51  ;;  %vm6126_vm7 = vcmask 404480  }
 0x4f7   :  { %v2787_v1 = vsel %vm2433_vm3, %v2772_v45, 0  ;;  %7541 = vmatprep.subr.msk.bf16.mxu0 %vm2433_vm3, %v2771_v62 }
 0x4f8   :  { %2795 = vmatpush1.bf16.msra.mxu0 %v2781_v61  ;;  %2838 = vmatpush1.bf16.msra.mxu1 %v2787_v1 }
 0x4f9   :  { %v9763_v28 = vpop.permute.xlu0 %3618  ;;  %2965 = vmatprep.subr.bf16.mxu0 %v2941_v44  ;;  %3008 = vmatprep.subr.bf16.mxu1 %v9663_v26  ;;  %v8491_v26 = vld [vmem:[%s10974_s28 + $0x18] sm:$0xff]  }
 0x4fa   :  { %v2939_v49 = vpop.permute.xlu1 %2938 }
 0x4fb   :  { %7542 = vmatmul.mubr.msk.bf16.vlgmr.msra.gmra.mrb[80].mxu0 %vm2429_vm1, %v8490_v7  ;;  %7544 = vmatmul.mubr.msk.bf16.vlgmr.msra.gmra.mrb[80].mxu1 %vm2429_vm1, %v8490_v7 }
 0x4fc   :  { %2966 = vmatpush1.bf16.msra.mxu0 %v2940_v8  ;;  %3009 = vmatpush1.bf16.msra.mxu1 %v2942_v12  ;;  %v8495_v12 = vld [vmem:[%s10974_s28 + $0x38] sm:$0xff]  }
 0x4fd   :  { %v2937_v60 = vpop.permute.xlu0 %2936  ;;  %7551 = vmatprep.subr.msk.bf16.mxu1 %vm2433_vm3, %v2939_v49  ;;  %2997 = vmatprep.mubr.bf16.mxu0 %v9484_v51 }
 0x4fe   :  { %v2944_v41 = vsel %vm850_vm8, %v2935_v15, %v2937_v60  ;;  %v2945_v48 = vsel %vm850_vm8, %v2937_v60, %v2939_v49  ;;  %v3108_v17 = vpop.permute.xlu1 %3107  ;;  %3040 = vmatprep.mubr.bf16.mxu1 %v9484_v51  ;;  %v3459_v15 = vsel %vm1489_vm11, %v9708_v19, %v9677_v11  ;;  %v3634_v49 = vsel %vm1702_vm12, %v9711_v4, %v9751_v9 }
 0x4ff   :  { %v2960_v34 = vsel %vm2433_vm3, %v2945_v48, 0  ;;  %7549 = vmatprep.subr.msk.bf16.mxu0 %vm2433_vm3, %v2944_v41  ;;  %v3116_v27 = vsel %vm1063_vm9, %v9693_v29, %v3108_v17  ;;  %vm6133_vm8 = vcmask 273536  }
 0x500   :  { %2968 = vmatpush1.bf16.msra.mxu0 %v2954_v35  ;;  %3011 = vmatpush1.bf16.msra.mxu1 %v2960_v34  ;;  %v3127_v56 = vsel %vm2433_vm3, %v3116_v27, 0 }
 0x501   :  { %v9790_v55 = vpop.permute.xlu0 %3616  ;;  %3138 = vmatprep.subr.bf16.mxu0 %v3114_v39  ;;  %3181 = vmatprep.subr.bf16.mxu1 %v9671_v38  ;;  %v3287_v38 = vsel %vm1276_vm10, %v9673_v53, %v9675_v32 }
 0x502   :  { %v3112_v40 = vpop.permute.xlu1 %3111  ;;  %v3632_v62 = vsel %vm1702_vm12, %v9790_v55, %v9763_v28 }
 0x503   :  { %7550 = vmatmul.mubr.msk.bf16.vlgmr.msra.gmra.mrb[84].mxu0 %vm2429_vm1, %v8491_v26  ;;  %7552 = vmatmul.mubr.msk.bf16.vlgmr.msra.gmra.mrb[84].mxu1 %vm2429_vm1, %v8491_v26 }
 0x504   :  { %3139 = vmatpush1.bf16.msra.mxu0 %v3113_v21  ;;  %3182 = vmatpush1.bf16.msra.mxu1 %v3115_v20 }
 0x505   :  { %v3110_v54 = vpop.permute.xlu0 %3109  ;;  %7559 = vmatprep.subr.msk.bf16.mxu1 %vm2433_vm3, %v3112_v40  ;;  %3170 = vmatprep.mubr.bf16.mxu0 %v9484_v51 }
 0x506   :  { %v3117_v23 = vsel %vm1063_vm9, %v3108_v17, %v3110_v54  ;;  %v3118_v42 = vsel %vm1063_vm9, %v3110_v54, %v3112_v40  ;;  %v3281_v0 = vpop.permute.xlu1 %3280  ;;  %3213 = vmatprep.mubr.bf16.mxu1 %v9484_v51  ;;  %v8496_v40 = vld [vmem:[%s10974_s28 + $0x40] sm:$0xff]   ;;  %vm6679_vm9 = vcmask 402432  }
 0x507   :  { %v3133_v31 = vsel %vm2433_vm3, %v3118_v42, 0  ;;  %7557 = vmatprep.subr.msk.bf16.mxu0 %vm2433_vm3, %v3117_v23  ;;  %v3289_v18 = vsel %vm1276_vm10, %v9695_v24, %v3281_v0  ;;  %v2532_v42 = vld [vmem:[%s10963_s2] ss:$8 sm:$0xf] }
 0x508   :  { %3141 = vmatpush1.bf16.msra.mxu0 %v3127_v56  ;;  %3184 = vmatpush1.bf16.msra.mxu1 %v3133_v31  ;;  %v3300_v37 = vsel %vm2433_vm3, %v3289_v18, 0  ;;  %v2545_v18 = vrot.slane %v2532_v42, %v9203_v59 }
 0x509   :  { %v3625_v29 = vpop.permute.xlu0 %3624  ;;  %3311 = vmatprep.subr.bf16.mxu0 %v3287_v38  ;;  %3354 = vmatprep.subr.bf16.mxu1 %v9679_v10  ;;  %v7537_v38 = vld [vmem:[%s10963_s2 + $0x1] ss:$8 sm:$0xf] }
 0x50a   :  { %v9818_v46 = vpop.permute.xlu1 %3793 }
 0x50b   :  { %7558 = vmatmul.mubr.msk.bf16.vlgmr.msra.gmra.mrb[88].mxu0 %vm2429_vm1, %v8492_v13  ;;  %7560 = vmatmul.mubr.msk.bf16.vlgmr.msra.gmra.mrb[88].mxu1 %vm2429_vm1, %v8492_v13 }
 0x50c   :  { %3312 = vmatpush1.bf16.msra.mxu0 %v3286_v52  ;;  %3355 = vmatpush1.bf16.msra.mxu1 %v3288_v22  ;;  %v2537_v22 = vrot.slane %v2532_v42, %v9199_v57  ;;  %v2541_v52 = vrot.slane %v2532_v42, %v9201_v58 }
 0x50d   :  { %v3283_v14 = vpop.permute.xlu0 %3282  ;;  %3343 = vmatprep.mubr.bf16.mxu0 %v9484_v51  ;;  %3386 = vmatprep.mubr.bf16.mxu1 %v9484_v51 }
 0x50e   :  { %v3290_v32 = vsel %vm1276_vm10, %v3281_v0, %v3283_v14  ;;  %v3285_v10 = vpop.permute.xlu1 %3284 }
 0x50f   :  { %v3291_v25 = vsel %vm1276_vm10, %v3283_v14, %v3285_v10  ;;  %7565 = vmatprep.subr.msk.bf16.mxu0 %vm2433_vm3, %v3290_v32  ;;  %7567 = vmatprep.subr.msk.bf16.mxu1 %vm2433_vm3, %v3285_v10  ;;  %v2549_v14 = vrot.slane %v2532_v42, %v9210_v2  ;;  %v2710_v32 = vrot.slane %v7537_v38, %v9199_v57  ;;  %vm6649_vm10 = vcmask 142336  }
 0x510   :  { %v3306_v53 = vsel %vm2433_vm3, %v3291_v25, 0  ;;  %3314 = vmatpush1.bf16.msra.mxu0 %v3300_v37  ;;  %v2718_v10 = vrot.slane %v7537_v38, %v9203_v59  ;;  %v2714_v37 = vrot.slane %v7537_v38, %v9201_v58  ;;  %v2722_v25 = vrot.slane %v7537_v38, %v9210_v2 }
 0x511   :  { %v3792_v24 = vpop.permute.xlu0 %3791  ;;  %3357 = vmatpush1.bf16.msra.mxu1 %v3306_v53  ;;  %3484 = vmatprep.subr.bf16.mxu0 %v9686_v50 }
 0x512   :  { %3527 = vmatprep.subr.bf16.mxu1 %v9688_v43  ;;  %v3454_v30 = vpop.permute.xlu1 %3453  ;;  %v3633_v43 = vsel %vm1702_vm12, %v9763_v28, %v9711_v4  ;;  %v3806_v60 = vsel %vm1915_vm13, %v3792_v24, %v9818_v46 }
 0x513   :  { %7566 = vmatmul.mubr.msk.bf16.vlgmr.msra.gmra.mrb[92].mxu0 %vm2429_vm1, %v8493_v36  ;;  %v3462_v63 = vsel %vm1489_vm11, %v9735_v16, %v3454_v30 }
 0x514   :  { %7568 = vmatmul.mubr.msk.bf16.vlgmr.msra.gmra.mrb[92].mxu1 %vm2429_vm1, %v8493_v36  ;;  %3485 = vmatpush1.bf16.msra.mxu0 %v3459_v15  ;;  %v3473_v11 = vsel %vm2433_vm3, %v3462_v63, 0 }
 0x515   :  { %v3456_v50 = vpop.permute.xlu0 %3455  ;;  %3528 = vmatpush1.bf16.msra.mxu1 %v3461_v6  ;;  %3516 = vmatprep.mubr.bf16.mxu0 %v9484_v51 }
 0x516   :  { %v3463_v33 = vsel %vm1489_vm11, %v3454_v30, %v3456_v50  ;;  %v3796_v3 = vpop.permute.xlu1 %3795  ;;  %3559 = vmatprep.mubr.bf16.mxu1 %v9484_v51 }
 0x517   :  { %7573 = vmatprep.subr.msk.bf16.mxu0 %vm2433_vm3, %v3463_v33  ;;  %v3807_v39 = vsel %vm1915_vm13, %v9818_v46, %v3796_v3 }
 0x518   :  { %3487 = vmatpush1.bf16.msra.mxu0 %v3473_v11 }
 0x519   :  { %v3790_v19 = vpop.permute.xlu0 %3789  ;;  %3657 = vmatprep.subr.bf16.mxu0 %v3633_v43 }
 0x51a   :  { %v3458_v16 = vpop.permute.xlu1 %3457 }
 0x51b   :  { %v3464_v45 = vsel %vm1489_vm11, %v3456_v50, %v3458_v16  ;;  %7574 = vmatmul.mubr.msk.bf16.vlgmr.msra.gmra.mrb[96].mxu0 %vm2429_vm1, %v8494_v5  ;;  %7575 = vmatprep.subr.msk.bf16.mxu1 %vm2433_vm3, %v3458_v16  ;;  %vm6686_vm11 = vcmask 271488  }
 0x51c   :  { %v3479_v61 = vsel %vm2433_vm3, %v3464_v45, 0  ;;  %3658 = vmatpush1.bf16.msra.mxu0 %v3632_v62  ;;  %3689 = vmatprep.mubr.bf16.mxu0 %v9484_v51 }
 0x51d   :  { %v3629_v1 = vpop.permute.xlu0 %3628  ;;  %3530 = vmatpush1.bf16.msra.mxu1 %v3479_v61 }
 0x51e   :  { %3700 = vmatprep.subr.bf16.mxu1 %v9751_v9  ;;  %v3627_v7 = vpop.permute.xlu1 %3626  ;;  %v3805_v9 = vsel %vm1915_vm13, %v3790_v19, %v3792_v24 }
 0x51f   :  { %v3635_v44 = vsel %vm1702_vm12, %v3625_v29, %v3627_v7  ;;  %v3636_v28 = vsel %vm1702_vm12, %v3627_v7, %v3629_v1 }
 0x520   :  { %v3646_v8 = vsel %vm2433_vm3, %v3635_v44, 0  ;;  %7576 = vmatmul.mubr.msk.bf16.vlgmr.msra.gmra.mrb[96].mxu1 %vm2429_vm1, %v8494_v5  ;;  %7581 = vmatprep.subr.msk.bf16.mxu0 %vm2433_vm3, %v3636_v28 }
 0x521   :  { %v3798_v47 = vpop.permute.xlu0 %3797  ;;  %3660 = vmatpush1.bf16.msra.mxu0 %v3646_v8  ;;  %3701 = vmatpush1.bf16.msra.mxu1 %v3634_v49 }
 0x522   :  { %3830 = vmatprep.subr.bf16.mxu0 %v3806_v60  ;;  %v3631_v41 = vpop.permute.xlu1 %3630  ;;  %3732 = vmatprep.mubr.bf16.mxu1 %v9484_v51 }
 0x523   :  { %v3637_v4 = vsel %vm1702_vm12, %v3629_v1, %v3631_v41  ;;  %7583 = vmatprep.subr.msk.bf16.mxu1 %vm2433_vm3, %v3631_v41  ;;  %v7545_v1 = vld [vmem:[%s10963_s2 + $0x2] ss:$8 sm:$0xf] }
 0x524   :  { %v3652_v48 = vsel %vm2433_vm3, %v3637_v4, 0  ;;  %7582 = vmatmul.mubr.msk.bf16.vlgmr.msra.gmra.mrb[100].mxu0 %vm2429_vm1, %v8495_v12 }
 0x525   :  { %v3802_v17 = vpop.permute.xlu0 %3801  ;;  %3703 = vmatpush1.bf16.msra.mxu1 %v3652_v48  ;;  %3831 = vmatpush1.bf16.msra.mxu0 %v3805_v9 }
 0x526   :  { %3873 = vmatprep.subr.bf16.mxu1 %v3796_v3  ;;  %v3800_v35 = vpop.permute.xlu1 %3799  ;;  %3862 = vmatprep.mubr.bf16.mxu0 %v9484_v51 }
 0x527   :  { %v3808_v34 = vsel %vm1915_vm13, %v3798_v47, %v3800_v35  ;;  %v3809_v26 = vsel %vm1915_vm13, %v3800_v35, %v3802_v17  ;;  %v2891_v35 = vrot.slane %v7545_v1, %v9203_v59 }
 0x528   :  { %v3819_v55 = vsel %vm2433_vm3, %v3808_v34, 0  ;;  %7584 = vmatmul.mubr.msk.bf16.vlgmr.msra.gmra.mrb[100].mxu1 %vm2429_vm1, %v8495_v12  ;;  %7589 = vmatprep.subr.msk.bf16.mxu0 %vm2433_vm3, %v3809_v26 }
 0x529   :  { %3833 = vmatpush1.bf16.msra.mxu0 %v3819_v55  ;;  %3874 = vmatpush1.bf16.msra.mxu1 %v3807_v39  ;;  %v2887_v39 = vrot.slane %v7545_v1, %v9201_v58  ;;  %v2895_v55 = vrot.slane %v7545_v1, %v9210_v2 }
 0x52a   :  { %v3804_v21 = vpop.permute.xlu1 %3803  ;;  %3905 = vmatprep.mubr.bf16.mxu1 %v9484_v51 }
 0x52b   :  { %v3810_v20 = vsel %vm1915_vm13, %v3802_v17, %v3804_v21  ;;  %7591 = vmatprep.subr.msk.bf16.mxu1 %vm2433_vm3, %v3804_v21  ;;  %v2883_v17 = vrot.slane %v7545_v1, %v9199_v57  ;;  %vm6693_vm13 = vcmask 31744  }
 0x52c   :  { %v3825_v27 = vsel %vm2433_vm3, %v3810_v20, 0  ;;  %7590 = vmatmul.mubr.msk.bf16.vlgmr.msra.gmra.mrb[104].mxu0 %vm2429_vm1, %v8496_v40 }
 0x52d   :  { %3876 = vmatpush1.bf16.msra.mxu1 %v3825_v27 }
 0x52e   :  { %4305 = vmatprep.subr.bf16.mxu1 %v9484_v51 }
 0x530   :  { %7592 = vmatmul.mubr.msk.bf16.vlgmr.msra.gmra.mrb[104].mxu1 %vm2429_vm1, %v8496_v40 }
 0x5be   :  { %v2480_v54 = vpop.f32.mrb[72].mxu0  ;;  %v2523_v23 = vpop.f32.mrb[72].mxu1 }
 0x5bf   :  { %v2482_v0 = vpop.f32.mrb[73].mxu0  ;;  %v2525_v56 = vpop.f32.mrb[73].mxu1  ;;  %v2554_v36 = vmul.f32 %v2537_v22, %v2480_v54  ;;  %v2556_v24 = vmul.f32 %v2545_v18, %v2523_v23 }
 0x5c0   :  { %v2484_v31 = vpop.f32.mrb[74].mxu0  ;;  %v2527_v13 = vpop.f32.mrb[74].mxu1  ;;  %v2555_v53 = vmul.f32 %v2541_v52, %v2482_v0  ;;  %v2557_v30 = vmul.f32 %v2549_v14, %v2525_v56 }
 0x5c1   :  { %v2486_v29 = vpop.f32.mrb[75].mxu0  ;;  %v2529_v46 = vpop.f32.mrb[75].mxu1  ;;  %v2558_v63 = vmul.f32 %v2537_v22, %v2484_v31  ;;  %v2560_v50 = vmul.f32 %v2545_v18, %v2527_v13  ;;  %v7553_v13 = vld [vmem:[%s10963_s2 + $0x3] ss:$8 sm:$0xf] }
 0x5c2   :  { %v2559_v43 = vmul.f32 %v2541_v52, %v2486_v29  ;;  %v2561_v19 = vmul.f32 %v2549_v14, %v2529_v46 }
 0x5c6   :  { %v2653_v15 = vpop.f32.mrb[76].mxu0  ;;  %v2696_v6 = vpop.f32.mrb[76].mxu1 }
 0x5c7   :  { %v2727_v33 = vmul.f32 %v2710_v32, %v2653_v15  ;;  %v2729_v3 = vmul.f32 %v2718_v10, %v2696_v6  ;;  %v2655_v11 = vpop.f32.mrb[77].mxu0  ;;  %v2698_v5 = vpop.f32.mrb[77].mxu1  ;;  %v3060_v6 = vrot.slane %v7553_v13, %v9201_v58 }
 0x5c8   :  { %v2728_v16 = vmul.f32 %v2714_v37, %v2655_v11  ;;  %v2730_v62 = vmul.f32 %v2722_v25, %v2698_v5  ;;  %v2657_v45 = vpop.f32.mrb[78].mxu0  ;;  %v2700_v61 = vpop.f32.mrb[78].mxu1 }
 0x5c9   :  { %v2735_v7 = vadd.f32 %v2727_v33, %v2554_v36  ;;  %v2737_v44 = vadd.f32 %v2729_v3, %v2556_v24  ;;  %v2731_v28 = vmul.f32 %v2710_v32, %v2657_v45  ;;  %v2733_v49 = vmul.f32 %v2718_v10, %v2700_v61  ;;  %v2659_v8 = vpop.f32.mrb[79].mxu0  ;;  %v2702_v12 = vpop.f32.mrb[79].mxu1  ;;  %v7561_v61 = vld [vmem:[%s10963_s2 + $0x4] ss:$8 sm:$0xf] }
 0x5ca   :  { %v2736_v47 = vadd.f32 %v2728_v16, %v2555_v53  ;;  %v2738_v60 = vadd.f32 %v2730_v62, %v2557_v30  ;;  %v2732_v41 = vmul.f32 %v2714_v37, %v2659_v8  ;;  %v2734_v4 = vmul.f32 %v2722_v25, %v2702_v12 }
 0x5cb   :  { %v2739_v9 = vadd.f32 %v2731_v28, %v2558_v63  ;;  %v2741_v48 = vadd.f32 %v2733_v49, %v2560_v50  ;;  %v3056_v53 = vrot.slane %v7553_v13, %v9199_v57  ;;  %v3064_v24 = vrot.slane %v7553_v13, %v9203_v59 }
 0x5cc   :  { %v2740_v34 = vadd.f32 %v2732_v41, %v2559_v43  ;;  %v2742_v26 = vadd.f32 %v2734_v4, %v2561_v19  ;;  %v3068_v63 = vrot.slane %v7553_v13, %v9210_v2 }
 0x5ce   :  { %v2826_v40 = vpop.f32.mrb[80].mxu0  ;;  %v2869_v21 = vpop.f32.mrb[80].mxu1 }
 0x5cf   :  { %v2900_v20 = vmul.f32 %v2883_v17, %v2826_v40  ;;  %v2902_v27 = vmul.f32 %v2891_v35, %v2869_v21  ;;  %v2828_v54 = vpop.f32.mrb[81].mxu0  ;;  %v2871_v23 = vpop.f32.mrb[81].mxu1 }
 0x5d0   :  { %v2901_v42 = vmul.f32 %v2887_v39, %v2828_v54  ;;  %v2903_v0 = vmul.f32 %v2895_v55, %v2871_v23  ;;  %v2830_v56 = vpop.f32.mrb[82].mxu0  ;;  %v2873_v31 = vpop.f32.mrb[82].mxu1 }
 0x5d1   :  { %v2908_v38 = vadd.f32 %v2900_v20, %v2735_v7  ;;  %v2910_v29 = vadd.f32 %v2902_v27, %v2737_v44  ;;  %v2904_v46 = vmul.f32 %v2883_v17, %v2830_v56  ;;  %v2906_v22 = vmul.f32 %v2891_v35, %v2873_v31  ;;  %v2832_v52 = vpop.f32.mrb[83].mxu0  ;;  %v2875_v18 = vpop.f32.mrb[83].mxu1  ;;  %v7569_v31 = vld [vmem:[%s10963_s2 + $0x5] ss:$8 sm:$0xf] }
 0x5d2   :  { %v2909_v14 = vadd.f32 %v2901_v42, %v2736_v47  ;;  %v2911_v32 = vadd.f32 %v2903_v0, %v2738_v60  ;;  %v2905_v10 = vmul.f32 %v2887_v39, %v2832_v52  ;;  %v2907_v37 = vmul.f32 %v2895_v55, %v2875_v18 }
 0x5d3   :  { %v2912_v25 = vadd.f32 %v2904_v46, %v2739_v9  ;;  %v2914_v36 = vadd.f32 %v2906_v22, %v2741_v48  ;;  %v3229_v48 = vrot.slane %v7561_v61, %v9199_v57  ;;  %v3237_v17 = vrot.slane %v7561_v61, %v9203_v59 }
 0x5d4   :  { %v2913_v30 = vadd.f32 %v2905_v10, %v2740_v34  ;;  %v2915_v15 = vadd.f32 %v2907_v37, %v2742_v26  ;;  %v3233_v26 = vrot.slane %v7561_v61, %v9201_v58  ;;  %v3241_v39 = vrot.slane %v7561_v61, %v9210_v2 }
 0x5d6   :  { %v2999_v50 = vpop.f32.mrb[84].mxu0  ;;  %v3042_v33 = vpop.f32.mrb[84].mxu1 }
 0x5d7   :  { %v3073_v3 = vmul.f32 %v3056_v53, %v2999_v50  ;;  %v3075_v11 = vmul.f32 %v3064_v24, %v3042_v33  ;;  %v3001_v5 = vpop.f32.mrb[85].mxu0  ;;  %v3044_v43 = vpop.f32.mrb[85].mxu1 }
 0x5d8   :  { %v3074_v19 = vmul.f32 %v3060_v6, %v3001_v5  ;;  %v3076_v16 = vmul.f32 %v3068_v63, %v3044_v43  ;;  %v3003_v62 = vpop.f32.mrb[86].mxu0  ;;  %v3046_v45 = vpop.f32.mrb[86].mxu1 }
 0x5d9   :  { %v3081_v1 = vadd.f32 %v3073_v3, %v2908_v38  ;;  %v3083_v7 = vadd.f32 %v3075_v11, %v2910_v29  ;;  %v3077_v44 = vmul.f32 %v3056_v53, %v3003_v62  ;;  %v3079_v28 = vmul.f32 %v3064_v24, %v3046_v45  ;;  %v3005_v49 = vpop.f32.mrb[87].mxu0  ;;  %v3048_v8 = vpop.f32.mrb[87].mxu1 }
 0x5da   :  { %v3082_v12 = vadd.f32 %v3074_v19, %v2909_v14  ;;  %v3084_v47 = vadd.f32 %v3076_v16, %v2911_v32  ;;  %v3078_v60 = vmul.f32 %v3060_v6, %v3005_v49  ;;  %v3080_v41 = vmul.f32 %v3068_v63, %v3048_v8  ;;  %v7577_v16 = vld [vmem:[%s10963_s2 + $0x6] ss:$8 sm:$0xf] }
 0x5db   :  { %v3085_v4 = vadd.f32 %v3077_v44, %v2912_v25  ;;  %v3087_v9 = vadd.f32 %v3079_v28, %v2914_v36  ;;  %v3402_v36 = vrot.slane %v7569_v31, %v9199_v57  ;;  %v3414_v6 = vrot.slane %v7569_v31, %v9210_v2 }
 0x5dc   :  { %v3086_v35 = vadd.f32 %v3078_v60, %v2913_v30  ;;  %v3088_v34 = vadd.f32 %v3080_v41, %v2915_v15  ;;  %v3406_v30 = vrot.slane %v7569_v31, %v9201_v58  ;;  %v3410_v15 = vrot.slane %v7569_v31, %v9203_v59 }
 0x5de   :  { %v3172_v55 = vpop.f32.mrb[88].mxu0  ;;  %v3215_v40 = vpop.f32.mrb[88].mxu1 }
 0x5df   :  { %v3246_v21 = vmul.f32 %v3229_v48, %v3172_v55  ;;  %v3248_v20 = vmul.f32 %v3237_v17, %v3215_v40  ;;  %v3174_v27 = vpop.f32.mrb[89].mxu0  ;;  %v3217_v54 = vpop.f32.mrb[89].mxu1 }
 0x5e0   :  { %v3247_v23 = vmul.f32 %v3233_v26, %v3174_v27  ;;  %v3249_v42 = vmul.f32 %v3241_v39, %v3217_v54  ;;  %v3176_v0 = vpop.f32.mrb[90].mxu0  ;;  %v3219_v56 = vpop.f32.mrb[90].mxu1 }
 0x5e1   :  { %v3254_v13 = vadd.f32 %v3246_v21, %v3081_v1  ;;  %v3256_v38 = vadd.f32 %v3248_v20, %v3083_v7  ;;  %v3250_v29 = vmul.f32 %v3229_v48, %v3176_v0  ;;  %v3252_v46 = vmul.f32 %v3237_v17, %v3219_v56  ;;  %v3178_v22 = vpop.f32.mrb[91].mxu0  ;;  %v3221_v52 = vpop.f32.mrb[91].mxu1 }
 0x5e2   :  { %v3255_v18 = vadd.f32 %v3247_v23, %v3082_v12  ;;  %v3257_v14 = vadd.f32 %v3249_v42, %v3084_v47  ;;  %v3251_v32 = vmul.f32 %v3233_v26, %v3178_v22  ;;  %v3253_v10 = vmul.f32 %v3241_v39, %v3221_v52  ;;  %v7585_v42 = vld [vmem:[%s10963_s2 + $0x7] ss:$8 sm:$0xf] }
 0x5e3   :  { %v3258_v37 = vadd.f32 %v3250_v29, %v3085_v4  ;;  %v3260_v25 = vadd.f32 %v3252_v46, %v3087_v9  ;;  %v3575_v4 = vrot.slane %v7577_v16, %v9199_v57  ;;  %v3579_v17 = vrot.slane %v7577_v16, %v9201_v58 }
 0x5e4   :  { %v3259_v53 = vadd.f32 %v3251_v32, %v3086_v35  ;;  %v3261_v24 = vadd.f32 %v3253_v10, %v3088_v34  ;;  %v3583_v21 = vrot.slane %v7577_v16, %v9203_v59  ;;  %v3587_v23 = vrot.slane %v7577_v16, %v9210_v2 }
 0x5e5   :  { %v3748_v22 = vrot.slane %v7585_v42, %v9199_v57 }
 0x5e6   :  { %v3345_v63 = vpop.f32.mrb[92].mxu0 }
 0x5e7   :  { %v3419_v50 = vmul.f32 %v3402_v36, %v3345_v63  ;;  %v3347_v33 = vpop.f32.mrb[93].mxu0  ;;  %v3388_v3 = vpop.f32.mrb[92].mxu1 }
 0x5e8   :  { %v3420_v11 = vmul.f32 %v3406_v30, %v3347_v33  ;;  %v3421_v5 = vmul.f32 %v3410_v15, %v3388_v3  ;;  %v3349_v43 = vpop.f32.mrb[94].mxu0  ;;  %v3390_v19 = vpop.f32.mrb[93].mxu1  ;;  %v3760_v3 = vrot.slane %v7585_v42, %v9210_v2 }
 0x5e9   :  { %v3427_v62 = vadd.f32 %v3419_v50, %v3254_v13  ;;  %v3423_v45 = vmul.f32 %v3402_v36, %v3349_v43  ;;  %v3422_v61 = vmul.f32 %v3414_v6, %v3390_v19  ;;  %v3351_v1 = vpop.f32.mrb[95].mxu0  ;;  %v3392_v7 = vpop.f32.mrb[94].mxu1 }
 0x5ea   :  { %v3428_v44 = vadd.f32 %v3420_v11, %v3255_v18  ;;  %v3429_v28 = vadd.f32 %v3421_v5, %v3256_v38  ;;  %v3424_v49 = vmul.f32 %v3406_v30, %v3351_v1  ;;  %v3425_v8 = vmul.f32 %v3410_v15, %v3392_v7  ;;  %v3394_v12 = vpop.f32.mrb[95].mxu1  ;;  %v7593_v11 = vld [vmem:[%s10963_s2 + $0x20] ss:$8 sm:$0xf]  ;;  %s8667_s2 = smov 106  }
 0x5eb   :  { %v3431_v47 = vadd.f32 %v3423_v45, %v3258_v37  ;;  %v3430_v60 = vadd.f32 %v3422_v61, %v3257_v14  ;;  %v3426_v41 = vmul.f32 %v3414_v6, %v3394_v12  ;;  %v3752_v14 = vrot.slane %v7585_v42, %v9201_v58 }
 0x5ec   :  { %v3432_v9 = vadd.f32 %v3424_v49, %v3259_v53  ;;  %v3433_v48 = vadd.f32 %v3425_v8, %v3260_v25  ;;  %v3756_v6 = vrot.slane %v7585_v42, %v9203_v59  ;;  %v3925_v12 = vrot.slane %v7593_v11, %v9201_v58 }
 0x5ed   :  { %v3434_v35 = vadd.f32 %v3426_v41, %v3261_v24 }
 0x5ee   :  { %v3518_v34 = vpop.f32.mrb[96].mxu0 }
 0x5ef   :  { %v3592_v26 = vmul.f32 %v3575_v4, %v3518_v34  ;;  %v3520_v39 = vpop.f32.mrb[97].mxu0 }
 0x5f0   :  { %v3593_v55 = vmul.f32 %v3579_v17, %v3520_v39  ;;  %v3522_v40 = vpop.f32.mrb[98].mxu0 }
 0x5f1   :  { %v3600_v20 = vadd.f32 %v3592_v26, %v3427_v62  ;;  %v3596_v27 = vmul.f32 %v3575_v4, %v3522_v40  ;;  %v3524_v54 = vpop.f32.mrb[99].mxu0  ;;  %v3929_v26 = vrot.slane %v7593_v11, %v9203_v59 }
 0x5f2   :  { %v3601_v0 = vadd.f32 %v3593_v55, %v3428_v44  ;;  %v3597_v56 = vmul.f32 %v3579_v17, %v3524_v54  ;;  %v3921_v44 = vrot.slane %v7593_v11, %v9199_v57  ;;  %v3933_v57 = vrot.slane %v7593_v11, %v9210_v2 }
 0x5f3   :  { %v3604_v31 = vadd.f32 %v3596_v27, %v3431_v47  ;;  %v3561_v13 = vpop.f32.mrb[96].mxu1 }
 0x5f4   :  { %v3605_v38 = vadd.f32 %v3597_v56, %v3432_v9  ;;  %v3594_v29 = vmul.f32 %v3583_v21, %v3561_v13  ;;  %v3563_v46 = vpop.f32.mrb[97].mxu1 }
 0x5f5   :  { %v3595_v52 = vmul.f32 %v3587_v23, %v3563_v46  ;;  %v3565_v18 = vpop.f32.mrb[98].mxu1 }
 0x5f6   :  { %v3602_v32 = vadd.f32 %v3594_v29, %v3429_v28  ;;  %v3598_v10 = vmul.f32 %v3583_v21, %v3565_v18  ;;  %v3567_v37 = vpop.f32.mrb[99].mxu1 }
 0x5f7   :  { %v3603_v25 = vadd.f32 %v3595_v52, %v3430_v60  ;;  %v3599_v36 = vmul.f32 %v3587_v23, %v3567_v37  ;;  %v3691_v53 = vpop.f32.mrb[100].mxu0 }
 0x5f8   :  { %v3606_v24 = vadd.f32 %v3598_v10, %v3433_v48  ;;  %v3765_v30 = vmul.f32 %v3748_v22, %v3691_v53  ;;  %v3693_v15 = vpop.f32.mrb[101].mxu0 }
 0x5f9   :  { %v3607_v63 = vadd.f32 %v3599_v36, %v3434_v35  ;;  %v3766_v50 = vmul.f32 %v3752_v14, %v3693_v15  ;;  %v3695_v33 = vpop.f32.mrb[102].mxu0  ;;  %v4030_v15 = vld [vmem:[%s10976_s29] sm:$0xff] }
 0x5fa   :  { %v3773_v5 = vadd.f32 %v3765_v30, %v3600_v20  ;;  %v3769_v43 = vmul.f32 %v3748_v22, %v3695_v33  ;;  %v3697_v19 = vpop.f32.mrb[103].mxu0  ;;  %v4010_v30 = vld [vmem:[%s10975_s24] sm:$0xff] }
 0x5fb   :  { %v3774_v16 = vadd.f32 %v3766_v50, %v3601_v0  ;;  %v3770_v62 = vmul.f32 %v3752_v14, %v3697_v19  ;;  %v3734_v45 = vpop.f32.mrb[100].mxu1  ;;  %v8498_v50 = vld [vmem:[%s10911_s20 + $0x40] sm:$0xff]  }
 0x5fc   :  { %v3777_v61 = vadd.f32 %v3769_v43, %v3604_v31  ;;  %v3767_v1 = vmul.f32 %v3756_v6, %v3734_v45  ;;  %v3736_v7 = vpop.f32.mrb[101].mxu1  ;;  %v8499_v33 = vld [vmem:[%s10911_s20] sm:$0xff]   ;;  %7998 = vmatprep.subr.bf16.mxu0 %v8498_v50 }
 0x5fd   :  { %v3778_v28 = vadd.f32 %v3770_v62, %v3605_v38  ;;  %v3768_v49 = vmul.f32 %v3760_v3, %v3736_v7  ;;  %v3738_v8 = vpop.f32.mrb[102].mxu1  ;;  %7999 = vmatpush3.bf16.msra.mxu0 %v8499_v33 }
 0x5fe   :  { %v3775_v47 = vadd.f32 %v3767_v1, %v3602_v32  ;;  %v3771_v60 = vmul.f32 %v3756_v6, %v3738_v8  ;;  %v3740_v41 = vpop.f32.mrb[103].mxu1  ;;  %v4031_v6 = vld [vmem:[%s10976_s29 + $0x8] sm:$0xff] }
 0x5ff   :  { %v3776_v4 = vadd.f32 %v3768_v49, %v3603_v25  ;;  %v3772_v9 = vmul.f32 %v3760_v3, %v3740_v41  ;;  %v3864_v48 = vpop.f32.mrb[104].mxu0  ;;  %v8500_v3 = vld [vmem:[%s10911_s20 + $0x88] sm:$0xff]  }
 0x600   :  { %v3779_v17 = vadd.f32 %v3771_v60, %v3606_v24  ;;  %v3938_v35 = vmul.f32 %v3921_v44, %v3864_v48  ;;  %v3866_v34 = vpop.f32.mrb[105].mxu0 }
 0x601   :  { %v3780_v39 = vadd.f32 %v3772_v9, %v3607_v63  ;;  %v3939_v55 = vmul.f32 %v3925_v12, %v3866_v34  ;;  %v3868_v40 = vpop.f32.mrb[106].mxu0  ;;  %v8497_v63 = vld [vmem:[%s10911_s20 + $0x80] sm:$0xff]  }
 0x602   :  { %v3946_v21 = vadd.f32 %v3938_v35, %v3773_v5  ;;  %v3942_v20 = vmul.f32 %v3921_v44, %v3868_v40  ;;  %v3870_v27 = vpop.f32.mrb[107].mxu0  ;;  %4306 = vmatpush1.bf16.msra.mxu1 %v8497_v63 }
 0x603   :  { %v3947_v58 = vadd.f32 %v3939_v55, %v3774_v16  ;;  %v3943_v54 = vmul.f32 %v3925_v12, %v3870_v27  ;;  %v3907_v23 = vpop.f32.mrb[104].mxu1  ;;  %4307 = vmatprep.subr.bf16.mxu1 %v9484_v51  ;;  %v8504_v27 = vld [vmem:[%s10911_s20 + $0x50] sm:$0xff]  }
 0x604   :  { %v3950_v42 = vadd.f32 %v3942_v20, %v3777_v61  ;;  %v3940_v0 = vmul.f32 %v3929_v26, %v3907_v23  ;;  %v3909_v56 = vpop.f32.mrb[105].mxu1  ;;  %v8503_v20 = vld [vmem:[%s10911_s20 + $0x90] sm:$0xff]   ;;  %v8507_v23 = vld [vmem:[%s10911_s20 + $0x58] sm:$0xff]  }
 0x605   :  { %v3954_v31 = vadd.f32 %v3947_v58, %v3946_v21  ;;  %v3951_v13 = vadd.f32 %v3943_v54, %v3778_v28  ;;  %v3941_v38 = vmul.f32 %v3933_v57, %v3909_v56  ;;  %v3911_v29 = vpop.f32.mrb[106].mxu1  ;;  %v8506_v54 = vld [vmem:[%s10911_s20 + $0x98] sm:$0xff]   ;;  %v8509_v56 = vld [vmem:[%s10911_s20 + $0xa0] sm:$0xff]  }
 0x606   :  { %v3948_v46 = vadd.f32 %v3940_v0, %v3775_v47  ;;  %v3944_v59 = vmul.f32 %v3929_v26, %v3911_v29  ;;  %v3913_v22 = vpop.f32.mrb[107].mxu1  ;;  %4308 = vmatpush1.bf16.msra.mxu1 %v8500_v3  ;;  %v8508_v0 = vld [vmem:[%s10911_s20 + $0x18] sm:$0xff]   ;;  %v8513_v29 = vld [vmem:[%s10911_s20 + $0x68] sm:$0xff]  }
 0x607   :  { %v3960_v52 = vadd.f32 %v3951_v13, %v3950_v42  ;;  %v3949_v18 = vadd.f32 %v3941_v38, %v3776_v4  ;;  %v3945_v14 = vmul.f32 %v3933_v57, %v3913_v22  ;;  %4309 = vmatprep.subr.bf16.mxu1 %v9484_v51  ;;  %v8501_v57 = vld [vmem:[%s10911_s20 + $0x48] sm:$0xff]   ;;  %v8516_v22 = vld [vmem:[%s10911_s20 + $0x70] sm:$0xff]  }
 0x608   :  { %v3955_v2 = vadd.f32 %v3954_v31, %v3948_v46  ;;  %v3952_v32 = vadd.f32 %v3944_v59, %v3779_v17  ;;  %8000 = vmatprep.subr.bf16.mxu0 %v8501_v57  ;;  %v8510_v31 = vld [vmem:[%s10911_s20 + $0x60] sm:$0xff]   ;;  %v8512_v38 = vld [vmem:[%s10911_s20 + $0xa8] sm:$0xff]   ;;  %v8515_v59 = vld [vmem:[%s10911_s20 + $0xb0] sm:$0xff]  }
 0x609   :  { %v3956_v10 = vsel %vm2099_vm14, %v3949_v18, 0.0  ;;  %v3953_v37 = vadd.f32 %v3945_v14, %v3780_v39  ;;  %v8519_v14 = vld [vmem:[%s10911_s20 + $0x78] sm:$0xff]  }
 0x60a   :  { %v3961_v25 = vadd.f32 %v3960_v52, %v3952_v32  ;;  %v3957_v36 = vadd.f32 %v3956_v10, %v3955_v2  ;;  %4310 = vmatpush1.bf16.msra.mxu1 %v8503_v20  ;;  %v8517_v52 = vld [vmem:[%s10911_s20 + $0x30] sm:$0xff]   ;;  %v8520_v2 = vld [vmem:[%s10911_s20 + $0x38] sm:$0xff]  }
 0x60b   :  { %v3962_v53 = vsel %vm2099_vm14, %v3953_v37, 0.0  ;;  %4311 = vmatprep.subr.bf16.mxu1 %v9484_v51 }
 0x60c   :  { %3958 = vadd.xlane.f32.xlu0 %v3957_v36  ;;  %v3963_v24 = vadd.f32 %v3962_v53, %v3961_v25 }
 0x60e   :  { %3964 = vadd.xlane.f32.xlu1 %v3963_v24  ;;  %4312 = vmatpush1.bf16.msra.mxu1 %v8506_v54 }
 0x60f   :  { %4313 = vmatprep.subr.bf16.mxu1 %v9484_v51 }
 0x612   :  { %4314 = vmatpush1.bf16.msra.mxu1 %v8509_v56  ;;  %v8523_v56 = vld [vmem:[%s10911_s20 + $0xc4] sm:$0xff]  }
 0x613   :  { %4315 = vmatprep.subr.bf16.mxu1 %v9484_v51 }
 0x616   :  { %4316 = vmatpush1.bf16.msra.mxu1 %v8512_v38  ;;  %v8526_v38 = vld [vmem:[%s10911_s20 + $0xcc] sm:$0xff]  }
 0x617   :  { %4317 = vmatprep.subr.bf16.mxu1 %v9484_v51 }
 0x61a   :  { %4318 = vmatpush1.bf16.msra.mxu1 %v8515_v59  ;;  %v8529_v59 = vld [vmem:[%s10911_s20 + $0xd4] sm:$0xff]  }
 0x61b   :  { %4319 = vmatprep.subr.bf16.mxu1 %v9484_v51 }
 0x61f   :  { %4014 = vperm.xlu1 %8456, %v4010_v30  }
 0x623   :  { %4034 = vperm.xlu1 %8456, %v4030_v15  }
 0x627   :  { %4039 = vperm.xlu1 %8456, %v4031_v6  }
 0x699   :  { %v3959_v11 = vpop.xlane.xlu0 %3958 }
 0x69a   :  { %v3966_v5 = vmul.f32 0.0025510204, %v3959_v11 }
 0x69b   :  { %v3965_v43 = vpop.xlane.xlu1 %3964 }
 0x69c   :  { %v9998_v19 = vsub.f32 %v3946_v21, %v3966_v5  ;;  %v10000_v16 = vsub.f32 %v3947_v58, %v3966_v5  ;;  %v10002_v62 = vsub.f32 %v3948_v46, %v3966_v5  ;;  %v10004_v45 = vsub.f32 %v3949_v18, %v3966_v5  ;;  %v8502_v21 = vld [vmem:[%s10911_s20 + $0x8] sm:$0xff]   ;;  %v8505_v58 = vld [vmem:[%s10911_s20 + $0x10] sm:$0xff]   ;;  %v8518_v18 = vld [vmem:[%s10911_s20 + $0xb8] sm:$0xff]  }
 0x69d   :  { %v3967_v61 = vmul.f32 0.0025510204, %v3965_v43  ;;  %8001 = vmatpush3.bf16.msra.mxu0 %v8502_v21  ;;  %v8514_v46 = vld [vmem:[%s10911_s20 + $0x28] sm:$0xff]   ;;  %4320 = vmatpush1.bf16.msra.mxu1 %v8518_v18  ;;  %v8532_v18 = vld [vmem:[%s10911_s20 + $0xdc] sm:$0xff]  }
 0x69e   :  { %v3976_v1 = vmul.f32 %v9998_v19, %v9998_v19  ;;  %v3977_v7 = vmul.f32 %v10000_v16, %v10000_v16  ;;  %v3979_v44 = vmul.f32 %v10004_v45, %v10004_v45  ;;  %v3978_v47 = vmul.f32 %v10002_v62, %v10002_v62  ;;  %8002 = vmatprep.subr.bf16.mxu0 %v8504_v27 }
 0x69f   :  { %v10012_v28 = vsub.f32 %v3950_v42, %v3967_v61  ;;  %v10014_v49 = vsub.f32 %v3951_v13, %v3967_v61  ;;  %v10016_v8 = vsub.f32 %v3952_v32, %v3967_v61  ;;  %v10018_v12 = vsub.f32 %v3953_v37, %v3967_v61  ;;  %v4011_v42 = vld [vmem:[%s10975_s24 + $0x8] sm:$0xff]  ;;  %v8511_v13 = vld [vmem:[%s10911_s20 + $0x20] sm:$0xff]   ;;  %4321 = vmatprep.subr.bf16.mxu1 %v9484_v51  ;;  %v4015_v6 = vpop.permute.xlu1 %4014 }
 0x6a0   :  { %v3984_v60 = vadd.f32 %v3977_v7, %v3976_v1  ;;  %v3986_v48 = vsel %vm2099_vm14, %v3979_v44, 0.0  ;;  %v8521_v32 = vld [vmem:[%s10911_s20 + $0xc0] ss:$0 sps:$4 sm:$0xff]   ;;  %v8522_v37 = vld [vmem:[%s10911_s20 + $0x104] sm:$0xff]  }
 0x6a1   :  { %v3980_v41 = vmul.f32 %v10012_v28, %v10012_v28  ;;  %v3981_v4 = vmul.f32 %v10014_v49, %v10014_v49  ;;  %v3982_v17 = vmul.f32 %v10016_v8, %v10016_v8  ;;  %v3983_v35 = vmul.f32 %v10018_v12, %v10018_v12  ;;  %8003 = vmatpush3.bf16.msra.mxu0 %v8505_v58 }
 0x6a2   :  { %v3985_v9 = vadd.f32 %v3984_v60, %v3978_v47  ;;  %8004 = vmatprep.subr.bf16.mxu0 %v8507_v23  ;;  %v4262_v10 = vsel %vm2116_vm15, %v8521_v32, 0  ;;  %v8535_v32 = vld [vmem:[%s10911_s20 + $0xe4] sm:$0xff]  }
 0x6a3   :  { %v3990_v34 = vadd.f32 %v3981_v4, %v3980_v41  ;;  %v3992_v55 = vsel %vm2099_vm14, %v3983_v35, 0.0  ;;  %4322 = vmatpush1.bf16.msra.mxu1 %v4262_v10  ;;  %v4035_v5 = vpop.permute.xlu1 %4034  ;;  %v8536_v10 = vld [vmem:[%s10911_s20 + $0x164] sm:$0xff]  }
 0x6a4   :  { %v3987_v26 = vadd.f32 %v3986_v48, %v3985_v9  ;;  %4587 = vmatprep.subr.bf16.mxu1 %v9484_v51 }
 0x6a5   :  { %v3991_v39 = vadd.f32 %v3990_v34, %v3982_v17  ;;  %8005 = vmatpush3.bf16.msra.mxu0 %v8508_v0 }
 0x6a6   :  { %3988 = vadd.xlane.f32.xlu0 %v3987_v26  ;;  %8006 = vmatprep.subr.bf16.mxu0 %v8510_v31  ;;  %v8524_v31 = vld [vmem:[%s10911_s20 + $0x144] sm:$0xff]  }
 0x6a7   :  { %v3993_v40 = vadd.f32 %v3992_v55, %v3991_v39  ;;  %v4040_v26 = vpop.permute.xlu1 %4039 }
 0x6a9   :  { %8007 = vmatpush3.bf16.msra.mxu0 %v8511_v13  ;;  %v8525_v13 = vld [vmem:[%s10911_s20 + $0x10c] sm:$0xff]  }
 0x6aa   :  { %3994 = vadd.xlane.f32.xlu0 %v3993_v40  ;;  %8008 = vmatprep.subr.bf16.mxu0 %v8513_v29  ;;  %v8527_v29 = vld [vmem:[%s10911_s20 + $0x14c] sm:$0xff]  }
 0x6ad   :  { %8009 = vmatpush3.bf16.msra.mxu0 %v8514_v46  ;;  %v8528_v46 = vld [vmem:[%s10911_s20 + $0x114] sm:$0xff]  }
 0x6ae   :  { %8010 = vmatprep.subr.bf16.mxu0 %v8516_v22  ;;  %v8530_v22 = vld [vmem:[%s10911_s20 + $0x154] sm:$0xff]  }
 0x6b1   :  { %8011 = vmatpush3.bf16.msra.mxu0 %v8517_v52  ;;  %v8531_v52 = vld [vmem:[%s10911_s20 + $0x11c] sm:$0xff]  }
 0x6b2   :  { %8012 = vmatprep.subr.bf16.mxu0 %v8519_v14  ;;  %v8533_v14 = vld [vmem:[%s10911_s20 + $0x15c] sm:$0xff]  }
 0x6b5   :  { %8013 = vmatpush3.bf16.msra.mxu0 %v8520_v2  ;;  %v8534_v2 = vld [vmem:[%s10911_s20 + $0x124] sm:$0xff]  }
 0x6b6   :  { %8020 = vmatprep.subr.bf16.mxu0 %v8522_v37  ;;  %v8537_v37 = vld [vmem:[%s10911_s20 + $0x12c] sm:$0xff]  }
 0x6c0   :  { %4019 = vperm.xlu0 %8457, %v4011_v42  }
 0x733   :  { %v3989_v25 = vpop.xlane.xlu0 %3988 }
 0x734   :  { %v3996_v36 = vmul.f32 0.0025510204, %v3989_v25  ;;  %v8538_v25 = vld [vmem:[%s10911_s20 + $0xec] sm:$0xff]  }
 0x736   :  { %v3998_v53 = vadd.f32 1e-05, %v3996_v36  ;;  %v8539_v36 = vld [vmem:[%s10911_s20 + $0x16c] sm:$0xff]  }
 0x737   :  { %v3995_v24 = vpop.xlane.xlu0 %3994 }
 0x738   :  { %8633 = vrsqrt.f32 %v3998_v53  ;;  %v3997_v30 = vmul.f32 0.0025510204, %v3995_v24  ;;  %v8540_v53 = vld [vmem:[%s10911_s20 + $0x134] sm:$0xff]  }
 0x739   :  { %v8541_v24 = vld [vmem:[%s10911_s20 + $0xf4] sm:$0xff]  }
 0x73a   :  { %v3999_v15 = vadd.f32 1e-05, %v3997_v30  ;;  %v8542_v30 = vld [vmem:[%s10911_s20 + $0x174] sm:$0xff]  }
 0x73c   :  { %8635 = vrsqrt.f32 %v3999_v15  ;;  %v8543_v15 = vld [vmem:[%s10911_s20 + $0x13c] sm:$0xff]  }
 0x73f   :  { %v4020_v4 = vpop.permute.xlu0 %4019 }
 0x742   :  { %v8634_v63 = vpop.eup %8633 }
 0x743   :  { %v4003_v50 = vmul.f32 %v8634_v63, %v10000_v16  ;;  %v4005_v33 = vmul.f32 %v8634_v63, %v10004_v45  ;;  %v4002_v3 = vmul.f32 %v8634_v63, %v9998_v19  ;;  %v4004_v11 = vmul.f32 %v8634_v63, %v10002_v62  ;;  %v8545_v63 = vld [vmem:[%s10911_s20 + $0x17c] sm:$0xff]  }
 0x745   :  { %v4023_v43 = vmul.f32 %v4015_v6, %v4003_v50  ;;  %v4025_v61 = vmul.f32 %v4015_v6, %v4005_v33  ;;  %v4022_v1 = vmul.f32 %v4015_v6, %v4002_v3  ;;  %v4024_v7 = vmul.f32 %v4015_v6, %v4004_v11  ;;  %v8544_v6 = vld [vmem:[%s10911_s20 + $0xfc] sm:$0xff]   ;;  %v8546_v50 = vld [vmem:[%s10911_s20 + $0x1c8] sm:$0xff]   ;;  %v8547_v33 = vld [vmem:[%s10911_s20 + $0x184] ss:$0 sps:$4 sm:$0xff]  }
 0x746   :  { %v8636_v44 = vpop.eup %8635  ;;  %v8548_v3 = vld [vmem:[%s10911_s20 + $0x188] sm:$0xff]   ;;  %v4544_v11 = vsel %vm2116_vm15, %v8547_v33, 0 }
 0x747   :  { %v4006_v47 = vmul.f32 %v8636_v44, %v10012_v28  ;;  %v4007_v60 = vmul.f32 %v8636_v44, %v10014_v49  ;;  %v4008_v41 = vmul.f32 %v8636_v44, %v10016_v8  ;;  %v4009_v16 = vmul.f32 %v8636_v44, %v10018_v12  ;;  %v8554_v44 = vld [vmem:[%s10911_s20 + $0x210] sm:$0xff]  }
 0x748   :  { %v4043_v45 = vadd.f32 %v4035_v5, %v4023_v43  ;;  %v4045_v9 = vadd.f32 %v4035_v5, %v4025_v61  ;;  %v4042_v19 = vadd.f32 %v4035_v5, %v4022_v1  ;;  %v4044_v48 = vadd.f32 %v4035_v5, %v4024_v7  ;;  %v8549_v5 = vld [vmem:[%s10911_s20 + $0x1d0] sm:$0xff]   ;;  %v8551_v61 = vld [vmem:[%s10911_s20 + $0x208] sm:$0xff]   ;;  %v8552_v1 = vld [vmem:[%s10911_s20 + $0x1d8] sm:$0xff]  }
 0x749   :  { %v4026_v62 = vmul.f32 %v4020_v4, %v4006_v47  ;;  %v4027_v17 = vmul.f32 %v4020_v4, %v4007_v60  ;;  %v4028_v35 = vmul.f32 %v4020_v4, %v4008_v41  ;;  %v4029_v34 = vmul.f32 %v4020_v4, %v4009_v16  ;;  %v8550_v43 = vld [vmem:[%s10911_s20 + $0x190] sm:$0xff]   ;;  %v8553_v7 = vld [vmem:[%s10911_s20 + $0x198] sm:$0xff]   ;;  %v8555_v47 = vld [vmem:[%s10911_s20 + $0x1e0] sm:$0xff]  }
 0x74a   :  { %v4051_v57 = vmax.f32 %v4043_v45, 0.0  ;;  %v4053_v49 = vmax.f32 %v4045_v9, 0.0  ;;  %v4050_v21 = vmax.f32 %v4042_v19, 0.0  ;;  %v4052_v8 = vmax.f32 %v4044_v48, 0.0  ;;  %v8556_v60 = vld [vmem:[%s10911_s20 + $0x1a0] sm:$0xff]   ;;  %v8557_v41 = vld [vmem:[%s10911_s20 + $0x218] sm:$0xff]  }
 0x74b   :  { %v4046_v39 = vadd.f32 %v4040_v26, %v4026_v62  ;;  %v4047_v55 = vadd.f32 %v4040_v26, %v4027_v17  ;;  %v4048_v40 = vadd.f32 %v4040_v26, %v4028_v35  ;;  %v4049_v28 = vadd.f32 %v4040_v26, %v4029_v34  ;;  %v8558_v16 = vld [vmem:[%s10911_s20 + $0x1e8] sm:$0xff]   ;;  %v8560_v45 = vld [vmem:[%s10911_s20 + $0x220] sm:$0xff]   ;;  %v8561_v9 = vld [vmem:[%s10911_s20 + $0x1f0] sm:$0xff]  }
 0x74c   :  { %v8559_v4 = vld [vmem:[%s10911_s20 + $0x1a8] sm:$0xff]   ;;  %v8562_v19 = vld [vmem:[%s10911_s20 + $0x1b0] sm:$0xff]   ;;  %v8564_v62 = vld [vmem:[%s10911_s20 + $0x1f8] sm:$0xff]  }
 0x74d   :  { %v4054_v20 = vmax.f32 %v4046_v39, 0.0  ;;  %v4055_v12 = vmax.f32 %v4047_v55, 0.0  ;;  %v4056_v27 = vmax.f32 %v4048_v40, 0.0  ;;  %v4057_v58 = vmax.f32 %v4049_v28, 0.0  ;;  %v8563_v48 = vld [vmem:[%s10911_s20 + $0x228] sm:$0xff]   ;;  %v8565_v17 = vld [vmem:[%s10911_s20 + $0x1b8] sm:$0xff]  }
 0x74e   :  { %v8566_v35 = vld [vmem:[%s10911_s20 + $0x230] sm:$0xff]   ;;  %v8567_v34 = vld [vmem:[%s10911_s20 + $0x200] sm:$0xff]   ;;  %v8569_v39 = vld [vmem:[%s10911_s20 + $0x238] sm:$0xff]  }
 0x74f   :  { %v10117_v54 = vpack.c.bf16 %v4055_v12, %v4051_v57  ;;  %v10119_v23 = vpack.c.bf16 %v4057_v58, %v4053_v49  ;;  %v10121_v42 = vpack.c.bf16 %v4054_v20, %v4050_v21  ;;  %v10123_v0 = vpack.c.bf16 %v4056_v27, %v4052_v8  ;;  %v8568_v26 = vld [vmem:[%s10911_s20 + $0x1c0] sm:$0xff]   ;;  %v8570_v55 = vld [vmem:[%s10911_s20 + $0x28c] sm:$0xff]   ;;  %v8574_v57 = vld [vmem:[%s10911_s20 + $0x248] ss:$0 sps:$4 sm:$0xff]  }
 0x750   :  { %v8571_v40 = vld [vmem:[%s10911_s20 + $0x240] sm:$0xff]   ;;  %v8572_v28 = vld [vmem:[%s10911_s20 + $0x24c] sm:$0xff]   ;;  %v8573_v49 = vld [vmem:[%s10911_s20 + $0x294] sm:$0xff]   ;;  %v4826_v8 = vsel %vm2116_vm15, %v8574_v57, 0 }
 0x751   :  { %4296 = vmatprep.mubr.bf16.mxu0 %v10117_v54  ;;  %7619 = vmatprep.mubr.msk.bf16.mxu1 %vm2099_vm14, %v10119_v23  ;;  %v8575_v21 = vld [vmem:[%s10911_s20 + $0x254] sm:$0xff]   ;;  %v8576_v20 = vld [vmem:[%s10911_s20 + $0x29c] sm:$0xff]   ;;  %v8578_v27 = vld [vmem:[%s10911_s20 + $0x2cc] sm:$0xff]  }
 0x752   :  { %4297 = vmatmul.mubr.bf16.vlgmr.msra.gmra.mrb[108].mxu0 %v10121_v42  ;;  %4338 = vmatmul.mubr.bf16.vlgmr.msra.gmra.mrb[108].mxu1 %v10123_v0  ;;  %v8577_v12 = vld [vmem:[%s10911_s20 + $0x25c] sm:$0xff]   ;;  %v8579_v58 = vld [vmem:[%s10911_s20 + $0x2a4] sm:$0xff]  }
 0x753   :  { %8021 = vmatpush3.bf16.msra.mxu0 %v8523_v56  ;;  %4588 = vmatpush1.bf16.msra.mxu1 %v8524_v31  ;;  %v8581_v56 = vld [vmem:[%s10911_s20 + $0x2d4] sm:$0xff]   ;;  %v8582_v31 = vld [vmem:[%s10911_s20 + $0x2ac] sm:$0xff]  }
 0x754   :  { %4578 = vmatprep.mubr.bf16.mxu0 %v10117_v54  ;;  %7694 = vmatprep.mubr.msk.bf16.mxu1 %vm2099_vm14, %v10119_v23 }
 0x755   :  { %8022 = vmatprep.subr.bf16.mxu0 %v8525_v13  ;;  %4589 = vmatprep.subr.bf16.mxu1 %v9484_v51  ;;  %v8583_v13 = vld [vmem:[%s10911_s20 + $0x26c] sm:$0xff]  }
 0x757   :  { %8023 = vmatpush3.bf16.msra.mxu0 %v8526_v38  ;;  %4590 = vmatpush1.bf16.msra.mxu1 %v8527_v29  ;;  %v8584_v38 = vld [vmem:[%s10911_s20 + $0x2dc] sm:$0xff]   ;;  %v8586_v29 = vld [vmem:[%s10911_s20 + $0x274] sm:$0xff]  }
 0x758   :  { %8024 = vmatprep.subr.bf16.mxu0 %v8528_v46  ;;  %4591 = vmatprep.subr.bf16.mxu1 %v9484_v51  ;;  %v8587_v46 = vld [vmem:[%s10911_s20 + $0x2e4] sm:$0xff]  }
 0x75b   :  { %8025 = vmatpush3.bf16.msra.mxu0 %v8529_v59  ;;  %4592 = vmatpush1.bf16.msra.mxu1 %v8530_v22  ;;  %v8588_v59 = vld [vmem:[%s10911_s20 + $0x2bc] sm:$0xff]  }
 0x75c   :  { %8026 = vmatprep.subr.bf16.mxu0 %v8531_v52  ;;  %4593 = vmatprep.subr.bf16.mxu1 %v9484_v51  ;;  %v8589_v22 = vld [vmem:[%s10911_s20 + $0x27c] sm:$0xff]   ;;  %v8590_v52 = vld [vmem:[%s10911_s20 + $0x2ec] sm:$0xff]  }
 0x75f   :  { %8027 = vmatpush3.bf16.msra.mxu0 %v8532_v18  ;;  %4594 = vmatpush1.bf16.msra.mxu1 %v8533_v14  ;;  %v8591_v18 = vld [vmem:[%s10911_s20 + $0x2c4] sm:$0xff]  }
 0x760   :  { %8028 = vmatprep.subr.bf16.mxu0 %v8534_v2  ;;  %4595 = vmatprep.subr.bf16.mxu1 %v9484_v51  ;;  %v8592_v14 = vld [vmem:[%s10911_s20 + $0x284] sm:$0xff]   ;;  %v8593_v2 = vld [vmem:[%s10911_s20 + $0x2f4] sm:$0xff]  }
 0x763   :  { %8029 = vmatpush3.bf16.msra.mxu0 %v8535_v32  ;;  %4596 = vmatpush1.bf16.msra.mxu1 %v8536_v10  ;;  %v8594_v32 = vld [vmem:[%s10911_s20 + $0x2fc] sm:$0xff]   ;;  %v8595_v10 = vld [vmem:[%s10911_s20 + $0x304] sm:$0xff]  }
 0x764   :  { %8030 = vmatprep.subr.bf16.mxu0 %v8537_v37  ;;  %4597 = vmatprep.subr.bf16.mxu1 %v9484_v51  ;;  %v8596_v37 = vld [vmem:[%s10911_s20 + $0x30c] ss:$0 sps:$4 sm:$0xff]  }
 0x767   :  { %8031 = vmatpush3.bf16.msra.mxu0 %v8538_v25  ;;  %4598 = vmatpush1.bf16.msra.mxu1 %v8539_v36  ;;  %v5108_v25 = vsel %vm2116_vm15, %v8596_v37, 0 }
 0x768   :  { %8032 = vmatprep.subr.bf16.mxu0 %v8540_v53  ;;  %4599 = vmatprep.subr.bf16.mxu1 %v9484_v51 }
 0x76b   :  { %8033 = vmatpush3.bf16.msra.mxu0 %v8541_v24  ;;  %4600 = vmatpush1.bf16.msra.mxu1 %v8542_v30 }
 0x76c   :  { %8034 = vmatprep.subr.bf16.mxu0 %v8543_v15  ;;  %4601 = vmatprep.subr.bf16.mxu1 %v9484_v51 }
 0x76f   :  { %8035 = vmatpush3.bf16.msra.mxu0 %v8544_v6  ;;  %4602 = vmatpush1.bf16.msra.mxu1 %v8545_v63 }
 0x770   :  { %4603 = vmatprep.subr.bf16.mxu1 %v9484_v51  ;;  %8042 = vmatprep.subr.bf16.mxu0 %v8546_v50 }
 0x772   :  { %4579 = vmatmul.mubr.bf16.vlgmr.msra.gmra.mrb[112].mxu0 %v10121_v42 }
 0x773   :  { %4604 = vmatpush1.bf16.msra.mxu1 %v4544_v11  ;;  %8043 = vmatpush3.bf16.msra.mxu0 %v8548_v3 }
 0x774   :  { %4860 = vmatprep.mubr.bf16.mxu0 %v10117_v54  ;;  %8044 = vmatprep.subr.bf16.mxu0 %v8549_v5 }
 0x775   :  { %4869 = vmatprep.subr.bf16.mxu1 %v9484_v51 }
 0x776   :  { %4620 = vmatmul.mubr.bf16.vlgmr.msra.gmra.mrb[112].mxu1 %v10123_v0 }
 0x777   :  { %8045 = vmatpush3.bf16.msra.mxu0 %v8550_v43  ;;  %4870 = vmatpush1.bf16.msra.mxu1 %v8551_v61 }
 0x778   :  { %7769 = vmatprep.mubr.msk.bf16.mxu1 %vm2099_vm14, %v10119_v23  ;;  %8046 = vmatprep.subr.bf16.mxu0 %v8552_v1 }
 0x779   :  { %4871 = vmatprep.subr.bf16.mxu1 %v9484_v51 }
 0x77b   :  { %8047 = vmatpush3.bf16.msra.mxu0 %v8553_v7  ;;  %4872 = vmatpush1.bf16.msra.mxu1 %v8554_v44 }
 0x77c   :  { %8048 = vmatprep.subr.bf16.mxu0 %v8555_v47  ;;  %4873 = vmatprep.subr.bf16.mxu1 %v9484_v51 }
 0x77f   :  { %8049 = vmatpush3.bf16.msra.mxu0 %v8556_v60  ;;  %4874 = vmatpush1.bf16.msra.mxu1 %v8557_v41 }
 0x780   :  { %8050 = vmatprep.subr.bf16.mxu0 %v8558_v16  ;;  %4875 = vmatprep.subr.bf16.mxu1 %v9484_v51 }
 0x783   :  { %8051 = vmatpush3.bf16.msra.mxu0 %v8559_v4  ;;  %4876 = vmatpush1.bf16.msra.mxu1 %v8560_v45 }
 0x784   :  { %8052 = vmatprep.subr.bf16.mxu0 %v8561_v9  ;;  %4877 = vmatprep.subr.bf16.mxu1 %v9484_v51 }
 0x787   :  { %8053 = vmatpush3.bf16.msra.mxu0 %v8562_v19  ;;  %4878 = vmatpush1.bf16.msra.mxu1 %v8563_v48 }
 0x788   :  { %8054 = vmatprep.subr.bf16.mxu0 %v8564_v62  ;;  %4879 = vmatprep.subr.bf16.mxu1 %v9484_v51 }
 0x78b   :  { %8055 = vmatpush3.bf16.msra.mxu0 %v8565_v17  ;;  %4880 = vmatpush1.bf16.msra.mxu1 %v8566_v35 }
 0x78c   :  { %8056 = vmatprep.subr.bf16.mxu0 %v8567_v34  ;;  %4881 = vmatprep.subr.bf16.mxu1 %v9484_v51 }
 0x78f   :  { %8057 = vmatpush3.bf16.msra.mxu0 %v8568_v26  ;;  %4882 = vmatpush1.bf16.msra.mxu1 %v8569_v39 }
 0x790   :  { %4883 = vmatprep.subr.bf16.mxu1 %v9484_v51  ;;  %8064 = vmatprep.subr.bf16.mxu0 %v8570_v55 }
 0x792   :  { %4861 = vmatmul.mubr.bf16.vlgmr.msra.gmra.mrb[116].mxu0 %v10121_v42 }
 0x793   :  { %4884 = vmatpush1.bf16.msra.mxu1 %v8571_v40  ;;  %8065 = vmatpush3.bf16.msra.mxu0 %v8572_v28 }
 0x794   :  { %5142 = vmatprep.mubr.bf16.mxu0 %v10117_v54  ;;  %4885 = vmatprep.subr.bf16.mxu1 %v9484_v51  ;;  %v8580_v54 = vld [vmem:[%s10911_s20 + $0x264] sm:$0xff]  }
 0x795   :  { %8066 = vmatprep.subr.bf16.mxu0 %v8573_v49 }
 0x797   :  { %4886 = vmatpush1.bf16.msra.mxu1 %v4826_v8  ;;  %8067 = vmatpush3.bf16.msra.mxu0 %v8575_v21 }
 0x798   :  { %8068 = vmatprep.subr.bf16.mxu0 %v8576_v20  ;;  %5151 = vmatprep.subr.bf16.mxu1 %v9484_v51 }
 0x79a   :  { %4902 = vmatmul.mubr.bf16.vlgmr.msra.gmra.mrb[116].mxu1 %v10123_v0 }
 0x79b   :  { %8069 = vmatpush3.bf16.msra.mxu0 %v8577_v12  ;;  %5152 = vmatpush1.bf16.msra.mxu1 %v8578_v27 }
 0x79c   :  { %7844 = vmatprep.mubr.msk.bf16.mxu1 %vm2099_vm14, %v10119_v23  ;;  %8070 = vmatprep.subr.bf16.mxu0 %v8579_v58  ;;  %v8585_v23 = vld [vmem:[%s10911_s20 + $0x2b4] sm:$0xff]   ;;  %s10977_s20 = smov 16  }
 0x79d   :  { %5153 = vmatprep.subr.bf16.mxu1 %v9484_v51 }
 0x79f   :  { %8071 = vmatpush3.bf16.msra.mxu0 %v8580_v54  ;;  %5154 = vmatpush1.bf16.msra.mxu1 %v8581_v56 }
 0x7a0   :  { %8072 = vmatprep.subr.bf16.mxu0 %v8582_v31  ;;  %5155 = vmatprep.subr.bf16.mxu1 %v9484_v51 }
 0x7a3   :  { %8073 = vmatpush3.bf16.msra.mxu0 %v8583_v13  ;;  %5156 = vmatpush1.bf16.msra.mxu1 %v8584_v38 }
 0x7a4   :  { %8074 = vmatprep.subr.bf16.mxu0 %v8585_v23  ;;  %5157 = vmatprep.subr.bf16.mxu1 %v9484_v51 }
 0x7a7   :  { %8075 = vmatpush3.bf16.msra.mxu0 %v8586_v29  ;;  %5158 = vmatpush1.bf16.msra.mxu1 %v8587_v46 }
 0x7a8   :  { %8076 = vmatprep.subr.bf16.mxu0 %v8588_v59  ;;  %5159 = vmatprep.subr.bf16.mxu1 %v9484_v51 }
 0x7ab   :  { %8077 = vmatpush3.bf16.msra.mxu0 %v8589_v22  ;;  %5160 = vmatpush1.bf16.msra.mxu1 %v8590_v52  ;;  %v8661_v52 = vmov 0.0  }
 0x7ac   :  { %8078 = vmatprep.subr.bf16.mxu0 %v8591_v18  ;;  %5161 = vmatprep.subr.bf16.mxu1 %v9484_v51 }
 0x7af   :  { %8079 = vmatpush3.bf16.msra.mxu0 %v8592_v14  ;;  %5162 = vmatpush1.bf16.msra.mxu1 %v8593_v2 }
 0x7b0   :  { %5163 = vmatprep.subr.bf16.mxu1 %v9484_v51  ;;  %8179 = vmatprep.subr.bf16.mxu0 %v8661_v52 }
 0x7b2   :  { %5143 = vmatmul.mubr.bf16.vlgmr.msra.gmra.mrb[120].mxu0 %v10121_v42 }
 0x7b3   :  { %5164 = vmatpush1.bf16.msra.mxu1 %v8594_v32  ;;  %8181 = vmatprep.mubr.msk.bf16.mxu0 %vm8662_vm4, %v8661_v52 }
 0x7b4   :  { %5165 = vmatprep.subr.bf16.mxu1 %v9484_v51 }
 0x7b7   :  { %5166 = vmatpush1.bf16.msra.mxu1 %v8595_v10  ;;  %v5209_v10 = vld [vmem:[%s10912_s7] sm:$0xf] }
 0x7b8   :  { %5167 = vmatprep.subr.bf16.mxu1 %v9484_v51 }
 0x7bb   :  { %5168 = vmatpush1.bf16.msra.mxu1 %v5108_v25  ;;  %v7853_v25 = vld [vmem:[%s10912_s7 + $0xc] sm:$0xf] }
 0x7bc   :  { %8197 = vmatprep.subr.bf16.mxu1 %v8661_v52 }
 0x7be   :  { %5184 = vmatmul.mubr.bf16.vlgmr.msra.gmra.mrb[120].mxu1 %v10123_v0 }
 0x7bf   :  { %8199 = vmatprep.mubr.msk.bf16.mxu1 %vm8662_vm4, %v8661_v52 }
 0x825   :  { %v8014_v42 = vpop.f32.mrb[108].mxu0  ;;  %v4339_v36 = vpop.f32.mrb[108].mxu1 }
 0x826   :  { %v8015_v53 = vpop.f32.mrb[109].mxu0  ;;  %v4341_v24 = vpop.f32.mrb[109].mxu1 }
 0x827   :  { %v8016_v30 = vadd.f32 %v8015_v53, %v8014_v42  ;;  %v8017_v15 = vpop.f32.mrb[110].mxu0  ;;  %v4342_v6 = vpop.f32.mrb[110].mxu1  ;;  %v7859_v24 = vld [vmem:[%s10912_s7 + $0x14] sm:$0xf] }
 0x828   :  { %v8018_v63 = vpop.f32.mrb[111].mxu0  ;;  %v4344_v50 = vpop.f32.mrb[111].mxu1 }
 0x829   :  { %v4340_v33 = vadd.f32 %v8016_v30, %v4339_v36  ;;  %v8019_v3 = vadd.f32 %v8018_v63, %v8017_v15  ;;  %v7847_v36 = vld [vmem:[%s10912_s7 + $0x4] sm:$0xf]  ;;  %v7850_v15 = vld [vmem:[%s10912_s7 + $0x8] sm:$0xf]  ;;  %v7865_v63 = vld [vmem:[%s10912_s7 + $0x1c] sm:$0xf] }
 0x82a   :  { %v7856_v50 = vld [vmem:[%s10912_s7 + $0x10] sm:$0xf] }
 0x82b   :  { %v4343_v11 = vadd.f32 %v8019_v3, %v4342_v6  ;;  %v7862_v3 = vld [vmem:[%s10912_s7 + $0x18] sm:$0xf] }
 0x845   :  { %v8036_v5 = vpop.f32.mrb[112].mxu0 }
 0x846   :  { %v8037_v43 = vpop.f32.mrb[113].mxu0 }
 0x847   :  { %v8038_v61 = vadd.f32 %v8037_v43, %v8036_v5  ;;  %v8039_v1 = vpop.f32.mrb[114].mxu0  ;;  %v7868_v5 = vld [vmem:[%s10912_s7 + $0x20] sm:$0xf]  ;;  %s8673_s7 = smov 110  }
 0x848   :  { %v8040_v7 = vpop.f32.mrb[115].mxu0 }
 0x849   :  { %v8041_v44 = vadd.f32 %v8040_v7, %v8039_v1  ;;  %v4621_v47 = vpop.f32.mrb[112].mxu1 }
 0x84a   :  { %v4622_v0 = vadd.f32 %v8038_v61, %v4621_v47  ;;  %v4623_v60 = vpop.f32.mrb[113].mxu1 }
 0x84b   :  { %v4624_v41 = vpop.f32.mrb[114].mxu1  ;;  %v7849_v60 = vld [vmem:[%s10913_s18 + $0x1] ss:$0 sm:$0xff] }
 0x84c   :  { %v5192_v16 = vmax.f32 %v4340_v33, %v4622_v0  ;;  %v4625_v4 = vadd.f32 %v8041_v44, %v4624_v41  ;;  %v4626_v45 = vpop.f32.mrb[115].mxu1  ;;  %v7846_v0 = vld [vmem:[%s10913_s18] ss:$0 sm:$0xff] }
 0x84e   :  { %v5193_v9 = vmax.f32 %v4343_v11, %v4625_v4 }
 0x865   :  { %v8058_v19 = vpop.f32.mrb[116].mxu0 }
 0x866   :  { %v8059_v48 = vpop.f32.mrb[117].mxu0 }
 0x867   :  { %v8060_v62 = vadd.f32 %v8059_v48, %v8058_v19  ;;  %v8061_v17 = vpop.f32.mrb[118].mxu0 }
 0x868   :  { %v8062_v35 = vpop.f32.mrb[119].mxu0 }
 0x869   :  { %v8063_v34 = vadd.f32 %v8062_v35, %v8061_v17 }
 0x86d   :  { %v4903_v26 = vpop.f32.mrb[116].mxu1 }
 0x86e   :  { %v4904_v39 = vadd.f32 %v8060_v62, %v4903_v26  ;;  %v4905_v55 = vpop.f32.mrb[117].mxu1  ;;  %v7852_v26 = vld [vmem:[%s10913_s18 + $0x2] ss:$0 sm:$0xff] }
 0x86f   :  { %v4906_v40 = vpop.f32.mrb[118].mxu1 }
 0x870   :  { %v4907_v28 = vadd.f32 %v8063_v34, %v4906_v40  ;;  %v4908_v57 = vpop.f32.mrb[119].mxu1 }
 0x885   :  { %v8080_v49 = vpop.f32.mrb[120].mxu0 }
 0x886   :  { %v8081_v21 = vpop.f32.mrb[121].mxu0 }
 0x887   :  { %v8082_v8 = vadd.f32 %v8081_v21, %v8080_v49  ;;  %v8083_v20 = vpop.f32.mrb[122].mxu0 }
 0x888   :  { %v8084_v12 = vpop.f32.mrb[123].mxu0 }
 0x889   :  { %v8085_v27 = vadd.f32 %v8084_v12, %v8083_v20 }
 0x891   :  { %v5185_v58 = vpop.f32.mrb[120].mxu1 }
 0x892   :  { %v5186_v54 = vadd.f32 %v8082_v8, %v5185_v58  ;;  %v5187_v56 = vpop.f32.mrb[121].mxu1 }
 0x893   :  { %v5188_v31 = vpop.f32.mrb[122].mxu1  ;;  %v7858_v56 = vld [vmem:[%s10913_s18 + $0x4] ss:$0 sm:$0xff] }
 0x894   :  { %v5194_v13 = vmax.f32 %v4904_v39, %v5186_v54  ;;  %v5189_v38 = vadd.f32 %v8085_v27, %v5188_v31  ;;  %v5190_v23 = vpop.f32.mrb[123].mxu1  ;;  %v7855_v39 = vld [vmem:[%s10913_s18 + $0x3] ss:$0 sm:$0xff]  ;;  %v7861_v31 = vld [vmem:[%s10913_s18 + $0x5] ss:$0 sm:$0xff] }
 0x896   :  { %v5196_v29 = vmax.f32 %v5192_v16, %v5194_v13  ;;  %v5195_v46 = vmax.f32 %v4907_v28, %v5189_v38 }
 0x898   :  { %v5197_v59 = vmax.f32 %v5193_v9, %v5195_v46 }
 0x89a   :  { %v5201_v22 = vpack.c.bf16 %v5197_v59, %v5196_v29 }
 0x89c   :  { %5203 = vrot.lane.b32.xlu0 %v5201_v22, %s10977_s20 }
 0x90e   :  { %v5204_v18 = vpop.permute.xlu0 %5203 }
 0x90f   :  { %5207 = vst.msk [vmem:[#allocation2] sm:$0xff] %vm5206_vm6, %v5204_v18 }
 0x916   :  { %v5208_v14 = vld [vmem:[#allocation2] sm:$0xff] }
 0x917   :  { %6127 = vst.msk [vmem:[#allocation2] sm:$0xf] %vm6126_vm7, %v9484_v51  ;;  %5267 = vrot.lane.b32.xlu0 %v5208_v14, %s8663_s30  ;;  %5211 = vrot.lane.b32.xlu1 %v5208_v14, %s8664_s4 }
 0x91b   :  { %5377 = vrot.lane.b32.xlu0 %v5208_v14, %s10968_s26  ;;  %5322 = vrot.lane.b32.xlu1 %v5208_v14, %s8665_s5  ;;  %s8670_s5 = smov 116  }
 0x91f   :  { %5487 = vrot.lane.b32.xlu0 %v5208_v14, %s10970_s27  ;;  %5432 = vrot.lane.b32.xlu1 %v5208_v14, %s10969_s17 }
 0x923   :  { %5597 = vrot.lane.b32.xlu0 %v5208_v14, %s8666_s6  ;;  %5542 = vrot.lane.b32.xlu1 %v5208_v14, %s8667_s2  ;;  %s8671_s6 = smov 114   ;;  %s8674_s2 = smov 108  }
 0x927   :  { %5652 = vrot.lane.b32.xlu1 %v5208_v14, %s8668_s0 }
 0x989   :  { %v5268_v2 = vpop.permute.xlu0 %5267  ;;  %v5212_v32 = vpop.permute.xlu1 %5211 }
 0x98a   :  { %8180 = vmatpush3.bf16.msra.mxu0 %v5212_v32  ;;  %v7864_v32 = vld [vmem:[%s10913_s18 + $0x6] ss:$0 sm:$0xff] }
 0x98b   :  { %8185 = vmatprep.subr.bf16.mxu0 %v8661_v52 }
 0x98d   :  { %v5378_v37 = vpop.permute.xlu0 %5377  ;;  %8182 = vmatmul.mubr.msk.bf16.vlgmr.msra.gmra.mrb[124].mxu0 %vm140_vm2, %v5209_v10  ;;  %v5323_v53 = vpop.permute.xlu1 %5322  ;;  %v7867_v10 = vld [vmem:[%s10913_s18 + $0x7] ss:$0 sm:$0xff] }
 0x98e   :  { %8186 = vmatpush3.bf16.msra.mxu0 %v5268_v2  ;;  %8198 = vmatpush3.bf16.msra.mxu1 %v5378_v37 }
 0x98f   :  { %8209 = vmatprep.subr.bf16.mxu1 %v8661_v52  ;;  %8187 = vmatprep.mubr.msk.bf16.mxu0 %vm8662_vm4, %v8661_v52 }
 0x990   :  { %8191 = vmatprep.subr.bf16.mxu0 %v8661_v52 }
 0x991   :  { %8200 = vmatmul.mubr.msk.bf16.vlgmr.msra.gmra.mrb[124].mxu1 %vm140_vm2, %v7853_v25  ;;  %v5488_v42 = vpop.permute.xlu0 %5487  ;;  %v5433_v6 = vpop.permute.xlu1 %5432 }
 0x992   :  { %8210 = vmatpush3.bf16.msra.mxu1 %v5488_v42  ;;  %8211 = vmatprep.mubr.msk.bf16.mxu1 %vm8662_vm4, %v8661_v52 }
 0x993   :  { %8221 = vmatprep.subr.bf16.mxu1 %v8661_v52 }
 0x995   :  { %8188 = vmatmul.mubr.msk.bf16.vlgmr.msra.gmra.mrb[128].mxu0 %vm140_vm2, %v7847_v36  ;;  %v5598_v30 = vpop.permute.xlu0 %5597  ;;  %v5543_v33 = vpop.permute.xlu1 %5542 }
 0x996   :  { %8192 = vmatpush3.bf16.msra.mxu0 %v5323_v53  ;;  %8193 = vmatprep.mubr.msk.bf16.mxu0 %vm8662_vm4, %v8661_v52 }
 0x997   :  { %8203 = vmatprep.subr.bf16.mxu0 %v8661_v52 }
 0x999   :  { %8212 = vmatmul.mubr.msk.bf16.vlgmr.msra.gmra.mrb[128].mxu1 %vm140_vm2, %v7859_v24  ;;  %v5653_v11 = vpop.permute.xlu1 %5652 }
 0x99a   :  { %8222 = vmatpush3.bf16.msra.mxu1 %v5598_v30  ;;  %8223 = vmatprep.mubr.msk.bf16.mxu1 %vm8662_vm4, %v8661_v52 }
 0x99b   :  { %8233 = vmatprep.subr.bf16.mxu1 %v8661_v52 }
 0x99d   :  { %8194 = vmatmul.mubr.msk.bf16.vlgmr.msra.gmra.mrb[132].mxu0 %vm140_vm2, %v7850_v15 }
 0x99e   :  { %8204 = vmatpush3.bf16.msra.mxu0 %v5433_v6  ;;  %8205 = vmatprep.mubr.msk.bf16.mxu0 %vm8662_vm4, %v8661_v52  ;;  %v7870_v6 = vld [vmem:[%s10913_s18 + $0x8] ss:$0 sm:$0xff] }
 0x99f   :  { %8215 = vmatprep.subr.bf16.mxu0 %v8661_v52 }
 0x9a1   :  { %8224 = vmatmul.mubr.msk.bf16.vlgmr.msra.gmra.mrb[132].mxu1 %vm140_vm2, %v7865_v63 }
 0x9a2   :  { %8247 = vmatprep.mubr.msk.bf16.mxu1 %vm8662_vm4, %v8661_v52 }
 0x9a5   :  { %8206 = vmatmul.mubr.msk.bf16.vlgmr.msra.gmra.mrb[136].mxu0 %vm140_vm2, %v7856_v50 }
 0x9a6   :  { %8216 = vmatpush3.bf16.msra.mxu0 %v5543_v33  ;;  %8217 = vmatprep.mubr.msk.bf16.mxu0 %vm8662_vm4, %v8661_v52 }
 0x9a7   :  { %8227 = vmatprep.subr.bf16.mxu0 %v8661_v52 }
 0x9ad   :  { %8218 = vmatmul.mubr.msk.bf16.vlgmr.msra.gmra.mrb[140].mxu0 %vm140_vm2, %v7862_v3 }
 0x9ae   :  { %8228 = vmatpush3.bf16.msra.mxu0 %v5653_v11  ;;  %8229 = vmatprep.mubr.msk.bf16.mxu0 %vm8662_vm4, %v8661_v52 }
 0x9af   :  { %8251 = vmatprep.subr.bf16.mxu0 %v8661_v52 }
 0x9b5   :  { %8230 = vmatmul.mubr.msk.bf16.vlgmr.msra.gmra.mrb[144].mxu0 %vm140_vm2, %v7868_v5  ;;  %vm5791_vm2 = vcmask 1040384  }
 0x9b6   :  { %8265 = vmatprep.mubr.msk.bf16.mxu0 %vm8662_vm4, %v8661_v52 }
 0xa60   :  { %v5252_v43 = vpop.f32.mrb[124].mxu0 }
 0xa61   :  { %v8183_v61 = vpop.f32.mrb[125].mxu0  ;;  %v5263_v45 = vmul.f32 %v7846_v0, %v5252_v43 }
 0xa62   :  { %v5255_v1 = vpop.f32.mrb[126].mxu0  ;;  %v5720_v61 = vld [vmem:[%s10914_s8] sm:$0xff] }
 0xa63   :  { %v8184_v7 = vpop.f32.mrb[127].mxu0  ;;  %v8597_v1 = vld [vmem:[%s10915_s21] sm:$0xff]  }
 0xa64   :  { %v5417_v44 = vpop.f32.mrb[124].mxu1  ;;  %v8598_v7 = vld [vmem:[%s10915_s21 + $0x34] sm:$0xff]   ;;  %8234 = vmatpush3.bf16.msra.mxu1 %v8597_v1 }
 0xa65   :  { %v8201_v47 = vpop.f32.mrb[125].mxu1  ;;  %v5428_v21 = vmul.f32 %v7855_v39, %v5417_v44  ;;  %8252 = vmatpush3.bf16.msra.mxu0 %v8598_v7  ;;  %8235 = vmatprep.subr.bf16.mxu1 %v8661_v52  ;;  %v8609_v39 = vld [vmem:[%s10915_s21 + $0x30] ss:$0 sps:$4 sm:$0x11]  }
 0xa66   :  { %v5420_v41 = vpop.f32.mrb[126].mxu1  ;;  %8253 = vmatprep.subr.bf16.mxu0 %v8661_v52 }
 0xa67   :  { %v8202_v16 = vpop.f32.mrb[127].mxu1 }
 0xa68   :  { %v5307_v4 = vpop.f32.mrb[128].mxu0  ;;  %v5727_v16 = vld [vmem:[%s10916_s9] sm:$0xff]  ;;  %s8672_s9 = smov 109  }
 0xa69   :  { %v5318_v9 = vmul.f32 %v7849_v60, %v5307_v4  ;;  %v8189_v19 = vpop.f32.mrb[129].mxu0  ;;  %v8599_v4 = vld [vmem:[%s10915_s21 + $0x8] sm:$0xff]  }
 0xa6a   :  { %v5310_v48 = vpop.f32.mrb[130].mxu0  ;;  %8236 = vmatpush3.bf16.msra.mxu1 %v8599_v4  ;;  %v8602_v19 = vld [vmem:[%s10915_s21 + $0x44] sm:$0xff]  }
 0xa6b   :  { %v5319_v62 = vadd.f32 %v5318_v9, %v5263_v45  ;;  %v8190_v17 = vpop.f32.mrb[131].mxu0  ;;  %v8600_v45 = vld [vmem:[%s10915_s21 + $0x3c] sm:$0xff]   ;;  %8237 = vmatprep.subr.bf16.mxu1 %v8661_v52  ;;  %v8601_v9 = vld [vmem:[%s10915_s21 + $0x10] sm:$0xff]  }
 0xa6c   :  { %v5527_v35 = vpop.f32.mrb[128].mxu1  ;;  %8254 = vmatpush3.bf16.msra.mxu0 %v8600_v45  ;;  %v8603_v48 = vld [vmem:[%s10915_s21 + $0x18] sm:$0xff]   ;;  %v8605_v17 = vld [vmem:[%s10915_s21 + $0x20] sm:$0xff]  }
 0xa6d   :  { %v8213_v34 = vpop.f32.mrb[129].mxu1  ;;  %v5538_v59 = vmul.f32 %v7861_v31, %v5527_v35  ;;  %8255 = vmatprep.subr.bf16.mxu0 %v8661_v52  ;;  %v8606_v35 = vld [vmem:[%s10915_s21 + $0x54] sm:$0xff]   ;;  %v8611_v31 = vld [vmem:[%s10915_s21 + $0x68] sm:$0xff]  }
 0xa6e   :  { %v5530_v55 = vpop.f32.mrb[130].mxu1  ;;  %8238 = vmatpush3.bf16.msra.mxu1 %v8601_v9  ;;  %v8607_v34 = vld [vmem:[%s10915_s21 + $0x28] sm:$0xff]  }
 0xa6f   :  { %v8214_v40 = vpop.f32.mrb[131].mxu1  ;;  %8239 = vmatprep.subr.bf16.mxu1 %v8661_v52  ;;  %v8610_v55 = vld [vmem:[%s10915_s21 + $0x64] ss:$0 sps:$4 sm:$0x11]  }
 0xa70   :  { %v5362_v28 = vpop.f32.mrb[132].mxu0  ;;  %8256 = vmatpush3.bf16.msra.mxu0 %v8602_v19  ;;  %v5793_v40 = vsel %vm5791_vm2, %v8609_v39, 0 }
 0xa71   :  { %v5373_v57 = vmul.f32 %v7852_v26, %v5362_v28  ;;  %v8195_v49 = vpop.f32.mrb[133].mxu0  ;;  %8257 = vmatprep.subr.bf16.mxu0 %v8661_v52  ;;  %v8608_v26 = vld [vmem:[%s10915_s21 + $0x5c] sm:$0xff]   ;;  %v5889_v28 = vsel %vm5791_vm2, %v8610_v55, 0 }
 0xa72   :  { %v5365_v8 = vpop.f32.mrb[134].mxu0  ;;  %8240 = vmatpush3.bf16.msra.mxu1 %v8603_v48  ;;  %v6136_v48 = vld [vmem:[%s10917_s10] sm:$0x3] }
 0xa73   :  { %v5374_v20 = vadd.f32 %v5373_v57, %v5319_v62  ;;  %v8196_v12 = vpop.f32.mrb[135].mxu0  ;;  %v8604_v62 = vld [vmem:[%s10915_s21 + $0x4c] sm:$0xff]   ;;  %8241 = vmatprep.subr.bf16.mxu1 %v8661_v52 }
 0xa74   :  { %v5637_v27 = vpop.f32.mrb[132].mxu1  ;;  %8258 = vmatpush3.bf16.msra.mxu0 %v8604_v62  ;;  %v7944_v62 = vld [vmem:[%s10917_s10 + $0x2] sm:$0x3] }
 0xa75   :  { %v5429_v58 = vadd.f32 %v5428_v21, %v5374_v20  ;;  %v8225_v54 = vpop.f32.mrb[133].mxu1  ;;  %v5648_v36 = vmul.f32 %v7867_v10, %v5637_v27  ;;  %8259 = vmatprep.subr.bf16.mxu0 %v8661_v52  ;;  %v8622_v10 = vld [vmem:[%s10915_s21 + $0xc4] sm:$0xff]  }
 0xa76   :  { %v5640_v13 = vpop.f32.mrb[134].mxu1  ;;  %8242 = vmatpush3.bf16.msra.mxu1 %v8605_v17 }
 0xa77   :  { %v8226_v38 = vpop.f32.mrb[135].mxu1  ;;  %8243 = vmatprep.subr.bf16.mxu1 %v8661_v52  ;;  %v8612_v13 = vld [vmem:[%s10915_s21 + $0x9c] sm:$0xff]  }
 0xa78   :  { %v5472_v23 = vpop.f32.mrb[136].mxu0  ;;  %8260 = vmatpush3.bf16.msra.mxu0 %v8606_v35 }
 0xa79   :  { %v5483_v29 = vmul.f32 %v7858_v56, %v5472_v23  ;;  %v8207_v46 = vpop.f32.mrb[137].mxu0  ;;  %8261 = vmatprep.subr.bf16.mxu0 %v8661_v52  ;;  %v8613_v23 = vld [vmem:[%s10915_s21 + $0x70] sm:$0xff]  }
 0xa7a   :  { %v5475_v22 = vpop.f32.mrb[138].mxu0  ;;  %8244 = vmatpush3.bf16.msra.mxu1 %v8607_v34  ;;  %v8615_v46 = vld [vmem:[%s10915_s21 + $0x78] sm:$0xff]  }
 0xa7b   :  { %v5484_v18 = vadd.f32 %v5483_v29, %v5429_v58  ;;  %v8208_v14 = vpop.f32.mrb[139].mxu0  ;;  %8245 = vmatprep.subr.bf16.mxu1 %v8661_v52  ;;  %v8614_v29 = vld [vmem:[%s10915_s21 + $0xa4] sm:$0xff]  }
 0xa7c   :  { %8262 = vmatpush3.bf16.msra.mxu0 %v8608_v26  ;;  %v8617_v22 = vld [vmem:[%s10915_s21 + $0x80] sm:$0xff]   ;;  %v8619_v14 = vld [vmem:[%s10915_s21 + $0x88] sm:$0xff]  }
 0xa7d   :  { %v5539_v2 = vadd.f32 %v5538_v59, %v5484_v18  ;;  %8263 = vmatprep.subr.bf16.mxu0 %v8661_v52  ;;  %v8616_v59 = vld [vmem:[%s10915_s21 + $0xac] sm:$0xff]   ;;  %v8618_v18 = vld [vmem:[%s10915_s21 + $0xb4] sm:$0xff]  }
 0xa7e   :  { %8246 = vmatpush3.bf16.msra.mxu1 %v5793_v40  ;;  %v7947_v40 = vld [vmem:[%s10917_s10 + $0x4] sm:$0x3] }
 0xa7f   :  { %8269 = vmatprep.subr.bf16.mxu1 %v8661_v52 }
 0xa80   :  { %v5582_v37 = vpop.f32.mrb[140].mxu0  ;;  %8264 = vmatpush3.bf16.msra.mxu0 %v5889_v28  ;;  %v7950_v28 = vld [vmem:[%s10917_s10 + $0x6] sm:$0x3] }
 0xa81   :  { %v5593_v25 = vmul.f32 %v7864_v32, %v5582_v37  ;;  %v8219_v42 = vpop.f32.mrb[141].mxu0  ;;  %8287 = vmatprep.subr.bf16.mxu0 %v8661_v52  ;;  %v8621_v32 = vld [vmem:[%s10915_s21 + $0x90] sm:$0xff]   ;;  %v8623_v37 = vld [vmem:[%s10915_s21 + $0x98] ss:$0 sps:$4 sm:$0x11]  }
 0xa82   :  { %v5585_v53 = vpop.f32.mrb[142].mxu0  ;;  %v5985_v42 = vsel %vm5791_vm2, %v8623_v37, 0 }
 0xa83   :  { %v5594_v24 = vadd.f32 %v5593_v25, %v5539_v2  ;;  %v8220_v30 = vpop.f32.mrb[143].mxu0  ;;  %v8620_v2 = vld [vmem:[%s10915_s21 + $0xbc] sm:$0xff]   ;;  %v8624_v25 = vld [vmem:[%s10915_s21 + $0xcc] ss:$0 sps:$4 sm:$0x11]   ;;  %s8669_s21 = smov 115  }
 0xa85   :  { %v5649_v15 = vadd.f32 %v5648_v36, %v5594_v24  ;;  %v6081_v36 = vsel %vm5791_vm2, %v8624_v25, 0 }
 0xa88   :  { %v5692_v63 = vpop.f32.mrb[144].mxu0 }
 0xa89   :  { %v5703_v50 = vmul.f32 %v7870_v6, %v5692_v63  ;;  %v8231_v33 = vpop.f32.mrb[145].mxu0 }
 0xa8a   :  { %v5695_v3 = vpop.f32.mrb[146].mxu0 }
 0xa8b   :  { %v5704_v11 = vadd.f32 %v5703_v50, %v5649_v15  ;;  %v8232_v5 = vpop.f32.mrb[147].mxu0 }
 0xa8d   :  { %v5706_v43 = vsel %vm1702_vm12, %v5704_v11, 0.0 }
 0xa8e   :  { %5707 = vadd.xlane.f32.xlu0 %v5706_v43 }
 0xaa4   :  { %5723 = vperm.xlu0 %8457, %v5720_v61  }
 0xb1b   :  { %v5708_v44 = vpop.xlane.xlu0 %5707 }
 0xb1c   :  { %v5710_v47 = vmul.f32 0.010204081, %v5708_v44 }
 0xb1e   :  { %v5711_v0 = vsub.f32 %v5704_v11, %v5710_v47 }
 0xb20   :  { %v5712_v60 = vmul.f32 %v5711_v0, %v5711_v0 }
 0xb22   :  { %v5713_v41 = vsel %vm1702_vm12, %v5712_v60, 0.0 }
 0xb23   :  { %5714 = vadd.xlane.f32.xlu1 %v5713_v41  ;;  %v5724_v12 = vpop.permute.xlu0 %5723 }
 0xb34   :  { %5730 = vperm.xlu1 %8456, %v5727_v16  }
 0xbb0   :  { %v5715_v57 = vpop.xlane.xlu1 %5714 }
 0xbb1   :  { %v5716_v49 = vmul.f32 0.010204081, %v5715_v57 }
 0xbb3   :  { %v5717_v21 = vadd.f32 1e-05, %v5716_v49 }
 0xbb4   :  { %v5731_v58 = vpop.permute.xlu1 %5730 }
 0xbb5   :  { %8637 = vrsqrt.f32 %v5717_v21 }
 0xbbf   :  { %v8638_v8 = vpop.eup %8637 }
 0xbc0   :  { %v5719_v20 = vmul.f32 %v8638_v8, %v5711_v0 }
 0xbc2   :  { %v5726_v27 = vmul.f32 %v5724_v12, %v5719_v20  ;;  %v7953_v20 = vld [vmem:[%s10917_s10 + $0x8] sm:$0x3]  ;;  %v7956_v12 = vld [vmem:[%s10917_s10 + $0xa] sm:$0x3] }
 0xbc4   :  { %v5733_v54 = vadd.f32 %v5731_v58, %v5726_v27 }
 0xbc6   :  { %v5734_v56 = vmax.f32 %v5733_v54, 0.0 }
 0xbc8   :  { %v5735_v38 = vpack.c.bf16 %v5734_v56, %v5734_v56  ;;  %v7959_v56 = vld [vmem:[%s10917_s10 + $0xc] sm:$0x3] }
 0xbca   :  { %8248 = vmatmul.mubr.msk.bf16.vlgmr.msra.gmra.mrb[136].mxu1 %vm1702_vm12, %v5735_v38  ;;  %8266 = vmatmul.mubr.msk.bf16.vlgmr.msra.gmra.mrb[148].mxu0 %vm1702_vm12, %v5735_v38 }
 0xbcb   :  { %8270 = vmatpush3.bf16.msra.mxu1 %v8611_v31  ;;  %8288 = vmatpush3.bf16.msra.mxu0 %v8612_v13  ;;  %v7962_v31 = vld [vmem:[%s10917_s10 + $0xe] sm:$0x3] }
 0xbcc   :  { %8271 = vmatprep.subr.bf16.mxu1 %v8661_v52  ;;  %8289 = vmatprep.subr.bf16.mxu0 %v8661_v52 }
 0xbcd   :  { %8283 = vmatprep.mubr.msk.bf16.mxu1 %vm8662_vm4, %v8661_v52  ;;  %8301 = vmatprep.mubr.msk.bf16.mxu0 %vm8662_vm4, %v8661_v52 }
 0xbcf   :  { %8272 = vmatpush3.bf16.msra.mxu1 %v8613_v23  ;;  %8290 = vmatpush3.bf16.msra.mxu0 %v8614_v29  ;;  %v10719_v23 = vld [vmem:[%s10918_s19] ss:$0 sm:$0xff]  ;;  %v10724_v29 = vld [vmem:[%s10918_s19 + $0x1] ss:$0 sm:$0xff] }
 0xbd0   :  { %8273 = vmatprep.subr.bf16.mxu1 %v8661_v52  ;;  %8291 = vmatprep.subr.bf16.mxu0 %v8661_v52 }
 0xbd3   :  { %8274 = vmatpush3.bf16.msra.mxu1 %v8615_v46  ;;  %8292 = vmatpush3.bf16.msra.mxu0 %v8616_v59 }
 0xbd4   :  { %8275 = vmatprep.subr.bf16.mxu1 %v8661_v52  ;;  %8293 = vmatprep.subr.bf16.mxu0 %v8661_v52 }
 0xbd7   :  { %8276 = vmatpush3.bf16.msra.mxu1 %v8617_v22  ;;  %8294 = vmatpush3.bf16.msra.mxu0 %v8618_v18 }
 0xbd8   :  { %8277 = vmatprep.subr.bf16.mxu1 %v8661_v52  ;;  %8295 = vmatprep.subr.bf16.mxu0 %v8661_v52 }
 0xbdb   :  { %8278 = vmatpush3.bf16.msra.mxu1 %v8619_v14  ;;  %8296 = vmatpush3.bf16.msra.mxu0 %v8620_v2 }
 0xbdc   :  { %8279 = vmatprep.subr.bf16.mxu1 %v8661_v52  ;;  %8297 = vmatprep.subr.bf16.mxu0 %v8661_v52 }
 0xbdf   :  { %8280 = vmatpush3.bf16.msra.mxu1 %v8621_v32  ;;  %8298 = vmatpush3.bf16.msra.mxu0 %v8622_v10 }
 0xbe0   :  { %8281 = vmatprep.subr.bf16.mxu1 %v8661_v52  ;;  %8299 = vmatprep.subr.bf16.mxu0 %v8661_v52 }
 0xbe3   :  { %8282 = vmatpush3.bf16.msra.mxu1 %v5985_v42  ;;  %8300 = vmatpush3.bf16.msra.mxu0 %v6081_v36  ;;  %v10731_v36 = vld [vmem:[%s10918_s19 + $0x2] ss:$0 sm:$0xff] }
 0xbe4   :  { %8305 = vmatprep.subr.bf16.mxu1 %v8661_v52  ;;  %8311 = vmatprep.subr.bf16.mxu0 %v8661_v52 }
 0xbe6   :  { %8284 = vmatmul.mubr.msk.bf16.vlgmr.msra.gmra.mrb[140].mxu1 %vm1702_vm12, %v5735_v38  ;;  %8302 = vmatmul.mubr.msk.bf16.vlgmr.msra.gmra.mrb[152].mxu0 %vm1702_vm12, %v5735_v38  ;;  %v7965_v38 = vld [vmem:[%s10917_s10 + $0x10] sm:$0x3]  ;;  %vm6697_vm12 = vcmask 1041408  }
 0xbe7   :  { %8307 = vmatprep.mubr.msk.bf16.mxu1 %vm8662_vm4, %v8661_v52  ;;  %8313 = vmatprep.mubr.msk.bf16.mxu0 %vm8662_vm4, %v8661_v52 }
 0xc9d   :  { %v5829_v53 = vpop.f32.mrb[136].mxu1  ;;  %v5925_v24 = vpop.f32.mrb[148].mxu0 }
 0xc9e   :  { %v6123_v30 = vmax.f32 %v5829_v53, %v5925_v24  ;;  %v8249_v15 = vpop.f32.mrb[137].mxu1  ;;  %v8267_v6 = vpop.f32.mrb[149].mxu0  ;;  %v10736_v53 = vld [vmem:[%s10918_s19 + $0x3] ss:$0 sm:$0xff] }
 0xc9f   :  { %v5832_v63 = vpop.f32.mrb[138].mxu1  ;;  %v5928_v50 = vpop.f32.mrb[150].mxu0 }
 0xca0   :  { %v8250_v33 = vpop.f32.mrb[139].mxu1  ;;  %v8268_v3 = vpop.f32.mrb[151].mxu0 }
 0xcb9   :  { %v6021_v11 = vpop.f32.mrb[140].mxu1  ;;  %v6117_v5 = vpop.f32.mrb[152].mxu0 }
 0xcba   :  { %v6124_v43 = vmax.f32 %v6021_v11, %v6117_v5  ;;  %v8285_v61 = vpop.f32.mrb[141].mxu1  ;;  %v8303_v1 = vpop.f32.mrb[153].mxu0 }
 0xcbb   :  { %v6024_v7 = vpop.f32.mrb[142].mxu1  ;;  %v6120_v44 = vpop.f32.mrb[154].mxu0  ;;  %v10743_v1 = vld [vmem:[%s10918_s19 + $0x4] ss:$0 sm:$0xff] }
 0xcbc   :  { %v6125_v47 = vmax.f32 %v6123_v30, %v6124_v43  ;;  %v8286_v0 = vpop.f32.mrb[143].mxu1  ;;  %v8304_v60 = vpop.f32.mrb[155].mxu0  ;;  %v10748_v7 = vld [vmem:[%s10918_s19 + $0x5] ss:$0 sm:$0xff] }
 0xcbe   :  { %v6128_v41 = vpack.c.bf16 %v6125_v47, %v6125_v47 }
 0xcc0   :  { %6130 = vrot.lane.b32.xlu0 %v6128_v41, %s10977_s20 }
 0xd32   :  { %v6131_v16 = vpop.permute.xlu0 %6130 }
 0xd33   :  { %6134 = vst.msk [vmem:[#allocation2] sm:$0xf] %vm6133_vm8, %v6131_v16 }
 0xd3a   :  { %v6135_v4 = vld [vmem:[#allocation2] sm:$0xf] }
 0xd3b   :  { %6680 = vst.msk [vmem:[#allocation2] sm:$0x3] %vm6679_vm9, %v9484_v51  ;;  %6195 = vrot.lane.b32.xlu0 %v6135_v4, %s8669_s21  ;;  %6138 = vrot.lane.b32.xlu1 %v6135_v4, %s8670_s5 }
 0xd3f   :  { %6309 = vrot.lane.b32.xlu0 %v6135_v4, %s10968_s26  ;;  %6252 = vrot.lane.b32.xlu1 %v6135_v4, %s8671_s6 }
 0xd43   :  { %6423 = vrot.lane.b32.xlu0 %v6135_v4, %s10970_s27  ;;  %6366 = vrot.lane.b32.xlu1 %v6135_v4, %s10969_s17 }
 0xd47   :  { %6537 = vrot.lane.b32.xlu0 %v6135_v4, %s8672_s9  ;;  %6480 = vrot.lane.b32.xlu1 %v6135_v4, %s8673_s7 }
 0xd4b   :  { %6594 = vrot.lane.b32.xlu1 %v6135_v4, %s8674_s2 }
 0xdad   :  { %v6196_v51 = vpop.permute.xlu0 %6195  ;;  %v6139_v45 = vpop.permute.xlu1 %6138 }
 0xdae   :  { %v6201_v9 = vsel %vm2116_vm15, %v6196_v51, 0  ;;  %v6144_v19 = vsel %vm2116_vm15, %v6139_v45, 0 }
 0xdaf   :  { %8306 = vmatpush3.bf16.msra.mxu1 %v6144_v19  ;;  %8312 = vmatpush3.bf16.msra.mxu0 %v6201_v9 }
 0xdb0   :  { %8317 = vmatprep.subr.bf16.mxu1 %v8661_v52  ;;  %8323 = vmatprep.subr.bf16.mxu0 %v8661_v52 }
 0xdb1   :  { %v6310_v17 = vpop.permute.xlu0 %6309  ;;  %v6253_v35 = vpop.permute.xlu1 %6252 }
 0xdb2   :  { %v6315_v34 = vsel %vm2116_vm15, %v6310_v17, 0  ;;  %v6258_v26 = vsel %vm2116_vm15, %v6253_v35, 0  ;;  %8308 = vmatmul.mubr.msk.bf16.vlgmr.msra.gmra.mrb[144].mxu1 %vm2099_vm14, %v6136_v48  ;;  %8314 = vmatmul.mubr.msk.bf16.vlgmr.msra.gmra.mrb[156].mxu0 %vm2099_vm14, %v7944_v62  ;;  %v10755_v62 = vld [vmem:[%s10918_s19 + $0x6] ss:$0 sm:$0xff]  ;;  %v10760_v17 = vld [vmem:[%s10918_s19 + $0x7] ss:$0 sm:$0xff] }
 0xdb3   :  { %8318 = vmatpush3.bf16.msra.mxu1 %v6258_v26  ;;  %8324 = vmatpush3.bf16.msra.mxu0 %v6315_v34 }
 0xdb4   :  { %8325 = vmatprep.mubr.msk.bf16.mxu0 %vm8662_vm4, %v8661_v52  ;;  %8335 = vmatprep.subr.bf16.mxu0 %v8661_v52 }
 0xdb5   :  { %8319 = vmatprep.mubr.msk.bf16.mxu1 %vm8662_vm4, %v8661_v52  ;;  %8329 = vmatprep.subr.bf16.mxu1 %v8661_v52  ;;  %v6424_v39 = vpop.permute.xlu0 %6423  ;;  %v6367_v55 = vpop.permute.xlu1 %6366 }
 0xdb6   :  { %v6429_v57 = vsel %vm2116_vm15, %v6424_v39, 0  ;;  %v6372_v49 = vsel %vm2116_vm15, %v6367_v55, 0 }
 0xdb9   :  { %v6538_v21 = vpop.permute.xlu0 %6537  ;;  %v6481_v8 = vpop.permute.xlu1 %6480 }
 0xdba   :  { %8320 = vmatmul.mubr.msk.bf16.vlgmr.msra.gmra.mrb[148].mxu1 %vm2099_vm14, %v7947_v40  ;;  %8326 = vmatmul.mubr.msk.bf16.vlgmr.msra.gmra.mrb[160].mxu0 %vm2099_vm14, %v7950_v28  ;;  %v6543_v27 = vsel %vm2116_vm15, %v6538_v21, 0  ;;  %v6486_v58 = vsel %vm2116_vm15, %v6481_v8, 0 }
 0xdbb   :  { %8330 = vmatpush3.bf16.msra.mxu1 %v6372_v49  ;;  %8336 = vmatpush3.bf16.msra.mxu0 %v6429_v57 }
 0xdbc   :  { %8331 = vmatprep.mubr.msk.bf16.mxu1 %vm8662_vm4, %v8661_v52  ;;  %8337 = vmatprep.mubr.msk.bf16.mxu0 %vm8662_vm4, %v8661_v52 }
 0xdbd   :  { %8341 = vmatprep.subr.bf16.mxu1 %v8661_v52  ;;  %8347 = vmatprep.subr.bf16.mxu0 %v8661_v52  ;;  %v6595_v54 = vpop.permute.xlu1 %6594 }
 0xdbe   :  { %v6600_v13 = vsel %vm2116_vm15, %v6595_v54, 0  ;;  %vm7215_vm15 = vcmask 146432  }
 0xdc2   :  { %8332 = vmatmul.mubr.msk.bf16.vlgmr.msra.gmra.mrb[152].mxu1 %vm2099_vm14, %v7953_v20  ;;  %8338 = vmatmul.mubr.msk.bf16.vlgmr.msra.gmra.mrb[164].mxu0 %vm2099_vm14, %v7956_v12  ;;  %v10767_v12 = vld [vmem:[%s10918_s19 + $0x8] ss:$0 sm:$0xff] }
 0xdc3   :  { %8342 = vmatpush3.bf16.msra.mxu1 %v6486_v58  ;;  %8348 = vmatpush3.bf16.msra.mxu0 %v6543_v27 }
 0xdc4   :  { %8343 = vmatprep.mubr.msk.bf16.mxu1 %vm8662_vm4, %v8661_v52  ;;  %8353 = vmatprep.subr.bf16.mxu1 %v8661_v52 }
 0xdc5   :  { %8349 = vmatprep.mubr.msk.bf16.mxu0 %vm8662_vm4, %v8661_v52  ;;  %8359 = vmatprep.subr.bf16.mxu0 %v8661_v52 }
 0xdca   :  { %8344 = vmatmul.mubr.msk.bf16.vlgmr.msra.gmra.mrb[156].mxu1 %vm2099_vm14, %v7959_v56  ;;  %8350 = vmatmul.mubr.msk.bf16.vlgmr.msra.gmra.mrb[168].mxu0 %vm2099_vm14, %v7962_v31 }
 0xdcb   :  { %8354 = vmatpush3.bf16.msra.mxu1 %v6600_v13  ;;  %8355 = vmatprep.mubr.msk.bf16.mxu1 %vm8662_vm4, %v8661_v52 }
 0xdcc   :  { %8365 = vmatprep.subr.bf16.mxu1 %v8661_v52  ;;  %8361 = vmatprep.mubr.msk.bf16.mxu0 %vm8662_vm4, %v8661_v52 }
 0xdd2   :  { %8356 = vmatmul.mubr.msk.bf16.vlgmr.msra.gmra.mrb[160].mxu1 %vm2099_vm14, %v7965_v38 }
 0xdd3   :  { %8367 = vmatprep.mubr.msk.bf16.mxu1 %vm8662_vm4, %v8661_v52 }
 0xe85   :  { %v6180_v46 = vpop.f32.mrb[144].mxu1  ;;  %v6237_v59 = vpop.f32.mrb[156].mxu0 }
 0xe86   :  { %v6191_v22 = vmul.f32 %v10719_v23, %v6180_v46  ;;  %v6248_v18 = vmul.f32 %v10724_v29, %v6237_v59  ;;  %v8309_v14 = vpop.f32.mrb[145].mxu1  ;;  %v8315_v2 = vpop.f32.mrb[157].mxu0  ;;  %v6664_v46 = vld [vmem:[%s10919_s11] sm:$0xf] }
 0xe87   :  { %v6183_v32 = vpop.f32.mrb[146].mxu1  ;;  %v6240_v10 = vpop.f32.mrb[158].mxu0 }
 0xe88   :  { %v6249_v37 = vadd.f32 %v6248_v18, %v6191_v22  ;;  %v8310_v25 = vpop.f32.mrb[147].mxu1  ;;  %v8316_v42 = vpop.f32.mrb[159].mxu0  ;;  %v6671_v32 = vld [vmem:[%s10920_s12] sm:$0xf] }
 0xe8d   :  { %v6294_v24 = vpop.f32.mrb[148].mxu1  ;;  %v6351_v30 = vpop.f32.mrb[160].mxu0 }
 0xe8e   :  { %v6305_v15 = vmul.f32 %v10731_v36, %v6294_v24  ;;  %v8321_v6 = vpop.f32.mrb[149].mxu1  ;;  %v6362_v63 = vmul.f32 %v10736_v53, %v6351_v30  ;;  %v8327_v50 = vpop.f32.mrb[161].mxu0 }
 0xe8f   :  { %v6297_v33 = vpop.f32.mrb[150].mxu1  ;;  %v6354_v3 = vpop.f32.mrb[162].mxu0 }
 0xe90   :  { %v6306_v11 = vadd.f32 %v6305_v15, %v6249_v37  ;;  %v8322_v5 = vpop.f32.mrb[151].mxu1  ;;  %v8328_v43 = vpop.f32.mrb[163].mxu0 }
 0xe91   :  { %v7204_v5 = vld [vmem:[%s10921_s14] sm:$0xff]  ;;  %v7295_v43 = vld [vmem:[%s10922_s16 + $0x8] sm:$0x3] }
 0xe92   :  { %v6363_v61 = vadd.f32 %v6362_v63, %v6306_v11 }
 0xe95   :  { %v6408_v44 = vpop.f32.mrb[152].mxu1  ;;  %v6465_v47 = vpop.f32.mrb[164].mxu0 }
 0xe96   :  { %v6419_v0 = vmul.f32 %v10743_v1, %v6408_v44  ;;  %v8333_v60 = vpop.f32.mrb[153].mxu1  ;;  %v6476_v41 = vmul.f32 %v10748_v7, %v6465_v47  ;;  %v8339_v16 = vpop.f32.mrb[165].mxu0 }
 0xe97   :  { %v6411_v4 = vpop.f32.mrb[154].mxu1  ;;  %v6468_v51 = vpop.f32.mrb[166].mxu0  ;;  %v7970_v16 = vld [vmem:[%s10923_s13 + $0x4] sm:$0xf] }
 0xe98   :  { %v6420_v45 = vadd.f32 %v6419_v0, %v6363_v61  ;;  %v8334_v9 = vpop.f32.mrb[155].mxu1  ;;  %v8340_v19 = vpop.f32.mrb[167].mxu0  ;;  %v7294_v61 = vld [vmem:[%s10922_s16] sm:$0xff] }
 0xe9a   :  { %v6477_v48 = vadd.f32 %v6476_v41, %v6420_v45  ;;  %v6689_v41 = vld [vmem:[%s10923_s13] sm:$0xf] }
 0xe9d   :  { %v6522_v35 = vpop.f32.mrb[156].mxu1  ;;  %v6579_v34 = vpop.f32.mrb[168].mxu0 }
 0xe9e   :  { %v6533_v26 = vmul.f32 %v10755_v62, %v6522_v35  ;;  %v8345_v39 = vpop.f32.mrb[157].mxu1  ;;  %v6590_v55 = vmul.f32 %v10760_v17, %v6579_v34  ;;  %v8351_v40 = vpop.f32.mrb[169].mxu0  ;;  %v7973_v35 = vld [vmem:[%s10923_s13 + $0x8] sm:$0xf]  ;;  %v7976_v34 = vld [vmem:[%s10923_s13 + $0xc] sm:$0xf] }
 0xe9f   :  { %v6525_v28 = vpop.f32.mrb[158].mxu1  ;;  %v6582_v57 = vpop.f32.mrb[170].mxu0 }
 0xea0   :  { %v6534_v49 = vadd.f32 %v6533_v26, %v6477_v48  ;;  %v8346_v21 = vpop.f32.mrb[159].mxu1  ;;  %v8352_v8 = vpop.f32.mrb[171].mxu0  ;;  %v7979_v28 = vld [vmem:[%s10923_s13 + $0x10] sm:$0xf]  ;;  %v7982_v57 = vld [vmem:[%s10923_s13 + $0x14] sm:$0xf] }
 0xea2   :  { %v6591_v20 = vadd.f32 %v6590_v55, %v6534_v49 }
 0xea5   :  { %v6636_v27 = vpop.f32.mrb[160].mxu1 }
 0xea6   :  { %v6647_v58 = vmul.f32 %v10767_v12, %v6636_v27  ;;  %v8357_v54 = vpop.f32.mrb[161].mxu1  ;;  %v7988_v27 = vld [vmem:[%s10923_s13 + $0x1c] sm:$0xf] }
 0xea7   :  { %v6639_v56 = vpop.f32.mrb[162].mxu1  ;;  %v7991_v54 = vld [vmem:[%s10923_s13 + $0x20] sm:$0xf] }
 0xea8   :  { %v6648_v31 = vadd.f32 %v6647_v58, %v6591_v20  ;;  %v8358_v13 = vpop.f32.mrb[163].mxu1  ;;  %v7985_v20 = vld [vmem:[%s10923_s13 + $0x18] sm:$0xf]  ;;  %v7212_v56 = vld [vmem:[%s10924_s22] sm:$0xff] }
 0xeaa   :  { %v6650_v38 = vsel %vm6649_vm10, %v6648_v31, 0.0 }
 0xeab   :  { %6651 = vadd.xlane.f32.xlu0 %v6650_v38  ;;  %v8675_v38 = vmov 0.0|0.0  }
 0xec1   :  { %6667 = vperm.xlu0 %8457, %v6664_v46   ;;  %v7214_v46 = vld [vmem:[%s10924_s22 + $0x10] sm:$0x3] }
 0xf38   :  { %v6652_v59 = vpop.xlane.xlu0 %6651 }
 0xf39   :  { %v6654_v22 = vmul.f32 0.055555556, %v6652_v59 }
 0xf3b   :  { %v6655_v18 = vsub.f32 %v6648_v31, %v6654_v22  ;;  %v7213_v31 = vld [vmem:[%s10924_s22 + $0x8] sm:$0xff] }
 0xf3c   :  { %v8428_v13 = vpack.c.bf16 %v7213_v31, %v7212_v56 }
 0xf3d   :  { %v6656_v14 = vmul.f32 %v6655_v18, %v6655_v18 }
 0xf3f   :  { %v6657_v2 = vsel %vm6649_vm10, %v6656_v14, 0.0 }
 0xf40   :  { %6658 = vadd.xlane.f32.xlu1 %v6657_v2  ;;  %v6668_v30 = vpop.permute.xlu0 %6667 }
 0xf51   :  { %6674 = vperm.xlu1 %8456, %v6671_v32  }
 0xfcd   :  { %v6659_v10 = vpop.xlane.xlu1 %6658 }
 0xfce   :  { %v6660_v37 = vmul.f32 0.055555556, %v6659_v10 }
 0xfd0   :  { %v6661_v25 = vadd.f32 1e-05, %v6660_v37 }
 0xfd1   :  { %v6675_v6 = vpop.permute.xlu1 %6674 }
 0xfd2   :  { %8639 = vrsqrt.f32 %v6661_v25 }
 0xfdc   :  { %v8640_v42 = vpop.eup %8639 }
 0xfdd   :  { %v6663_v24 = vmul.f32 %v8640_v42, %v6655_v18 }
 0xfdf   :  { %v6670_v15 = vmul.f32 %v6668_v30, %v6663_v24 }
 0xfe1   :  { %v6677_v63 = vadd.f32 %v6675_v6, %v6670_v15 }
 0xfe3   :  { %v6678_v50 = vmax.f32 %v6677_v63, 0.0 }
 0xfe5   :  { %v6681_v33 = vpack.c.bf16 %v6678_v50, %v6678_v50 }
 0xfe7   :  { %6683 = vrot.lane.b32.xlu0 %v6681_v33, %s10977_s20 }
0x1059   :  { %v6684_v3 = vpop.permute.xlu0 %6683 }
0x105a   :  { %6687 = vst.msk [vmem:[#allocation2] sm:$0x3] %vm6686_vm11, %v6684_v3 }
0x1061   :  { %v6688_v11 = vld [vmem:[#allocation2] sm:$0x3] }
0x1062   :  { %6750 = vrot.lane.b32.xlu0 %v6688_v11, %s8669_s21  ;;  %6691 = vrot.lane.b32.xlu1 %v6688_v11, %s8670_s5 }
0x1066   :  { %6864 = vrot.lane.b32.xlu0 %v6688_v11, %s10968_s26  ;;  %6807 = vrot.lane.b32.xlu1 %v6688_v11, %s8671_s6 }
0x106a   :  { %6978 = vrot.lane.b32.xlu0 %v6688_v11, %s10970_s27  ;;  %6921 = vrot.lane.b32.xlu1 %v6688_v11, %s10969_s17 }
0x106e   :  { %7092 = vrot.lane.b32.xlu0 %v6688_v11, %s8672_s9  ;;  %7035 = vrot.lane.b32.xlu1 %v6688_v11, %s8673_s7 }
0x1072   :  { %7207 = vperm.xlu0 %8457, %v7204_v5   ;;  %7149 = vrot.lane.b32.xlu1 %v6688_v11, %s8674_s2 }
0x1076   :  { %7303 = vperm.xlu0 %8457, %v7295_v43   ;;  %7298 = vperm.xlu1 %8456, %v7294_v61  }
0x10d4   :  { %v6751_v44 = vpop.permute.xlu0 %6750  ;;  %v6692_v47 = vpop.permute.xlu1 %6691 }
0x10d5   :  { %v6756_v0 = vsel %vm6697_vm12, %v6751_v44, 0  ;;  %v6699_v60 = vsel %vm6697_vm12, %v6692_v47, 0 }
0x10d6   :  { %8360 = vmatpush3.bf16.msra.mxu0 %v6699_v60  ;;  %8366 = vmatpush3.bf16.msra.mxu1 %v6756_v0 }
0x10d7   :  { %8371 = vmatprep.subr.bf16.mxu0 %v8661_v52  ;;  %8377 = vmatprep.subr.bf16.mxu1 %v8661_v52 }
0x10d8   :  { %v6865_v4 = vpop.permute.xlu0 %6864  ;;  %v6808_v51 = vpop.permute.xlu1 %6807 }
0x10d9   :  { %v6870_v45 = vsel %vm6697_vm12, %v6865_v4, 0  ;;  %v6813_v9 = vsel %vm6697_vm12, %v6808_v51, 0  ;;  %8362 = vmatmul.mubr.msk.bf16.vlgmr.msra.gmra.mrb[172].mxu0 %vm6693_vm13, %v6689_v41  ;;  %8368 = vmatmul.mubr.msk.bf16.vlgmr.msra.gmra.mrb[164].mxu1 %vm6693_vm13, %v7970_v16 }
0x10da   :  { %8372 = vmatpush3.bf16.msra.mxu0 %v6813_v9  ;;  %8378 = vmatpush3.bf16.msra.mxu1 %v6870_v45 }
0x10db   :  { %8379 = vmatprep.mubr.msk.bf16.mxu1 %vm8662_vm4, %v8661_v52  ;;  %8389 = vmatprep.subr.bf16.mxu1 %v8661_v52 }
0x10dc   :  { %8373 = vmatprep.mubr.msk.bf16.mxu0 %vm8662_vm4, %v8661_v52  ;;  %8383 = vmatprep.subr.bf16.mxu0 %v8661_v52  ;;  %v6979_v19 = vpop.permute.xlu0 %6978  ;;  %v6922_v48 = vpop.permute.xlu1 %6921 }
0x10dd   :  { %v6984_v26 = vsel %vm6697_vm12, %v6979_v19, 0  ;;  %v6927_v39 = vsel %vm6697_vm12, %v6922_v48, 0 }
0x10e0   :  { %v7093_v55 = vpop.permute.xlu0 %7092  ;;  %v7036_v40 = vpop.permute.xlu1 %7035 }
0x10e1   :  { %8374 = vmatmul.mubr.msk.bf16.vlgmr.msra.gmra.mrb[176].mxu0 %vm6693_vm13, %v7973_v35  ;;  %8380 = vmatmul.mubr.msk.bf16.vlgmr.msra.gmra.mrb[168].mxu1 %vm6693_vm13, %v7976_v34  ;;  %v7098_v49 = vsel %vm6697_vm12, %v7093_v55, 0  ;;  %v7041_v21 = vsel %vm6697_vm12, %v7036_v40, 0 }
0x10e2   :  { %8384 = vmatpush3.bf16.msra.mxu0 %v6927_v39  ;;  %8390 = vmatpush3.bf16.msra.mxu1 %v6984_v26 }
0x10e3   :  { %8385 = vmatprep.mubr.msk.bf16.mxu0 %vm8662_vm4, %v8661_v52  ;;  %8391 = vmatprep.mubr.msk.bf16.mxu1 %vm8662_vm4, %v8661_v52 }
0x10e4   :  { %8395 = vmatprep.subr.bf16.mxu0 %v8661_v52  ;;  %8401 = vmatprep.subr.bf16.mxu1 %v8661_v52  ;;  %v7150_v8 = vpop.permute.xlu1 %7149 }
0x10e5   :  { %v7155_v58 = vsel %vm6697_vm12, %v7150_v8, 0 }
0x10e9   :  { %8386 = vmatmul.mubr.msk.bf16.vlgmr.msra.gmra.mrb[180].mxu0 %vm6693_vm13, %v7979_v28  ;;  %8392 = vmatmul.mubr.msk.bf16.vlgmr.msra.gmra.mrb[172].mxu1 %vm6693_vm13, %v7982_v57 }
0x10ea   :  { %8396 = vmatpush3.bf16.msra.mxu0 %v7041_v21  ;;  %8402 = vmatpush3.bf16.msra.mxu1 %v7098_v49 }
0x10eb   :  { %8397 = vmatprep.mubr.msk.bf16.mxu0 %vm8662_vm4, %v8661_v52  ;;  %8407 = vmatprep.subr.bf16.mxu0 %v8661_v52 }
0x10ec   :  { %8403 = vmatprep.mubr.msk.bf16.mxu1 %vm8662_vm4, %v8661_v52  ;;  %8427 = vmatprep.subr.bf16.mxu1 %v8675_v38 }
0x10f1   :  { %8398 = vmatmul.mubr.msk.bf16.vlgmr.msra.gmra.mrb[184].mxu0 %vm6693_vm13, %v7985_v20  ;;  %8404 = vmatmul.mubr.msk.bf16.vlgmr.msra.gmra.mrb[176].mxu1 %vm6693_vm13, %v7988_v27  ;;  %v7208_v27 = vpop.permute.xlu0 %7207 }
0x10f2   :  { %8408 = vmatpush3.bf16.msra.mxu0 %v7155_v58  ;;  %8409 = vmatprep.mubr.msk.bf16.mxu0 %vm8662_vm4, %v8661_v52 }
0x10f3   :  { %8419 = vmatprep.mubr.msk.f32.mxu1 %vm8662_vm4, %v8661_v52  ;;  %8429 = vmatpush3.bf16.msra.mxu1 %v8428_v13 }
0x10f4   :  { %8417 = vmatprep.subr.mxu1 %v8661_v52 }
0x10f5   :  { %v7304_v31 = vpop.permute.xlu0 %7303  ;;  %v7299_v38 = vpop.permute.xlu1 %7298 }
0x10f7   :  { %8418 = vmatpush3.msk.msra.mxu1 %vm6697_vm12, %v7214_v46 }
0x10f9   :  { %8410 = vmatmul.mubr.msk.bf16.vlgmr.msra.gmra.mrb[188].mxu0 %vm6693_vm13, %v7991_v54 }
0x11ac   :  { %v6735_v59 = vpop.f32.mrb[172].mxu0  ;;  %v6792_v22 = vpop.f32.mrb[164].mxu1 }
0x11ad   :  { %v6746_v18 = vmul.f32 %v10719_v23, %v6735_v59  ;;  %v8363_v14 = vpop.f32.mrb[173].mxu0  ;;  %v6803_v2 = vmul.f32 %v10724_v29, %v6792_v22  ;;  %v8369_v32 = vpop.f32.mrb[165].mxu1 }
0x11ae   :  { %v6738_v10 = vpop.f32.mrb[174].mxu0  ;;  %v6795_v37 = vpop.f32.mrb[166].mxu1 }
0x11af   :  { %v6804_v25 = vadd.f32 %v6803_v2, %v6746_v18  ;;  %v8364_v42 = vpop.f32.mrb[175].mxu0  ;;  %v8370_v24 = vpop.f32.mrb[167].mxu1 }
0x11b4   :  { %v6849_v52 = vpop.f32.mrb[176].mxu0  ;;  %v6906_v30 = vpop.f32.mrb[168].mxu1 }
0x11b5   :  { %v6860_v15 = vmul.f32 %v10731_v36, %v6849_v52  ;;  %v8375_v6 = vpop.f32.mrb[177].mxu0  ;;  %v6917_v63 = vmul.f32 %v10736_v53, %v6906_v30  ;;  %v8381_v50 = vpop.f32.mrb[169].mxu1 }
0x11b6   :  { %v6852_v33 = vpop.f32.mrb[178].mxu0  ;;  %v6909_v3 = vpop.f32.mrb[170].mxu1 }
0x11b7   :  { %v6861_v23 = vadd.f32 %v6860_v15, %v6804_v25  ;;  %v8376_v11 = vpop.f32.mrb[179].mxu0  ;;  %v8382_v5 = vpop.f32.mrb[171].mxu1 }
0x11b9   :  { %v6918_v29 = vadd.f32 %v6917_v63, %v6861_v23 }
0x11bc   :  { %v6963_v43 = vpop.f32.mrb[180].mxu0  ;;  %v7020_v61 = vpop.f32.mrb[172].mxu1 }
0x11bd   :  { %v6974_v44 = vmul.f32 %v10743_v1, %v6963_v43  ;;  %v8387_v47 = vpop.f32.mrb[181].mxu0  ;;  %v7031_v0 = vmul.f32 %v10748_v7, %v7020_v61  ;;  %v8393_v60 = vpop.f32.mrb[173].mxu1 }
0x11be   :  { %v6966_v41 = vpop.f32.mrb[182].mxu0  ;;  %v7023_v36 = vpop.f32.mrb[174].mxu1 }
0x11bf   :  { %v6975_v16 = vadd.f32 %v6974_v44, %v6918_v29  ;;  %v8388_v4 = vpop.f32.mrb[183].mxu0  ;;  %v8394_v53 = vpop.f32.mrb[175].mxu1 }
0x11c1   :  { %v7032_v51 = vadd.f32 %v7031_v0, %v6975_v16 }
0x11c4   :  { %v7077_v45 = vpop.f32.mrb[184].mxu0  ;;  %v7134_v9 = vpop.f32.mrb[176].mxu1 }
0x11c5   :  { %v7088_v19 = vmul.f32 %v10755_v62, %v7077_v45  ;;  %v8399_v48 = vpop.f32.mrb[185].mxu0  ;;  %v7145_v35 = vmul.f32 %v10760_v17, %v7134_v9  ;;  %v8405_v34 = vpop.f32.mrb[177].mxu1  ;;  %v7292_v17 = vld [vmem:[%s10925_s15] sm:$0xff] }
0x11c6   :  { %v7080_v26 = vpop.f32.mrb[186].mxu0  ;;  %v7137_v1 = vpop.f32.mrb[178].mxu1 }
0x11c7   :  { %v7089_v39 = vadd.f32 %v7088_v19, %v7032_v51  ;;  %v8400_v55 = vpop.f32.mrb[187].mxu0  ;;  %v8406_v7 = vpop.f32.mrb[179].mxu1 }
0x11c9   :  { %v7146_v40 = vadd.f32 %v7145_v35, %v7089_v39 }
0x11cc   :  { %v7191_v28 = vpop.f32.mrb[188].mxu0 }
0x11cd   :  { %v7202_v57 = vmul.f32 %v10767_v12, %v7191_v28  ;;  %v8411_v49 = vpop.f32.mrb[189].mxu0  ;;  %v7293_v12 = vld [vmem:[%s10925_s15 + $0x8] sm:$0x3] }
0x11ce   :  { %v7194_v21 = vpop.f32.mrb[190].mxu0 }
0x11cf   :  { %v7203_v8 = vadd.f32 %v7202_v57, %v7146_v40  ;;  %v8412_v20 = vpop.f32.mrb[191].mxu0 }
0x11d1   :  { %v7210_v58 = vadd.f32 %v7208_v27, %v7203_v8 }
0x11d3   :  { %v7211_v62 = vmax.f32 %v7210_v58, 0.0 }
0x11d5   :  { %8420 = vmatmul.mubr.msk.f32.vlgmr.msra.gmra.mrb[180].mxu1 %vm7215_vm15, %v7211_v62 }
0x11d6   :  { %8424 = vmatprep.mubr.msk.f32.mxu1 %vm2099_vm14, %v7292_v17 }
0x12a8   :  { %v7288_v54 = vpop.f32.mrb[180].mxu1 }
0x12a9   :  { %v8421_v56 = vpop.f32.mrb[181].mxu1  ;;  %8422 = vmatprep.subr.mxu1 %v7288_v54 }
0x12aa   :  { %8423 = vmatpush3.msra.mxu1 %v7288_v54 }
0x12ab   :  { %8425 = vmatmul.mubr.msk.f32.vlgmr.msra.gmra.mrb[182].mxu1 %vm2099_vm14, %v7293_v12 }
0x137e   :  { %v8426_v13 = vpop.f32.mrb[182].mxu1 }
0x137f   :  { %v7384_v46 = vadd.f32 %v8426_v13, %v7304_v31  ;;  %v7378_v59 = vpop.f32.mrb[183].mxu1 }
0x1380   :  { %v7379_v22 = vadd.f32 %v7378_v59, %v7299_v38 }
0x1381   :  { %v7389_v18 = vsel %vm7388_vm5, %v7384_v46, -inf }
0x1382   :  { %v7387_v14 = vsel %vm5199_vm0, %v7379_v22, -inf }
0x1383   :  { %v7390_v2 = vmax.f32 %v7387_v14, %v7389_v18 }
0x1385   :  { %v7391_v32 = vrot.slane %v7390_v2, 4 }
0x1387   :  { %v7392_v10 = vmax.f32 %v7390_v2, %v7391_v32 }
0x1389   :  { %v7393_v37 = vrot.slane %v7392_v10, 2 }
0x138b   :  { %v7394_v25 = vmax.f32 %v7392_v10, %v7393_v37 }
0x138d   :  { %v7395_v42 = vrot.slane %v7394_v25, 1 }
0x138f   :  { %v7396_v24 = vmax.f32 %v7394_v25, %v7395_v42 }
0x1391   :  { %v7397_v52 = vsub.f32 %v7379_v22, %v7396_v24  ;;  %v7398_v30 = vsub.f32 %v7384_v46, %v7396_v24 }
0x1393   :  { %v7399_v15 = vmul.f32 1.442695, %v7397_v52  ;;  %v7401_v6 = vmul.f32 1.442695, %v7398_v30 }
0x1395   :  { %8641 = vpow2.f32 %v7399_v15 }
0x1396   :  { %8643 = vpow2.f32 %v7401_v6 }
0x139f   :  { %v8642_v63 = vpop.eup %8641 }
0x13a0   :  { %v8644_v50 = vpop.eup %8643  ;;  %v7403_v33 = vsel %vm5199_vm0, %v8642_v63, 0.0 }
0x13a1   :  { %v7404_v3 = vsel %vm7388_vm5, %v8644_v50, 0.0 }
0x13a2   :  { %v7405_v23 = vadd.f32 %v7404_v3, %v7403_v33 }
0x13a4   :  { %v7406_v11 = vrot.slane %v7405_v23, 4 }
0x13a6   :  { %v7407_v5 = vadd.f32 %v7406_v11, %v7405_v23 }
0x13a8   :  { %v7408_v29 = vrot.slane %v7407_v5, 2 }
0x13aa   :  { %v7409_v43 = vadd.f32 %v7408_v29, %v7407_v5 }
0x13ac   :  { %v7410_v61 = vrot.slane %v7409_v43, 1 }
0x13ae   :  { %v7411_v44 = vadd.f32 %v7410_v61, %v7409_v43 }
0x13b0   :  { %8645 = vlog2.f32 %v7411_v44 }
0x13ba   :  { %v8646_v47 = vpop.eup %8645 }
0x13bb   :  { %v7413_v0 = vmul.f32 0.6931472, %v8646_v47 }
0x13bd   :  { %v7414_v60 = vadd.f32 %v7413_v0, %v7396_v24 }
0x13bf   :  { %v7415_v41 = vsub.f32 %v7379_v22, %v7414_v60  ;;  %v7416_v36 = vsub.f32 %v7384_v46, %v7414_v60 }
0x13c1   :  { %7417 = vst.msk [vmem:[%s10926_s23] sm:$0xff] %vm5199_vm0, %v7415_v41 }
0x13c2   :  { %7418 = vst.msk [vmem:[%s10926_s23 + $0x8] sm:$0x3] %vm7388_vm5, %v7416_v36 }

</bundles_post_ra>
